<compile_context>
chip_gen: v5e
topology: v5e:2x2
jax: 0.10.0
libtpu: 0.0.40
codegen_flags: <defaults>
</compile_context>

<pallas_src>
from functools import partial

import jax
import jax.numpy as jnp
from jax import lax
from jax.experimental import pallas as pl
from jax.experimental.pallas import tpu as pltpu


def _mbconv_kernel(
    xf_ref,       # (R, C_in)  f32   zero-padded, row-flattened input image (R=(H+2)*W+2)
    w_exp_ref,    # (9*C_in, hidden)  bf16   expand conv weights (BN scale folded)
    exp_b_ref,    # (1, hidden)       f32
    w_dw_ref,     # (9, hidden)       f32    depthwise per-tap weights (BN scale folded)
    dw_b_ref,     # (1, hidden)       f32
    se_w1_ref,    # (reduced, hidden) f32    (transposed SE reduce weights)
    se_b1_ref,    # (reduced, 1)      f32
    se_w2_ref,    # (reduced, hidden) f32
    se_b2_ref,    # (1, hidden)       f32
    w_pw_ref,     # (hidden, C_out)   bf16   pointwise weights (BN scale folded)
    pw_b_ref,     # (1, C_out)        f32
    out_ref,      # (H*W, C_out)
    patches_ref,  # scratch VMEM (H*W, 9*C_in) f32
    zpad_ref,     # scratch VMEM (R, hidden)   f32
    *, H, W, C_in, hidden, use_residual):
    f32 = jnp.float32
    bf16 = jnp.bfloat16
    HW = H * W
    R = (H + 2) * W + 2
    base = W + 1                       # flat-padded row index of pixel (0, 0)
    taps = [(dy, dx) for dy in (-1, 0, 1) for dx in (-1, 0, 1)]

    # Hoisted dx-boundary masks on the flattened pixel index p = h*W + w
    # (shared by the expand-conv patch build and the depthwise stage).
    w_idx = lax.broadcasted_iota(jnp.int32, (HW, 1), 0) % W
    mask_l = (w_idx >= 1).astype(f32)          # valid when reading neighbor w-1
    mask_r = (w_idx <= W - 2).astype(f32)      # valid when reading neighbor w+1

    def dx_mask(v, dx):
        if dx == -1:
            return v * mask_l
        if dx == 1:
            return v * mask_r
        return v

    # --- 1) expand conv: build (H*W, 9*C_in) patch matrix in VMEM, one bf16 MXU dot
    for t, (dy, dx) in enumerate(taps):
        start = base + dy * W + dx                     # static offset in [0, 2*W+2]
        v = xf_ref[start:start + HW, :]                # (HW, C_in)
        patches_ref[:, t * C_in:(t + 1) * C_in] = dx_mask(v, dx)
    y = jnp.dot(patches_ref[...].astype(bf16), w_exp_ref[...],
                preferred_element_type=f32)            # (HW, hidden) f32 accum
    y = y + exp_b_ref[...]                             # folded BN (eval): bias only
    y = y * jax.nn.sigmoid(y)                          # SiLU (f32 VPU/EUP)

    # --- 2) depthwise 3x3 via zero-padded VMEM scratch + static row-slices (no rolls)
    zpad_ref[0:base, :] = jnp.zeros((base, hidden), f32)
    zpad_ref[base:base + HW, :] = y
    zpad_ref[base + HW:R, :] = jnp.zeros((R - base - HW, hidden), f32)
    acc = jnp.zeros((HW, hidden), f32)
    for t, (dy, dx) in enumerate(taps):
        start = base + dy * W + dx
        v = dx_mask(zpad_ref[start:start + HW, :], dx)
        acc = acc + v * w_dw_ref[t:t + 1, :]
    z = acc + dw_b_ref[...]
    z = z * jax.nn.sigmoid(z)                          # SiLU

    # --- 3) squeeze-excitation (vectorized: one lane-reduce + one sublane-reduce)
    pooled = jnp.sum(z, axis=0, keepdims=True) * (1.0 / HW)            # (1, hidden)
    s = jnp.sum(pooled * se_w1_ref[...], axis=1, keepdims=True)        # (reduced, 1)
    s = s + se_b1_ref[...]
    s = s * jax.nn.sigmoid(s)                                          # SiLU
    gate = jnp.sum(s * se_w2_ref[...], axis=0, keepdims=True) + se_b2_ref[...]
    gate = jax.nn.sigmoid(gate)                                        # (1, hidden)
    z = z * gate

    # --- 4) pointwise 1x1 conv: (HW, hidden) x (hidden, C_out) bf16 dot, f32 accum
    o = jnp.dot(z.astype(bf16), w_pw_ref[...], preferred_element_type=f32)
    o = o + pw_b_ref[...]                                              # folded BN bias

    # --- 5) residual (stochastic_depth == identity in eval mode)
    if use_residual:
        o = o + xf_ref[base:base + HW, :]
    out_ref[...] = o.astype(out_ref.dtype)


def _prepare_kernel_params(p):
    """Fold BN (eval) scales into conv weights; bf16 for MXU operands, f32 otherwise."""
    f32, bf16 = jnp.float32, jnp.bfloat16
    w_exp = p["w_exp"].astype(f32)                     # (3, 3, C_in, hidden)
    C_in, hidden = w_exp.shape[2], w_exp.shape[3]
    C_out = p["w_pw"].shape[1]
    reduced = p["se_w1"].shape[1]
    kp = dict(
        w_exp=(w_exp * p["exp_s"][0]).reshape(9 * C_in, hidden).astype(bf16),
        exp_b=p["exp_b"].astype(f32),                                   # (1, hidden)
        w_dw=(p["w_dw"].astype(f32) * p["dw_s"][0]).reshape(9, hidden),
        dw_b=p["dw_b"].astype(f32),                                     # (1, hidden)
        se_w1=p["se_w1"].T.astype(f32),                                 # (reduced, hidden)
        se_b1=p["se_b1"][0].astype(f32).reshape(reduced, 1),            # (reduced, 1)
        se_w2=p["se_w2"].astype(f32),                                   # (reduced, hidden)
        se_b2=p["se_b2"].astype(f32),                                   # (1, hidden)
        w_pw=(p["w_pw"].astype(f32) * p["pw_s"][0]).astype(bf16),       # (hidden, C_out)
        pw_b=p["pw_b"].astype(f32),                                     # (1, C_out)
    )
    return kp, C_in, hidden, C_out, reduced


def inverted_residual_block(x_nhwc, params, *, stride=1):
    """x_nhwc: (N, H, W, C_in). Supports kernel_size=3, stride=1, padding=1 (eval mode)."""
    N, H, W, C_in = x_nhwc.shape
    assert stride == 1, "kernel implements kernel_size=3 / stride=1 / padding=1 only"
    kp, C_in_w, hidden, C_out, _reduced = _prepare_kernel_params(params)
    assert C_in_w == C_in and hidden != C_in, "expand_ratio == 1 path not implemented"
    use_residual = (C_in == C_out) and (stride == 1)

    HW = H * W
    R = (H + 2) * W + 2
    # Zero-padded, row-flattened slab: xf[n, 1 + (h+1)*W + w, :] = x[n, h, w, :].
    # Only ~1.3x the raw activation bytes (no 9x im2col amplification in HBM).
    xf = jnp.pad(x_nhwc, ((0, 0), (1, 1), (0, 0), (0, 0))).reshape(N, (H + 2) * W, C_in)
    xf = jnp.pad(xf, ((0, 0), (1, 1), (0, 0)))                         # (N, R, C_in)

    kernel = partial(_mbconv_kernel, H=H, W=W, C_in=C_in, hidden=hidden,
                     use_residual=use_residual)

    def const_spec(shape):
        nd = len(shape)
        return pl.BlockSpec(shape, lambda n, _nd=nd: (0,) * _nd)

    in_specs = [
        pl.BlockSpec((None, R, C_in), lambda n: (n, 0, 0)),    # per-image activation slab
        const_spec(kp["w_exp"].shape),
        const_spec(kp["exp_b"].shape),
        const_spec(kp["w_dw"].shape),
        const_spec(kp["dw_b"].shape),
        const_spec(kp["se_w1"].shape),
        const_spec(kp["se_b1"].shape),
        const_spec(kp["se_w2"].shape),
        const_spec(kp["se_b2"].shape),
        const_spec(kp["w_pw"].shape),
        const_spec(kp["pw_b"].shape),
    ]
    out_spec = pl.BlockSpec((None, HW, C_out), lambda n: (n, 0, 0))

    out_flat = pl.pallas_call(
        kernel,
        out_shape=jax.ShapeDtypeStruct((N, HW, C_out), x_nhwc.dtype),
        grid_spec=pltpu.PrefetchScalarGridSpec(
            num_scalar_prefetch=0,
            grid=(N,),
            in_specs=in_specs,
            out_specs=out_spec,
            scratch_shapes=[pltpu.VMEM((HW, 9 * C_in), jnp.float32),   # patch matrix
                            pltpu.VMEM((R, hidden), jnp.float32)],     # padded dw input
        ),
        compiler_params=pltpu.CompilerParams(
            dimension_semantics=("parallel",)),
    )(xf, kp["w_exp"], kp["exp_b"], kp["w_dw"], kp["dw_b"],
      kp["se_w1"], kp["se_b1"], kp["se_w2"], kp["se_b2"],
      kp["w_pw"], kp["pw_b"])
    return out_flat.reshape(N, H, W, C_out)


def make_params(key, C_in, C_out, expand_ratio, reduction=4):
    """Deterministic synthetic parameters; BatchNorms are pre-folded (eval mode)."""
    hidden = C_in * expand_ratio
    reduced = int(C_in / reduction)
    ks = jax.random.split(key, 16)
    eps = 1e-5

    def bn(k, c):
        k1, k2, k3, k4 = jax.random.split(k, 4)
        gamma = jax.random.uniform(k1, (c,), minval=0.5, maxval=1.5)
        beta = 0.1 * jax.random.normal(k2, (c,))
        mean = 0.1 * jax.random.normal(k3, (c,))
        var = jax.random.uniform(k4, (c,), minval=0.5, maxval=1.5)
        scale = gamma / jnp.sqrt(var + eps)
        bias = beta - mean * scale
        return (scale.reshape(1, c).astype(jnp.float32),
                bias.reshape(1, c).astype(jnp.float32))

    exp_s, exp_b = bn(ks[0], hidden)
    dw_s, dw_b = bn(ks[1], hidden)
    pw_s, pw_b = bn(ks[2], C_out)
    return dict(
        w_exp=0.1 * jax.random.normal(ks[3], (3, 3, C_in, hidden), jnp.float32),
        exp_s=exp_s, exp_b=exp_b,
        w_dw=0.1 * jax.random.normal(ks[4], (3, 3, hidden), jnp.float32),
        dw_s=dw_s, dw_b=dw_b,
        se_w1=0.1 * jax.random.normal(ks[5], (hidden, reduced), jnp.float32),
        se_b1=0.1 * jax.random.normal(ks[6], (1, reduced), jnp.float32),
        se_w2=0.1 * jax.random.normal(ks[7], (reduced, hidden), jnp.float32),
        se_b2=0.1 * jax.random.normal(ks[8], (1, hidden), jnp.float32),
        w_pw=0.1 * jax.random.normal(ks[9], (hidden, C_out), jnp.float32),
        pw_s=pw_s, pw_b=pw_b,
    )


def ref_forward(x, p):
    """Pure-JAX f32 reference (eval-mode InvertedResidualBlock) for verification."""
    dn = ("NHWC", "HWIO", "NHWC")
    y = lax.conv_general_dilated(x, p["w_exp"], (1, 1), "SAME", dimension_numbers=dn)
    y = y * p["exp_s"][0] + p["exp_b"][0]
    y = y * jax.nn.sigmoid(y)
    hidden = y.shape[-1]
    w_dw = p["w_dw"].reshape(3, 3, 1, hidden)
    z = lax.conv_general_dilated(y, w_dw, (1, 1), "SAME", dimension_numbers=dn,
                                 feature_group_count=hidden)
    z = z * p["dw_s"][0] + p["dw_b"][0]
    z = z * jax.nn.sigmoid(z)
    pooled = z.mean(axis=(1, 2), keepdims=True)
    s1 = jnp.einsum("nijc,cr->nijr", pooled, p["se_w1"]) + p["se_b1"][0]
    s1 = s1 * jax.nn.sigmoid(s1)
    s2 = jnp.einsum("nijr,rc->nijc", s1, p["se_w2"]) + p["se_b2"][0]
    z = z * jax.nn.sigmoid(s2)
    o = jnp.einsum("nhwc,cd->nhwd", z, p["w_pw"])
    o = o * p["pw_s"][0] + p["pw_b"][0]
    return o + x  # use_residual: C_in == C_out and stride == 1


if __name__ == "__main__":
    key = jax.random.PRNGKey(0)
    kx, kp = jax.random.split(key)

    # InvertedResidualBlock(in=8, out=8, kernel_size=3, stride=1, padding=1, expand_ratio=4)
    N, C_in, H, W = 2, 8, 16, 16
    C_out, expand_ratio = 8, 4

    x_nchw = jax.random.normal(kx, (N, C_in, H, W), jnp.float32)   # PyTorch NCHW input
    x_nhwc = jnp.transpose(x_nchw, (0, 2, 3, 1))                   # kernel layout NHWC

    params = make_params(kp, C_in, C_out, expand_ratio)

    out = inverted_residual_block(x_nhwc, params)
    out = jax.block_until_ready(out)

    ref = ref_forward(x_nhwc, params)
    err = float(jnp.max(jnp.abs(out - ref)))
    # bf16 MXU operands (f32 accumulation) -> loosened tolerance vs the f32 reference.
    assert jnp.allclose(out, ref, atol=3e-2, rtol=3e-2), f"max abs err {err}"

    print("KERNEL_OK")
</pallas_src>

<mosaic_0001>
module attributes {stable_mosaic.version = 11 : i64} {
  func.func @_mbconv_kernel(%arg0: i32, %arg1: memref<1x290x8xf32, #tpu.memory_space<vmem>>, %arg2: memref<72x32xbf16, #tpu.memory_space<vmem>>, %arg3: memref<1x32xf32, #tpu.memory_space<vmem>>, %arg4: memref<9x32xf32, #tpu.memory_space<vmem>>, %arg5: memref<1x32xf32, #tpu.memory_space<vmem>>, %arg6: memref<2x32xf32, #tpu.memory_space<vmem>>, %arg7: memref<2x1xf32, #tpu.memory_space<vmem>>, %arg8: memref<2x32xf32, #tpu.memory_space<vmem>>, %arg9: memref<1x32xf32, #tpu.memory_space<vmem>>, %arg10: memref<32x8xbf16, #tpu.memory_space<vmem>>, %arg11: memref<1x8xf32, #tpu.memory_space<vmem>>, %arg12: memref<1x256x8xf32, #tpu.memory_space<vmem>>, %arg13: memref<256x72xf32, #tpu.memory_space<vmem>>, %arg14: memref<290x32xf32, #tpu.memory_space<vmem>>) attributes {dimension_semantics = [#tpu.dimension_semantics<parallel>], iteration_bounds = array<i64: 2>, scalar_prefetch = 0 : i64, scratch_operands = 2 : i64, tpu.core_type = #tpu.core_type<tc>, window_params = [{transform_indices = @transform_0, window_bounds = array<i64: 1, 290, 8>}, {pipeline_mode = #tpu.pipeline_mode<synchronous>, transform_indices = @transform_1, window_bounds = array<i64: 72, 32>}, {pipeline_mode = #tpu.pipeline_mode<synchronous>, transform_indices = @transform_2, window_bounds = array<i64: 1, 32>}, {pipeline_mode = #tpu.pipeline_mode<synchronous>, transform_indices = @transform_3, window_bounds = array<i64: 9, 32>}, {pipeline_mode = #tpu.pipeline_mode<synchronous>, transform_indices = @transform_4, window_bounds = array<i64: 1, 32>}, {pipeline_mode = #tpu.pipeline_mode<synchronous>, transform_indices = @transform_5, window_bounds = array<i64: 2, 32>}, {pipeline_mode = #tpu.pipeline_mode<synchronous>, transform_indices = @transform_6, window_bounds = array<i64: 2, 1>}, {pipeline_mode = #tpu.pipeline_mode<synchronous>, transform_indices = @transform_7, window_bounds = array<i64: 2, 32>}, {pipeline_mode = #tpu.pipeline_mode<synchronous>, transform_indices = @transform_8, window_bounds = array<i64: 1, 32>}, {pipeline_mode = #tpu.pipeline_mode<synchronous>, transform_indices = @transform_9, window_bounds = array<i64: 32, 8>}, {pipeline_mode = #tpu.pipeline_mode<synchronous>, transform_indices = @transform_10, window_bounds = array<i64: 1, 8>}, {transform_indices = @transform_11, window_bounds = array<i64: 1, 256, 8>}]} {
    %0 = tpu.iota {dimensions = array<i32: 0>} : vector<256x1xi32>
    %c16_i32 = arith.constant 16 : i32
    %c0_i32 = arith.constant 0 : i32
    %1 = arith.cmpi eq, %c16_i32, %c0_i32 : i32
    %c1_i32 = arith.constant 1 : i32
    %2 = arith.select %1, %c1_i32, %c16_i32 : i32
    %3 = vector.broadcast %2 : i32 to vector<256x1xi32>
    %4 = arith.remsi %0, %3 : vector<256x1xi32>
    %c0_i32_0 = arith.constant 0 : i32
    %5 = vector.broadcast %c0_i32_0 : i32 to vector<256x1xi32>
    %6 = arith.cmpi ne, %4, %5 : vector<256x1xi32>
    %c0_i32_1 = arith.constant 0 : i32
    %7 = vector.broadcast %c0_i32_1 : i32 to vector<256x1xi32>
    %8 = arith.cmpi slt, %4, %7 : vector<256x1xi32>
    %c0_i32_2 = arith.constant 0 : i32
    %9 = arith.cmpi slt, %2, %c0_i32_2 : i32
    %10 = vector.broadcast %9 : i1 to vector<256x1xi1>
    %11 = vector.broadcast %10 : vector<256x1xi1> to vector<256x1xi1>
    %12 = arith.xori %8, %11 : vector<256x1xi1>
    %13 = arith.andi %12, %6 : vector<256x1xi1>
    %14 = vector.broadcast %2 : i32 to vector<256x1xi32>
    %15 = arith.addi %4, %14 : vector<256x1xi32>
    %16 = arith.select %13, %15, %4 : vector<256x1xi1>, vector<256x1xi32>
    %c1_i32_3 = arith.constant 1 : i32
    %17 = vector.broadcast %c1_i32_3 : i32 to vector<256x1xi32>
    %18 = arith.cmpi sge, %16, %17 : vector<256x1xi32>
    %19 = arith.extui %18 : vector<256x1xi1> to vector<256x1xi32>
    %20 = arith.sitofp %19 : vector<256x1xi32> to vector<256x1xf32>
    %c14_i32 = arith.constant 14 : i32
    %21 = vector.broadcast %c14_i32 : i32 to vector<256x1xi32>
    %22 = arith.cmpi sle, %16, %21 : vector<256x1xi32>
    %23 = arith.extui %22 : vector<256x1xi1> to vector<256x1xi32>
    %24 = arith.sitofp %23 : vector<256x1xi32> to vector<256x1xf32>
    %c0 = arith.constant 0 : index
    %c0_4 = arith.constant 0 : index
    %c0_5 = arith.constant 0 : index
    %25 = vector.load %arg1[%c0, %c0_4, %c0_5] : memref<1x290x8xf32, #tpu.memory_space<vmem>>, vector<1x256x8xf32>
    %26 = vector.shape_cast %25 : vector<1x256x8xf32> to vector<256x8xf32>
    %27 = vector.broadcast %20 : vector<256x1xf32> to vector<256x8xf32>
    %28 = arith.mulf %26, %27 : vector<256x8xf32>
    %c0_6 = arith.constant 0 : index
    %c0_7 = arith.constant 0 : index
    %29 = vector.load %arg13[%c0_6, %c0_7] : memref<256x72xf32, #tpu.memory_space<vmem>>, vector<256x8xf32>
    tpu.vector_store %arg13[%c0_6, %c0_7], %28 {strides = array<i32>} : memref<256x72xf32, #tpu.memory_space<vmem>>, vector<256x8xf32>,
    %c0_8 = arith.constant 0 : index
    %c1 = arith.constant 1 : index
    %c0_9 = arith.constant 0 : index
    %30 = vector.load %arg1[%c0_8, %c1, %c0_9] : memref<1x290x8xf32, #tpu.memory_space<vmem>>, vector<1x256x8xf32>
    %31 = vector.shape_cast %30 : vector<1x256x8xf32> to vector<256x8xf32>
    %c0_10 = arith.constant 0 : index
    %c8 = arith.constant 8 : index
    %32 = vector.load %arg13[%c0_10, %c8] : memref<256x72xf32, #tpu.memory_space<vmem>>, vector<256x8xf32>
    tpu.vector_store %arg13[%c0_10, %c8], %31 {strides = array<i32>} : memref<256x72xf32, #tpu.memory_space<vmem>>, vector<256x8xf32>,
    %c0_11 = arith.constant 0 : index
    %c2 = arith.constant 2 : index
    %c0_12 = arith.constant 0 : index
    %33 = vector.load %arg1[%c0_11, %c2, %c0_12] : memref<1x290x8xf32, #tpu.memory_space<vmem>>, vector<1x256x8xf32>
    %34 = vector.shape_cast %33 : vector<1x256x8xf32> to vector<256x8xf32>
    %35 = vector.broadcast %24 : vector<256x1xf32> to vector<256x8xf32>
    %36 = arith.mulf %34, %35 : vector<256x8xf32>
    %c0_13 = arith.constant 0 : index
    %c16 = arith.constant 16 : index
    %37 = vector.load %arg13[%c0_13, %c16] : memref<256x72xf32, #tpu.memory_space<vmem>>, vector<256x8xf32>
    tpu.vector_store %arg13[%c0_13, %c16], %36 {strides = array<i32>} : memref<256x72xf32, #tpu.memory_space<vmem>>, vector<256x8xf32>,
    %c0_14 = arith.constant 0 : index
    %c16_15 = arith.constant 16 : index
    %c0_16 = arith.constant 0 : index
    %38 = vector.load %arg1[%c0_14, %c16_15, %c0_16] : memref<1x290x8xf32, #tpu.memory_space<vmem>>, vector<1x256x8xf32>
    %39 = vector.shape_cast %38 : vector<1x256x8xf32> to vector<256x8xf32>
    %40 = vector.broadcast %20 : vector<256x1xf32> to vector<256x8xf32>
    %41 = arith.mulf %39, %40 : vector<256x8xf32>
    %c0_17 = arith.constant 0 : index
    %c24 = arith.constant 24 : index
    %42 = vector.load %arg13[%c0_17, %c24] : memref<256x72xf32, #tpu.memory_space<vmem>>, vector<256x8xf32>
    tpu.vector_store %arg13[%c0_17, %c24], %41 {strides = array<i32>} : memref<256x72xf32, #tpu.memory_space<vmem>>, vector<256x8xf32>,
    %c0_18 = arith.constant 0 : index
    %c17 = arith.constant 17 : index
    %c0_19 = arith.constant 0 : index
    %43 = vector.load %arg1[%c0_18, %c17, %c0_19] : memref<1x290x8xf32, #tpu.memory_space<vmem>>, vector<1x256x8xf32>
    %44 = vector.shape_cast %43 : vector<1x256x8xf32> to vector<256x8xf32>
    %c0_20 = arith.constant 0 : index
    %c32 = arith.constant 32 : index
    %45 = vector.load %arg13[%c0_20, %c32] : memref<256x72xf32, #tpu.memory_space<vmem>>, vector<256x8xf32>
    tpu.vector_store %arg13[%c0_20, %c32], %44 {strides = array<i32>} : memref<256x72xf32, #tpu.memory_space<vmem>>, vector<256x8xf32>,
    %c0_21 = arith.constant 0 : index
    %c18 = arith.constant 18 : index
    %c0_22 = arith.constant 0 : index
    %46 = vector.load %arg1[%c0_21, %c18, %c0_22] : memref<1x290x8xf32, #tpu.memory_space<vmem>>, vector<1x256x8xf32>
    %47 = vector.shape_cast %46 : vector<1x256x8xf32> to vector<256x8xf32>
    %48 = vector.broadcast %24 : vector<256x1xf32> to vector<256x8xf32>
    %49 = arith.mulf %47, %48 : vector<256x8xf32>
    %c0_23 = arith.constant 0 : index
    %c40 = arith.constant 40 : index
    %50 = vector.load %arg13[%c0_23, %c40] : memref<256x72xf32, #tpu.memory_space<vmem>>, vector<256x8xf32>
    tpu.vector_store %arg13[%c0_23, %c40], %49 {strides = array<i32>} : memref<256x72xf32, #tpu.memory_space<vmem>>, vector<256x8xf32>,
    %c0_24 = arith.constant 0 : index
    %c32_25 = arith.constant 32 : index
    %c0_26 = arith.constant 0 : index
    %51 = vector.load %arg1[%c0_24, %c32_25, %c0_26] : memref<1x290x8xf32, #tpu.memory_space<vmem>>, vector<1x256x8xf32>
    %52 = vector.shape_cast %51 : vector<1x256x8xf32> to vector<256x8xf32>
    %53 = vector.broadcast %20 : vector<256x1xf32> to vector<256x8xf32>
    %54 = arith.mulf %52, %53 : vector<256x8xf32>
    %c0_27 = arith.constant 0 : index
    %c48 = arith.constant 48 : index
    %55 = vector.load %arg13[%c0_27, %c48] : memref<256x72xf32, #tpu.memory_space<vmem>>, vector<256x8xf32>
    tpu.vector_store %arg13[%c0_27, %c48], %54 {strides = array<i32>} : memref<256x72xf32, #tpu.memory_space<vmem>>, vector<256x8xf32>,
    %c0_28 = arith.constant 0 : index
    %c33 = arith.constant 33 : index
    %c0_29 = arith.constant 0 : index
    %56 = vector.load %arg1[%c0_28, %c33, %c0_29] : memref<1x290x8xf32, #tpu.memory_space<vmem>>, vector<1x256x8xf32>
    %57 = vector.shape_cast %56 : vector<1x256x8xf32> to vector<256x8xf32>
    %c0_30 = arith.constant 0 : index
    %c56 = arith.constant 56 : index
    %58 = vector.load %arg13[%c0_30, %c56] : memref<256x72xf32, #tpu.memory_space<vmem>>, vector<256x8xf32>
    tpu.vector_store %arg13[%c0_30, %c56], %57 {strides = array<i32>} : memref<256x72xf32, #tpu.memory_space<vmem>>, vector<256x8xf32>,
    %c0_31 = arith.constant 0 : index
    %c34 = arith.constant 34 : index
    %c0_32 = arith.constant 0 : index
    %59 = vector.load %arg1[%c0_31, %c34, %c0_32] : memref<1x290x8xf32, #tpu.memory_space<vmem>>, vector<1x256x8xf32>
    %60 = vector.shape_cast %59 : vector<1x256x8xf32> to vector<256x8xf32>
    %61 = vector.broadcast %24 : vector<256x1xf32> to vector<256x8xf32>
    %62 = arith.mulf %60, %61 : vector<256x8xf32>
    %c0_33 = arith.constant 0 : index
    %c64 = arith.constant 64 : index
    %63 = vector.load %arg13[%c0_33, %c64] : memref<256x72xf32, #tpu.memory_space<vmem>>, vector<256x8xf32>
    tpu.vector_store %arg13[%c0_33, %c64], %62 {strides = array<i32>} : memref<256x72xf32, #tpu.memory_space<vmem>>, vector<256x8xf32>,
    %c0_34 = arith.constant 0 : index
    %c0_35 = arith.constant 0 : index
    %64 = vector.load %arg13[%c0_34, %c0_35] : memref<256x72xf32, #tpu.memory_space<vmem>>, vector<256x72xf32>
    %65 = arith.truncf %64 : vector<256x72xf32> to vector<256x72xbf16>
    %c0_36 = arith.constant 0 : index
    %c0_37 = arith.constant 0 : index
    %66 = vector.load %arg2[%c0_36, %c0_37] : memref<72x32xbf16, #tpu.memory_space<vmem>>, vector<72x32xbf16>
    %cst = arith.constant dense<0.000000e+00> : vector<256x32xf32>
    %67 = tpu.matmul %65, %66, %cst {dimension_numbers = #tpu.dot_dimension_numbers<[1], [0], [0], [1], [0, 0, 1, 1], [], []>} : vector<256x72xbf16>, vector<72x32xbf16>, vector<256x32xf32> -> vector<256x32xf32>
    %c0_38 = arith.constant 0 : index
    %c0_39 = arith.constant 0 : index
    %68 = vector.load %arg3[%c0_38, %c0_39] : memref<1x32xf32, #tpu.memory_space<vmem>>, vector<1x32xf32>
    %69 = vector.broadcast %68 : vector<1x32xf32> to vector<256x32xf32>
    %70 = arith.addf %67, %69 : vector<256x32xf32>
    %71 = arith.negf %70 : vector<256x32xf32>
    %72 = math.exp %71 : vector<256x32xf32>
    %cst_40 = arith.constant 1.000000e+00 : f32
    %73 = vector.broadcast %cst_40 : f32 to vector<256x32xf32>
    %74 = arith.addf %73, %72 : vector<256x32xf32>
    %75 = arith.divf %73, %74 : vector<256x32xf32>
    %76 = arith.mulf %70, %75 : vector<256x32xf32>
    %cst_41 = arith.constant 0.000000e+00 : f32
    %77 = vector.broadcast %cst_41 : f32 to vector<17x32xf32>
    %c0_42 = arith.constant 0 : index
    %c0_43 = arith.constant 0 : index
    %78 = vector.load %arg14[%c0_42, %c0_43] : memref<290x32xf32, #tpu.memory_space<vmem>>, vector<17x32xf32>
    tpu.vector_store %arg14[%c0_42, %c0_43], %77 {strides = array<i32>} : memref<290x32xf32, #tpu.memory_space<vmem>>, vector<17x32xf32>,
    %c17_44 = arith.constant 17 : index
    %c0_45 = arith.constant 0 : index
    %79 = vector.load %arg14[%c17_44, %c0_45] : memref<290x32xf32, #tpu.memory_space<vmem>>, vector<256x32xf32>
    tpu.vector_store %arg14[%c17_44, %c0_45], %76 {strides = array<i32>} : memref<290x32xf32, #tpu.memory_space<vmem>>, vector<256x32xf32>,
    %cst_46 = arith.constant 0.000000e+00 : f32
    %80 = vector.broadcast %cst_46 : f32 to vector<17x32xf32>
    %c273 = arith.constant 273 : index
    %c0_47 = arith.constant 0 : index
    %81 = vector.load %arg14[%c273, %c0_47] : memref<290x32xf32, #tpu.memory_space<vmem>>, vector<17x32xf32>
    tpu.vector_store %arg14[%c273, %c0_47], %80 {strides = array<i32>} : memref<290x32xf32, #tpu.memory_space<vmem>>, vector<17x32xf32>,
    %cst_48 = arith.constant 0.000000e+00 : f32
    %82 = vector.broadcast %cst_48 : f32 to vector<256x32xf32>
    %c0_49 = arith.constant 0 : index
    %c0_50 = arith.constant 0 : index
    %83 = vector.load %arg14[%c0_49, %c0_50] : memref<290x32xf32, #tpu.memory_space<vmem>>, vector<256x32xf32>
    %84 = vector.broadcast %20 : vector<256x1xf32> to vector<256x32xf32>
    %85 = arith.mulf %83, %84 : vector<256x32xf32>
    %c0_51 = arith.constant 0 : index
    %c0_52 = arith.constant 0 : index
    %86 = vector.load %arg4[%c0_51, %c0_52] : memref<9x32xf32, #tpu.memory_space<vmem>>, vector<1x32xf32>
    %87 = vector.broadcast %86 : vector<1x32xf32> to vector<256x32xf32>
    %88 = arith.mulf %85, %87 : vector<256x32xf32>
    %89 = arith.addf %82, %88 : vector<256x32xf32>
    %c1_53 = arith.constant 1 : index
    %c0_54 = arith.constant 0 : index
    %90 = vector.load %arg14[%c1_53, %c0_54] : memref<290x32xf32, #tpu.memory_space<vmem>>, vector<256x32xf32>
    %c1_55 = arith.constant 1 : index
    %c0_56 = arith.constant 0 : index
    %91 = vector.load %arg4[%c1_55, %c0_56] : memref<9x32xf32, #tpu.memory_space<vmem>>, vector<1x32xf32>
    %92 = vector.broadcast %91 : vector<1x32xf32> to vector<256x32xf32>
    %93 = arith.mulf %90, %92 : vector<256x32xf32>
    %94 = arith.addf %89, %93 : vector<256x32xf32>
    %c2_57 = arith.constant 2 : index
    %c0_58 = arith.constant 0 : index
    %95 = vector.load %arg14[%c2_57, %c0_58] : memref<290x32xf32, #tpu.memory_space<vmem>>, vector<256x32xf32>
    %96 = vector.broadcast %24 : vector<256x1xf32> to vector<256x32xf32>
    %97 = arith.mulf %95, %96 : vector<256x32xf32>
    %c2_59 = arith.constant 2 : index
    %c0_60 = arith.constant 0 : index
    %98 = vector.load %arg4[%c2_59, %c0_60] : memref<9x32xf32, #tpu.memory_space<vmem>>, vector<1x32xf32>
    %99 = vector.broadcast %98 : vector<1x32xf32> to vector<256x32xf32>
    %100 = arith.mulf %97, %99 : vector<256x32xf32>
    %101 = arith.addf %94, %100 : vector<256x32xf32>
    %c16_61 = arith.constant 16 : index
    %c0_62 = arith.constant 0 : index
    %102 = vector.load %arg14[%c16_61, %c0_62] : memref<290x32xf32, #tpu.memory_space<vmem>>, vector<256x32xf32>
    %103 = vector.broadcast %20 : vector<256x1xf32> to vector<256x32xf32>
    %104 = arith.mulf %102, %103 : vector<256x32xf32>
    %c3 = arith.constant 3 : index
    %c0_63 = arith.constant 0 : index
    %105 = vector.load %arg4[%c3, %c0_63] : memref<9x32xf32, #tpu.memory_space<vmem>>, vector<1x32xf32>
    %106 = vector.broadcast %105 : vector<1x32xf32> to vector<256x32xf32>
    %107 = arith.mulf %104, %106 : vector<256x32xf32>
    %108 = arith.addf %101, %107 : vector<256x32xf32>
    %c17_64 = arith.constant 17 : index
    %c0_65 = arith.constant 0 : index
    %109 = vector.load %arg14[%c17_64, %c0_65] : memref<290x32xf32, #tpu.memory_space<vmem>>, vector<256x32xf32>
    %c4 = arith.constant 4 : index
    %c0_66 = arith.constant 0 : index
    %110 = vector.load %arg4[%c4, %c0_66] : memref<9x32xf32, #tpu.memory_space<vmem>>, vector<1x32xf32>
    %111 = vector.broadcast %110 : vector<1x32xf32> to vector<256x32xf32>
    %112 = arith.mulf %109, %111 : vector<256x32xf32>
    %113 = arith.addf %108, %112 : vector<256x32xf32>
    %c18_67 = arith.constant 18 : index
    %c0_68 = arith.constant 0 : index
    %114 = vector.load %arg14[%c18_67, %c0_68] : memref<290x32xf32, #tpu.memory_space<vmem>>, vector<256x32xf32>
    %115 = vector.broadcast %24 : vector<256x1xf32> to vector<256x32xf32>
    %116 = arith.mulf %114, %115 : vector<256x32xf32>
    %c5 = arith.constant 5 : index
    %c0_69 = arith.constant 0 : index
    %117 = vector.load %arg4[%c5, %c0_69] : memref<9x32xf32, #tpu.memory_space<vmem>>, vector<1x32xf32>
    %118 = vector.broadcast %117 : vector<1x32xf32> to vector<256x32xf32>
    %119 = arith.mulf %116, %118 : vector<256x32xf32>
    %120 = arith.addf %113, %119 : vector<256x32xf32>
    %c32_70 = arith.constant 32 : index
    %c0_71 = arith.constant 0 : index
    %121 = vector.load %arg14[%c32_70, %c0_71] : memref<290x32xf32, #tpu.memory_space<vmem>>, vector<256x32xf32>
    %122 = vector.broadcast %20 : vector<256x1xf32> to vector<256x32xf32>
    %123 = arith.mulf %121, %122 : vector<256x32xf32>
    %c6 = arith.constant 6 : index
    %c0_72 = arith.constant 0 : index
    %124 = vector.load %arg4[%c6, %c0_72] : memref<9x32xf32, #tpu.memory_space<vmem>>, vector<1x32xf32>
    %125 = vector.broadcast %124 : vector<1x32xf32> to vector<256x32xf32>
    %126 = arith.mulf %123, %125 : vector<256x32xf32>
    %127 = arith.addf %120, %126 : vector<256x32xf32>
    %c33_73 = arith.constant 33 : index
    %c0_74 = arith.constant 0 : index
    %128 = vector.load %arg14[%c33_73, %c0_74] : memref<290x32xf32, #tpu.memory_space<vmem>>, vector<256x32xf32>
    %c7 = arith.constant 7 : index
    %c0_75 = arith.constant 0 : index
    %129 = vector.load %arg4[%c7, %c0_75] : memref<9x32xf32, #tpu.memory_space<vmem>>, vector<1x32xf32>
    %130 = vector.broadcast %129 : vector<1x32xf32> to vector<256x32xf32>
    %131 = arith.mulf %128, %130 : vector<256x32xf32>
    %132 = arith.addf %127, %131 : vector<256x32xf32>
    %c34_76 = arith.constant 34 : index
    %c0_77 = arith.constant 0 : index
    %133 = vector.load %arg14[%c34_76, %c0_77] : memref<290x32xf32, #tpu.memory_space<vmem>>, vector<256x32xf32>
    %134 = vector.broadcast %24 : vector<256x1xf32> to vector<256x32xf32>
    %135 = arith.mulf %133, %134 : vector<256x32xf32>
    %c8_78 = arith.constant 8 : index
    %c0_79 = arith.constant 0 : index
    %136 = vector.load %arg4[%c8_78, %c0_79] : memref<9x32xf32, #tpu.memory_space<vmem>>, vector<1x32xf32>
    %137 = vector.broadcast %136 : vector<1x32xf32> to vector<256x32xf32>
    %138 = arith.mulf %135, %137 : vector<256x32xf32>
    %139 = arith.addf %132, %138 : vector<256x32xf32>
    %c0_80 = arith.constant 0 : index
    %c0_81 = arith.constant 0 : index
    %140 = vector.load %arg5[%c0_80, %c0_81] : memref<1x32xf32, #tpu.memory_space<vmem>>, vector<1x32xf32>
    %141 = vector.broadcast %140 : vector<1x32xf32> to vector<256x32xf32>
    %142 = arith.addf %139, %141 : vector<256x32xf32>
    %143 = arith.negf %142 : vector<256x32xf32>
    %144 = math.exp %143 : vector<256x32xf32>
    %cst_82 = arith.constant 1.000000e+00 : f32
    %145 = vector.broadcast %cst_82 : f32 to vector<256x32xf32>
    %146 = arith.addf %145, %144 : vector<256x32xf32>
    %147 = arith.divf %145, %146 : vector<256x32xf32>
    %148 = arith.mulf %142, %147 : vector<256x32xf32>
    %cst_83 = arith.constant dense<0.000000e+00> : vector<32xf32>
    %149 = vector.multi_reduction <add>, %148, %cst_83 [0] : vector<256x32xf32> to vector<32xf32>
    %150 = vector.shape_cast %149 : vector<32xf32> to vector<1x32xf32>
    %cst_84 = arith.constant 3.906250e-03 : f32
    %151 = vector.broadcast %cst_84 : f32 to vector<1x32xf32>
    %152 = arith.mulf %150, %151 : vector<1x32xf32>
    %c0_85 = arith.constant 0 : index
    %c0_86 = arith.constant 0 : index
    %153 = vector.load %arg6[%c0_85, %c0_86] : memref<2x32xf32, #tpu.memory_space<vmem>>, vector<2x32xf32>
    %154 = vector.broadcast %152 : vector<1x32xf32> to vector<2x32xf32>
    %155 = arith.mulf %154, %153 : vector<2x32xf32>
    %cst_87 = arith.constant dense<0.000000e+00> : vector<2xf32>
    %156 = vector.multi_reduction <add>, %155, %cst_87 [1] : vector<2x32xf32> to vector<2xf32>
    %157 = vector.shape_cast %156 : vector<2xf32> to vector<2x1xf32>
    %c0_88 = arith.constant 0 : index
    %c0_89 = arith.constant 0 : index
    %158 = vector.load %arg7[%c0_88, %c0_89] : memref<2x1xf32, #tpu.memory_space<vmem>>, vector<2x1xf32>
    %159 = arith.addf %157, %158 : vector<2x1xf32>
    %160 = arith.negf %159 : vector<2x1xf32>
    %161 = math.exp %160 : vector<2x1xf32>
    %cst_90 = arith.constant 1.000000e+00 : f32
    %162 = vector.broadcast %cst_90 : f32 to vector<2x1xf32>
    %163 = arith.addf %162, %161 : vector<2x1xf32>
    %164 = arith.divf %162, %163 : vector<2x1xf32>
    %165 = arith.mulf %159, %164 : vector<2x1xf32>
    %c0_91 = arith.constant 0 : index
    %c0_92 = arith.constant 0 : index
    %166 = vector.load %arg8[%c0_91, %c0_92] : memref<2x32xf32, #tpu.memory_space<vmem>>, vector<2x32xf32>
    %167 = vector.broadcast %165 : vector<2x1xf32> to vector<2x32xf32>
    %168 = arith.mulf %167, %166 : vector<2x32xf32>
    %cst_93 = arith.constant dense<0.000000e+00> : vector<32xf32>
    %169 = vector.multi_reduction <add>, %168, %cst_93 [0] : vector<2x32xf32> to vector<32xf32>
    %170 = vector.shape_cast %169 : vector<32xf32> to vector<1x32xf32>
    %c0_94 = arith.constant 0 : index
    %c0_95 = arith.constant 0 : index
    %171 = vector.load %arg9[%c0_94, %c0_95] : memref<1x32xf32, #tpu.memory_space<vmem>>, vector<1x32xf32>
    %172 = arith.addf %170, %171 : vector<1x32xf32>
    %173 = arith.negf %172 : vector<1x32xf32>
    %174 = math.exp %173 : vector<1x32xf32>
    %cst_96 = arith.constant 1.000000e+00 : f32
    %175 = vector.broadcast %cst_96 : f32 to vector<1x32xf32>
    %176 = arith.addf %175, %174 : vector<1x32xf32>
    %177 = arith.divf %175, %176 : vector<1x32xf32>
    %178 = vector.broadcast %177 : vector<1x32xf32> to vector<256x32xf32>
    %179 = arith.mulf %148, %178 : vector<256x32xf32>
    %180 = arith.truncf %179 : vector<256x32xf32> to vector<256x32xbf16>
    %c0_97 = arith.constant 0 : index
    %c0_98 = arith.constant 0 : index
    %181 = vector.load %arg10[%c0_97, %c0_98] : memref<32x8xbf16, #tpu.memory_space<vmem>>, vector<32x8xbf16>
    %cst_99 = arith.constant dense<0.000000e+00> : vector<256x8xf32>
    %182 = tpu.matmul %180, %181, %cst_99 {dimension_numbers = #tpu.dot_dimension_numbers<[1], [0], [0], [1], [0, 0, 1, 1], [], []>} : vector<256x32xbf16>, vector<32x8xbf16>, vector<256x8xf32> -> vector<256x8xf32>
    %c0_100 = arith.constant 0 : index
    %c0_101 = arith.constant 0 : index
    %183 = vector.load %arg11[%c0_100, %c0_101] : memref<1x8xf32, #tpu.memory_space<vmem>>, vector<1x8xf32>
    %184 = vector.broadcast %183 : vector<1x8xf32> to vector<256x8xf32>
    %185 = arith.addf %182, %184 : vector<256x8xf32>
    %c0_102 = arith.constant 0 : index
    %c17_103 = arith.constant 17 : index
    %c0_104 = arith.constant 0 : index
    %186 = vector.load %arg1[%c0_102, %c17_103, %c0_104] : memref<1x290x8xf32, #tpu.memory_space<vmem>>, vector<1x256x8xf32>
    %187 = vector.shape_cast %186 : vector<1x256x8xf32> to vector<256x8xf32>
    %188 = arith.addf %185, %187 : vector<256x8xf32>
    %c0_105 = arith.constant 0 : index
    %c0_106 = arith.constant 0 : index
    %c0_107 = arith.constant 0 : index
    %189 = vector.load %arg12[%c0_105, %c0_106, %c0_107] : memref<1x256x8xf32, #tpu.memory_space<vmem>>, vector<1x256x8xf32>
    %190 = vector.shape_cast %189 : vector<1x256x8xf32> to vector<256x8xf32>
    %191 = vector.shape_cast %188 : vector<256x8xf32> to vector<1x256x8xf32>
    tpu.vector_store %arg12[%c0_105, %c0_106, %c0_107], %191 {strides = array<i32>} : memref<1x256x8xf32, #tpu.memory_space<vmem>>, vector<1x256x8xf32>,
    return
  }
  func.func @transform_0(%arg0: i32) -> (i32, i32, i32) {
    %c0_i32 = arith.constant 0 : i32
    %c0_i32_0 = arith.constant 0 : i32
    %c0_i32_1 = arith.constant 0 : i32
    return %arg0, %c0_i32, %c0_i32_0 : i32, i32, i32
  }
  func.func @transform_1(%arg0: i32) -> (i32, i32) {
    %c0_i32 = arith.constant 0 : i32
    %c0_i32_0 = arith.constant 0 : i32
    %c0_i32_1 = arith.constant 0 : i32
    return %c0_i32, %c0_i32_0 : i32, i32
  }
  func.func @transform_2(%arg0: i32) -> (i32, i32) {
    %c0_i32 = arith.constant 0 : i32
    %c0_i32_0 = arith.constant 0 : i32
    %c0_i32_1 = arith.constant 0 : i32
    return %c0_i32, %c0_i32_0 : i32, i32
  }
  func.func @transform_3(%arg0: i32) -> (i32, i32) {
    %c0_i32 = arith.constant 0 : i32
    %c0_i32_0 = arith.constant 0 : i32
    %c0_i32_1 = arith.constant 0 : i32
    return %c0_i32, %c0_i32_0 : i32, i32
  }
  func.func @transform_4(%arg0: i32) -> (i32, i32) {
    %c0_i32 = arith.constant 0 : i32
    %c0_i32_0 = arith.constant 0 : i32
    %c0_i32_1 = arith.constant 0 : i32
    return %c0_i32, %c0_i32_0 : i32, i32
  }
  func.func @transform_5(%arg0: i32) -> (i32, i32) {
    %c0_i32 = arith.constant 0 : i32
    %c0_i32_0 = arith.constant 0 : i32
    %c0_i32_1 = arith.constant 0 : i32
    return %c0_i32, %c0_i32_0 : i32, i32
  }
  func.func @transform_6(%arg0: i32) -> (i32, i32) {
    %c0_i32 = arith.constant 0 : i32
    %c0_i32_0 = arith.constant 0 : i32
    %c0_i32_1 = arith.constant 0 : i32
    return %c0_i32, %c0_i32_0 : i32, i32
  }
  func.func @transform_7(%arg0: i32) -> (i32, i32) {
    %c0_i32 = arith.constant 0 : i32
    %c0_i32_0 = arith.constant 0 : i32
    %c0_i32_1 = arith.constant 0 : i32
    return %c0_i32, %c0_i32_0 : i32, i32
  }
  func.func @transform_8(%arg0: i32) -> (i32, i32) {
    %c0_i32 = arith.constant 0 : i32
    %c0_i32_0 = arith.constant 0 : i32
    %c0_i32_1 = arith.constant 0 : i32
    return %c0_i32, %c0_i32_0 : i32, i32
  }
  func.func @transform_9(%arg0: i32) -> (i32, i32) {
    %c0_i32 = arith.constant 0 : i32
    %c0_i32_0 = arith.constant 0 : i32
    %c0_i32_1 = arith.constant 0 : i32
    return %c0_i32, %c0_i32_0 : i32, i32
  }
  func.func @transform_10(%arg0: i32) -> (i32, i32) {
    %c0_i32 = arith.constant 0 : i32
    %c0_i32_0 = arith.constant 0 : i32
    %c0_i32_1 = arith.constant 0 : i32
    return %c0_i32, %c0_i32_0 : i32, i32
  }
  func.func @transform_11(%arg0: i32) -> (i32, i32, i32) {
    %c0_i32 = arith.constant 0 : i32
    %c0_i32_0 = arith.constant 0 : i32
    %c0_i32_1 = arith.constant 0 : i32
    return %arg0, %c0_i32, %c0_i32_0 : i32, i32, i32
  }
}

</mosaic_0001>

<bundles_post_ra>
// kernel: tpu_custom_call.1
= control target key start
LH: loop header
LB: loop body
LE: loop exit
PB: predicated region body
PF: predicated region fallthrough
CT: control target
= control target key end

     0   :  { %s6355_s17 = smov 0   ;;  %s10853_s0 = inlined_call_operand.vmem [shape: f32[2,290,8], index: 0, kind: input, shape index: {}]   ;;  %s10854_s1 = inlined_call_operand.vmem [shape: bf16[72,32], index: 1, kind: input, shape index: {}]   ;;  %s10855_s2 = inlined_call_operand.vmem [shape: f32[1,32], index: 2, kind: input, shape index: {}]   ;;  %s10856_s3 = inlined_call_operand.vmem [shape: f32[9,32], index: 3, kind: input, shape index: {}]   ;;  %s10857_s4 = inlined_call_operand.vmem [shape: f32[1,32], index: 4, kind: input, shape index: {}]   ;;  %s10858_s5 = inlined_call_operand.vmem [shape: f32[2,32], index: 5, kind: input, shape index: {}]   ;;  %s10859_s6 = inlined_call_operand.vmem [shape: f32[2,1], index: 6, kind: input, shape index: {}]   ;;  %s10860_s7 = inlined_call_operand.vmem [shape: f32[2,32], index: 7, kind: input, shape index: {}]   ;;  %s10861_s8 = inlined_call_operand.vmem [shape: f32[1,32], index: 8, kind: input, shape index: {}]   ;;  %s10862_s9 = inlined_call_operand.vmem [shape: bf16[32,8], index: 9, kind: input, shape index: {}]   ;;  %s10863_s10 = inlined_call_operand.vmem [shape: f32[1,8], index: 10, kind: input, shape index: {}]   ;;  %s10864_s11 = inlined_call_operand.vmem [shape: f32[2,256,8], index: 11, kind: output, shape index: {}]  }
   0x1 LB: > { %s5768_s18 = sadd.s32 4294967295, %s6283_s17   ;;  %p5772_p0 = scmp.ge.s32.totalorder %s6283_s17, 1  ;;  %s6283_s17 = sphi %s6355_s17, %s21_s17  }
   0x2   : > { %p337_p1 = scmp.lt.s32.totalorder %s6283_s17, 3 }
   0x4   : > { %p338_p2 = pnand %p5772_p0, %p337_p1 }
   0x6   : > { %341 = sbr.rel (%p338_p2) target bundleno = 1648 (0x670), region = 64 }
   0xb   : > { %p377_p3 = scmp.lt.s32.totalorder %s5768_s18, 1  ;;  %v388_v0 = vlaneseq  ;;  %vm3668_vm0 = vcmask 261120   ;;  %v10866_v1 = vmov 0.0   ;;  %s6286_s23 = smov 16   ;;  %vm1061_vm6 = vcmask 64512  }
   0xc   : > { %3669 = vst.msk [vmem:[#allocation3] sm:$0xff] %vm3668_vm0, %v10866_v1  ;;  %s6287_s24 = smov 8   ;;  %s6288_s25 = smov 24   ;;  %vm1254_vm8 = vcmask 130112   ;;  %vm2935_vm9 = vcmask 1043456   ;;  %vm10865_vm10 = vcmask 195712  }
   0xd   : > { %s11270_s18 = smov (!%p377_p3, %s5768_s18), 1  ;;  %v6367_v2 = vshrl.u32 %v388_v0, 7  ;;  %3670 = vst.msk [vmem:[#allocation3 + $0x8] sm:$0xff] %vm3668_vm0, %v10866_v1  ;;  %s6289_s26 = smov 32   ;;  %vm1704_vm11 = vcmask 261312   ;;  %vm1897_vm14 = vcmask 326912  }
   0xe   : > { %s5946_s19 = smul.u32 296, %s11270_s18  ;;  %3705 = vst.msk [vmem:[#allocation3 + $0x111] sm:$0xff] %vm3668_vm0, %v10866_v1  ;;  %s6290_s27 = smov 40   ;;  %vm2122_vm15 = vcmask 392512  }
   0xf   : > { %v390_v3 = vadd.s32 8, %v6367_v2  ;;  %3706 = vst.msk [vmem:[#allocation3 + $0x119] sm:$0xff] %vm3668_vm0, %v10866_v1  ;;  %v425_v5 = vand.u32 15, %v6367_v2  ;;  %s6291_s28 = smov 48   ;;  %v392_v26 = vadd.s32 24, %v6367_v2  ;;  %s6292_s29 = smov 56  }
  0x10   : > { %s6380_s22 = scalar_lea.vmem %s10853_s0, %s5946_s19  ;;  %v391_v28 = vadd.s32 16, %v6367_v2  ;;  %s6293_s30 = smov 64   ;;  %v406_v43 = vadd.s32 136, %v6367_v2  ;;  %v405_v48 = vadd.s32 128, %v6367_v2 }
  0x11   : > { %v432_v4 = vand.u32 15, %v390_v3  ;;  %v1287_v6 = vld [vmem:[%s6380_s22 + $0x2] sm:$0xff]  ;;  %v1288_v9 = vld [vmem:[%s6380_s22 + $0xa] sm:$0xff]  ;;  %v6392_v10 = vld [vmem:[%s6380_s22 + $0x18] sm:$0xff]  ;;  %vm805_vm2 = vcmp.ge.s32.totalorder %v425_v5, 1  ;;  %v446_v30 = vand.u32 15, %v392_v26 }
  0x12   : > { %v1094_v7 = vld [vmem:[%s6380_s22 + $0x1] sm:$0xff]  ;;  %1383 = vrot.lane.b32.xlu1 %v1287_v6, %s6286_s23  ;;  %1610 = vrot.lane.b32.xlu2 %v6392_v10, %s6288_s25  ;;  %v6397_v11 = vld [vmem:[%s6380_s22 + $0x10] sm:$0xff]  ;;  %v6402_v14 = vsel %vm805_vm2, 1.0, %v10866_v1  ;;  %v439_v32 = vand.u32 15, %v391_v28  ;;  %v544_v46 = vand.u32 15, %v406_v43  ;;  %v537_v52 = vand.u32 15, %v405_v48 }
  0x13   : > { %1158 = vrot.lane.b32.xlu0 %v1094_v7, %s6287_s24  ;;  %vm902_vm1 = vcmp.le.s32.totalorder %v432_v4, 14  ;;  %v1095_v13 = vld [vmem:[%s6380_s22 + $0x9] sm:$0xff]  ;;  %v1544_v15 = vmul.f32 %v6402_v14, %v6397_v11  ;;  %v1738_v16 = vld [vmem:[%s6380_s22 + $0x19] sm:$0xff]  ;;  %v1737_v17 = vld [vmem:[%s6380_s22 + $0x11] sm:$0xff]  ;;  %vm904_vm3 = vcmp.le.s32.totalorder %v446_v30, 14  ;;  %1065 = vst.msk [vmem:[#allocation2 + $0x18] sm:$0xff] %vm1061_vm6, %v6392_v10 }
  0x14   : > { %v6388_v8 = vsel %vm902_vm1, 1.0, %v10866_v1  ;;  %v1930_v18 = vld [vmem:[%s6380_s22 + $0x12] sm:$0xff]  ;;  %v6415_v19 = vld [vmem:[%s6380_s22 + $0x20] sm:$0xff]  ;;  %v6423_v23 = vld [vmem:[%s6380_s22 + $0x28] sm:$0xff]  ;;  %vm807_vm4 = vcmp.ge.s32.totalorder %v439_v32, 1  ;;  %v6454_v33 = vsel %vm904_vm3, 1.0, %v10866_v1 }
  0x15   : > { %v1320_v12 = vmul.f32 %v6388_v8, %v1288_v9  ;;  %v1931_v20 = vld [vmem:[%s6380_s22 + $0x1a] sm:$0xff]  ;;  %v2187_v21 = vmul.f32 %v6402_v14, %v6415_v19  ;;  %v6430_v24 = vld [vmem:[%s6380_s22 + $0x29] sm:$0xff]  ;;  %v6458_v34 = vsel %vm807_vm4, 1.0, %v10866_v1  ;;  %v6484_v40 = vld [vmem:[%s6380_s22 + $0x31] sm:$0xff]  ;;  %vm918_vm5 = vcmp.le.s32.totalorder %v544_v46, 14  ;;  %1067 = vst.msk [vmem:[#allocation2 + $0x28] sm:$0xff] %vm1061_vm6, %v6423_v23 }
  0x16   : > { %v1963_v22 = vmul.f32 %v6388_v8, %v1931_v20  ;;  %v6433_v25 = vld [vmem:[%s6380_s22 + $0x21] sm:$0xff]  ;;  %v6445_v29 = vld [vmem:[%s6380_s22 + $0x2a] sm:$0xff]  ;;  %v1322_v35 = vmul.f32 %v6454_v33, %v1931_v20  ;;  %v1546_v36 = vmul.f32 %v6458_v34, %v6415_v19  ;;  %v6487_v41 = vld [vmem:[%s6380_s22 + $0x38] sm:$0xff]  ;;  %v6517_v53 = vsel %vm918_vm5, 1.0, %v10866_v1 }
  0x17   : > { %v6437_v27 = vld [vmem:[%s6380_s22 + $0x22] sm:$0xff]  ;;  %v2606_v31 = vmul.f32 %v6388_v8, %v6445_v29  ;;  %v6473_v37 = vld [vmem:[%s6380_s22 + $0x30] sm:$0xff]  ;;  %v1965_v38 = vmul.f32 %v6454_v33, %v6445_v29  ;;  %v6490_v42 = vld [vmem:[%s6380_s22 + $0x39] sm:$0xff]  ;;  %10953 = vst [vmem:[#allocation4_spill] sm:$0xff] %v6517_v53  ;;  %vm821_vm7 = vcmp.ge.s32.totalorder %v537_v52, 1  ;;  %v1031_v43 = vmul.f32 %v6458_v34, %v6397_v11 }
  0x18   : > { %v2189_v39 = vmul.f32 %v6458_v34, %v6473_v37  ;;  %v6498_v44 = vld [vmem:[%s6380_s22 + $0x3a] sm:$0xff]  ;;  %v6505_v47 = vld [vmem:[%s6380_s22 + $0x32] sm:$0xff]  ;;  %v1304_v54 = vld [vmem:[%s6380_s22 + $0x8a] sm:$0xff]  ;;  %v6532_v59 = vsel %vm821_vm7, 1.0, %v10866_v1  ;;  %vm2347_vm1 = vcmask 458112   ;;  %vm10911_vm2 = vcmask 523712  }
  0x19   : > { %v2608_v45 = vmul.f32 %v6454_v33, %v6498_v44  ;;  %v1110_v49 = vld [vmem:[%s6380_s22 + $0x81] sm:$0xff]  ;;  %v1529_v55 = vld [vmem:[%s6380_s22 + $0x98] sm:$0xff]  ;;  %v1111_v57 = vld [vmem:[%s6380_s22 + $0x89] sm:$0xff]  ;;  %v1336_v58 = vmul.f32 %v6517_v53, %v1304_v54  ;;  %10954 = vst [vmem:[#allocation5_spill] sm:$0xff] %v6532_v59  ;;  %vm10910_vm3 = vcmask 589312   ;;  %vm2886_vm4 = vcmask 588800  }
  0x1a   : > { %1385 = vrot.lane.b32.xlu1 %v1320_v12, %s6286_s23  ;;  %1608 = vrot.lane.b32.xlu2 %v1544_v15, %s6288_s25  ;;  %v997_v50 = vld [vmem:[%s6380_s22] sm:$0xff]  ;;  %1081 = vst.msk [vmem:[#allocation2 + $0x98] sm:$0xff] %vm1061_vm6, %v1529_v55  ;;  %v6535_v60 = vld [vmem:[%s6380_s22 + $0x90] sm:$0xff] }
  0x1b   : > { %1160 = vrot.lane.b32.xlu0 %v1095_v13, %s6287_s24  ;;  %v1029_v51 = vmul.f32 %v6402_v14, %v997_v50  ;;  %v1303_v56 = vld [vmem:[%s6380_s22 + $0x82] sm:$0xff]  ;;  %v1560_v62 = vmul.f32 %v6532_v59, %v6535_v60  ;;  %v6543_v0 = vld [vmem:[%s6380_s22 + $0x91] sm:$0xff]  ;;  %v6550_v3 = vld [vmem:[%s6380_s22 + $0x9a] sm:$0xff]  ;;  %1064 = vst.msk [vmem:[#allocation2 + $0x10] sm:$0xff] %vm1061_vm6, %v1031_v43 }
  0x1c   : > { %v998_v61 = vld [vmem:[%s6380_s22 + $0x8] sm:$0xff]  ;;  %v6553_v5 = vld [vmem:[%s6380_s22 + $0x92] sm:$0xff]  ;;  %v1979_v7 = vmul.f32 %v6517_v53, %v6550_v3  ;;  %v6565_v9 = vld [vmem:[%s6380_s22 + $0xa0] sm:$0xff] }
  0x1d   : > { %1062 = vst.msk [vmem:[#allocation2] sm:$0xff] %vm1061_vm6, %v1029_v51  ;;  %v6556_v6 = vld [vmem:[%s6380_s22 + $0x99] sm:$0xff]  ;;  %v2203_v10 = vmul.f32 %v6532_v59, %v6565_v9  ;;  %v6573_v13 = vld [vmem:[%s6380_s22 + $0xa8] sm:$0xff]  ;;  %v5935_v32 = vld [vmem:[%s10854_s1 + $0x10] sm:$0xff] }
  0x1e   : > { %1063 = vst.msk [vmem:[#allocation2 + $0x8] sm:$0xff] %vm1061_vm6, %v998_v61  ;;  %v2854_v15 = vld [vmem:[%s10854_s1 + $0x20] sm:$0xf]  ;;  %v5936_v30 = vld [vmem:[%s10854_s1 + $0x18] sm:$0xff]  ;;  %v5934_v46 = vld [vmem:[%s10854_s1 + $0x8] sm:$0xff] }
  0x1f   : > { %v6587_v28 = vld [vmem:[%s6380_s22 + $0xa1] sm:$0xff] }
  0x20   : > { %v6621_v11 = vld [vmem:[%s6380_s22 + $0xa2] sm:$0xff] }
  0x22   : > { %1803 = vrot.lane.b32.xlu1 %v1738_v16, %s6289_s26  ;;  %2026 = vrot.lane.b32.xlu2 %v1930_v18, %s6290_s27 }
  0x23   : > { %1801 = vrot.lane.b32.xlu0 %v1737_v17, %s6289_s26 }
  0x2a   : > { %2251 = vrot.lane.b32.xlu1 %v2187_v21, %s6291_s28  ;;  %2253 = vrot.lane.b32.xlu2 %v6423_v23, %s6291_s28 }
  0x2b   : > { %2028 = vrot.lane.b32.xlu0 %v1963_v22, %s6290_s27 }
  0x32   : > { %2446 = vrot.lane.b32.xlu1 %v6430_v24, %s6292_s29  ;;  %2669 = vrot.lane.b32.xlu2 %v6437_v27, %s6293_s30 }
  0x33   : > { %2444 = vrot.lane.b32.xlu0 %v6433_v25, %s6292_s29 }
  0x3a   : > { %1162 = vrot.lane.b32.xlu1 %v1737_v17, %s6287_s24  ;;  %1164 = vrot.lane.b32.xlu2 %v1738_v16, %s6287_s24  ;;  %v394_v16 = vadd.s32 40, %v6367_v2  ;;  %v2876_v17 = vunpack.c.l.b16 %v2854_v15  ;;  %v6679_v15 = vld [vmem:[%s6380_s22 + $0x49] sm:$0xff] }
  0x3b   : > { %2671 = vrot.lane.b32.xlu0 %v2606_v31, %s6293_s30  ;;  %v6595_v31 = vld [vmem:[%s6380_s22 + $0xa9] sm:$0xff] }
  0x3c   : > { %v460_v22 = vand.u32 15, %v394_v16  ;;  %v6682_v16 = vld [vmem:[%s6380_s22 + $0x41] sm:$0xff] }
  0x3e   : > { %vm906_vm12 = vcmp.le.s32.totalorder %v460_v22, 14  ;;  %v6694_v22 = vld [vmem:[%s6380_s22 + $0x4a] sm:$0xff] }
  0x42   : > { %1389 = vrot.lane.b32.xlu1 %v1322_v35, %s6286_s23  ;;  %1612 = vrot.lane.b32.xlu2 %v1546_v36, %s6288_s25  ;;  %v6605_v35 = vsel %vm906_vm12, 1.0, %v10866_v1 }
  0x43   : > { %1387 = vrot.lane.b32.xlu0 %v1930_v18, %s6286_s23  ;;  %v2881_v18 = vpack.c.b16 %v2876_v17, %v2876_v17  ;;  %v408_v17 = vadd.s32 152, %v6367_v2 }
  0x4a   : > { %1805 = vrot.lane.b32.xlu1 %v6433_v25, %s6289_s26  ;;  %1807 = vrot.lane.b32.xlu2 %v6430_v24, %s6289_s26 }
  0x4b   : > { %1614 = vrot.lane.b32.xlu0 %v6423_v23, %s6288_s25  ;;  %v2937_v23 = vsel %vm2935_vm9, %v2881_v18, 0  ;;  %v6686_v18 = vld [vmem:[%s6380_s22 + $0x42] sm:$0xff] }
  0x4c   : > { %2942 = vmatpush.bf16.msra.mxu0 %v2937_v23  ;;  %5939 = vmatpush.bf16.msra.mxu2 %v2937_v23  ;;  %v407_v23 = vadd.s32 144, %v6367_v2 }
  0x50   : > { %2943 = vmatpush.bf16.msra.mxu0 %v5936_v30  ;;  %5940 = vmatpush.bf16.msra.mxu2 %v5936_v30 }
  0x52   : > { %2032 = vrot.lane.b32.xlu1 %v1965_v38, %s6290_s27  ;;  %2255 = vrot.lane.b32.xlu2 %v2189_v39, %s6291_s28 }
  0x53   : > { %2030 = vrot.lane.b32.xlu0 %v6437_v27, %s6290_s27 }
  0x54   : > { %2944 = vmatpush.bf16.msra.mxu0 %v5935_v32  ;;  %5941 = vmatpush.bf16.msra.mxu2 %v5935_v32 }
  0x58   : > { %2945 = vmatpush.bf16.msra.mxu0 %v5934_v46  ;;  %5942 = vmatpush.bf16.msra.mxu2 %v5934_v46 }
  0x5a   : > { %2448 = vrot.lane.b32.xlu1 %v6484_v40, %s6292_s29  ;;  %2450 = vrot.lane.b32.xlu2 %v6490_v42, %s6292_s29 }
  0x5b   : > { %2257 = vrot.lane.b32.xlu0 %v6487_v41, %s6291_s28 }
  0x62   : > { %2675 = vrot.lane.b32.xlu1 %v2608_v45, %s6293_s30  ;;  %1190 = vrot.lane.b32.xlu2 %v1110_v49, %s6287_s24  ;;  %v6633_v49 = vld [vmem:[%s6380_s22 + $0xaa] sm:$0xff] }
  0x63   : > { %2673 = vrot.lane.b32.xlu0 %v6505_v47, %s6293_s30  ;;  %v2622_v52 = vmul.f32 %v6517_v53, %v6633_v49 }
  0x6a   : > { %1415 = vrot.lane.b32.xlu1 %v1303_v56, %s6286_s23  ;;  %1417 = vrot.lane.b32.xlu2 %v1336_v58, %s6286_s23 }
  0x6b   : > { %1192 = vrot.lane.b32.xlu0 %v1111_v57, %s6287_s24  ;;  %v6658_v57 = vld [vmem:[%s6380_s22 + $0x40] sm:$0xff] }
  0x6c   : > { %v1611_v63 = vpop.permute.xlu2 %1610 }
  0x72   : > { %1642 = vrot.lane.b32.xlu1 %v1529_v55, %s6288_s25  ;;  %1833 = vrot.lane.b32.xlu2 %v6543_v0, %s6289_s26 }
  0x73   : > { %1640 = vrot.lane.b32.xlu0 %v1560_v62, %s6288_s25  ;;  %v1967_v62 = vmul.f32 %v6605_v35, %v6498_v44 }
  0x74   : > { %v1609_v4 = vpop.permute.xlu2 %1608 }
  0x7a   : > { %2058 = vrot.lane.b32.xlu1 %v6553_v5, %s6290_s27  ;;  %2060 = vrot.lane.b32.xlu2 %v1979_v7, %s6290_s27 }
  0x7b   : > { %1835 = vrot.lane.b32.xlu0 %v6556_v6, %s6289_s26 }
  0x7c   : > { %v6570_v12 = vpop.permute.xlu2 %2026 }
  0x82   : > { %2285 = vrot.lane.b32.xlu1 %v6573_v13, %s6291_s28  ;;  %1166 = vrot.lane.b32.xlu2 %v6433_v25, %s6287_s24  ;;  %v393_v25 = vadd.s32 32, %v6367_v2 }
  0x83   : > { %2283 = vrot.lane.b32.xlu0 %v2203_v10, %s6291_s28 }
  0x84   : > { %v1384_v20 = vpop.permute.xlu1 %1383  ;;  %v2254_v26 = vpop.permute.xlu2 %2253  ;;  %v453_v39 = vand.u32 15, %v393_v25  ;;  %v558_v25 = vand.u32 15, %v408_v17 }
  0x85   : > { %v1159_v21 = vpop.permute.xlu0 %1158 }
  0x86   : > { %1255 = vst.msk [vmem:[#allocation2] sm:$0xff] %vm1254_vm8, %v1159_v21  ;;  %vm809_vm13 = vcmp.ge.s32.totalorder %v453_v39, 1  ;;  %v2610_v39 = vmul.f32 %v6605_v35, %v6694_v22  ;;  %vm920_vm5 = vcmp.le.s32.totalorder %v558_v25, 14 }
  0x87   : > { %1480 = vst.msk [vmem:[#allocation2] sm:$0xff] %vm10865_vm10, %v1384_v20  ;;  %v6630_v48 = vsel %vm809_vm13, 1.0, %v10866_v1  ;;  %v1013_v20 = vld [vmem:[%s6380_s22 + $0x80] sm:$0xff] }
  0x88   : > { %1705 = vst.msk [vmem:[#allocation2] sm:$0xff] %vm1704_vm11, %v1609_v4  ;;  %v2191_v61 = vmul.f32 %v6630_v48, %v6658_v57  ;;  %v6670_v4 = vld [vmem:[%s6380_s22 + $0x48] sm:$0xff]  ;;  %v1045_v32 = vmul.f32 %v6532_v59, %v1013_v20 }
  0x8a   : > { %2476 = vrot.lane.b32.xlu1 %v6587_v28, %s6292_s29  ;;  %2478 = vrot.lane.b32.xlu2 %v6595_v31, %s6292_s29  ;;  %1078 = vst.msk [vmem:[#allocation2 + $0x80] sm:$0xff] %vm1061_vm6, %v1045_v32 }
  0x8b   : > { %1168 = vrot.lane.b32.xlu0 %v6430_v24, %s6287_s24  ;;  %v1324_v24 = vmul.f32 %v6605_v35, %v6445_v29  ;;  %v5933_v29 = vld [vmem:[%s10854_s1] sm:$0xff] }
  0x8c   : > { %v1386_v36 = vpop.permute.xlu1 %1385  ;;  %v2670_v45 = vpop.permute.xlu2 %2669  ;;  %2946 = vmatpush.bf16.msra.mxu0 %v5933_v29  ;;  %5943 = vmatpush.bf16.msra.mxu2 %v5933_v29 }
  0x8d   : > { %v1161_v38 = vpop.permute.xlu0 %1160 }
  0x8e   : > { %1256 = vst.msk [vmem:[#allocation2 + $0x8] sm:$0xff] %vm1254_vm8, %v1161_v38 }
  0x8f   : > { %1481 = vst.msk [vmem:[#allocation2 + $0x8] sm:$0xff] %vm10865_vm10, %v1386_v36 }
  0x90   : > { %1706 = vst.msk [vmem:[#allocation2 + $0x8] sm:$0xff] %vm1704_vm11, %v1611_v63 }
  0x92   : > { %1393 = vrot.lane.b32.xlu1 %v1324_v24, %s6286_s23  ;;  %2701 = vrot.lane.b32.xlu2 %v6621_v11, %s6293_s30  ;;  %v551_v24 = vand.u32 15, %v407_v23 }
  0x93   : > { %1391 = vrot.lane.b32.xlu0 %v6437_v27, %s6286_s23  ;;  %v1548_v27 = vmul.f32 %v6630_v48, %v6473_v37 }
  0x94   : > { %v1804_v50 = vpop.permute.xlu1 %1803  ;;  %v1165_v54 = vpop.permute.xlu2 %1164  ;;  %vm823_vm7 = vcmp.ge.s32.totalorder %v551_v24, 1  ;;  %v6800_v24 = vld [vmem:[%s6380_s22 + $0xb2] sm:$0xff] }
  0x95   : > { %v1802_v51 = vpop.permute.xlu0 %1801  ;;  %1899 = vst.msk [vmem:[#allocation2 + $0x8] sm:$0xff] %vm1897_vm14, %v1804_v50  ;;  %v6717_v50 = vsel %vm823_vm7, 1.0, %v10866_v1 }
  0x96   : > { %1898 = vst.msk [vmem:[#allocation2] sm:$0xff] %vm1897_vm14, %v1802_v51 }
  0x97   : > { %2123 = vst.msk [vmem:[#allocation2] sm:$0xff] %vm2122_vm15, %v6570_v12 }
  0x98   : > { %1258 = vst.msk [vmem:[#allocation2 + $0x18] sm:$0xff] %vm1254_vm8, %v1165_v54 }
  0x99   : > { %10956 = vst [vmem:[#allocation7_spill] sm:$0xff] %v6717_v50 }
  0x9a   : > { %1616 = vrot.lane.b32.xlu1 %v1548_v27, %s6288_s25  ;;  %1618 = vrot.lane.b32.xlu2 %v6487_v41, %s6288_s25  ;;  %v1014_v27 = vld [vmem:[%s6380_s22 + $0x88] sm:$0xff] }
  0x9b   : > { %2703 = vrot.lane.b32.xlu0 %v2622_v52, %s6293_s30  ;;  %v1562_v52 = vmul.f32 %v6717_v50, %v6565_v9  ;;  %1079 = vst.msk [vmem:[#allocation2 + $0x88] sm:$0xff] %vm1061_vm6, %v1014_v27 }
  0x9c   : > { %v2252_v55 = vpop.permute.xlu1 %2251  ;;  %v1613_v37 = vpop.permute.xlu2 %1612 }
  0x9d   : > { %v2029_v56 = vpop.permute.xlu0 %2028  ;;  %2348 = vst.msk [vmem:[#allocation2] sm:$0xff] %vm2347_vm1, %v2252_v55 }
  0x9e   : > { %2124 = vst.msk [vmem:[#allocation2 + $0x8] sm:$0xff] %vm2122_vm15, %v2029_v56 }
  0x9f   : > { %2349 = vst.msk [vmem:[#allocation2 + $0x8] sm:$0xff] %vm2347_vm1, %v2254_v26 }
  0xa2   : > { %1811 = vrot.lane.b32.xlu1 %v6490_v42, %s6289_s26  ;;  %2034 = vrot.lane.b32.xlu2 %v6505_v47, %s6290_s27 }
  0xa3   : > { %1809 = vrot.lane.b32.xlu0 %v6484_v40, %s6289_s26 }
  0xa4   : > { %v2447_v58 = vpop.permute.xlu1 %2446  ;;  %v1808_v63 = vpop.permute.xlu2 %1807 }
  0xa5   : > { %v2445_v41 = vpop.permute.xlu0 %2444  ;;  %2542 = vst.msk [vmem:[#allocation2 + $0x8] sm:$0xff] %vm10911_vm2, %v2447_v58  ;;  %v1033_v58 = vmul.f32 %v6630_v48, %v6415_v19 }
  0xa6   : > { %2541 = vst.msk [vmem:[#allocation2] sm:$0xff] %vm10911_vm2, %v2445_v41 }
  0xa7   : > { %2766 = vst.msk [vmem:[#allocation2] sm:$0xff] %vm10910_vm3, %v2670_v45  ;;  %v6711_v45 = vsel %vm920_vm5, 1.0, %v10866_v1 }
  0xa8   : > { %10955 = vst [vmem:[#allocation6_spill] sm:$0xff] %v6711_v45  ;;  %v1981_v56 = vmul.f32 %v6711_v45, %v6633_v49 }
  0xa9   : > { %1066 = vst.msk [vmem:[#allocation2 + $0x20] sm:$0xff] %vm1061_vm6, %v1033_v58 }
  0xaa   : > { %2259 = vrot.lane.b32.xlu1 %v2191_v61, %s6291_s28  ;;  %2261 = vrot.lane.b32.xlu2 %v6670_v4, %s6291_s28 }
  0xab   : > { %2036 = vrot.lane.b32.xlu0 %v1967_v62, %s6290_s27 }
  0xac   : > { %v1163_v7 = vpop.permute.xlu1 %1162  ;;  %v2256_v12 = vpop.permute.xlu2 %2255 }
  0xad   : > { %v2672_v10 = vpop.permute.xlu0 %2671  ;;  %1257 = vst.msk [vmem:[#allocation2 + $0x10] sm:$0xff] %vm1254_vm8, %v1163_v7  ;;  %v396_v7 = vadd.s32 56, %v6367_v2 }
  0xae   : > { %2767 = vst.msk [vmem:[#allocation2 + $0x8] sm:$0xff] %vm10910_vm3, %v2672_v10  ;;  %v2798_v21 = vld [vmem:[#allocation2] sm:$0xff] }
  0xaf   : > { %v474_v17 = vand.u32 15, %v396_v7  ;;  %v6859_v7 = vld [vmem:[%s6380_s22 + $0x59] sm:$0xff] }
  0xb1   : > { %vm908_vm9 = vcmp.le.s32.totalorder %v474_v17, 14 }
  0xb2   : > { %2454 = vrot.lane.b32.xlu1 %v6679_v15, %s6292_s29  ;;  %2677 = vrot.lane.b32.xlu2 %v6686_v18, %s6293_s30 }
  0xb3   : > { %2452 = vrot.lane.b32.xlu0 %v6682_v16, %s6292_s29 }
  0xb4   : > { %v1390_v26 = vpop.permute.xlu1 %1389  ;;  %v2451_v43 = vpop.permute.xlu2 %2450 }
  0xb5   : > { %v1388_v30 = vpop.permute.xlu0 %1387  ;;  %1483 = vst.msk [vmem:[#allocation2 + $0x18] sm:$0xff] %vm10865_vm10, %v1390_v26  ;;  %v2799_v36 = vld [vmem:[#allocation2 + $0x8] sm:$0xff]  ;;  %v6777_v26 = vld [vmem:[%s6380_s22 + $0xb1] sm:$0xff] }
  0xb6   : > { %1482 = vst.msk [vmem:[#allocation2 + $0x10] sm:$0xff] %vm10865_vm10, %v1388_v30  ;;  %v2830_v38 = vpack.c.bf16 %v2799_v36, %v2798_v21  ;;  %v6787_v30 = vsel %vm908_vm9, 1.0, %v10866_v1  ;;  %vm3671_vm9 = vcmask 253952  }
  0xb7   : > { %1707 = vst.msk [vmem:[#allocation2 + $0x10] sm:$0xff] %vm1704_vm11, %v1613_v37 }
  0xb8   : > { %5824 = vmatmul.msk.bf16.vlgmr.msra.gmra.mxu0 %vm2886_vm4, %v2830_v38  ;;  %10957 = vst [vmem:[#allocation8_spill] sm:$0xff] %v6787_v30  ;;  %v6793_v38 = vld [vmem:[%s6380_s22 + $0xba] sm:$0xff] }
  0xb9   : > { %3672 = vst.msk [vmem:[#allocation3 + $0x10] sm:$0x1] %vm3671_vm9, %v10866_v1 }
  0xba   : > { %1194 = vrot.lane.b32.xlu1 %v6543_v0, %s6287_s24  ;;  %1196 = vrot.lane.b32.xlu2 %v6556_v6, %s6287_s24  ;;  %v1338_v0 = vmul.f32 %v6711_v45, %v6550_v3  ;;  %3707 = vst.msk [vmem:[#allocation3 + $0x121] sm:$0x1] %vm3671_vm9, %v10866_v1 }
  0xbb   : > { %2679 = vrot.lane.b32.xlu0 %v2610_v39, %s6293_s30  ;;  %v1326_v39 = vmul.f32 %v6787_v30, %v6498_v44 }
  0xbc   : > { %v1806_v46 = vpop.permute.xlu1 %1805  ;;  %v1191_v51 = vpop.permute.xlu2 %1190 }
  0xbd   : > { %v1615_v29 = vpop.permute.xlu0 %1614  ;;  %1900 = vst.msk [vmem:[#allocation2 + $0x10] sm:$0xff] %vm1897_vm14, %v1806_v46  ;;  %v2624_v46 = vmul.f32 %v6711_v45, %v6793_v38 }
  0xbe   : > { %1708 = vst.msk [vmem:[#allocation2 + $0x18] sm:$0xff] %vm1704_vm11, %v1615_v29 }
  0xbf   : > { %1901 = vst.msk [vmem:[#allocation2 + $0x18] sm:$0xff] %vm1897_vm14, %v1808_v63  ;;  %v6761_v63 = vld [vmem:[%s6380_s22 + $0xb8] sm:$0xff] }
  0xc0   : > { %1271 = vst.msk [vmem:[#allocation2 + $0x80] sm:$0xff] %vm1254_vm8, %v1191_v51 }
  0xc2   : > { %1421 = vrot.lane.b32.xlu1 %v1338_v0, %s6286_s23  ;;  %1644 = vrot.lane.b32.xlu2 %v1562_v52, %s6288_s25 }
  0xc3   : > { %1419 = vrot.lane.b32.xlu0 %v6553_v5, %s6286_s23  ;;  %v6743_v5 = vld [vmem:[%s6380_s22 + $0xb0] sm:$0xff] }
  0xc4   : > { %v2033_v6 = vpop.permute.xlu1 %2032  ;;  %v1418_v3 = vpop.permute.xlu2 %1417 }
  0xc5   : > { %v2031_v54 = vpop.permute.xlu0 %2030  ;;  %2126 = vst.msk [vmem:[#allocation2 + $0x18] sm:$0xff] %vm2122_vm15, %v2033_v6  ;;  %v1969_v6 = vmul.f32 %v6787_v30, %v6694_v22 }
  0xc6   : > { %2125 = vst.msk [vmem:[#allocation2 + $0x10] sm:$0xff] %vm2122_vm15, %v2031_v54 }
  0xc7   : > { %2350 = vst.msk [vmem:[#allocation2 + $0x10] sm:$0xff] %vm2347_vm1, %v2256_v12 }
  0xca   : > { %1837 = vrot.lane.b32.xlu1 %v6587_v28, %s6289_s26  ;;  %1839 = vrot.lane.b32.xlu2 %v6595_v31, %s6289_s26 }
  0xcb   : > { %1646 = vrot.lane.b32.xlu0 %v6573_v13, %s6288_s25  ;;  %v2205_v13 = vmul.f32 %v6717_v50, %v6743_v5 }
  0xcc   : > { %v2449_v9 = vpop.permute.xlu1 %2448  ;;  %v1834_v37 = vpop.permute.xlu2 %1833 }
  0xcd   : > { %v2258_v55 = vpop.permute.xlu0 %2257  ;;  %2543 = vst.msk [vmem:[#allocation2 + $0x10] sm:$0xff] %vm10911_vm2, %v2449_v9 }
  0xce   : > { %2351 = vst.msk [vmem:[#allocation2 + $0x18] sm:$0xff] %vm2347_vm1, %v2258_v55 }
  0xcf   : > { %2544 = vst.msk [vmem:[#allocation2 + $0x18] sm:$0xff] %vm10911_vm2, %v2451_v43 }
  0xd2   : > { %2064 = vrot.lane.b32.xlu1 %v1981_v56, %s6290_s27  ;;  %2287 = vrot.lane.b32.xlu2 %v2205_v13, %s6291_s28  ;;  %v6839_v56 = vld [vmem:[%s6380_s22 + $0x58] sm:$0xff] }
  0xd3   : > { %2062 = vrot.lane.b32.xlu0 %v6621_v11, %s6290_s27 }
  0xd4   : > { %v2676_v41 = vpop.permute.xlu1 %2675  ;;  %v2061_v62 = vpop.permute.xlu2 %2060 }
  0xd5   : > { %v2674_v61 = vpop.permute.xlu0 %2673  ;;  %2769 = vst.msk [vmem:[#allocation2 + $0x18] sm:$0xff] %vm10910_vm3, %v2676_v41  ;;  %v6852_v41 = vld [vmem:[%s6380_s22 + $0x5a] sm:$0xff] }
  0xd6   : > { %2768 = vst.msk [vmem:[#allocation2 + $0x10] sm:$0xff] %vm10910_vm3, %v2674_v61 }
  0xda   : > { %1170 = vrot.lane.b32.xlu1 %v6484_v40, %s6287_s24  ;;  %1172 = vrot.lane.b32.xlu2 %v6490_v42, %s6287_s24  ;;  %v6774_v40 = vld [vmem:[%s6380_s22 + $0xb9] sm:$0xff]  ;;  %v395_v42 = vadd.s32 48, %v6367_v2 }
  0xdb   : > { %2289 = vrot.lane.b32.xlu0 %v6761_v63, %s6291_s28 }
  0xdc   : > { %v1416_v19 = vpop.permute.xlu1 %1415  ;;  %v2801_v12 = vld [vmem:[#allocation2 + $0x18] sm:$0xff]  ;;  %v1167_v23 = vpop.permute.xlu2 %1166  ;;  %v467_v36 = vand.u32 15, %v395_v42  ;;  %v1047_v42 = vmul.f32 %v6717_v50, %v6535_v60 }
  0xdd   : > { %v1193_v10 = vpop.permute.xlu0 %1192  ;;  %1496 = vst.msk [vmem:[#allocation2 + $0x80] sm:$0xff] %vm10865_vm10, %v1416_v19  ;;  %v2800_v20 = vld [vmem:[#allocation2 + $0x10] sm:$0xff]  ;;  %v409_v19 = vadd.s32 160, %v6367_v2 }
  0xde   : > { %1272 = vst.msk [vmem:[#allocation2 + $0x88] sm:$0xff] %vm1254_vm8, %v1193_v10  ;;  %v2831_v21 = vpack.c.bf16 %v2801_v12, %v2800_v20  ;;  %vm811_vm12 = vcmp.ge.s32.totalorder %v467_v36, 1  ;;  %v410_v10 = vadd.s32 168, %v6367_v2  ;;  %v2612_v12 = vmul.f32 %v6787_v30, %v6852_v41 }
  0xdf   : > { %1497 = vst.msk [vmem:[#allocation2 + $0x88] sm:$0xff] %vm10865_vm10, %v1418_v3 }
  0xe0   : > { %5825 = vmatmul.msk.bf16.gmra.mxu0 %vm2886_vm4, %v2831_v21  ;;  %1259 = vst.msk [vmem:[#allocation2 + $0x20] sm:$0xff] %vm1254_vm8, %v1167_v23  ;;  %v565_v21 = vand.u32 15, %v409_v19  ;;  %v572_v23 = vand.u32 15, %v410_v10 }
  0xe1   : > { %1080 = vst.msk [vmem:[#allocation2 + $0x90] sm:$0xff] %vm1061_vm6, %v1047_v42 }
  0xe2   : > { %2482 = vrot.lane.b32.xlu1 %v6774_v40, %s6292_s29  ;;  %1395 = vrot.lane.b32.xlu2 %v6505_v47, %s6286_s23  ;;  %v6808_v47 = vsel %vm811_vm12, 1.0, %v10866_v1  ;;  %vm825_vm13 = vcmp.ge.s32.totalorder %v565_v21, 1  ;;  %vm922_vm5 = vcmp.le.s32.totalorder %v572_v23, 14 }
  0xe3   : > { %2480 = vrot.lane.b32.xlu0 %v6777_v26, %s6292_s29  ;;  %v1550_v44 = vmul.f32 %v6808_v47, %v6658_v57  ;;  %v6881_v36 = vsel %vm825_vm13, 1.0, %v10866_v1  ;;  %v6884_v60 = vsel %vm922_vm5, 1.0, %v10866_v1 }
  0xe4   : > { %v1643_v25 = vpop.permute.xlu1 %1642  ;;  %v2479_v43 = vpop.permute.xlu2 %2478  ;;  %10958 = vst [vmem:[#allocation9_spill] sm:$0xff] %v6884_v60 }
  0xe5   : > { %v1641_v32 = vpop.permute.xlu0 %1640  ;;  %1722 = vst.msk [vmem:[#allocation2 + $0x88] sm:$0xff] %vm1704_vm11, %v1643_v25 }
  0xe6   : > { %1721 = vst.msk [vmem:[#allocation2 + $0x80] sm:$0xff] %vm1704_vm11, %v1641_v32 }
  0xe7   : > { %1914 = vst.msk [vmem:[#allocation2 + $0x80] sm:$0xff] %vm1897_vm14, %v1834_v37  ;;  %v6843_v37 = vld [vmem:[%s6380_s22 + $0x51] sm:$0xff] }
  0xea   : > { %2705 = vrot.lane.b32.xlu1 %v6800_v24, %s6293_s30  ;;  %2707 = vrot.lane.b32.xlu2 %v2624_v46, %s6293_s30 }
  0xeb   : > { %1397 = vrot.lane.b32.xlu0 %v1326_v39, %s6286_s23 }
  0xec   : > { %v2059_v29 = vpop.permute.xlu1 %2058  ;;  %v2702_v51 = vpop.permute.xlu2 %2701 }
  0xed   : > { %v1836_v0 = vpop.permute.xlu0 %1835  ;;  %2139 = vst.msk [vmem:[#allocation2 + $0x80] sm:$0xff] %vm2122_vm15, %v2059_v29  ;;  %v1340_v29 = vmul.f32 %v6884_v60, %v6633_v49 }
  0xee   : > { %1915 = vst.msk [vmem:[#allocation2 + $0x88] sm:$0xff] %vm1897_vm14, %v1836_v0 }
  0xef   : > { %2140 = vst.msk [vmem:[#allocation2 + $0x88] sm:$0xff] %vm2122_vm15, %v2061_v62  ;;  %v6856_v62 = vld [vmem:[%s6380_s22 + $0x52] sm:$0xff] }
  0xf2   : > { %1622 = vrot.lane.b32.xlu1 %v6670_v4, %s6288_s25  ;;  %1813 = vrot.lane.b32.xlu2 %v6682_v16, %s6289_s26  ;;  %v6831_v4 = vld [vmem:[%s6380_s22 + $0x50] sm:$0xff] }
  0xf3   : > { %1620 = vrot.lane.b32.xlu0 %v1550_v44, %s6288_s25  ;;  %v2193_v9 = vmul.f32 %v6808_v47, %v6831_v4 }
  0xf4   : > { %v2286_v27 = vpop.permute.xlu1 %2285  ;;  %v1619_v57 = vpop.permute.xlu2 %1618 }
  0xf5   : > { %v2284_v52 = vpop.permute.xlu0 %2283  ;;  %2365 = vst.msk [vmem:[#allocation2 + $0x88] sm:$0xff] %vm2347_vm1, %v2286_v27 }
  0xf6   : > { %2364 = vst.msk [vmem:[#allocation2 + $0x80] sm:$0xff] %vm2347_vm1, %v2284_v52  ;;  %v1983_v52 = vmul.f32 %v6884_v60, %v6793_v38 }
  0xf7   : > { %2558 = vst.msk [vmem:[#allocation2 + $0x88] sm:$0xff] %vm10911_vm2, %v2479_v43 }
  0xfa   : > { %2038 = vrot.lane.b32.xlu1 %v6686_v18, %s6290_s27  ;;  %2040 = vrot.lane.b32.xlu2 %v1969_v6, %s6290_s27  ;;  %v6921_v6 = vld [vmem:[%s6380_s22 + $0xc8] sm:$0xff] }
  0xfb   : > { %1815 = vrot.lane.b32.xlu0 %v6679_v15, %s6289_s26 }
  0xfc   : > { %v2477_v54 = vpop.permute.xlu1 %2476  ;;  %v2035_v55 = vpop.permute.xlu2 %2034 }
  0xfd   : > { %v1169_v3 = vpop.permute.xlu0 %1168  ;;  %2557 = vst.msk [vmem:[#allocation2 + $0x80] sm:$0xff] %vm10911_vm2, %v2477_v54 }
  0xfe   : > { %1260 = vst.msk [vmem:[#allocation2 + $0x28] sm:$0xff] %vm1254_vm8, %v1169_v3 }
  0xff   : > { %2782 = vst.msk [vmem:[#allocation2 + $0x80] sm:$0xff] %vm10910_vm3, %v2702_v51 }
 0x102   : > { %2265 = vrot.lane.b32.xlu1 %v6839_v56, %s6291_s28  ;;  %2456 = vrot.lane.b32.xlu2 %v6843_v37, %s6292_s29 }
 0x103   : > { %2263 = vrot.lane.b32.xlu0 %v2193_v9, %s6291_s28  ;;  %v398_v9 = vadd.s32 72, %v6367_v2 }
 0x104   : > { %v1394_v13 = vpop.permute.xlu1 %1393  ;;  %v2262_v61 = vpop.permute.xlu2 %2261 }
 0x105   : > { %v1392_v58 = vpop.permute.xlu0 %1391  ;;  %1485 = vst.msk [vmem:[#allocation2 + $0x28] sm:$0xff] %vm10865_vm10, %v1394_v13  ;;  %v488_v13 = vand.u32 15, %v398_v9 }
 0x106   : > { %1484 = vst.msk [vmem:[#allocation2 + $0x20] sm:$0xff] %vm10865_vm10, %v1392_v58  ;;  %v2814_v32 = vld [vmem:[#allocation2 + $0x80] sm:$0xff] }
 0x107   : > { %1710 = vst.msk [vmem:[#allocation2 + $0x28] sm:$0xff] %vm1704_vm11, %v1619_v57  ;;  %v6933_v58 = vld [vmem:[%s6380_s22 + $0xc1] sm:$0xff]  ;;  %vm910_vm7 = vcmp.le.s32.totalorder %v488_v13, 14 }
 0x108   : > { %v6950_v21 = vsel %vm910_vm7, 1.0, %v10866_v1 }
 0x109   : > { %10959 = vst [vmem:[#allocation10_spill] sm:$0xff] %v6950_v21 }
 0x10a   : > { %2681 = vrot.lane.b32.xlu1 %v6856_v62, %s6293_s30  ;;  %2683 = vrot.lane.b32.xlu2 %v2612_v12, %s6293_s30 }
 0x10b   : > { %2458 = vrot.lane.b32.xlu0 %v6859_v7, %s6292_s29 }
 0x10c   : > { %v1617_v17 = vpop.permute.xlu1 %1616  ;;  %v2678_v25 = vpop.permute.xlu2 %2677 }
 0x10d   : > { %v2704_v20 = vpop.permute.xlu0 %2703  ;;  %1709 = vst.msk [vmem:[#allocation2 + $0x20] sm:$0xff] %vm1704_vm11, %v1617_v17  ;;  %v397_v17 = vadd.s32 64, %v6367_v2 }
 0x10e   : > { %2783 = vst.msk [vmem:[#allocation2 + $0x88] sm:$0xff] %vm10910_vm3, %v2704_v20  ;;  %v1003_v20 = vld [vmem:[%s6380_s22 + $0x30] sm:$0xff] }
 0x112   : > { %1200 = vrot.lane.b32.xlu1 %v6595_v31, %s6287_s24  ;;  %1423 = vrot.lane.b32.xlu2 %v6621_v11, %s6286_s23 }
 0x113   : > { %1198 = vrot.lane.b32.xlu0 %v6587_v28, %s6287_s24  ;;  %v1564_v28 = vmul.f32 %v6881_v36, %v6743_v5  ;;  %v6909_v5 = vld [vmem:[%s6380_s22 + $0xc0] sm:$0xff] }
 0x114   : > { %v1812_v39 = vpop.permute.xlu1 %1811  ;;  %v1197_v0 = vpop.permute.xlu2 %1196 }
 0x115   : > { %v1810_v43 = vpop.permute.xlu0 %1809  ;;  %1903 = vst.msk [vmem:[#allocation2 + $0x28] sm:$0xff] %vm1897_vm14, %v1812_v39  ;;  %v2815_v46 = vld [vmem:[#allocation2 + $0x88] sm:$0xff] }
 0x116   : > { %1902 = vst.msk [vmem:[#allocation2 + $0x20] sm:$0xff] %vm1897_vm14, %v1810_v43  ;;  %v2838_v31 = vpack.c.bf16 %v2815_v46, %v2814_v32  ;;  %v481_v32 = vand.u32 15, %v397_v17  ;;  %v6958_v39 = vld [vmem:[%s6380_s22 + $0xc9] sm:$0xff]  ;;  %v1004_v43 = vld [vmem:[%s6380_s22 + $0x38] sm:$0xff] }
 0x117   : > { %2127 = vst.msk [vmem:[#allocation2 + $0x20] sm:$0xff] %vm2122_vm15, %v2035_v55 }
 0x118   : > { %5832 = vmatmul.msk.bf16.vlgmr.msra.gmra.mxu2 %vm2886_vm4, %v2838_v31  ;;  %1274 = vst.msk [vmem:[#allocation2 + $0x98] sm:$0xff] %vm1254_vm8, %v1197_v0  ;;  %v1035_v31 = vmul.f32 %v6808_v47, %v1003_v20  ;;  %vm813_vm12 = vcmp.ge.s32.totalorder %v481_v32, 1 }
 0x119   : > { %1069 = vst.msk [vmem:[#allocation2 + $0x38] sm:$0xff] %vm1061_vm6, %v1004_v43 }
 0x11a   : > { %1648 = vrot.lane.b32.xlu1 %v1564_v28, %s6288_s25  ;;  %1650 = vrot.lane.b32.xlu2 %v6761_v63, %s6288_s25  ;;  %v2207_v63 = vmul.f32 %v6881_v36, %v6909_v5  ;;  %v1328_v28 = vmul.f32 %v6950_v21, %v6694_v22  ;;  %1068 = vst.msk [vmem:[#allocation2 + $0x30] sm:$0xff] %vm1061_vm6, %v1035_v31 }
 0x11b   : > { %1425 = vrot.lane.b32.xlu0 %v1340_v29, %s6286_s23  ;;  %v6976_v29 = vld [vmem:[%s6380_s22 + $0xca] sm:$0xff] }
 0x11c   : > { %v2260_v11 = vpop.permute.xlu1 %2259  ;;  %v1645_v49 = vpop.permute.xlu2 %1644 }
 0x11d   : > { %v2037_v44 = vpop.permute.xlu0 %2036  ;;  %2352 = vst.msk [vmem:[#allocation2 + $0x20] sm:$0xff] %vm2347_vm1, %v2260_v11  ;;  %v6983_v11 = vsel %vm813_vm12, 1.0, %v10866_v1 }
 0x11e   : > { %2128 = vst.msk [vmem:[#allocation2 + $0x28] sm:$0xff] %vm2122_vm15, %v2037_v44 }
 0x11f   : > { %2353 = vst.msk [vmem:[#allocation2 + $0x28] sm:$0xff] %vm2347_vm1, %v2262_v61  ;;  %v6942_v61 = vld [vmem:[%s10855_s2] ss:$0 sm:$0xff] }
 0x120   : > { %10960 = vst [vmem:[#allocation11_spill] sm:$0xff] %v6983_v11 }
 0x122   : > { %1843 = vrot.lane.b32.xlu1 %v6774_v40, %s6289_s26  ;;  %2066 = vrot.lane.b32.xlu2 %v6800_v24, %s6290_s27 }
 0x123   : > { %1841 = vrot.lane.b32.xlu0 %v6777_v26, %s6289_s26 }
 0x124   : > { %v2455_v51 = vpop.permute.xlu1 %2454  ;;  %v1840_v57 = vpop.permute.xlu2 %1839 }
 0x125   : > { %v2453_v27 = vpop.permute.xlu0 %2452  ;;  %2546 = vst.msk [vmem:[#allocation2 + $0x28] sm:$0xff] %vm10911_vm2, %v2455_v51 }
 0x126   : > { %2545 = vst.msk [vmem:[#allocation2 + $0x20] sm:$0xff] %vm10911_vm2, %v2453_v27  ;;  %v6993_v27 = vld [vmem:[%s6380_s22 + $0xc2] sm:$0xff] }
 0x127   : > { %2770 = vst.msk [vmem:[#allocation2 + $0x20] sm:$0xff] %vm10910_vm3, %v2678_v25 }
 0x12a   : > { %2291 = vrot.lane.b32.xlu1 %v2207_v63, %s6291_s28  ;;  %2293 = vrot.lane.b32.xlu2 %v6921_v6, %s6291_s28 }
 0x12b   : > { %2068 = vrot.lane.b32.xlu0 %v1983_v52, %s6290_s27 }
 0x12c   : > { %v1195_v54 = vpop.permute.xlu1 %1194  ;;  %v6930_v55 = vpop.permute.xlu2 %2287 }
 0x12d   : > { %v2680_v3 = vpop.permute.xlu0 %2679  ;;  %1273 = vst.msk [vmem:[#allocation2 + $0x90] sm:$0xff] %vm1254_vm8, %v1195_v54  ;;  %v1552_v54 = vmul.f32 %v6983_v11, %v6831_v4 }
 0x12e   : > { %2771 = vst.msk [vmem:[#allocation2 + $0x28] sm:$0xff] %vm10910_vm3, %v2680_v3  ;;  %v2802_v19 = vld [vmem:[#allocation2 + $0x20] sm:$0xff] }
 0x132   : > { %1176 = vrot.lane.b32.xlu1 %v6679_v15, %s6287_s24  ;;  %2484 = vrot.lane.b32.xlu2 %v6933_v58, %s6292_s29 }
 0x133   : > { %1174 = vrot.lane.b32.xlu0 %v6682_v16, %s6287_s24 }
 0x134   : > { %v1422_v10 = vpop.permute.xlu1 %1421  ;;  %v1173_v25 = vpop.permute.xlu2 %1172 }
 0x135   : > { %v1420_v12 = vpop.permute.xlu0 %1419  ;;  %1499 = vst.msk [vmem:[#allocation2 + $0x98] sm:$0xff] %vm10865_vm10, %v1422_v10  ;;  %v2948_v15 = vpop.f32.mrf.mxu0  ;;  %v2803_v16 = vld [vmem:[#allocation2 + $0x28] sm:$0xff] }
 0x136   : > { %1498 = vst.msk [vmem:[#allocation2 + $0x90] sm:$0xff] %vm10865_vm10, %v1420_v12  ;;  %v6954_v23 = vadd.f32 %v6942_v61, %v2948_v15  ;;  %v2832_v42 = vpack.c.bf16 %v2803_v16, %v2802_v19 }
 0x137   : > { %1723 = vst.msk [vmem:[#allocation2 + $0x90] sm:$0xff] %vm1704_vm11, %v1645_v49  ;;  %v2626_v49 = vmul.f32 %v6884_v60, %v6976_v29 }
 0x138   : > { %v5840_v46 = vmul.f32 -1.442695, %v6954_v23  ;;  %5826 = vmatmul.msk.bf16.gmra.mxu0 %vm2886_vm4, %v2832_v42  ;;  %1262 = vst.msk [vmem:[#allocation2 + $0x38] sm:$0xff] %vm1254_vm8, %v1173_v25 }
 0x13a   : > { %5979 = vpow2.f32 %v5840_v46  ;;  %1399 = vrot.lane.b32.xlu1 %v6686_v18, %s6286_s23  ;;  %1401 = vrot.lane.b32.xlu2 %v1328_v28, %s6286_s23 }
 0x13b   : > { %2486 = vrot.lane.b32.xlu0 %v6958_v39, %s6292_s29 }
 0x13c   : > { %v1838_v0 = vpop.permute.xlu1 %1837  ;;  %v1396_v51 = vpop.permute.xlu2 %1395 }
 0x13d   : > { %v1647_v22 = vpop.permute.xlu0 %1646  ;;  %1916 = vst.msk [vmem:[#allocation2 + $0x90] sm:$0xff] %vm1897_vm14, %v1838_v0  ;;  %v2950_v18 = vpop.f32.mrf.mxu0 }
 0x13e   : > { %1724 = vst.msk [vmem:[#allocation2 + $0x98] sm:$0xff] %vm1704_vm11, %v1647_v22  ;;  %v6987_v44 = vadd.f32 %v6942_v61, %v2950_v18 }
 0x13f   : > { %1917 = vst.msk [vmem:[#allocation2 + $0x98] sm:$0xff] %vm1897_vm14, %v1840_v57 }
 0x140   : > { %v5980_v63 = vpop.eup %5979  ;;  %v5841_v52 = vmul.f32 -1.442695, %v6987_v44 }
 0x141   : > { %v3124_v3 = vadd.f32 1.0, %v5980_v63 }
 0x142   : > { %5981 = vpow2.f32 %v5841_v52  ;;  %2711 = vrot.lane.b32.xlu1 %v2626_v49, %s6293_s30  ;;  %1624 = vrot.lane.b32.xlu2 %v1552_v54, %s6288_s25 }
 0x143   : > { %2709 = vrot.lane.b32.xlu0 %v6993_v27, %s6293_s30  ;;  %5983 = vrcp.f32 %v3124_v3  ;;  %v3167_v20 = vand.u32 2147483648, %v3124_v3  ;;  %v3165_v25 = vand.u32 2147483647, %v3124_v3  ;;  %vm3161_vm5 = vweird.f32 %v3124_v3 }
 0x144   : > { %v2065_v9 = vpop.permute.xlu1 %2064  ;;  %v2708_v57 = vpop.permute.xlu2 %2707 }
 0x145   : > { %v2063_v13 = vpop.permute.xlu0 %2062  ;;  %2142 = vst.msk [vmem:[#allocation2 + $0x98] sm:$0xff] %vm2122_vm15, %v2065_v9  ;;  %v3168_v28 = vor.u32 1.1754944e-38, %v3167_v20  ;;  %vm3166_vm9 = vcmp.eq.f32.partialorder %v3165_v25, 8.507059e+37  ;;  %v7049_v20 = vld [vmem:[%s6380_s22 + $0x6a] sm:$0xff] }
 0x146   : > { %2141 = vst.msk [vmem:[#allocation2 + $0x90] sm:$0xff] %vm2122_vm15, %v2063_v13 }
 0x147   : > { %2366 = vst.msk [vmem:[#allocation2 + $0x90] sm:$0xff] %vm2347_vm1, %v6930_v55  ;;  %v7014_v55 = vld [vmem:[%s6380_s22 + $0x60] sm:$0xff] }
 0x148   : > { %v5982_v4 = vpop.eup %5981  ;;  %v2195_v46 = vmul.f32 %v6983_v11, %v7014_v55 }
 0x149   : > { %v5984_v19 = vpop.eup %5983  ;;  %v3125_v10 = vadd.f32 1.0, %v5982_v4  ;;  %v7038_v4 = vld [vmem:[%s6380_s22 + $0x68] sm:$0xff] }
 0x14a   : > { %v3157_v12 = vmul.f32 %v5984_v19, %v3124_v3  ;;  %1817 = vrot.lane.b32.xlu1 %v6843_v37, %s6289_s26  ;;  %1819 = vrot.lane.b32.xlu2 %v6859_v7, %s6289_s26  ;;  %vm3162_vm13 = vweird.f32 %v5984_v19 }
 0x14b   : > { %1626 = vrot.lane.b32.xlu0 %v6839_v56, %s6288_s25  ;;  %5985 = vrcp.f32 %v3125_v10  ;;  %v1971_v56 = vmul.f32 %v6950_v21, %v6852_v41  ;;  %vm3163_vm7 = vmor %vm3161_vm5, %vm3162_vm13  ;;  %v3182_v54 = vand.u32 2147483648, %v3125_v10  ;;  %v3180_v9 = vand.u32 2147483647, %v3125_v10 }
 0x14c   : > { %v3158_v17 = vsub.f32 1.0, %v3157_v12  ;;  %v1171_v15 = vpop.permute.xlu1 %1170  ;;  %v7019_v32 = vpop.permute.xlu2 %1813  ;;  %vm3176_vm13 = vweird.f32 %v3125_v10 }
 0x14d   : > { %v2290_v16 = vpop.permute.xlu0 %2289  ;;  %1261 = vst.msk [vmem:[#allocation2 + $0x30] sm:$0xff] %vm1254_vm8, %v1171_v15  ;;  %v3183_v12 = vor.u32 1.1754944e-38, %v3182_v54 }
 0x14e   : > { %v3159_v42 = vmul.f32 %v5984_v19, %v3158_v17  ;;  %2367 = vst.msk [vmem:[#allocation2 + $0x98] sm:$0xff] %vm2347_vm1, %v2290_v16  ;;  %v7042_v17 = vld [vmem:[%s6380_s22 + $0x69] sm:$0xff] }
 0x14f   : > { %1486 = vst.msk [vmem:[#allocation2 + $0x30] sm:$0xff] %vm10865_vm10, %v1396_v51 }
 0x150   : > { %v3160_v43 = vadd.f32 %v5984_v19, %v3159_v42 }
 0x151   : > { %v5986_v31 = vpop.eup %5985 }
 0x152   : > { %v3164_v0 = vsel %vm3163_vm7, %v5984_v19, %v3160_v43  ;;  %v3172_v22 = vmul.f32 %v5986_v31, %v3125_v10  ;;  %2044 = vrot.lane.b32.xlu1 %v1971_v56, %s6290_s27  ;;  %2267 = vrot.lane.b32.xlu2 %v2195_v46, %s6291_s28  ;;  %vm3177_vm12 = vweird.f32 %v5986_v31  ;;  %vm3181_vm7 = vcmp.eq.f32.partialorder %v3180_v9, 8.507059e+37 }
 0x153   : > { %2042 = vrot.lane.b32.xlu0 %v6856_v62, %s6290_s27  ;;  %v3169_v18 = vsel %vm3166_vm9, %v3168_v28, %v3164_v0  ;;  %vm3178_vm5 = vmor %vm3176_vm13, %vm3177_vm12  ;;  %v2614_v56 = vmul.f32 %v6950_v21, %v7049_v20  ;;  %v411_v28 = vadd.s32 176, %v6367_v2  ;;  %v3839_v21 = vld [vmem:[#allocation3 + $0x9] sm:$0xff] }
 0x154   : > { %v3636_v49 = vmul.f32 %v3169_v18, %v6954_v23  ;;  %v3173_v51 = vsub.f32 1.0, %v3172_v22  ;;  %v2483_v63 = vpop.permute.xlu1 %2482  ;;  %v7031_v13 = vpop.permute.xlu2 %2040  ;;  %v7035_v23 = vld [vmem:[%s6380_s22 + $0x61] sm:$0xff] }
 0x155   : > { %v2481_v52 = vpop.permute.xlu0 %2480  ;;  %2560 = vst.msk [vmem:[#allocation2 + $0x98] sm:$0xff] %vm10911_vm2, %v2483_v63 }
 0x156   : > { %3673 = vst.msk [vmem:[#allocation3 + $0x11] sm:$0xff] %vm3668_vm0, %v3636_v49  ;;  %v3174_v3 = vmul.f32 %v5986_v31, %v3173_v51 }
 0x157   : > { %2559 = vst.msk [vmem:[#allocation2 + $0x90] sm:$0xff] %vm10911_vm2, %v2481_v52  ;;  %v579_v52 = vand.u32 15, %v411_v28 }
 0x158   : > { %v3175_v19 = vadd.f32 %v5986_v31, %v3174_v3  ;;  %2785 = vst.msk [vmem:[#allocation2 + $0x98] sm:$0xff] %vm10910_vm3, %v2708_v57 }
 0x159   : > { %vm827_vm12 = vcmp.ge.s32.totalorder %v579_v52, 1 }
 0x15a   : > { %v3179_v15 = vsel %vm3178_vm5, %v5986_v31, %v3175_v19  ;;  %2460 = vrot.lane.b32.xlu1 %v7035_v23, %s6292_s29  ;;  %2462 = vrot.lane.b32.xlu2 %v7042_v17, %s6292_s29  ;;  %v412_v31 = vadd.s32 184, %v6367_v2 }
 0x15b   : > { %2269 = vrot.lane.b32.xlu0 %v7038_v4, %s6291_s28  ;;  %v3184_v16 = vsel %vm3181_vm7, %v3183_v12, %v3179_v15  ;;  %v1017_v12 = vld [vmem:[%s6380_s22 + $0xa0] sm:$0xff] }
 0x15c   : > { %v3637_v10 = vmul.f32 %v3184_v16, %v6987_v44  ;;  %v2706_v42 = vpop.permute.xlu1 %2705  ;;  %v7058_v43 = vpop.permute.xlu2 %2456  ;;  %v7065_v44 = vld [vmem:[%s6380_s22 + $0x62] sm:$0xff]  ;;  %v586_v22 = vand.u32 15, %v412_v31  ;;  %v1049_v16 = vmul.f32 %v6881_v36, %v1017_v12 }
 0x15d   : > { %v1398_v57 = vpop.permute.xlu0 %1397  ;;  %2784 = vst.msk [vmem:[#allocation2 + $0x90] sm:$0xff] %vm10910_vm3, %v2706_v42  ;;  %v2953_v25 = vpop.f32.mrf.mxu0 }
 0x15e   : > { %3674 = vst.msk [vmem:[#allocation3 + $0x19] sm:$0xff] %vm3668_vm0, %v3637_v10  ;;  %v7062_v46 = vadd.f32 %v6942_v61, %v2953_v25  ;;  %vm924_vm9 = vcmp.le.s32.totalorder %v586_v22, 14 }
 0x15f   : > { %1487 = vst.msk [vmem:[#allocation2 + $0x38] sm:$0xff] %vm10865_vm10, %v1398_v57  ;;  %v2817_v18 = vld [vmem:[#allocation2 + $0x98] sm:$0xff]  ;;  %v7077_v9 = vsel %vm924_vm9, 1.0, %v10866_v1 }
 0x160   : > { %v5842_v0 = vmul.f32 -1.442695, %v7062_v46  ;;  %10961 = vst [vmem:[#allocation12_spill] sm:$0xff] %v7077_v9  ;;  %v1985_v52 = vmul.f32 %v7077_v9, %v6976_v29 }
 0x161   : > { %1082 = vst.msk [vmem:[#allocation2 + $0xa0] sm:$0xff] %vm1061_vm6, %v1049_v16 }
 0x162   : > { %2687 = vrot.lane.b32.xlu1 %v2614_v56, %s6293_s30  ;;  %5987 = vpow2.f32 %v5842_v0  ;;  %1202 = vrot.lane.b32.xlu2 %v6777_v26, %s6287_s24  ;;  %v1342_v26 = vmul.f32 %v7077_v9, %v6793_v38 }
 0x163   : > { %2685 = vrot.lane.b32.xlu0 %v7065_v44, %s6293_s30 }
 0x164   : > { %v1623_v49 = vpop.permute.xlu1 %1622  ;;  %v2816_v63 = vld [vmem:[#allocation2 + $0x90] sm:$0xff]  ;;  %v7080_v19 = vpop.permute.xlu2 %2683 }
 0x165   : > { %v1621_v51 = vpop.permute.xlu0 %1620  ;;  %1712 = vst.msk [vmem:[#allocation2 + $0x38] sm:$0xff] %vm1704_vm11, %v1623_v49  ;;  %v2955_v54 = vpop.f32.mrf.mxu0  ;;  %v2839_v3 = vpack.c.bf16 %v2817_v18, %v2816_v63 }
 0x166   : > { %1711 = vst.msk [vmem:[#allocation2 + $0x30] sm:$0xff] %vm1704_vm11, %v1621_v51  ;;  %v7086_v15 = vadd.f32 %v6942_v61, %v2955_v54 }
 0x167   : > { %1904 = vst.msk [vmem:[#allocation2 + $0x30] sm:$0xff] %vm1897_vm14, %v7019_v32  ;;  %5833 = vmatmul.msk.bf16.gmra.mxu2 %vm2886_vm4, %v2839_v3  ;;  %v7099_v32 = vsel %vm827_vm12, 1.0, %v10866_v1 }
 0x168   : > { %v5988_v10 = vpop.eup %5987  ;;  %v5843_v42 = vmul.f32 -1.442695, %v7086_v15  ;;  %10962 = vst [vmem:[#allocation13_spill] sm:$0xff] %v7099_v32 }
 0x169   : > { %v3126_v57 = vadd.f32 1.0, %v5988_v10  ;;  %v7130_v10 = vld [vmem:[%s6380_s22 + $0xd0] sm:$0xff] }
 0x16a   : > { %1427 = vrot.lane.b32.xlu1 %v6800_v24, %s6286_s23  ;;  %5989 = vpow2.f32 %v5843_v42  ;;  %1429 = vrot.lane.b32.xlu2 %v1342_v26, %s6286_s23  ;;  %v1566_v24 = vmul.f32 %v7099_v32, %v6909_v5 }
 0x16b   : > { %1204 = vrot.lane.b32.xlu0 %v6774_v40, %s6287_s24  ;;  %5991 = vrcp.f32 %v3126_v57  ;;  %v1018_v40 = vld [vmem:[%s6380_s22 + $0xa8] sm:$0xff]  ;;  %vm3191_vm5 = vweird.f32 %v3126_v57 }
 0x16c   : > { %v2039_v38 = vpop.permute.xlu1 %2038  ;;  %v7106_v56 = vpop.permute.xlu2 %1423  ;;  %1083 = vst.msk [vmem:[#allocation2 + $0xa8] sm:$0xff] %vm1061_vm6, %v1018_v40 }
 0x16d   : > { %v1816_v25 = vpop.permute.xlu0 %1815  ;;  %2129 = vst.msk [vmem:[#allocation2 + $0x30] sm:$0xff] %vm2122_vm15, %v2039_v38 }
 0x16e   : > { %1905 = vst.msk [vmem:[#allocation2 + $0x38] sm:$0xff] %vm1897_vm14, %v1816_v25 }
 0x16f   : > { %2130 = vst.msk [vmem:[#allocation2 + $0x38] sm:$0xff] %vm2122_vm15, %v7031_v13  ;;  %v3197_v13 = vand.u32 2147483648, %v3126_v57 }
 0x170   : > { %v5990_v31 = vpop.eup %5989 }
 0x171   : > { %v5992_v28 = vpop.eup %5991  ;;  %v3127_v0 = vadd.f32 1.0, %v5990_v31  ;;  %v3198_v12 = vor.u32 1.1754944e-38, %v3197_v13  ;;  %v7142_v31 = vld [vmem:[%s6380_s22 + $0xd8] sm:$0xff] }
 0x172   : > { %1654 = vrot.lane.b32.xlu1 %v6921_v6, %s6288_s25  ;;  %v3187_v22 = vmul.f32 %v5992_v28, %v3126_v57  ;;  %1845 = vrot.lane.b32.xlu2 %v6933_v58, %s6289_s26  ;;  %vm3192_vm13 = vweird.f32 %v5992_v28  ;;  %v3195_v6 = vand.u32 2147483647, %v3126_v57 }
 0x173   : > { %1652 = vrot.lane.b32.xlu0 %v1566_v24, %s6288_s25  ;;  %5993 = vrcp.f32 %v3127_v0  ;;  %vm3193_vm7 = vmor %vm3191_vm5, %vm3192_vm13  ;;  %v3210_v40 = vand.u32 2147483647, %v3127_v0  ;;  %vm3206_vm13 = vweird.f32 %v3127_v0 }
 0x174   : > { %v2266_v18 = vpop.permute.xlu1 %2265  ;;  %v3188_v49 = vsub.f32 1.0, %v3187_v22  ;;  %v7119_v51 = vpop.permute.xlu2 %1650  ;;  %vm3196_vm9 = vcmp.eq.f32.partialorder %v3195_v6, 8.507059e+37 }
 0x175   : > { %v2264_v5 = vpop.permute.xlu0 %2263  ;;  %2355 = vst.msk [vmem:[#allocation2 + $0x38] sm:$0xff] %vm2347_vm1, %v2266_v18 }
 0x176   : > { %2354 = vst.msk [vmem:[#allocation2 + $0x30] sm:$0xff] %vm2347_vm1, %v2264_v5  ;;  %v3189_v63 = vmul.f32 %v5992_v28, %v3188_v49 }
 0x177   : > { %2547 = vst.msk [vmem:[#allocation2 + $0x30] sm:$0xff] %vm10911_vm2, %v7058_v43 }
 0x178   : > { %v3190_v54 = vadd.f32 %v5992_v28, %v3189_v63 }
 0x179   : > { %v5994_v3 = vpop.eup %5993 }
 0x17a   : > { %2070 = vrot.lane.b32.xlu1 %v6993_v27, %s6290_s27  ;;  %v3194_v26 = vsel %vm3193_vm7, %v5992_v28, %v3190_v54  ;;  %v3202_v16 = vmul.f32 %v5994_v3, %v3127_v0  ;;  %2072 = vrot.lane.b32.xlu2 %v1985_v52, %s6290_s27  ;;  %v3212_v27 = vand.u32 2147483648, %v3127_v0  ;;  %vm3207_vm12 = vweird.f32 %v5994_v3  ;;  %v1005_v0 = vld [vmem:[%s6380_s22 + $0x40] sm:$0xff] }
 0x17b   : > { %1847 = vrot.lane.b32.xlu0 %v6958_v39, %s6289_s26  ;;  %v3199_v43 = vsel %vm3196_vm9, %v3198_v12, %v3194_v26  ;;  %v2209_v39 = vmul.f32 %v7099_v32, %v7130_v10  ;;  %vm3208_vm5 = vmor %vm3206_vm13, %vm3207_vm12  ;;  %vm3211_vm7 = vcmp.eq.f32.partialorder %v3210_v40, 8.507059e+37  ;;  %v1037_v54 = vmul.f32 %v6983_v11, %v1005_v0  ;;  %v7159_v12 = vld [vmem:[%s6380_s22 + $0xd1] sm:$0xff]  ;;  %v7165_v26 = vld [vmem:[%s6380_s22 + $0xd9] sm:$0xff] }
 0x17c   : > { %v2682_v42 = vpop.permute.xlu1 %2681  ;;  %v3638_v57 = vmul.f32 %v3199_v43, %v7062_v46  ;;  %v3203_v38 = vsub.f32 1.0, %v3202_v16  ;;  %v7138_v25 = vpop.permute.xlu2 %2066  ;;  %v400_v46 = vadd.s32 88, %v6367_v2  ;;  %v3213_v22 = vor.u32 1.1754944e-38, %v3212_v27 }
 0x17d   : > { %v2459_v29 = vpop.permute.xlu0 %2458  ;;  %2772 = vst.msk [vmem:[#allocation2 + $0x30] sm:$0xff] %vm10910_vm3, %v2682_v42 }
 0x17e   : > { %2548 = vst.msk [vmem:[#allocation2 + $0x38] sm:$0xff] %vm10911_vm2, %v2459_v29  ;;  %v3204_v24 = vmul.f32 %v5994_v3, %v3203_v38  ;;  %v502_v63 = vand.u32 15, %v400_v46  ;;  %v7187_v38 = vld [vmem:[%s6380_s22 + $0xd2] sm:$0xff] }
 0x17f   : > { %3675 = vst.msk [vmem:[#allocation3 + $0x21] sm:$0xff] %vm3668_vm0, %v3638_v57  ;;  %v1006_v57 = vld [vmem:[%s6380_s22 + $0x48] sm:$0xff] }
 0x180   : > { %2773 = vst.msk [vmem:[#allocation2 + $0x38] sm:$0xff] %vm10910_vm3, %v7080_v19  ;;  %v3205_v28 = vadd.f32 %v5994_v3, %v3204_v24  ;;  %vm912_vm9 = vcmp.le.s32.totalorder %v502_v63, 14 }
 0x181   : > { %1070 = vst.msk [vmem:[#allocation2 + $0x40] sm:$0xff] %vm1061_vm6, %v1037_v54 }
 0x182   : > { %2297 = vrot.lane.b32.xlu1 %v7142_v31, %s6291_s28  ;;  %v3209_v18 = vsel %vm3208_vm5, %v5994_v3, %v3205_v28  ;;  %1178 = vrot.lane.b32.xlu2 %v6843_v37, %s6287_s24  ;;  %v399_v37 = vadd.s32 80, %v6367_v2  ;;  %1071 = vst.msk [vmem:[#allocation2 + $0x48] sm:$0xff] %vm1061_vm6, %v1006_v57 }
 0x183   : > { %2295 = vrot.lane.b32.xlu0 %v2209_v39, %s6291_s28  ;;  %v3214_v5 = vsel %vm3211_vm7, %v3213_v22, %v3209_v18  ;;  %v7196_v39 = vld [vmem:[%s6380_s22 + $0xda] sm:$0xff] }
 0x184   : > { %v1201_v49 = vpop.permute.xlu1 %1200  ;;  %v3639_v19 = vmul.f32 %v3214_v5, %v7086_v15  ;;  %v2804_v6 = vld [vmem:[#allocation2 + $0x30] sm:$0xff]  ;;  %v2294_v52 = vpop.permute.xlu2 %2293  ;;  %v495_v42 = vand.u32 15, %v399_v37 }
 0x185   : > { %v1199_v13 = vpop.permute.xlu0 %1198  ;;  %1276 = vst.msk [vmem:[#allocation2 + $0xa8] sm:$0xff] %vm1254_vm8, %v1201_v49 }
 0x186   : > { %1275 = vst.msk [vmem:[#allocation2 + $0xa0] sm:$0xff] %vm1254_vm8, %v1199_v13  ;;  %vm815_vm12 = vcmp.ge.s32.totalorder %v495_v42, 1  ;;  %v7256_v42 = vld [vmem:[%s6380_s22 + $0x79] sm:$0xff] }
 0x187   : > { %3676 = vst.msk [vmem:[#allocation3 + $0x29] sm:$0xff] %vm3668_vm0, %v3639_v19  ;;  %v2805_v3 = vld [vmem:[#allocation2 + $0x38] sm:$0xff]  ;;  %v7193_v27 = vsel %vm815_vm12, 1.0, %v10866_v1 }
 0x188   : > { %1500 = vst.msk [vmem:[#allocation2 + $0xa0] sm:$0xff] %vm10865_vm10, %v7106_v56  ;;  %v2833_v15 = vpack.c.bf16 %v2805_v3, %v2804_v6  ;;  %v7174_v56 = vsel %vm912_vm9, 1.0, %v10866_v1 }
 0x189   : > { %10963 = vst [vmem:[#allocation14_spill] sm:$0xff] %v7174_v56  ;;  %v1330_v29 = vmul.f32 %v7174_v56, %v6852_v41  ;;  %v1973_v6 = vmul.f32 %v7174_v56, %v7049_v20 }
 0x18a   : > { %2488 = vrot.lane.b32.xlu1 %v7159_v12, %s6292_s29  ;;  %5827 = vmatmul.msk.bf16.gmra.mxu0 %vm2886_vm4, %v2833_v15  ;;  %10964 = vst [vmem:[#allocation15_spill] sm:$0xff] %v7193_v27 }
 0x18b   : > { %1180 = vrot.lane.b32.xlu0 %v6859_v7, %s6287_s24  ;;  %2490 = vrot.lane.b32.xlu2 %v7165_v26, %s6292_s29 }
 0x18c   : > { %v1649_v16 = vpop.permute.xlu1 %1648  ;;  %v2485_v7 = vpop.permute.xlu2 %2484 }
 0x18d   : > { %v1426_v43 = vpop.permute.xlu0 %1425  ;;  %1725 = vst.msk [vmem:[#allocation2 + $0xa0] sm:$0xff] %vm1704_vm11, %v1649_v16 }
 0x18e   : > { %1501 = vst.msk [vmem:[#allocation2 + $0xa8] sm:$0xff] %vm10865_vm10, %v1426_v43 }
 0x18f   : > { %1726 = vst.msk [vmem:[#allocation2 + $0xa8] sm:$0xff] %vm1704_vm11, %v7119_v51  ;;  %v1554_v51 = vmul.f32 %v7193_v27, %v7014_v55 }
 0x192   : > { %1405 = vrot.lane.b32.xlu1 %v1330_v29, %s6286_s23  ;;  %v7259_v29 = vld [vmem:[%s6380_s22 + $0x71] sm:$0xff] }
 0x193   : > { %1403 = vrot.lane.b32.xlu0 %v6856_v62, %s6286_s23  ;;  %2713 = vrot.lane.b32.xlu2 %v7187_v38, %s6293_s30  ;;  %v2628_v62 = vmul.f32 %v7077_v9, %v7196_v39  ;;  %v419_v9 = vadd.s32 240, %v6367_v2 }
 0x194   : > { %v1844_v41 = vpop.permute.xlu1 %1843  ;;  %v1402_v40 = vpop.permute.xlu2 %1401 }
 0x195   : > { %v1842_v24 = vpop.permute.xlu0 %1841  ;;  %1919 = vst.msk [vmem:[#allocation2 + $0xa8] sm:$0xff] %vm1897_vm14, %v1844_v41  ;;  %v7265_v41 = vld [vmem:[%s6380_s22 + $0x72] sm:$0xff] }
 0x196   : > { %1918 = vst.msk [vmem:[#allocation2 + $0xa0] sm:$0xff] %vm1897_vm14, %v1842_v24 }
 0x197   : > { %2143 = vst.msk [vmem:[#allocation2 + $0xa0] sm:$0xff] %vm2122_vm15, %v7138_v25 }
 0x19a   : > { %1628 = vrot.lane.b32.xlu1 %v1554_v51, %s6288_s25  ;;  %v7272_v51 = vld [vmem:[%s6380_s22 + $0x7a] sm:$0xff] }
 0x19b   : > { %2715 = vrot.lane.b32.xlu0 %v2628_v62, %s6293_s30  ;;  %v2988_v46 = vpop.f32.mrf.mxu2  ;;  %1630 = vrot.lane.b32.xlu2 %v7038_v4, %s6288_s25  ;;  %v7225_v4 = vld [vmem:[%s6380_s22 + $0x70] sm:$0xff] }
 0x19c   : > { %v7211_v28 = vadd.f32 %v6942_v61, %v2988_v46  ;;  %v2292_v22 = vpop.permute.xlu1 %2291  ;;  %v1625_v25 = vpop.permute.xlu2 %1624 }
 0x19d   : > { %v2069_v18 = vpop.permute.xlu0 %2068  ;;  %2368 = vst.msk [vmem:[#allocation2 + $0xa0] sm:$0xff] %vm2347_vm1, %v2292_v22 }
 0x19e   : > { %v5856_v55 = vmul.f32 -1.442695, %v7211_v28  ;;  %2144 = vst.msk [vmem:[#allocation2 + $0xa8] sm:$0xff] %vm2122_vm15, %v2069_v18 }
 0x19f   : > { %2369 = vst.msk [vmem:[#allocation2 + $0xa8] sm:$0xff] %vm2347_vm1, %v2294_v52 }
 0x1a0   : > { %5995 = vpow2.f32 %v5856_v55  ;;  %2561 = vst.msk [vmem:[#allocation2 + $0xa0] sm:$0xff] %vm10911_vm2, %v2485_v7  ;;  %v414_v7 = vadd.s32 200, %v6367_v2 }
 0x1a2   : > { %1823 = vrot.lane.b32.xlu1 %v7042_v17, %s6289_s26 }
 0x1a3   : > { %1821 = vrot.lane.b32.xlu0 %v7035_v23, %s6289_s26  ;;  %v2990_v5 = vpop.f32.mrf.mxu2  ;;  %2046 = vrot.lane.b32.xlu2 %v7065_v44, %s6290_s27  ;;  %v2197_v23 = vmul.f32 %v7193_v27, %v7225_v4  ;;  %v7243_v44 = vld [vmem:[%s6380_s22 + $0x78] sm:$0xff] }
 0x1a4   : > { %v7228_v49 = vadd.f32 %v6942_v61, %v2990_v5  ;;  %v1177_v13 = vpop.permute.xlu1 %1176  ;;  %v7239_v52 = vpop.permute.xlu2 %1819  ;;  %v2616_v5 = vmul.f32 %v7174_v56, %v7272_v51 }
 0x1a5   : > { %v1175_v63 = vpop.permute.xlu0 %1174  ;;  %1264 = vst.msk [vmem:[#allocation2 + $0x48] sm:$0xff] %vm1254_vm8, %v1177_v13 }
 0x1a6   : > { %v5996_v19 = vpop.eup %5995  ;;  %v5857_v0 = vmul.f32 -1.442695, %v7228_v49  ;;  %1263 = vst.msk [vmem:[#allocation2 + $0x40] sm:$0xff] %vm1254_vm8, %v1175_v63 }
 0x1a7   : > { %v3140_v54 = vadd.f32 1.0, %v5996_v19  ;;  %1489 = vst.msk [vmem:[#allocation2 + $0x48] sm:$0xff] %vm10865_vm10, %v1402_v40  ;;  %v600_v40 = vand.u32 15, %v414_v7  ;;  %v1119_v7 = vld [vmem:[%s6380_s22 + $0xc9] sm:$0xff] }
 0x1a8   : > { %5997 = vpow2.f32 %v5857_v0  ;;  %v413_v0 = vadd.s32 192, %v6367_v2 }
 0x1a9   : > { %5999 = vrcp.f32 %v3140_v54  ;;  %v3407_v62 = vand.u32 2147483648, %v3140_v54  ;;  %v3405_v22 = vand.u32 2147483647, %v3140_v54  ;;  %vm3401_vm5 = vweird.f32 %v3140_v54 }
 0x1aa   : > { %2271 = vrot.lane.b32.xlu1 %v2197_v23, %s6291_s28  ;;  %vm926_vm9 = vcmp.le.s32.totalorder %v600_v40, 14 }
 0x1ab   : > { %2048 = vrot.lane.b32.xlu0 %v1973_v6, %s6290_s27  ;;  %2273 = vrot.lane.b32.xlu2 %v7243_v44, %s6291_s28  ;;  %v3408_v6 = vor.u32 1.1754944e-38, %v3407_v62  ;;  %vm3406_vm12 = vcmp.eq.f32.partialorder %v3405_v22, 8.507059e+37  ;;  %v7295_v62 = vsel %vm926_vm9, 1.0, %v10866_v1 }
 0x1ac   : > { %v1400_v3 = vpop.permute.xlu1 %1399  ;;  %v7251_v15 = vpop.permute.xlu2 %2267  ;;  %10965 = vst [vmem:[#allocation16_spill] sm:$0xff] %v7295_v62 }
 0x1ad   : > { %v2487_v37 = vpop.permute.xlu0 %2486  ;;  %1488 = vst.msk [vmem:[#allocation2 + $0x40] sm:$0xff] %vm10865_vm10, %v1400_v3 }
 0x1ae   : > { %v5998_v20 = vpop.eup %5997  ;;  %2562 = vst.msk [vmem:[#allocation2 + $0xa8] sm:$0xff] %vm10911_vm2, %v2487_v37 }
 0x1af   : > { %v6000_v16 = vpop.eup %5999  ;;  %v7253_v43 = vadd.f32 1.0, %v5998_v20  ;;  %1713 = vst.msk [vmem:[#allocation2 + $0x40] sm:$0xff] %vm1704_vm11, %v1625_v25 }
 0x1b0   : > { %v3397_v57 = vmul.f32 %v6000_v16, %v3140_v54  ;;  %vm3402_vm13 = vweird.f32 %v6000_v16 }
 0x1b1   : > { %6001 = vrcp.f32 %v7253_v43  ;;  %vm3403_vm7 = vmor %vm3401_vm5, %vm3402_vm13  ;;  %v3422_v40 = vand.u32 2147483648, %v7253_v43 }
 0x1b2   : > { %v3398_v24 = vsub.f32 1.0, %v3397_v57  ;;  %2466 = vrot.lane.b32.xlu1 %v7256_v42, %s6292_s29  ;;  %v593_v57 = vand.u32 15, %v413_v0  ;;  %v1019_v0 = vld [vmem:[%s6380_s22 + $0xb0] sm:$0xff] }
 0x1b3   : > { %2464 = vrot.lane.b32.xlu0 %v7259_v29, %s6292_s29  ;;  %2689 = vrot.lane.b32.xlu2 %v7265_v41, %s6293_s30 }
 0x1b4   : > { %v3399_v46 = vmul.f32 %v6000_v16, %v3398_v24  ;;  %v2712_v18 = vpop.permute.xlu1 %2711  ;;  %v7283_v19 = vpop.permute.xlu2 %2462  ;;  %vm829_vm13 = vcmp.ge.s32.totalorder %v593_v57, 1  ;;  %v1311_v57 = vld [vmem:[%s6380_s22 + $0xc2] sm:$0xff] }
 0x1b5   : > { %v2710_v55 = vpop.permute.xlu0 %2709  ;;  %2787 = vst.msk [vmem:[#allocation2 + $0xa8] sm:$0xff] %vm10910_vm3, %v2712_v18  ;;  %v2958_v25 = vpop.f32.mrf.mxu0 }
 0x1b6   : > { %v3400_v13 = vadd.f32 %v6000_v16, %v3399_v46  ;;  %2786 = vst.msk [vmem:[#allocation2 + $0xa0] sm:$0xff] %vm10910_vm3, %v2710_v55  ;;  %v7281_v63 = vadd.f32 %v6942_v61, %v2958_v25 }
 0x1b7   : > { %v6002_v23 = vpop.eup %6001 }
 0x1b8   : > { %v3404_v3 = vsel %vm3403_vm7, %v6000_v16, %v3400_v13  ;;  %v3412_v37 = vmul.f32 %v6002_v23, %v7253_v43  ;;  %v5844_v54 = vmul.f32 -1.442695, %v7281_v63  ;;  %v1312_v16 = vld [vmem:[%s6380_s22 + $0xca] sm:$0xff]  ;;  %vm3417_vm5 = vweird.f32 %v6002_v23 }
 0x1b9   : > { %v3409_v20 = vsel %vm3406_vm12, %v3408_v6, %v3404_v3  ;;  %vm3416_vm7 = vweird.f32 %v7253_v43  ;;  %v1344_v13 = vmul.f32 %v7295_v62, %v1312_v16  ;;  %v7307_v6 = vsel %vm829_vm13, 1.0, %v10866_v1 }
 0x1ba   : > { %v3652_v24 = vmul.f32 %v3409_v20, %v7211_v28  ;;  %v3413_v46 = vsub.f32 1.0, %v3412_v37  ;;  %6003 = vpow2.f32 %v5844_v54  ;;  %1206 = vrot.lane.b32.xlu1 %v6933_v58, %s6287_s24  ;;  %v3420_v28 = vand.u32 2147483647, %v7253_v43  ;;  %10966 = vst [vmem:[#allocation17_spill] sm:$0xff] %v7307_v6  ;;  %vm3418_vm9 = vmor %vm3416_vm7, %vm3417_vm5 }
 0x1bb   : > { %2691 = vrot.lane.b32.xlu0 %v2616_v5, %s6293_s30  ;;  %1208 = vrot.lane.b32.xlu2 %v1119_v7, %s6287_s24  ;;  %v1051_v20 = vmul.f32 %v7099_v32, %v1019_v0  ;;  %v3423_v7 = vor.u32 1.1754944e-38, %v3422_v40 }
 0x1bc   : > { %3689 = vst.msk [vmem:[#allocation3 + $0x91] sm:$0xff] %vm3668_vm0, %v3652_v24  ;;  %v3414_v22 = vmul.f32 %v6002_v23, %v3413_v46  ;;  %v1818_v18 = vpop.permute.xlu1 %1817  ;;  %v2819_v25 = vld [vmem:[#allocation2 + $0xa8] sm:$0xff]  ;;  %v1203_v43 = vpop.permute.xlu2 %1202  ;;  %v1020_v24 = vld [vmem:[%s6380_s22 + $0xb8] sm:$0xff]  ;;  %vm3421_vm12 = vcmp.eq.f32.partialorder %v3420_v28, 8.507059e+37 }
 0x1bd   : > { %v1627_v55 = vpop.permute.xlu0 %1626  ;;  %1906 = vst.msk [vmem:[#allocation2 + $0x40] sm:$0xff] %vm1897_vm14, %v1818_v18  ;;  %v2960_v58 = vpop.f32.mrf.mxu0  ;;  %v2818_v5 = vld [vmem:[#allocation2 + $0xa0] sm:$0xff] }
 0x1be   : > { %v3415_v3 = vadd.f32 %v6002_v23, %v3414_v22  ;;  %1714 = vst.msk [vmem:[#allocation2 + $0x48] sm:$0xff] %vm1704_vm11, %v1627_v55  ;;  %v7311_v37 = vadd.f32 %v6942_v61, %v2960_v58  ;;  %v2840_v54 = vpack.c.bf16 %v2819_v25, %v2818_v5  ;;  %v1568_v61 = vmul.f32 %v7307_v6, %v7130_v10 }
 0x1bf   : > { %1907 = vst.msk [vmem:[#allocation2 + $0x48] sm:$0xff] %vm1897_vm14, %v7239_v52 }
 0x1c0   : > { %v6004_v46 = vpop.eup %6003  ;;  %v3419_v16 = vsel %vm3418_vm9, %v6002_v23, %v3415_v3  ;;  %v5845_v22 = vmul.f32 -1.442695, %v7311_v37  ;;  %5834 = vmatmul.msk.bf16.gmra.mxu2 %vm2886_vm4, %v2840_v54  ;;  %1084 = vst.msk [vmem:[#allocation2 + $0xb0] sm:$0xff] %vm1061_vm6, %v1051_v20 }
 0x1c1   : > { %v3424_v18 = vsel %vm3421_vm12, %v3423_v7, %v3419_v16  ;;  %v3128_v55 = vadd.f32 1.0, %v6004_v46  ;;  %1277 = vst.msk [vmem:[#allocation2 + $0xb0] sm:$0xff] %vm1254_vm8, %v1203_v43 }
 0x1c2   : > { %v3653_v52 = vmul.f32 %v3424_v18, %v7228_v49  ;;  %6005 = vpow2.f32 %v5845_v22  ;;  %1433 = vrot.lane.b32.xlu1 %v1344_v13, %s6286_s23  ;;  %1085 = vst.msk [vmem:[#allocation2 + $0xb8] sm:$0xff] %vm1061_vm6, %v1020_v24 }
 0x1c3   : > { %1431 = vrot.lane.b32.xlu0 %v1311_v57, %s6286_s23  ;;  %6007 = vrcp.f32 %v3128_v55  ;;  %1656 = vrot.lane.b32.xlu2 %v1568_v61, %s6288_s25  ;;  %v3227_v3 = vand.u32 2147483648, %v3128_v55  ;;  %v3225_v43 = vand.u32 2147483647, %v3128_v55  ;;  %vm3221_vm5 = vweird.f32 %v3128_v55 }
 0x1c4   : > { %3690 = vst.msk [vmem:[#allocation3 + $0x99] sm:$0xff] %vm3668_vm0, %v3653_v52  ;;  %v2045_v23 = vpop.permute.xlu1 %2044  ;;  %v7333_v10 = vpop.permute.xlu2 %1429 }
 0x1c5   : > { %v2043_v40 = vpop.permute.xlu0 %2042  ;;  %2132 = vst.msk [vmem:[#allocation2 + $0x48] sm:$0xff] %vm2122_vm15, %v2045_v23  ;;  %v3228_v57 = vor.u32 1.1754944e-38, %v3227_v3  ;;  %vm3226_vm9 = vcmp.eq.f32.partialorder %v3225_v43, 8.507059e+37  ;;  %v1106_v23 = vld [vmem:[%s6380_s22 + $0x61] sm:$0xff]  ;;  %v1007_v43 = vld [vmem:[%s6380_s22 + $0x50] sm:$0xff] }
 0x1c6   : > { %2131 = vst.msk [vmem:[#allocation2 + $0x40] sm:$0xff] %vm2122_vm15, %v2043_v40  ;;  %v7368_v40 = vld [vmem:[%s6380_s22 + $0xe8] sm:$0xff] }
 0x1c7   : > { %2356 = vst.msk [vmem:[#allocation2 + $0x40] sm:$0xff] %vm2347_vm1, %v7251_v15  ;;  %v7345_v15 = vld [vmem:[%s6380_s22 + $0xe0] sm:$0xff] }
 0x1c8   : > { %v6006_v49 = vpop.eup %6005 }
 0x1c9   : > { %v6008_v28 = vpop.eup %6007  ;;  %v3129_v25 = vadd.f32 1.0, %v6006_v49 }
 0x1ca   : > { %v3217_v58 = vmul.f32 %v6008_v28, %v3128_v55  ;;  %1849 = vrot.lane.b32.xlu1 %v7159_v12, %s6289_s26  ;;  %v1987_v12 = vmul.f32 %v7295_v62, %v7196_v39  ;;  %vm3222_vm13 = vweird.f32 %v6008_v28 }
 0x1cb   : > { %1658 = vrot.lane.b32.xlu0 %v7142_v31, %s6288_s25  ;;  %6009 = vrcp.f32 %v3129_v25  ;;  %1851 = vrot.lane.b32.xlu2 %v7165_v26, %s6289_s26  ;;  %v2211_v26 = vmul.f32 %v7307_v6, %v7345_v15  ;;  %vm3223_vm7 = vmor %vm3221_vm5, %vm3222_vm13  ;;  %v3242_v18 = vand.u32 2147483648, %v3129_v25  ;;  %v3240_v52 = vand.u32 2147483647, %v3129_v25 }
 0x1cc   : > { %v2461_v5 = vpop.permute.xlu1 %2460  ;;  %v3218_v0 = vsub.f32 1.0, %v3217_v58  ;;  %v7350_v54 = vpop.permute.xlu2 %1845  ;;  %vm3236_vm13 = vweird.f32 %v3129_v25 }
 0x1cd   : > { %v2270_v13 = vpop.permute.xlu0 %2269  ;;  %2549 = vst.msk [vmem:[#allocation2 + $0x40] sm:$0xff] %vm10911_vm2, %v2461_v5 }
 0x1ce   : > { %2357 = vst.msk [vmem:[#allocation2 + $0x48] sm:$0xff] %vm2347_vm1, %v2270_v13  ;;  %v3219_v31 = vmul.f32 %v6008_v28, %v3218_v0 }
 0x1cf   : > { %2550 = vst.msk [vmem:[#allocation2 + $0x48] sm:$0xff] %vm10911_vm2, %v7283_v19 }
 0x1d0   : > { %v3220_v7 = vadd.f32 %v6008_v28, %v3219_v31 }
 0x1d1   : > { %v6010_v20 = vpop.eup %6009 }
 0x1d2   : > { %v3232_v24 = vmul.f32 %v6010_v20, %v3129_v25  ;;  %2076 = vrot.lane.b32.xlu1 %v1987_v12, %s6290_s27  ;;  %v3224_v39 = vsel %vm3223_vm7, %v6008_v28, %v3220_v7  ;;  %vm3237_vm12 = vweird.f32 %v6010_v20  ;;  %v402_v28 = vadd.s32 104, %v6367_v2  ;;  %v7383_v7 = vld [vmem:[%s6380_s22 + $0xe9] sm:$0xff] }
 0x1d3   : > { %2074 = vrot.lane.b32.xlu0 %v7187_v38, %s6290_s27  ;;  %v3229_v46 = vsel %vm3226_vm9, %v3228_v57, %v3224_v39  ;;  %2299 = vrot.lane.b32.xlu2 %v2211_v26, %s6291_s28  ;;  %vm3238_vm5 = vmor %vm3236_vm13, %vm3237_vm12  ;;  %vm3241_vm7 = vcmp.eq.f32.partialorder %v3240_v52, 8.507059e+37  ;;  %v7386_v57 = vld [vmem:[%s6380_s22 + $0xe1] sm:$0xff]  ;;  %v1008_v39 = vld [vmem:[%s6380_s22 + $0x58] sm:$0xff] }
 0x1d4   : > { %v3233_v19 = vsub.f32 1.0, %v3232_v24  ;;  %v2688_v16 = vpop.permute.xlu1 %2687  ;;  %v3640_v61 = vmul.f32 %v3229_v46, %v7281_v63  ;;  %v7363_v38 = vpop.permute.xlu2 %2072  ;;  %v3243_v63 = vor.u32 1.1754944e-38, %v3242_v18  ;;  %v516_v12 = vand.u32 15, %v402_v28  ;;  %v1299_v24 = vld [vmem:[%s6380_s22 + $0x62] sm:$0xff]  ;;  %1073 = vst.msk [vmem:[#allocation2 + $0x58] sm:$0xff] %vm1061_vm6, %v1008_v39 }
 0x1d5   : > { %v2686_v22 = vpop.permute.xlu0 %2685  ;;  %2775 = vst.msk [vmem:[#allocation2 + $0x48] sm:$0xff] %vm10910_vm3, %v2688_v16  ;;  %v7415_v52 = vld [vmem:[%s6380_s22 + $0xe2] sm:$0xff]  ;;  %v7425_v28 = vld [vmem:[%s10855_s2] ss:$0 sm:$0xff] }
 0x1d6   : > { %v3234_v55 = vmul.f32 %v6010_v20, %v3233_v19  ;;  %2774 = vst.msk [vmem:[#allocation2 + $0x40] sm:$0xff] %vm10910_vm3, %v2686_v22  ;;  %vm914_vm9 = vcmp.le.s32.totalorder %v516_v12, 14 }
 0x1d7   : > { %3677 = vst.msk [vmem:[#allocation3 + $0x31] sm:$0xff] %vm3668_vm0, %v3640_v61  ;;  %v7400_v46 = vsel %vm914_vm9, 1.0, %v10866_v1  ;;  %v7408_v61 = vld [vmem:[%s6380_s22 + $0xea] sm:$0xff] }
 0x1d8   : > { %v3235_v49 = vadd.f32 %v6010_v20, %v3234_v55  ;;  %10967 = vst [vmem:[#allocation18_spill] sm:$0xff] %v7400_v46 }
 0x1da   : > { %v3239_v58 = vsel %vm3238_vm5, %v6010_v20, %v3235_v49  ;;  %1182 = vrot.lane.b32.xlu1 %v1106_v23, %s6287_s24  ;;  %v2630_v23 = vmul.f32 %v7295_v62, %v7408_v61 }
 0x1db   : > { %2301 = vrot.lane.b32.xlu0 %v7368_v40, %s6291_s28  ;;  %v3244_v5 = vsel %vm3241_vm7, %v3243_v63, %v3239_v58  ;;  %1184 = vrot.lane.b32.xlu2 %v7042_v17, %s6287_s24  ;;  %v401_v17 = vadd.s32 96, %v6367_v2 }
 0x1dc   : > { %v3641_v13 = vmul.f32 %v3244_v5, %v7311_v37  ;;  %v1428_v0 = vpop.permute.xlu1 %1427  ;;  %v2807_v25 = vld [vmem:[#allocation2 + $0x48] sm:$0xff]  ;;  %v1179_v20 = vpop.permute.xlu2 %1178  ;;  %v1039_v37 = vmul.f32 %v7193_v27, %v1007_v43 }
 0x1dd   : > { %v1205_v3 = vpop.permute.xlu0 %1204  ;;  %1502 = vst.msk [vmem:[#allocation2 + $0xb0] sm:$0xff] %vm10865_vm10, %v1428_v0  ;;  %v2806_v31 = vld [vmem:[#allocation2 + $0x40] sm:$0xff]  ;;  %v509_v22 = vand.u32 15, %v401_v17  ;;  %v1975_v17 = vmul.f32 %v7400_v46, %v7272_v51  ;;  %v3937_v27 = vld [vmem:[#allocation3 + $0xa] sm:$0xff] }
 0x1de   : > { %3678 = vst.msk [vmem:[#allocation3 + $0x39] sm:$0xff] %vm3668_vm0, %v3641_v13  ;;  %v2834_v26 = vpack.c.bf16 %v2807_v25, %v2806_v31 }
 0x1df   : > { %1278 = vst.msk [vmem:[#allocation2 + $0xb8] sm:$0xff] %vm1254_vm8, %v1205_v3  ;;  %vm817_vm12 = vcmp.ge.s32.totalorder %v509_v22, 1 }
 0x1e0   : > { %1503 = vst.msk [vmem:[#allocation2 + $0xb8] sm:$0xff] %vm10865_vm10, %v7333_v10  ;;  %5828 = vmatmul.msk.bf16.gmra.mxu0 %vm2886_vm4, %v2834_v26  ;;  %v1300_v10 = vld [vmem:[%s6380_s22 + $0x6a] sm:$0xff] }
 0x1e1   : > { %1072 = vst.msk [vmem:[#allocation2 + $0x50] sm:$0xff] %vm1061_vm6, %v1039_v37  ;;  %v1332_v18 = vmul.f32 %v7400_v46, %v1300_v10 }
 0x1e2   : > { %2494 = vrot.lane.b32.xlu1 %v7383_v7, %s6292_s29  ;;  %1265 = vst.msk [vmem:[#allocation2 + $0x50] sm:$0xff] %vm1254_vm8, %v1179_v20 }
 0x1e3   : > { %2492 = vrot.lane.b32.xlu0 %v7386_v57, %s6292_s29  ;;  %1407 = vrot.lane.b32.xlu2 %v1299_v24, %s6286_s23 }
 0x1e4   : > { %v1655_v19 = vpop.permute.xlu1 %1654 }
 0x1e5   : > { %v1653_v16 = vpop.permute.xlu0 %1652  ;;  %1728 = vst.msk [vmem:[#allocation2 + $0xb8] sm:$0xff] %vm1704_vm11, %v1655_v19  ;;  %v2491_v55 = vpop.permute.xlu2 %2490 }
 0x1e6   : > { %1727 = vst.msk [vmem:[#allocation2 + $0xb0] sm:$0xff] %vm1704_vm11, %v1653_v16  ;;  %v7470_v16 = vld [vmem:[%s6380_s22 + $0x88] sm:$0xff] }
 0x1e7   : > { %1920 = vst.msk [vmem:[#allocation2 + $0xb0] sm:$0xff] %vm1897_vm14, %v7350_v54  ;;  %v7431_v54 = vsel %vm817_vm12, 1.0, %v10866_v1 }
 0x1e8   : > { %10968 = vst [vmem:[#allocation19_spill] sm:$0xff] %v7431_v54  ;;  %v1556_v0 = vmul.f32 %v7431_v54, %v7225_v4 }
 0x1ea   : > { %2717 = vrot.lane.b32.xlu1 %v7415_v52, %s6293_s30  ;;  %v2993_v49 = vpop.f32.mrf.mxu2 }
 0x1eb   : > { %1409 = vrot.lane.b32.xlu0 %v1332_v18, %s6286_s23  ;;  %v7428_v63 = vadd.f32 %v7425_v28, %v2993_v49  ;;  %2719 = vrot.lane.b32.xlu2 %v2630_v23, %s6293_s30 }
 0x1ec   : > { %v2071_v58 = vpop.permute.xlu1 %2070 }
 0x1ed   : > { %v1848_v5 = vpop.permute.xlu0 %1847  ;;  %v5858_v13 = vmul.f32 -1.442695, %v7428_v63  ;;  %2145 = vst.msk [vmem:[#allocation2 + $0xb0] sm:$0xff] %vm2122_vm15, %v2071_v58  ;;  %v2714_v3 = vpop.permute.xlu2 %2713 }
 0x1ee   : > { %1921 = vst.msk [vmem:[#allocation2 + $0xb8] sm:$0xff] %vm1897_vm14, %v1848_v5 }
 0x1ef   : > { %6011 = vpow2.f32 %v5858_v13  ;;  %2146 = vst.msk [vmem:[#allocation2 + $0xb8] sm:$0xff] %vm2122_vm15, %v7363_v38  ;;  %v7481_v13 = vld [vmem:[%s6380_s22 + $0x81] sm:$0xff] }
 0x1f2   : > { %1634 = vrot.lane.b32.xlu1 %v7243_v44, %s6288_s25  ;;  %v2995_v25 = vpop.f32.mrf.mxu2 }
 0x1f3   : > { %1632 = vrot.lane.b32.xlu0 %v1556_v0, %s6288_s25  ;;  %v7445_v12 = vadd.f32 %v7425_v28, %v2995_v25  ;;  %1825 = vrot.lane.b32.xlu2 %v7259_v29, %s6289_s26  ;;  %v7458_v29 = vld [vmem:[%s6380_s22 + $0x80] sm:$0xff] }
 0x1f4   : > { %v2298_v31 = vpop.permute.xlu1 %2297  ;;  %v2199_v19 = vmul.f32 %v7431_v54, %v7458_v29 }
 0x1f5   : > { %v2296_v43 = vpop.permute.xlu0 %2295  ;;  %v6012_v4 = vpop.eup %6011  ;;  %v5859_v26 = vmul.f32 -1.442695, %v7445_v12  ;;  %2371 = vst.msk [vmem:[#allocation2 + $0xb8] sm:$0xff] %vm2347_vm1, %v2298_v31 }
 0x1f6   : > { %v3142_v38 = vadd.f32 1.0, %v6012_v4  ;;  %2370 = vst.msk [vmem:[#allocation2 + $0xb0] sm:$0xff] %vm2347_vm1, %v2296_v43  ;;  %v1631_v44 = vpop.permute.xlu2 %1630  ;;  %v7488_v43 = vld [vmem:[%s6380_s22 + $0x82] sm:$0xff] }
 0x1f7   : > { %6013 = vpow2.f32 %v5859_v26  ;;  %2564 = vst.msk [vmem:[#allocation2 + $0xb8] sm:$0xff] %vm10911_vm2, %v2491_v55  ;;  %v7491_v4 = vld [vmem:[%s6380_s22 + $0x89] sm:$0xff] }
 0x1f8   : > { %6015 = vrcp.f32 %v3142_v38  ;;  %v3437_v18 = vand.u32 2147483648, %v3142_v38  ;;  %vm3431_vm13 = vweird.f32 %v3142_v38  ;;  %v3435_v23 = vand.u32 2147483647, %v3142_v38 }
 0x1fa   : > { %2050 = vrot.lane.b32.xlu1 %v7265_v41, %s6290_s27  ;;  %vm3436_vm9 = vcmp.eq.f32.partialorder %v3435_v23, 8.507059e+37 }
 0x1fb   : > { %1827 = vrot.lane.b32.xlu0 %v7256_v42, %s6289_s26  ;;  %2052 = vrot.lane.b32.xlu2 %v1975_v17, %s6290_s27  ;;  %v416_v17 = vadd.s32 216, %v6367_v2 }
 0x1fc   : > { %v2489_v20 = vpop.permute.xlu1 %2488 }
 0x1fd   : > { %v1181_v37 = vpop.permute.xlu0 %1180  ;;  %v6014_v24 = vpop.eup %6013  ;;  %2563 = vst.msk [vmem:[#allocation2 + $0xb0] sm:$0xff] %vm10911_vm2, %v2489_v20 }
 0x1fe   : > { %v6016_v39 = vpop.eup %6015  ;;  %v7463_v10 = vadd.f32 1.0, %v6014_v24  ;;  %1266 = vst.msk [vmem:[#allocation2 + $0x58] sm:$0xff] %vm1254_vm8, %v1181_v37  ;;  %v7473_v51 = vpop.permute.xlu2 %2046  ;;  %v415_v37 = vadd.s32 208, %v6367_v2 }
 0x1ff   : > { %v3427_v42 = vmul.f32 %v6016_v39, %v3142_v38  ;;  %2788 = vst.msk [vmem:[#allocation2 + $0xb0] sm:$0xff] %vm10910_vm3, %v2714_v3  ;;  %vm3432_vm5 = vweird.f32 %v6016_v39  ;;  %v3438_v3 = vor.u32 1.1754944e-38, %v3437_v18  ;;  %v7511_v18 = vld [vmem:[%s6380_s22 + $0x8a] sm:$0xff] }
 0x200   : > { %6017 = vrcp.f32 %v7463_v10  ;;  %vm3433_vm7 = vmor %vm3431_vm13, %vm3432_vm5  ;;  %vm3446_vm13 = vweird.f32 %v7463_v10 }
 0x201   : > { %v3428_v22 = vsub.f32 1.0, %v3427_v42  ;;  %v3452_v42 = vand.u32 2147483648, %v7463_v10 }
 0x202   : > { %2277 = vrot.lane.b32.xlu1 %v7470_v16, %s6291_s28 }
 0x203   : > { %2275 = vrot.lane.b32.xlu0 %v2199_v19, %s6291_s28  ;;  %v3429_v55 = vmul.f32 %v6016_v39, %v3428_v22  ;;  %2468 = vrot.lane.b32.xlu2 %v7481_v13, %s6292_s29  ;;  %v3450_v22 = vand.u32 2147483647, %v7463_v10 }
 0x204   : > { %v1406_v49 = vpop.permute.xlu1 %1405 }
 0x205   : > { %v1404_v58 = vpop.permute.xlu0 %1403  ;;  %v3430_v5 = vadd.f32 %v6016_v39, %v3429_v55  ;;  %1491 = vst.msk [vmem:[#allocation2 + $0x58] sm:$0xff] %vm10865_vm10, %v1406_v49  ;;  %v607_v49 = vand.u32 15, %v415_v37 }
 0x206   : > { %v6018_v0 = vpop.eup %6017  ;;  %1490 = vst.msk [vmem:[#allocation2 + $0x50] sm:$0xff] %vm10865_vm10, %v1404_v58  ;;  %v7494_v26 = vpop.permute.xlu2 %2273  ;;  %v614_v58 = vand.u32 15, %v416_v17 }
 0x207   : > { %v3434_v25 = vsel %vm3433_vm7, %v6016_v39, %v3430_v5  ;;  %v3442_v31 = vmul.f32 %v6018_v0, %v7463_v10  ;;  %1716 = vst.msk [vmem:[#allocation2 + $0x58] sm:$0xff] %vm1704_vm11, %v1631_v44  ;;  %v2963_v20 = vpop.f32.mrf.mxu0  ;;  %vm3447_vm12 = vweird.f32 %v6018_v0  ;;  %v2618_v5 = vmul.f32 %v7400_v46, %v7511_v18 }
 0x208   : > { %v3439_v38 = vsel %vm3436_vm9, %v3438_v3, %v3434_v25  ;;  %v7500_v19 = vadd.f32 %v7425_v28, %v2963_v20  ;;  %vm3448_vm5 = vmor %vm3446_vm13, %vm3447_vm12  ;;  %v3453_v25 = vor.u32 1.1754944e-38, %v3452_v42  ;;  %vm3451_vm7 = vcmp.eq.f32.partialorder %v3450_v22, 8.507059e+37  ;;  %v1120_v20 = vld [vmem:[%s6380_s22 + $0xd1] sm:$0xff]  ;;  %v1314_v22 = vld [vmem:[%s6380_s22 + $0xda] sm:$0xff] }
 0x209   : > { %v3654_v24 = vmul.f32 %v3439_v38, %v7428_v63  ;;  %v3443_v39 = vsub.f32 1.0, %v3442_v31  ;;  %v1121_v38 = vld [vmem:[%s6380_s22 + $0xd9] sm:$0xff]  ;;  %vm831_vm9 = vcmp.ge.s32.totalorder %v607_v49, 1  ;;  %vm928_vm10 = vcmp.le.s32.totalorder %v614_v58, 14  ;;  %v2820_v49 = vld [vmem:[#allocation2 + $0xb0] sm:$0xff] }
 0x20a   : > { %2693 = vrot.lane.b32.xlu1 %v7488_v43, %s6293_s30  ;;  %v5846_v63 = vmul.f32 -1.442695, %v7500_v19  ;;  %v7531_v42 = vsel %vm831_vm9, 1.0, %v10866_v1 }
 0x20b   : > { %2470 = vrot.lane.b32.xlu0 %v7491_v4, %s6292_s29  ;;  %3691 = vst.msk [vmem:[#allocation3 + $0xa1] sm:$0xff] %vm3668_vm0, %v3654_v24  ;;  %v3444_v44 = vmul.f32 %v6018_v0, %v3443_v39  ;;  %2695 = vrot.lane.b32.xlu2 %v2618_v5, %s6293_s30  ;;  %v1313_v5 = vld [vmem:[%s6380_s22 + $0xd2] sm:$0xff] }
 0x20c   : > { %v1629_v55 = vpop.permute.xlu1 %1628  ;;  %6019 = vpow2.f32 %v5846_v63  ;;  %10969 = vst [vmem:[#allocation20_spill] sm:$0xff] %v7531_v42 }
 0x20d   : > { %v2716_v23 = vpop.permute.xlu0 %2715  ;;  %v3445_v3 = vadd.f32 %v6018_v0, %v3444_v44  ;;  %1715 = vst.msk [vmem:[#allocation2 + $0x50] sm:$0xff] %vm1704_vm11, %v1629_v55  ;;  %v7534_v44 = vsel %vm928_vm10, 1.0, %v10866_v1 }
 0x20e   : > { %2789 = vst.msk [vmem:[#allocation2 + $0xb8] sm:$0xff] %vm10910_vm3, %v2716_v23  ;;  %v7521_v37 = vpop.permute.xlu2 %2689 }
 0x20f   : > { %v3449_v31 = vsel %vm3448_vm5, %v6018_v0, %v3445_v3  ;;  %v2965_v24 = vpop.f32.mrf.mxu0  ;;  %10970 = vst [vmem:[#allocation21_spill] sm:$0xff] %v7534_v44  ;;  %v1570_v3 = vmul.f32 %v7531_v42, %v7345_v15 }
 0x210   : > { %v3454_v17 = vsel %vm3451_vm7, %v3453_v25, %v3449_v31  ;;  %v7525_v39 = vadd.f32 %v7425_v28, %v2965_v24  ;;  %v1346_v25 = vmul.f32 %v7534_v44, %v1314_v22 }
 0x211   : > { %v3655_v10 = vmul.f32 %v3454_v17, %v7445_v12 }
 0x212   : > { %1212 = vrot.lane.b32.xlu1 %v1121_v38, %s6287_s24  ;;  %v6020_v0 = vpop.eup %6019  ;;  %v5847_v12 = vmul.f32 -1.442695, %v7525_v39 }
 0x213   : > { %1210 = vrot.lane.b32.xlu0 %v1120_v20, %s6287_s24  ;;  %3692 = vst.msk [vmem:[#allocation3 + $0xa9] sm:$0xff] %vm3668_vm0, %v3655_v10  ;;  %v3130_v63 = vadd.f32 1.0, %v6020_v0  ;;  %1435 = vrot.lane.b32.xlu2 %v1313_v5, %s6286_s23  ;;  %v1021_v20 = vld [vmem:[%s6380_s22 + $0xc0] sm:$0xff] }
 0x214   : > { %v1824_v55 = vpop.permute.xlu1 %1823 }
 0x215   : > { %v1822_v23 = vpop.permute.xlu0 %1821  ;;  %1909 = vst.msk [vmem:[#allocation2 + $0x58] sm:$0xff] %vm1897_vm14, %v1824_v55  ;;  %v2821_v58 = vld [vmem:[#allocation2 + $0xb8] sm:$0xff]  ;;  %6021 = vrcp.f32 %v3130_v63  ;;  %vm3251_vm10 = vweird.f32 %v3130_v63  ;;  %v3255_v5 = vand.u32 2147483647, %v3130_v63 }
 0x216   : > { %1908 = vst.msk [vmem:[#allocation2 + $0x50] sm:$0xff] %vm1897_vm14, %v1822_v23  ;;  %6023 = vpow2.f32 %v5847_v12  ;;  %v2841_v31 = vpack.c.bf16 %v2821_v58, %v2820_v49  ;;  %v1209_v38 = vpop.permute.xlu2 %1208  ;;  %v1053_v12 = vmul.f32 %v7307_v6, %v1021_v20  ;;  %v3257_v49 = vand.u32 2147483648, %v3130_v63  ;;  %v7899_v6 = vld [vmem:[%s6380_s22 + $0x109] sm:$0xff] }
 0x217   : > { %2133 = vst.msk [vmem:[#allocation2 + $0x50] sm:$0xff] %vm2122_vm15, %v7473_v51  ;;  %v1022_v51 = vld [vmem:[%s6380_s22 + $0xc8] sm:$0xff]  ;;  %vm3256_vm5 = vcmp.eq.f32.partialorder %v3255_v5, 8.507059e+37 }
 0x218   : > { %5835 = vmatmul.msk.bf16.gmra.mxu2 %vm2886_vm4, %v2841_v31  ;;  %1087 = vst.msk [vmem:[#allocation2 + $0xc8] sm:$0xff] %vm1061_vm6, %v1022_v51 }
 0x219   : > { %1280 = vst.msk [vmem:[#allocation2 + $0xc8] sm:$0xff] %vm1254_vm8, %v1209_v38 }
 0x21a   : > { %1660 = vrot.lane.b32.xlu1 %v1570_v3, %s6288_s25  ;;  %1086 = vst.msk [vmem:[#allocation2 + $0xc0] sm:$0xff] %vm1061_vm6, %v1053_v12  ;;  %v3258_v3 = vor.u32 1.1754944e-38, %v3257_v49 }
 0x21b   : > { %1437 = vrot.lane.b32.xlu0 %v1346_v25, %s6286_s23  ;;  %v6022_v17 = vpop.eup %6021  ;;  %1662 = vrot.lane.b32.xlu2 %v7368_v40, %s6288_s25 }
 0x21c   : > { %v2272_v15 = vpop.permute.xlu1 %2271  ;;  %v6024_v10 = vpop.eup %6023  ;;  %v3247_v0 = vmul.f32 %v6022_v17, %v3130_v63  ;;  %vm3252_vm12 = vweird.f32 %v6022_v17 }
 0x21d   : > { %v2049_v24 = vpop.permute.xlu0 %2048  ;;  %2358 = vst.msk [vmem:[#allocation2 + $0x50] sm:$0xff] %vm2347_vm1, %v2272_v15  ;;  %v3131_v22 = vadd.f32 1.0, %v6024_v10  ;;  %vm3253_vm13 = vmor %vm3251_vm10, %vm3252_vm12 }
 0x21e   : > { %2134 = vst.msk [vmem:[#allocation2 + $0x58] sm:$0xff] %vm2122_vm15, %v2049_v24  ;;  %v3248_v55 = vsub.f32 1.0, %v3247_v0  ;;  %v7559_v23 = vpop.permute.xlu2 %1656 }
 0x21f   : > { %2359 = vst.msk [vmem:[#allocation2 + $0x58] sm:$0xff] %vm2347_vm1, %v7494_v26  ;;  %6025 = vrcp.f32 %v3131_v22  ;;  %v7569_v26 = vld [vmem:[%s6380_s22 + $0xf0] sm:$0xff]  ;;  %v3272_v0 = vand.u32 2147483648, %v3131_v22  ;;  %vm3266_vm9 = vweird.f32 %v3131_v22 }
 0x220   : > { %v3249_v58 = vmul.f32 %v6022_v17, %v3248_v55 }
 0x221   : > { %v3273_v49 = vor.u32 1.1754944e-38, %v3272_v0  ;;  %v1302_v0 = vld [vmem:[%s6380_s22 + $0x7a] sm:$0xff] }
 0x222   : > { %1855 = vrot.lane.b32.xlu1 %v7383_v7, %s6289_s26  ;;  %v3250_v40 = vadd.f32 %v6022_v17, %v3249_v58  ;;  %v2213_v7 = vmul.f32 %v7531_v42, %v7569_v26  ;;  %v1109_v58 = vld [vmem:[%s6380_s22 + $0x79] sm:$0xff] }
 0x223   : > { %1853 = vrot.lane.b32.xlu0 %v7386_v57, %s6289_s26  ;;  %v1989_v57 = vmul.f32 %v7534_v44, %v7408_v61  ;;  %2078 = vrot.lane.b32.xlu2 %v7415_v52, %s6290_s27  ;;  %v3270_v52 = vand.u32 2147483647, %v3131_v22 }
 0x224   : > { %v2467_v25 = vpop.permute.xlu1 %2466  ;;  %v3254_v20 = vsel %vm3253_vm13, %v6022_v17, %v3250_v40  ;;  %v1108_v40 = vld [vmem:[%s6380_s22 + $0x71] sm:$0xff]  ;;  %vm10971_vm13 = vcmask 195712  }
 0x225   : > { %v2465_v31 = vpop.permute.xlu0 %2464  ;;  %2552 = vst.msk [vmem:[#allocation2 + $0x58] sm:$0xff] %vm10911_vm2, %v2467_v25  ;;  %v6026_v63 = vpop.eup %6025  ;;  %v3259_v38 = vsel %vm3256_vm5, %v3258_v3, %v3254_v20  ;;  %vm3271_vm12 = vcmp.eq.f32.partialorder %v3270_v52, 8.507059e+37  ;;  %vm10972_vm5 = vmmov %vm10971_vm13 }
 0x226   : > { %2551 = vst.msk [vmem:[#allocation2 + $0x50] sm:$0xff] %vm10911_vm2, %v2465_v31  ;;  %v3642_v15 = vmul.f32 %v3259_v38, %v7500_v19  ;;  %v3262_v24 = vmul.f32 %v6026_v63, %v3131_v22  ;;  %v1852_v17 = vpop.permute.xlu2 %1851  ;;  %vm3267_vm7 = vweird.f32 %v6026_v63  ;;  %v404_v22 = vadd.s32 120, %v6367_v2 }
 0x227   : > { %2776 = vst.msk [vmem:[#allocation2 + $0x50] sm:$0xff] %vm10910_vm3, %v7521_v37  ;;  %v7587_v37 = vld [vmem:[%s6380_s22 + $0xf8] sm:$0xff]  ;;  %vm3268_vm10 = vmor %vm3266_vm9, %vm3267_vm7 }
 0x228   : > { %3679 = vst.msk [vmem:[#allocation3 + $0x41] sm:$0xff] %vm3668_vm0, %v3642_v15  ;;  %v3263_v10 = vsub.f32 1.0, %v3262_v24  ;;  %v7610_v24 = vld [vmem:[%s6380_s22 + $0xf9] sm:$0xff] }
 0x22a   : > { %2303 = vrot.lane.b32.xlu1 %v2213_v7, %s6291_s28  ;;  %v3264_v61 = vmul.f32 %v6026_v63, %v3263_v10  ;;  %v7600_v7 = vld [vmem:[%s6380_s22 + $0xf1] sm:$0xff]  ;;  %v7617_v10 = vld [vmem:[%s6380_s22 + $0xfa] sm:$0xff] }
 0x22b   : > { %2080 = vrot.lane.b32.xlu0 %v1989_v57, %s6290_s27  ;;  %2305 = vrot.lane.b32.xlu2 %v7587_v37, %s6291_s28  ;;  %v530_v57 = vand.u32 15, %v404_v22 }
 0x22c   : > { %v1207_v19 = vpop.permute.xlu1 %1206  ;;  %v3265_v12 = vadd.f32 %v6026_v63, %v3264_v61  ;;  %v1009_v61 = vld [vmem:[%s6380_s22 + $0x60] sm:$0xff] }
 0x22d   : > { %v2692_v51 = vpop.permute.xlu0 %2691  ;;  %1279 = vst.msk [vmem:[#allocation2 + $0xc0] sm:$0xff] %vm1254_vm8, %v1207_v19  ;;  %vm916_vm7 = vcmp.le.s32.totalorder %v530_v57, 14 }
 0x22e   : > { %2777 = vst.msk [vmem:[#allocation2 + $0x58] sm:$0xff] %vm10910_vm3, %v2692_v51  ;;  %v3269_v55 = vsel %vm3268_vm10, %v6026_v63, %v3265_v12  ;;  %v2300_v5 = vpop.permute.xlu2 %2299  ;;  %v2808_v25 = vld [vmem:[#allocation2 + $0x50] sm:$0xff]  ;;  %v1010_v12 = vld [vmem:[%s6380_s22 + $0x68] sm:$0xff]  ;;  %vm10975_vm10 = vmmov %vm10972_vm5 }
 0x22f   : > { %v3274_v3 = vsel %vm3271_vm12, %v3273_v49, %v3269_v55  ;;  %v1041_v55 = vmul.f32 %v7431_v54, %v1009_v61  ;;  %1075 = vst.msk [vmem:[#allocation2 + $0x68] sm:$0xff] %vm1061_vm6, %v1010_v12 }
 0x230   : > { %v3643_v31 = vmul.f32 %v3274_v3, %v7525_v39 }
 0x231   : > { %1074 = vst.msk [vmem:[#allocation2 + $0x60] sm:$0xff] %vm1061_vm6, %v1041_v55 }
 0x232   : > { %1188 = vrot.lane.b32.xlu1 %v1109_v58, %s6287_s24  ;;  %3680 = vst.msk [vmem:[#allocation3 + $0x49] sm:$0xff] %vm3668_vm0, %v3643_v31  ;;  %v7633_v58 = vld [vmem:[%s6380_s22 + $0xf2] sm:$0xff] }
 0x233   : > { %1186 = vrot.lane.b32.xlu0 %v1108_v40, %s6287_s24  ;;  %2496 = vrot.lane.b32.xlu2 %v7600_v7, %s6292_s29  ;;  %v403_v40 = vadd.s32 112, %v6367_v2 }
 0x234   : > { %v1434_v20 = vpop.permute.xlu1 %1433 }
 0x235   : > { %v1432_v38 = vpop.permute.xlu0 %1431  ;;  %1505 = vst.msk [vmem:[#allocation2 + $0xc8] sm:$0xff] %vm10971_vm13, %v1434_v20  ;;  %v2809_v63 = vld [vmem:[#allocation2 + $0x58] sm:$0xff]  ;;  %vm10976_vm13 = vmmov %vm10972_vm5 }
 0x236   : > { %v2835_v15 = vpack.c.bf16 %v2809_v63, %v2808_v25  ;;  %1504 = vst.msk [vmem:[#allocation2 + $0xc0] sm:$0xff] %vm10972_vm5, %v1432_v38  ;;  %v1185_v39 = vpop.permute.xlu2 %1184 }
 0x237   : > { %1729 = vst.msk [vmem:[#allocation2 + $0xc0] sm:$0xff] %vm1704_vm11, %v7559_v23  ;;  %v7622_v23 = vsel %vm916_vm7, 1.0, %v10866_v1 }
 0x238   : > { %5829 = vmatmul.msk.bf16.gmra.mxu0 %vm2886_vm4, %v2835_v15  ;;  %10973 = vst [vmem:[#allocation22_spill] sm:$0xff] %v7622_v23  ;;  %v1334_v51 = vmul.f32 %v7622_v23, %v1302_v0 }
 0x239   : > { %1268 = vst.msk [vmem:[#allocation2 + $0x68] sm:$0xff] %vm1254_vm8, %v1185_v39 }
 0x23a   : > { %1411 = vrot.lane.b32.xlu1 %v7265_v41, %s6286_s23  ;;  %v2632_v41 = vmul.f32 %v7534_v44, %v7617_v10 }
 0x23b   : > { %2498 = vrot.lane.b32.xlu0 %v7610_v24, %s6292_s29  ;;  %1413 = vrot.lane.b32.xlu2 %v1334_v51, %s6286_s23  ;;  %v2169_v51 = vld [vmem:[%s6380_s22 + $0x90] sm:$0xff] }
 0x23c   : > { %v1850_v52 = vpop.permute.xlu1 %1849 }
 0x23d   : > { %v1659_v19 = vpop.permute.xlu0 %1658  ;;  %1922 = vst.msk [vmem:[#allocation2 + $0xc0] sm:$0xff] %vm1897_vm14, %v1850_v52 }
 0x23e   : > { %1730 = vst.msk [vmem:[#allocation2 + $0xc8] sm:$0xff] %vm1704_vm11, %v1659_v19  ;;  %v1408_v49 = vpop.permute.xlu2 %1407 }
 0x23f   : > { %1923 = vst.msk [vmem:[#allocation2 + $0xc8] sm:$0xff] %vm1897_vm14, %v1852_v17  ;;  %v523_v17 = vand.u32 15, %v403_v40 }
 0x241   : > { %vm819_vm9 = vcmp.ge.s32.totalorder %v523_v17, 1  ;;  %v2588_v17 = vld [vmem:[%s6380_s22 + $0x9a] sm:$0xff] }
 0x242   : > { %2723 = vrot.lane.b32.xlu1 %v2632_v41, %s6293_s30  ;;  %v7651_v38 = vsel %vm819_vm9, 1.0, %v10866_v1 }
 0x243   : > { %2721 = vrot.lane.b32.xlu0 %v7633_v58, %s6293_s30  ;;  %v2998_v3 = vpop.f32.mrf.mxu2  ;;  %10974 = vst [vmem:[#allocation23_spill] sm:$0xff] %v7651_v38  ;;  %v1558_v57 = vmul.f32 %v7651_v38, %v7458_v29  ;;  %v2201_v12 = vmul.f32 %v7651_v38, %v2169_v51  ;;  %v2587_v51 = vld [vmem:[%s6380_s22 + $0x92] sm:$0xff] }
 0x244   : > { %v7644_v22 = vadd.f32 %v7425_v28, %v2998_v3  ;;  %v2077_v25 = vpop.permute.xlu1 %2076 }
 0x245   : > { %v2075_v31 = vpop.permute.xlu0 %2074  ;;  %2148 = vst.msk [vmem:[#allocation2 + $0xc8] sm:$0xff] %vm2122_vm15, %v2077_v25  ;;  %1636 = vrot.lane.b32.xlu2 %v1558_v57, %s6288_s25 }
 0x246   : > { %2147 = vst.msk [vmem:[#allocation2 + $0xc0] sm:$0xff] %vm2122_vm15, %v2075_v31  ;;  %v5860_v20 = vmul.f32 -1.442695, %v7644_v22  ;;  %v2720_v63 = vpop.permute.xlu2 %2719 }
 0x247   : > { %2372 = vst.msk [vmem:[#allocation2 + $0xc0] sm:$0xff] %vm2347_vm1, %v2300_v5 }
 0x248   : > { %6027 = vpow2.f32 %v5860_v20 }
 0x24a   : > { %1829 = vrot.lane.b32.xlu1 %v7481_v13, %s6289_s26  ;;  %v1977_v13 = vmul.f32 %v7622_v23, %v7511_v18 }
 0x24b   : > { %1638 = vrot.lane.b32.xlu0 %v7470_v16, %s6288_s25  ;;  %v3000_v15 = vpop.f32.mrf.mxu2 }
 0x24c   : > { %v7661_v39 = vadd.f32 %v7425_v28, %v3000_v15  ;;  %v1183_v5 = vpop.permute.xlu1 %1182 }
 0x24d   : > { %v2302_v61 = vpop.permute.xlu0 %2301  ;;  %1267 = vst.msk [vmem:[#allocation2 + $0x60] sm:$0xff] %vm1254_vm8, %v1183_v5  ;;  %1831 = vrot.lane.b32.xlu2 %v7491_v4, %s6289_s26  ;;  %v2170_v4 = vld [vmem:[%s6380_s22 + $0x98] sm:$0xff] }
 0x24e   : > { %v5861_v29 = vmul.f32 -1.442695, %v7661_v39  ;;  %2373 = vst.msk [vmem:[#allocation2 + $0xc8] sm:$0xff] %vm2347_vm1, %v2302_v61  ;;  %v6028_v0 = vpop.eup %6027  ;;  %v7669_v52 = vpop.permute.xlu2 %1825  ;;  %v2620_v61 = vmul.f32 %v7622_v23, %v2588_v17 }
 0x24f   : > { %1492 = vst.msk [vmem:[#allocation2 + $0x60] sm:$0xff] %vm10975_vm10, %v1408_v49  ;;  %v3144_v16 = vadd.f32 1.0, %v6028_v0  ;;  %v2394_v49 = vld [vmem:[%s6380_s22 + $0x91] sm:$0xff]  ;;  %v2395_v0 = vld [vmem:[%s6380_s22 + $0x99] sm:$0xff] }
 0x250   : > { %6029 = vpow2.f32 %v5861_v29 }
 0x251   : > { %6031 = vrcp.f32 %v3144_v16  ;;  %v3465_v15 = vand.u32 2147483647, %v3144_v16  ;;  %vm3461_vm5 = vweird.f32 %v3144_v16 }
 0x252   : > { %2056 = vrot.lane.b32.xlu1 %v1977_v13, %s6290_s27 }
 0x253   : > { %2054 = vrot.lane.b32.xlu0 %v7488_v43, %s6290_s27  ;;  %vm3466_vm9 = vcmp.eq.f32.partialorder %v3465_v15, 8.507059e+37 }
 0x254   : > { %v2495_v19 = vpop.permute.xlu1 %2494 }
 0x255   : > { %v2493_v18 = vpop.permute.xlu0 %2492  ;;  %2566 = vst.msk [vmem:[#allocation2 + $0xc8] sm:$0xff] %vm10911_vm2, %v2495_v19  ;;  %2279 = vrot.lane.b32.xlu2 %v2201_v12, %s6291_s28 }
 0x256   : > { %v6030_v41 = vpop.eup %6029  ;;  %2565 = vst.msk [vmem:[#allocation2 + $0xc0] sm:$0xff] %vm10911_vm2, %v2493_v18  ;;  %v7686_v43 = vpop.permute.xlu2 %2052 }
 0x257   : > { %v7680_v55 = vadd.f32 1.0, %v6030_v41  ;;  %2791 = vst.msk [vmem:[#allocation2 + $0xc8] sm:$0xff] %vm10910_vm3, %v2720_v63  ;;  %v6032_v40 = vpop.eup %6031  ;;  %v3467_v63 = vand.u32 2147483648, %v3144_v16 }
 0x258   : > { %v3457_v3 = vmul.f32 %v6032_v40, %v3144_v16  ;;  %vm3462_vm12 = vweird.f32 %v6032_v40 }
 0x259   : > { %6033 = vrcp.f32 %v7680_v55  ;;  %vm3463_vm7 = vmor %vm3461_vm5, %vm3462_vm12  ;;  %v3468_v41 = vor.u32 1.1754944e-38, %v3467_v63  ;;  %vm3476_vm12 = vweird.f32 %v7680_v55 }
 0x25a   : > { %2472 = vrot.lane.b32.xlu1 %v2394_v49, %s6292_s29  ;;  %v3458_v25 = vsub.f32 1.0, %v3457_v3  ;;  %v417_v49 = vadd.s32 224, %v6367_v2 }
 0x25b   : > { %2281 = vrot.lane.b32.xlu0 %v2170_v4, %s6291_s28 }
 0x25c   : > { %v2718_v31 = vpop.permute.xlu1 %2717  ;;  %v3459_v57 = vmul.f32 %v6032_v40, %v3458_v25 }
 0x25d   : > { %v1410_v20 = vpop.permute.xlu0 %1409  ;;  %2790 = vst.msk [vmem:[#allocation2 + $0xc0] sm:$0xff] %vm10910_vm3, %v2718_v31  ;;  %v2968_v5 = vpop.f32.mrf.mxu0  ;;  %2474 = vrot.lane.b32.xlu2 %v2395_v0, %s6292_s29  ;;  %v3482_v31 = vand.u32 2147483648, %v7680_v55  ;;  %v621_v0 = vand.u32 15, %v417_v49  ;;  %v1123_v49 = vld [vmem:[%s6380_s22 + $0xe9] sm:$0xff] }
 0x25e   : > { %1493 = vst.msk [vmem:[#allocation2 + $0x68] sm:$0xff] %vm10976_vm13, %v1410_v20  ;;  %v7696_v13 = vadd.f32 %v7425_v28, %v2968_v5  ;;  %v3460_v19 = vadd.f32 %v6032_v40, %v3459_v57  ;;  %v7703_v4 = vpop.permute.xlu2 %2468  ;;  %v2823_v25 = vld [vmem:[#allocation2 + $0xc8] sm:$0xff]  ;;  %v3480_v57 = vand.u32 2147483647, %v7680_v55 }
 0x25f   : > { %v6034_v29 = vpop.eup %6033 }
 0x260   : > { %v3472_v18 = vmul.f32 %v6034_v29, %v7680_v55  ;;  %v5848_v12 = vmul.f32 -1.442695, %v7696_v13  ;;  %v3464_v3 = vsel %vm3463_vm7, %v6032_v40, %v3460_v19  ;;  %vm3477_vm10 = vweird.f32 %v6034_v29  ;;  %v3708_v55 = vld [vmem:[#allocation3] sm:$0xff] }
 0x261   : > { %v3469_v16 = vsel %vm3466_vm9, %v3468_v41, %v3464_v3  ;;  %vm3478_vm13 = vmor %vm3476_vm12, %vm3477_vm10  ;;  %v1315_v41 = vld [vmem:[%s6380_s22 + $0xe2] sm:$0xff]  ;;  %vm3481_vm5 = vcmp.eq.f32.partialorder %v3480_v57, 8.507059e+37  ;;  %vm7725_vm7 = vcmp.ge.s32.totalorder %v621_v0, 1  ;;  %v7742_v57 = vld [vmem:[%s10856_s3] ss:$0 sm:$0xff] }
 0x262   : > { %v3473_v17 = vsub.f32 1.0, %v3472_v18  ;;  %2699 = vrot.lane.b32.xlu1 %v2620_v61, %s6293_s30  ;;  %6035 = vpow2.f32 %v5848_v12  ;;  %v3656_v20 = vmul.f32 %v3469_v16, %v7644_v22  ;;  %v3483_v18 = vor.u32 1.1754944e-38, %v3482_v31  ;;  %v1122_v12 = vld [vmem:[%s6380_s22 + $0xe1] sm:$0xff] }
 0x263   : > { %2697 = vrot.lane.b32.xlu0 %v2587_v51, %s6293_s30  ;;  %v7783_v31 = vld [vmem:[%s10856_s3 + $0x3] ss:$0 sm:$0xff] }
 0x264   : > { %v3474_v63 = vmul.f32 %v6034_v29, %v3473_v17  ;;  %v1635_v40 = vpop.permute.xlu1 %1634  ;;  %v2822_v5 = vld [vmem:[#allocation2 + $0xc0] sm:$0xff]  ;;  %3693 = vst.msk [vmem:[#allocation3 + $0xb1] sm:$0xff] %vm3668_vm0, %v3656_v20 }
 0x265   : > { %v1633_v15 = vpop.permute.xlu0 %1632  ;;  %1718 = vst.msk [vmem:[#allocation2 + $0x68] sm:$0xff] %vm1704_vm11, %v1635_v40  ;;  %v2842_v61 = vpack.c.bf16 %v2823_v25, %v2822_v5  ;;  %v2970_v22 = vpop.f32.mrf.mxu0  ;;  %1214 = vrot.lane.b32.xlu2 %v1122_v12, %s6287_s24  ;;  %v7754_v5 = vsel %vm7725_vm7, 1.0, %v10866_v1 }
 0x266   : > { %v3475_v19 = vadd.f32 %v6034_v29, %v3474_v63  ;;  %1717 = vst.msk [vmem:[#allocation2 + $0x60] sm:$0xff] %vm1704_vm11, %v1633_v15  ;;  %v7716_v51 = vadd.f32 %v7425_v28, %v2970_v22  ;;  %v7729_v28 = vpop.permute.xlu2 %2695  ;;  %v1572_v0 = vmul.f32 %v7754_v5, %v7569_v26 }
 0x267   : > { %5836 = vmatmul.msk.bf16.gmra.mxu2 %vm2886_vm4, %v2842_v61  ;;  %1910 = vst.msk [vmem:[#allocation2 + $0x60] sm:$0xff] %vm1897_vm14, %v7669_v52  ;;  %v418_v52 = vadd.s32 232, %v6367_v2  ;;  %v3838_v61 = vld [vmem:[#allocation3 + $0x1] sm:$0xff] }
 0x268   : > { %v3479_v3 = vsel %vm3478_vm13, %v6034_v29, %v3475_v19  ;;  %v6036_v17 = vpop.eup %6035  ;;  %v5849_v16 = vmul.f32 -1.442695, %v7716_v51  ;;  %v3740_v29 = vmul.f32 %v6402_v14, %v3708_v55  ;;  %10979 = vst [vmem:[#allocation24_spill] sm:$0xff] %v7754_v5 }
 0x269   : > { %v3484_v25 = vsel %vm3481_vm5, %v3483_v18, %v3479_v3  ;;  %v7732_v63 = vadd.f32 1.0, %v6036_v17  ;;  %v628_v19 = vand.u32 15, %v418_v52  ;;  %v3936_v3 = vld [vmem:[#allocation3 + $0x2] sm:$0xff] }
 0x26a   : > { %v3657_v20 = vmul.f32 %v3484_v25, %v7661_v39  ;;  %1439 = vrot.lane.b32.xlu1 %v1315_v41, %s6286_s23  ;;  %6037 = vpow2.f32 %v5849_v16  ;;  %v7747_v39 = vld [vmem:[%s10856_s3 + $0x1] ss:$0 sm:$0xff]  ;;  %v3774_v22 = vmul.f32 %v7742_v57, %v3740_v29  ;;  %v7767_v41 = vld [vmem:[%s10856_s3 + $0x2] ss:$0 sm:$0xff] }
 0x26b   : > { %1216 = vrot.lane.b32.xlu0 %v1123_v49, %s6287_s24  ;;  %6039 = vrcp.f32 %v7732_v63  ;;  %v3872_v18 = vmul.f32 %v7747_v39, %v3838_v61  ;;  %v7769_v49 = vld [vmem:[#allocation3 + $0x10] sm:$0xff]  ;;  %vm930_vm9 = vcmp.le.s32.totalorder %v628_v19, 14  ;;  %v4002_v25 = vmul.f32 %v7767_v41, %v3936_v3 }
 0x26c   : > { %3694 = vst.msk [vmem:[#allocation3 + $0xb9] sm:$0xff] %vm3668_vm0, %v3657_v20  ;;  %v2051_v40 = vpop.permute.xlu1 %2050  ;;  %v4068_v16 = vmul.f32 %v6402_v14, %v7769_v49  ;;  %v7790_v29 = vsel %vm930_vm9, 1.0, %v10866_v1  ;;  %v3285_v3 = vand.u32 2147483647, %v7732_v63  ;;  %vm3281_vm12 = vweird.f32 %v7732_v63  ;;  %v7830_v1 = vld [vmem:[%s6380_s22 + $0x100] sm:$0xff] }
 0x26d   : > { %v1828_v15 = vpop.permute.xlu0 %1827  ;;  %2135 = vst.msk [vmem:[#allocation2 + $0x60] sm:$0xff] %vm2122_vm15, %v2051_v40  ;;  %v3904_v55 = vadd.f32 %v3872_v18, %v3774_v22  ;;  %v1316_v40 = vld [vmem:[%s6380_s22 + $0xea] sm:$0xff]  ;;  %v3287_v18 = vand.u32 2147483648, %v7732_v63 }
 0x26e   : > { %1911 = vst.msk [vmem:[#allocation2 + $0x68] sm:$0xff] %vm1897_vm14, %v1828_v15  ;;  %v7771_v17 = vpop.permute.xlu2 %1435  ;;  %v1024_v15 = vld [vmem:[%s6380_s22 + $0xd8] sm:$0xff]  ;;  %v4102_v22 = vmul.f32 %v7783_v31, %v4068_v16  ;;  %vm3286_vm5 = vcmp.eq.f32.partialorder %v3285_v3, 8.507059e+37  ;;  %v7853_v3 = vld [vmem:[%s6380_s22 + $0x108] sm:$0xff] }
 0x26f   : > { %2136 = vst.msk [vmem:[#allocation2 + $0x68] sm:$0xff] %vm2122_vm15, %v7686_v43  ;;  %v4034_v19 = vadd.f32 %v4002_v25, %v3904_v55  ;;  %v7810_v55 = vld [vmem:[#allocation3 + $0x20] sm:$0xff]  ;;  %v7815_v16 = vld [vmem:[#allocation3 + $0x11] sm:$0xff] }
 0x270   : > { %v6038_v12 = vpop.eup %6037  ;;  %10980 = vst [vmem:[#allocation25_spill] sm:$0xff] %v7790_v29 }
 0x271   : > { %v6040_v43 = vpop.eup %6039  ;;  %v7785_v20 = vadd.f32 1.0, %v6038_v12  ;;  %1089 = vst.msk [vmem:[#allocation2 + $0xd8] sm:$0xff] %vm1061_vm6, %v1024_v15  ;;  %v7826_v15 = vld [vmem:[#allocation3 + $0x12] sm:$0xff] }
 0x272   : > { %1666 = vrot.lane.b32.xlu1 %v7587_v37, %s6288_s25  ;;  %v3277_v26 = vmul.f32 %v6040_v43, %v7732_v63  ;;  %vm3282_vm10 = vweird.f32 %v6040_v43  ;;  %v4336_v63 = vmul.f32 %v6402_v14, %v7810_v55 }
 0x273   : > { %1664 = vrot.lane.b32.xlu0 %v1572_v0, %s6288_s25  ;;  %v1023_v0 = vld [vmem:[%s6380_s22 + $0xd0] sm:$0xff]  ;;  %6041 = vrcp.f32 %v7785_v20  ;;  %vm3283_vm13 = vmor %vm3281_vm12, %vm3282_vm10  ;;  %vm3296_vm9 = vweird.f32 %v7785_v20  ;;  %vm10983_vm12 = vcmask 195712  }
 0x274   : > { %v2278_v37 = vpop.permute.xlu1 %2277  ;;  %v3278_v61 = vsub.f32 1.0, %v3277_v26  ;;  %v1055_v25 = vmul.f32 %v7531_v42, %v1023_v0 }
 0x275   : > { %v2276_v52 = vpop.permute.xlu0 %2275  ;;  %2361 = vst.msk [vmem:[#allocation2 + $0x68] sm:$0xff] %vm2347_vm1, %v2278_v37  ;;  %v1348_v37 = vmul.f32 %v7790_v29, %v1316_v40 }
 0x276   : > { %2360 = vst.msk [vmem:[#allocation2 + $0x60] sm:$0xff] %vm2347_vm1, %v2276_v52  ;;  %v3279_v12 = vmul.f32 %v6040_v43, %v3278_v61  ;;  %v7803_v26 = vpop.permute.xlu2 %1662  ;;  %v7820_v52 = vld [vmem:[%s10856_s3 + $0x5] ss:$0 sm:$0xff] }
 0x277   : > { %2553 = vst.msk [vmem:[#allocation2 + $0x60] sm:$0xff] %vm10911_vm2, %v7703_v4  ;;  %v7808_v4 = vld [vmem:[%s10856_s3 + $0x4] ss:$0 sm:$0xff]  ;;  %1441 = vrot.lane.b32.xlu2 %v1348_v37, %s6286_s23  ;;  %v7838_v37 = vld [vmem:[%s10856_s3 + $0x6] ss:$0 sm:$0xff] }
 0x278   : > { %v3280_v40 = vadd.f32 %v6040_v43, %v3279_v12  ;;  %1088 = vst.msk [vmem:[#allocation2 + $0xd0] sm:$0xff] %vm1061_vm6, %v1055_v25  ;;  %v4134_v12 = vadd.f32 %v4102_v22, %v4034_v19  ;;  %v4170_v46 = vmul.f32 %v7808_v4, %v7815_v16  ;;  %v4270_v19 = vmul.f32 %v7820_v52, %v7826_v15 }
 0x27a   : > { %2082 = vrot.lane.b32.xlu1 %v7633_v58, %s6290_s27  ;;  %v3288_v58 = vor.u32 1.1754944e-38, %v3287_v18  ;;  %v3284_v44 = vsel %vm3283_vm13, %v6040_v43, %v3280_v40  ;;  %v6042_v18 = vpop.eup %6041  ;;  %v2215_v43 = vmul.f32 %v7754_v5, %v7830_v1  ;;  %v4202_v25 = vadd.f32 %v4170_v46, %v4134_v12  ;;  %v7871_v46 = vld [vmem:[%s10856_s3 + $0x8] ss:$0 sm:$0xff] }
 0x27b   : > { %1859 = vrot.lane.b32.xlu0 %v7610_v24, %s6289_s26  ;;  %v3292_v22 = vmul.f32 %v6042_v18, %v7785_v20  ;;  %vm3297_vm7 = vweird.f32 %v6042_v18  ;;  %v7877_v12 = vld [vmem:[#allocation3 + $0x22] sm:$0xff] }
 0x27c   : > { %v2694_v61 = vpop.permute.xlu1 %2693  ;;  %v3289_v62 = vsel %vm3286_vm5, %v3288_v58, %v3284_v44  ;;  %v4370_v44 = vmul.f32 %v7838_v37, %v4336_v63  ;;  %v3300_v63 = vand.u32 2147483647, %v7785_v20  ;;  %vm7884_vm10 = vmor %vm3296_vm9, %vm3297_vm7  ;;  %v4538_v54 = vmul.f32 %v7871_v46, %v7877_v12 }
 0x27d   : > { %v2471_v0 = vpop.permute.xlu0 %2470  ;;  %2778 = vst.msk [vmem:[#allocation2 + $0x60] sm:$0xff] %vm10910_vm3, %v2694_v61  ;;  %v3644_v14 = vmul.f32 %v3289_v62, %v7696_v13  ;;  %v3293_v40 = vsub.f32 1.0, %v3292_v22  ;;  %v7862_v62 = vld [vmem:[%s10856_s3 + $0x7] ss:$0 sm:$0xff]  ;;  %v4302_v13 = vadd.f32 %v4270_v19, %v4202_v25  ;;  %vm10984_vm5 = vmmov %vm10983_vm12 }
 0x27e   : > { %2554 = vst.msk [vmem:[#allocation2 + $0x68] sm:$0xff] %vm10911_vm2, %v2471_v0  ;;  %v7857_v58 = vpop.permute.xlu2 %2078  ;;  %v3302_v0 = vand.u32 2147483648, %v7785_v20  ;;  %vm3301_vm13 = vcmp.eq.f32.partialorder %v3300_v63, 8.507059e+37 }
 0x27f   : > { %2779 = vst.msk [vmem:[#allocation2 + $0x68] sm:$0xff] %vm10910_vm3, %v7729_v28  ;;  %v7866_v28 = vld [vmem:[#allocation3 + $0x21] sm:$0xff]  ;;  %v3294_v61 = vmul.f32 %v6042_v18, %v3293_v40  ;;  %1857 = vrot.lane.b32.xlu2 %v7600_v7, %s6289_s26  ;;  %v4402_v25 = vadd.f32 %v4370_v44, %v4302_v13 }
 0x280   : > { %3681 = vst.msk [vmem:[#allocation3 + $0x51] sm:$0xff] %vm3668_vm0, %v3644_v14  ;;  %v3303_v13 = vor.u32 1.1754944e-38, %v3302_v0 }
 0x281   : > { %v3295_v42 = vadd.f32 %v6042_v18, %v3294_v61  ;;  %v7896_v61 = vld [vmem:[%s6380_s22 + $0x102] sm:$0xff] }
 0x282   : > { %2309 = vrot.lane.b32.xlu1 %v7853_v3, %s6291_s28 }
 0x283   : > { %2307 = vrot.lane.b32.xlu0 %v2215_v43, %s6291_s28  ;;  %v4438_v43 = vmul.f32 %v7862_v62, %v7866_v28  ;;  %v3299_v44 = vsel %vm7884_vm10, %v6042_v18, %v3295_v42  ;;  %v3742_v18 = vmul.f32 %v6458_v34, %v7769_v49  ;;  %v635_v49 = vand.u32 15, %v419_v9  ;;  %vm10990_vm10 = vmmov %vm10984_vm5 }
 0x284   : > { %v1213_v19 = vpop.permute.xlu1 %1212  ;;  %v2810_v22 = vld [vmem:[#allocation2 + $0x60] sm:$0xff]  ;;  %v3304_v42 = vsel %vm3301_vm13, %v3303_v13, %v3299_v44 }
 0x285   : > { %v1211_v14 = vpop.permute.xlu0 %1210  ;;  %1282 = vst.msk [vmem:[#allocation2 + $0xd8] sm:$0xff] %vm1254_vm8, %v1213_v19  ;;  %v3709_v19 = vld [vmem:[#allocation3 + $0x8] sm:$0xff]  ;;  %v4470_v40 = vadd.f32 %v4438_v43, %v4402_v25  ;;  %v3873_v25 = vmul.f32 %v7747_v39, %v3839_v21  ;;  %v3645_v43 = vmul.f32 %v3304_v42, %v7716_v51  ;;  %v4070_v21 = vmul.f32 %v6458_v34, %v7810_v55 }
 0x286   : > { %1281 = vst.msk [vmem:[#allocation2 + $0xd0] sm:$0xff] %vm1254_vm8, %v1211_v14  ;;  %v2811_v56 = vld [vmem:[#allocation2 + $0x68] sm:$0xff]  ;;  %v1991_v14 = vmul.f32 %v7790_v29, %v7617_v10  ;;  %v3775_v0 = vmul.f32 %v7742_v57, %v3709_v19  ;;  %v3776_v19 = vmul.f32 %v7742_v57, %v3742_v18  ;;  %vm835_vm7 = vcmp.ge.s32.totalorder %v635_v49, 1  ;;  %v7944_v18 = vld [vmem:[#allocation3 + $0x1a] sm:$0xff] }
 0x287   : > { %1506 = vst.msk [vmem:[#allocation2 + $0xd0] sm:$0xff] %vm10983_vm12, %v7771_v17  ;;  %v2836_v20 = vpack.c.bf16 %v2811_v56, %v2810_v22  ;;  %v420_v17 = vadd.s32 248, %v6367_v2  ;;  %v7906_v56 = vpop.permute.xlu2 %2305  ;;  %v4570_v63 = vadd.f32 %v4538_v54, %v4470_v40  ;;  %v7916_v22 = vld [vmem:[%s10857_s4] ss:$0 sm:$0xff]  ;;  %v3969_v2 = vmul.f32 %v6388_v8, %v3937_v27  ;;  %v7928_v40 = vld [vmem:[#allocation3 + $0x18] sm:$0xff]  ;;  %vm10991_vm12 = vmmov %vm10984_vm5 }
 0x288   : > { %2084 = vrot.lane.b32.xlu2 %v1991_v14, %s6290_s27  ;;  %3682 = vst.msk [vmem:[#allocation3 + $0x59] sm:$0xff] %vm3668_vm0, %v3645_v43  ;;  %v3905_v14 = vadd.f32 %v3873_v25, %v3775_v0  ;;  %v3874_v42 = vmul.f32 %v7747_v39, %v7815_v16  ;;  %v7951_v43 = vld [vmem:[%s6380_s22 + $0x101] sm:$0xff]  ;;  %v10987_v25 = vmov 0.0   ;;  %v4237_v49 = vmul.f32 %v6388_v8, %v7944_v18 }
 0x289   : > { %5830 = vmatmul.msk.bf16.gmra.mxu0 %vm2886_vm4, %v2836_v20  ;;  %v642_v54 = vand.u32 15, %v420_v17  ;;  %v1011_v20 = vld [vmem:[%s6380_s22 + $0x70] sm:$0xff]  ;;  %v7933_v27 = vadd.f32 %v7916_v22, %v4570_v63  ;;  %v4003_v51 = vmul.f32 %v7767_v41, %v3969_v2  ;;  %v4004_v17 = vmul.f32 %v7767_v41, %v7826_v15 }
 0x28a   : > { %2725 = vrot.lane.b32.xlu1 %v7896_v61, %s6293_s30  ;;  %v1043_v9 = vmul.f32 %v7651_v38, %v1011_v20  ;;  %v3906_v16 = vadd.f32 %v3874_v42, %v3776_v19  ;;  %v4104_v15 = vmul.f32 %v7783_v31, %v4070_v21  ;;  %v1012_v42 = vld [vmem:[%s6380_s22 + $0x78] sm:$0xff] }
 0x28b   : > { %2502 = vrot.lane.b32.xlu0 %v7899_v6, %s6292_s29  ;;  %vm7946_vm9 = vcmp.le.s32.totalorder %v642_v54, 14  ;;  %v5872_v2 = vmul.f32 -1.442695, %v7933_v27  ;;  %v7969_v54 = vld [vmem:[#allocation3 + $0x30] sm:$0xff]  ;;  %1077 = vst.msk [vmem:[#allocation2 + $0x78] sm:$0xff] %vm1061_vm6, %v1012_v42 }
 0x28c   : > { %v1661_v44 = vpop.permute.xlu1 %1660  ;;  %1076 = vst.msk [vmem:[#allocation2 + $0x70] sm:$0xff] %vm1061_vm6, %v1043_v9  ;;  %v7974_v19 = vsel %vm7946_vm9, 1.0, %v10987_v25  ;;  %v4036_v21 = vadd.f32 %v4004_v17, %v3906_v16  ;;  %v7982_v9 = vld [vmem:[%s6380_s22 + $0x10a] sm:$0xff]  ;;  %v4338_v38 = vmul.f32 %v6458_v34, %v7969_v54  ;;  %v4271_v16 = vmul.f32 %v7820_v52, %v4237_v49 }
 0x28d   : > { %v1438_v13 = vpop.permute.xlu0 %1437  ;;  %1731 = vst.msk [vmem:[#allocation2 + $0xd0] sm:$0xff] %vm1704_vm11, %v1661_v44  ;;  %v7965_v44 = vsel %vm835_vm7, 1.0, %v10987_v25  ;;  %v7988_v25 = vld [vmem:[#allocation3 + $0x28] sm:$0xff]  ;;  %6043 = vpow2.f32 %v5872_v2  ;;  %v1350_v17 = vmul.f32 %v7974_v19, %v7617_v10  ;;  %v4272_v34 = vmul.f32 %v7820_v52, %v7877_v12 }
 0x28e   : > { %1507 = vst.msk [vmem:[#allocation2 + $0xd8] sm:$0xff] %vm10984_vm5, %v1438_v13  ;;  %v4035_v13 = vadd.f32 %v4003_v51, %v3905_v14  ;;  %v1574_v14 = vmul.f32 %v7965_v44, %v7830_v1  ;;  %v4136_v63 = vadd.f32 %v4104_v15, %v4036_v21  ;;  %v2634_v1 = vmul.f32 %v7790_v29, %v7982_v9 }
 0x28f   : > { %1732 = vst.msk [vmem:[#allocation2 + $0xd8] sm:$0xff] %vm1704_vm11, %v7803_v26  ;;  %v7954_v0 = vpop.permute.xlu2 %2496  ;;  %v4103_v26 = vmul.f32 %v7783_v31, %v7928_v40  ;;  %v4172_v15 = vmul.f32 %v7808_v4, %v7866_v28  ;;  %v4371_v10 = vmul.f32 %v7838_v37, %v7988_v25  ;;  %v4372_v49 = vmul.f32 %v7838_v37, %v4338_v38 }
 0x290   : > { %10988 = vst [vmem:[#allocation26_spill] sm:$0xff] %v7965_v44  ;;  %2500 = vrot.lane.b32.xlu2 %v7951_v43, %s6292_s29 }
 0x291   : > { %10989 = vst [vmem:[#allocation27_spill] sm:$0xff] %v7974_v19  ;;  %v4135_v51 = vadd.f32 %v4103_v26, %v4035_v13  ;;  %v4204_v13 = vadd.f32 %v4172_v15, %v4136_v63 }
 0x292   : > { %1220 = vrot.lane.b32.xlu1 %v7610_v24, %s6287_s24 }
 0x293   : > { %1218 = vrot.lane.b32.xlu0 %v7600_v7, %s6287_s24  ;;  %v7978_v7 = vld [vmem:[#allocation3 + $0x19] sm:$0xff]  ;;  %v4304_v60 = vadd.f32 %v4272_v34, %v4204_v13  ;;  %s5932_s24 = sshll.u32 %s11270_s18, 8 }
 0x294   : > { %v1856_v24 = vpop.permute.xlu1 %1855  ;;  %v4171_v26 = vmul.f32 %v7808_v4, %v7978_v7  ;;  %v1317_v13 = vld [vmem:[%s6380_s22 + $0xf2] sm:$0xff] }
 0x295   : > { %v1854_v20 = vpop.permute.xlu0 %1853  ;;  %1925 = vst.msk [vmem:[#allocation2 + $0xd8] sm:$0xff] %vm1897_vm14, %v1856_v24 }
 0x296   : > { %1924 = vst.msk [vmem:[#allocation2 + $0xd0] sm:$0xff] %vm1897_vm14, %v1854_v20  ;;  %v4203_v2 = vadd.f32 %v4171_v26, %v4135_v51  ;;  %v6044_v51 = vpop.eup %6043  ;;  %v8016_v26 = vld [vmem:[#allocation3 + $0x29] sm:$0xff] }
 0x297   : > { %2149 = vst.msk [vmem:[#allocation2 + $0xd0] sm:$0xff] %vm2122_vm15, %v7857_v58  ;;  %v8006_v58 = vld [vmem:[#allocation3 + $0x2a] sm:$0xff]  ;;  %v1414_v24 = vpop.permute.xlu2 %1413  ;;  %v4439_v34 = vmul.f32 %v7862_v62, %v8016_v26 }
 0x298   : > { %v4303_v20 = vadd.f32 %v4271_v16, %v4203_v2  ;;  %v4505_v21 = vmul.f32 %v6388_v8, %v8006_v58  ;;  %2727 = vrot.lane.b32.xlu2 %v2634_v1, %s6293_s30  ;;  %v8029_v16 = vld [vmem:[#allocation3 + $0x32] sm:$0xff]  ;;  %v4404_v1 = vadd.f32 %v4372_v49, %v4304_v60  ;;  %v8037_v2 = vadd.f32 1.0, %v6044_v51 }
 0x299   : > { %v4540_v60 = vmul.f32 %v7871_v46, %v8029_v16 }
 0x29a   : > { %1668 = vrot.lane.b32.xlu1 %v1574_v14, %s6288_s25  ;;  %v8021_v14 = vld [vmem:[%s10855_s2] ss:$0 sm:$0xff]  ;;  %v4403_v63 = vadd.f32 %v4371_v10, %v4303_v20  ;;  %v2185_v20 = vld [vmem:[%s6380_s22 + $0x110] sm:$0xff] }
 0x29b   : > { %1445 = vrot.lane.b32.xlu0 %v1350_v17, %s6286_s23  ;;  %v3003_v42 = vpop.f32.mrf.mxu2  ;;  %v8027_v17 = vld [vmem:[#allocation3 + $0x31] sm:$0xff] }
 0x29c   : > { %v2304_v29 = vpop.permute.xlu1 %2303  ;;  %v8024_v38 = vadd.f32 %v8021_v14, %v3003_v42  ;;  %v4440_v10 = vmul.f32 %v7862_v62, %v8027_v17  ;;  %v4471_v49 = vadd.f32 %v4439_v34, %v4403_v63 }
 0x29d   : > { %2374 = vst.msk [vmem:[#allocation2 + $0xd0] sm:$0xff] %vm2347_vm1, %v2304_v29  ;;  %v2081_v8 = vpop.permute.xlu0 %2080  ;;  %v4539_v29 = vmul.f32 %v7871_v46, %v4505_v21 }
 0x29e   : > { %2150 = vst.msk [vmem:[#allocation2 + $0xd8] sm:$0xff] %vm2122_vm15, %v2081_v8  ;;  %v5862_v15 = vmul.f32 -1.442695, %v8024_v38 }
 0x29f   : > { %2375 = vst.msk [vmem:[#allocation2 + $0xd8] sm:$0xff] %vm2347_vm1, %v7906_v56  ;;  %v4472_v56 = vadd.f32 %v4440_v10, %v4404_v1  ;;  %v3971_v1 = vmul.f32 %v6454_v33, %v7944_v18  ;;  %v3875_v18 = vmul.f32 %v7747_v39, %v7978_v7  ;;  %v4072_v7 = vmul.f32 %v6630_v48, %v7969_v54 }
 0x2a0   : > { %2567 = vst.msk [vmem:[#allocation2 + $0xd0] sm:$0xff] %vm10911_vm2, %v7954_v0  ;;  %6045 = vpow2.f32 %v5862_v15  ;;  %v4571_v0 = vadd.f32 %v4539_v29, %v4471_v49  ;;  %1443 = vrot.lane.b32.xlu2 %v1317_v13, %s6286_s23  ;;  %v3744_v15 = vmul.f32 %v6630_v48, %v7810_v55  ;;  %v1993_v29 = vmul.f32 %v7974_v19, %v7982_v9 }
 0x2a1   : > { %6047 = vrcp.f32 %v8037_v2  ;;  %v4572_v51 = vadd.f32 %v4540_v60, %v4472_v56  ;;  %v3777_v60 = vmul.f32 %v7742_v57, %v7928_v40  ;;  %v4005_v9 = vmul.f32 %v7767_v41, %v3971_v1 }
 0x2a2   : > { %1863 = vrot.lane.b32.xlu1 %v7899_v6, %s6289_s26  ;;  %v1637_v6 = vpop.permute.xlu2 %1636  ;;  %v8073_v13 = vadd.f32 %v7916_v22, %v4571_v0  ;;  %v3778_v40 = vmul.f32 %v7742_v57, %v3744_v15 }
 0x2a3   : > { %1861 = vrot.lane.b32.xlu0 %v7951_v43, %s6289_s26  ;;  %v3005_v21 = vpop.f32.mrf.mxu2  ;;  %v2217_v43 = vmul.f32 %v7965_v44, %v2185_v20  ;;  %v8076_v49 = vadd.f32 %v7916_v22, %v4572_v51  ;;  %v4105_v20 = vmul.f32 %v7783_v31, %v7988_v25  ;;  %v4006_v51 = vmul.f32 %v7767_v41, %v7877_v12 }
 0x2a4   : > { %v1189_v42 = vpop.permute.xlu1 %1188  ;;  %v8055_v8 = vadd.f32 %v8021_v14, %v3005_v21  ;;  %v5873_v0 = vmul.f32 -1.442695, %v8073_v13  ;;  %v4239_v12 = vmul.f32 %v6454_v33, %v8006_v58 }
 0x2a5   : > { %1270 = vst.msk [vmem:[#allocation2 + $0x78] sm:$0xff] %vm1254_vm8, %v1189_v42  ;;  %v1187_v63 = vpop.permute.xlu0 %1186  ;;  %v3876_v42 = vmul.f32 %v7747_v39, %v7866_v28  ;;  %v5874_v1 = vmul.f32 -1.442695, %v8076_v49  ;;  %v4106_v28 = vmul.f32 %v7783_v31, %v4072_v7  ;;  %v8115_v7 = vld [vmem:[#allocation3 + $0x38] sm:$0xff] }
 0x2a6   : > { %1269 = vst.msk [vmem:[#allocation2 + $0x70] sm:$0xff] %vm1254_vm8, %v1187_v63  ;;  %v5863_v34 = vmul.f32 -1.442695, %v8055_v8  ;;  %v6046_v10 = vpop.eup %6045 }
 0x2a7   : > { %1495 = vst.msk [vmem:[#allocation2 + $0x78] sm:$0xff] %vm10990_vm10, %v1414_v24  ;;  %v8078_v55 = vadd.f32 1.0, %v6046_v10  ;;  %v8080_v56 = vpop.eup %6047  ;;  %v3907_v24 = vadd.f32 %v3875_v18, %v3777_v60  ;;  %v2411_v10 = vld [vmem:[%s6380_s22 + $0x119] sm:$0xff] }
 0x2a8   : > { %6049 = vpow2.f32 %v5863_v34  ;;  %1670 = vrot.lane.b32.xlu2 %v7853_v3, %s6288_s25  ;;  %v4767_v63 = vmul.f32 %v8080_v56, %v8037_v2  ;;  %s10721_s25 = scalar_lea.vmem %s10864_s11, %s5932_s24 }
 0x2a9   : > { %6051 = vrcp.f32 %v8078_v55  ;;  %v4037_v34 = vadd.f32 %v4005_v9, %v3907_v24  ;;  %vm3491_vm5 = vweird.f32 %v8078_v55 }
 0x2aa   : > { %2311 = vrot.lane.b32.xlu1 %v2217_v43, %s6291_s28  ;;  %v8102_v15 = vpop.permute.xlu2 %1831  ;;  %6053 = vpow2.f32 %v5873_v0  ;;  %v4768_v24 = vsub.f32 1.0, %v4767_v63 }
 0x2ab   : > { %2088 = vrot.lane.b32.xlu0 %v1993_v29, %s6290_s27  ;;  %v3908_v29 = vadd.f32 %v3876_v42, %v3778_v40  ;;  %v4137_v60 = vadd.f32 %v4105_v20, %v4037_v34  ;;  %6055 = vpow2.f32 %v5874_v1  ;;  %v4173_v40 = vmul.f32 %v7808_v4, %v8016_v26 }
 0x2ac   : > { %v1412_v21 = vpop.permute.xlu1 %1411  ;;  %v4273_v20 = vmul.f32 %v7820_v52, %v4239_v12  ;;  %v8128_v34 = vmul.f32 %v8080_v56, %v4768_v24  ;;  %v3497_v12 = vand.u32 2147483648, %v8078_v55 }
 0x2ad   : > { %1494 = vst.msk [vmem:[#allocation2 + $0x70] sm:$0xff] %vm10991_vm12, %v1412_v21  ;;  %v2499_v43 = vpop.permute.xlu0 %2498  ;;  %v2410_v21 = vld [vmem:[%s6380_s22 + $0x111] sm:$0xff]  ;;  %v4038_v9 = vadd.f32 %v4006_v51, %v3908_v29  ;;  %v4205_v0 = vadd.f32 %v4173_v40, %v4137_v60  ;;  %v8122_v51 = vld [vmem:[#allocation3 + $0x40] sm:$0xff]  ;;  %v4373_v29 = vmul.f32 %v7838_v37, %v8115_v7 }
 0x2ae   : > { %2568 = vst.msk [vmem:[#allocation2 + $0xd8] sm:$0xff] %vm10911_vm2, %v2499_v43  ;;  %v6050_v3 = vpop.eup %6049  ;;  %v2604_v43 = vld [vmem:[%s6380_s22 + $0x11a] sm:$0xff]  ;;  %v4340_v11 = vmul.f32 %v6630_v48, %v8122_v51 }
 0x2af   : > { %1719 = vst.msk [vmem:[#allocation2 + $0x70] sm:$0xff] %vm1704_vm11, %v1637_v6  ;;  %v8110_v18 = vadd.f32 1.0, %v6050_v3  ;;  %v6052_v32 = vpop.eup %6051  ;;  %v4138_v6 = vadd.f32 %v4106_v28, %v4038_v9  ;;  %v4174_v3 = vmul.f32 %v7808_v4, %v8027_v17  ;;  %v8134_v28 = vld [vmem:[#allocation3 + $0x3a] sm:$0xff]  ;;  %v4305_v30 = vadd.f32 %v4273_v20, %v4205_v0 }
 0x2b0   : > { %v3487_v42 = vmul.f32 %v6052_v32, %v8078_v55  ;;  %2086 = vrot.lane.b32.xlu2 %v7896_v61, %s6290_s27  ;;  %vm3492_vm13 = vweird.f32 %v6052_v32  ;;  %v3495_v61 = vand.u32 2147483647, %v8078_v55  ;;  %v4507_v23 = vmul.f32 %v6454_v33, %v8134_v28 }
 0x2b1   : > { %6057 = vrcp.f32 %v8110_v18  ;;  %v4274_v20 = vmul.f32 %v7820_v52, %v8029_v16  ;;  %v4405_v48 = vadd.f32 %v4373_v29, %v4305_v30  ;;  %vm3493_vm7 = vmor %vm3491_vm5, %vm3492_vm13  ;;  %v3498_v0 = vor.u32 1.1754944e-38, %v3497_v12 }
 0x2b2   : > { %2506 = vrot.lane.b32.xlu1 %v2411_v10, %s6292_s29  ;;  %v3488_v63 = vsub.f32 1.0, %v3487_v42  ;;  %v4206_v42 = vadd.f32 %v4174_v3, %v4138_v6  ;;  %v8146_v44 = vpop.permute.xlu2 %2279  ;;  %v8154_v6 = vld [vmem:[#allocation3 + $0x39] sm:$0xff]  ;;  %vm3496_vm9 = vcmp.eq.f32.partialorder %v3495_v61, 8.507059e+37  ;;  %v4541_v29 = vmul.f32 %v7871_v46, %v4507_v23 }
 0x2b3   : > { %2504 = vrot.lane.b32.xlu0 %v2410_v21, %s6292_s29  ;;  %v6054_v21 = vpop.eup %6053  ;;  %v2186_v3 = vld [vmem:[%s6380_s22 + $0x118] sm:$0xff]  ;;  %v4441_v30 = vmul.f32 %v7862_v62, %v8154_v6  ;;  %vm3506_vm12 = vweird.f32 %v8110_v18 }
 0x2b4   : > { %v2724_v1 = vpop.permute.xlu1 %2723  ;;  %v3489_v9 = vmul.f32 %v6052_v32, %v3488_v63  ;;  %v6056_v40 = vpop.eup %6055 }
 0x2b5   : > { %2793 = vst.msk [vmem:[#allocation2 + $0xd8] sm:$0xff] %vm10910_vm3, %v2724_v1  ;;  %v2722_v10 = vpop.permute.xlu0 %2721  ;;  %v2973_v60 = vpop.f32.mrf.mxu0  ;;  %v2636_v1 = vmul.f32 %v7974_v19, %v2604_v43  ;;  %v8162_v19 = vadd.f32 1.0, %v6054_v21  ;;  %v8164_v55 = vadd.f32 1.0, %v6056_v40  ;;  %v3512_v21 = vand.u32 2147483648, %v8110_v18 }
 0x2b6   : > { %2792 = vst.msk [vmem:[#allocation2 + $0xd0] sm:$0xff] %vm10910_vm3, %v2722_v10  ;;  %v8141_v24 = vadd.f32 %v8021_v14, %v2973_v60  ;;  %v3490_v10 = vadd.f32 %v6052_v32, %v3489_v9  ;;  %v4374_v9 = vmul.f32 %v7838_v37, %v4340_v11  ;;  %v4306_v40 = vadd.f32 %v4274_v20, %v4206_v42 }
 0x2b7   : > { %v8148_v63 = vpop.eup %6057 }
 0x2b8   : > { %v5850_v60 = vmul.f32 -1.442695, %v8141_v24  ;;  %v3502_v43 = vmul.f32 %v8148_v63, %v8110_v18  ;;  %v3494_v33 = vsel %vm3493_vm7, %v6052_v32, %v3490_v10  ;;  %2313 = vrot.lane.b32.xlu2 %v2186_v3, %s6291_s28  ;;  %v8174_v10 = vld [vmem:[#allocation3 + $0x41] sm:$0xff]  ;;  %vm3507_vm10 = vweird.f32 %v8148_v63 }
 0x2b9   : > { %v3499_v53 = vsel %vm3496_vm9, %v3498_v0, %v3494_v33  ;;  %v8181_v0 = vld [vmem:[#allocation3 + $0x42] sm:$0xff]  ;;  %v4406_v20 = vadd.f32 %v4374_v9, %v4306_v40  ;;  %vm3508_vm13 = vmor %vm3506_vm12, %vm3507_vm10  ;;  %vm4772_vm7 = vweird.f32 %v8080_v56  ;;  %vm4771_vm9 = vweird.f32 %v8037_v2 }
 0x2ba   : > { %6059 = vpow2.f32 %v5850_v60  ;;  %v3503_v45 = vsub.f32 1.0, %v3502_v43  ;;  %v3658_v12 = vmul.f32 %v3499_v53, %v8024_v38  ;;  %v4473_v38 = vadd.f32 %v4441_v30, %v4405_v48  ;;  %vm8231_vm10 = vmor %vm4771_vm9, %vm4772_vm7 }
 0x2bb   : > { %2731 = vrot.lane.b32.xlu0 %v2636_v1, %s6293_s30  ;;  %v3510_v1 = vand.u32 2147483647, %v8110_v18  ;;  %6061 = vrcp.f32 %v8162_v19  ;;  %v4442_v48 = vmul.f32 %v7862_v62, %v8174_v10  ;;  %v3513_v30 = vor.u32 1.1754944e-38, %v3512_v21 }
 0x2bc   : > { %v1830_v32 = vpop.permute.xlu1 %1829  ;;  %v2825_v61 = vld [vmem:[#allocation2 + $0xd8] sm:$0xff]  ;;  %v3504_v11 = vmul.f32 %v8148_v63, %v3503_v45  ;;  %3695 = vst.msk [vmem:[#allocation3 + $0xc1] sm:$0xff] %vm3668_vm0, %v3658_v12  ;;  %6063 = vrcp.f32 %v8164_v55  ;;  %v4573_v33 = vadd.f32 %v4541_v29, %v4473_v38  ;;  %v4542_v18 = vmul.f32 %v7871_v46, %v8181_v0  ;;  %v2475_v29 = vpop.permute.xlu2 %2474 }
 0x2bd   : > { %1912 = vst.msk [vmem:[#allocation2 + $0x70] sm:$0xff] %vm1897_vm14, %v1830_v32  ;;  %v1639_v23 = vpop.permute.xlu0 %1638  ;;  %v2975_v60 = vpop.f32.mrf.mxu0  ;;  %v2824_v53 = vld [vmem:[#allocation2 + $0xd0] sm:$0xff]  ;;  %vm3511_vm5 = vcmp.eq.f32.partialorder %v3510_v1, 8.507059e+37  ;;  %v4474_v21 = vadd.f32 %v4442_v48, %v4406_v20  ;;  %v3973_v1 = vmul.f32 %v6605_v35, %v8006_v58  ;;  %v3779_v58 = vmul.f32 %v7742_v57, %v7988_v25 }
 0x2be   : > { %v8185_v42 = vadd.f32 %v8021_v14, %v2975_v60  ;;  %v2843_v45 = vpack.c.bf16 %v2825_v61, %v2824_v53  ;;  %v3505_v43 = vadd.f32 %v8148_v63, %v3504_v11  ;;  %1720 = vst.msk [vmem:[#allocation2 + $0x78] sm:$0xff] %vm1704_vm11, %v1639_v23  ;;  %v2603_v61 = vld [vmem:[%s6380_s22 + $0x112] sm:$0xff]  ;;  %v4770_v23 = vadd.f32 %v8080_v56, %v8128_v34 }
 0x2bf   : > { %1913 = vst.msk [vmem:[#allocation2 + $0x78] sm:$0xff] %vm1897_vm14, %v8102_v15  ;;  %v4574_v38 = vadd.f32 %v4542_v18, %v4474_v21  ;;  %v3877_v20 = vmul.f32 %v7747_v39, %v8016_v26  ;;  %v4007_v25 = vmul.f32 %v7767_v41, %v3973_v1  ;;  %v8256_v21 = vld [vmem:[#allocation3 + $0x91] sm:$0xff] }
 0x2c0   : > { %v6060_v3 = vpop.eup %6059  ;;  %v5851_v12 = vmul.f32 -1.442695, %v8185_v42  ;;  %5837 = vmatmul.msk.bf16.gmra.mxu2 %vm2886_vm4, %v2843_v45  ;;  %v3509_v9 = vsel %vm3508_vm13, %v8148_v63, %v3505_v43  ;;  %v4777_v63 = vand.u32 2147483648, %v8037_v2  ;;  %2729 = vrot.lane.b32.xlu2 %v2603_v61, %s6293_s30  ;;  %v4775_v45 = vand.u32 2147483647, %v8037_v2 }
 0x2c1   : > { %v8202_v32 = vadd.f32 1.0, %v6060_v3  ;;  %v3514_v40 = vsel %vm3511_vm5, %v3513_v30, %v3509_v9  ;;  %v8207_v15 = vpop.eup %6061  ;;  %v1026_v3 = vld [vmem:[%s6380_s22 + $0xe8] sm:$0xff]  ;;  %v4774_v2 = vsel %vm8231_vm10, %v8080_v56, %v4770_v23  ;;  %v8249_v18 = vadd.f32 %v7916_v22, %v4574_v38 }
 0x2c2   : > { %6065 = vpow2.f32 %v5851_v12  ;;  %v3659_v11 = vmul.f32 %v3514_v40, %v8055_v8  ;;  %v8216_v53 = vpop.eup %6063  ;;  %v8219_v8 = vadd.f32 %v7916_v22, %v4573_v33  ;;  %v4778_v33 = vor.u32 1.1754944e-38, %v4777_v63  ;;  %1091 = vst.msk [vmem:[#allocation2 + $0xe8] sm:$0xff] %vm1061_vm6, %v1026_v3 }
 0x2c3   : > { %6067 = vrcp.f32 %v8202_v32  ;;  %v4782_v30 = vmul.f32 %v8207_v15, %v8162_v19  ;;  %vm4776_vm12 = vcmp.eq.f32.partialorder %v4775_v45, 8.507059e+37  ;;  %v3909_v56 = vadd.f32 %v3877_v20, %v3779_v58 }
 0x2c4   : > { %v2057_v60 = vpop.permute.xlu1 %2056  ;;  %3696 = vst.msk [vmem:[#allocation3 + $0xc9] sm:$0xff] %vm3668_vm0, %v3659_v11  ;;  %v5875_v12 = vmul.f32 -1.442695, %v8219_v8  ;;  %v4779_v61 = vsel %vm4776_vm12, %v4778_v33, %v4774_v2  ;;  %v1215_v40 = vpop.permute.xlu2 %1214  ;;  %v3746_v11 = vmul.f32 %v6808_v47, %v7969_v54  ;;  %v4797_v23 = vmul.f32 %v8216_v53, %v8164_v55  ;;  %v1025_v54 = vld [vmem:[%s6380_s22 + $0xe0] sm:$0xff] }
 0x2c5   : > { %v2055_v34 = vpop.permute.xlu0 %2054  ;;  %2138 = vst.msk [vmem:[#allocation2 + $0x78] sm:$0xff] %vm2122_vm15, %v2057_v60  ;;  %v4783_v60 = vsub.f32 1.0, %v4782_v30  ;;  %v4039_v38 = vadd.f32 %v4007_v25, %v3909_v56  ;;  %v8270_v45 = vmul.f32 %v4779_v61, %v7933_v27  ;;  %v8274_v58 = vmul.f32 %v7747_v39, %v8256_v21 }
 0x2c6   : > { %2137 = vst.msk [vmem:[#allocation2 + $0x70] sm:$0xff] %vm2122_vm15, %v2055_v34  ;;  %v8278_v20 = vmul.f32 %v7747_v39, %v8027_v17  ;;  %v8282_v3 = vmul.f32 %v7742_v57, %v3746_v11  ;;  %v4798_v2 = vsub.f32 1.0, %v4797_v23  ;;  %v3317_v25 = vand.u32 2147483648, %v8202_v32 }
 0x2c7   : > { %2362 = vst.msk [vmem:[#allocation2 + $0x70] sm:$0xff] %vm2347_vm1, %v8146_v44  ;;  %v4107_v44 = vmul.f32 %v7783_v31, %v8115_v7  ;;  %v5876_v31 = vmul.f32 -1.442695, %v8249_v18  ;;  %v4784_v33 = vmul.f32 %v8207_v15, %v4783_v60  ;;  %v1057_v30 = vmul.f32 %v7754_v5, %v1025_v54 }
 0x2c8   : > { %v6066_v48 = vpop.eup %6065  ;;  %10994 = vst [vmem:[#allocation28_spill] sm:$0xff] %v8270_v45  ;;  %v8291_v17 = vmul.f32 %v7767_v41, %v8029_v16  ;;  %vm4786_vm5 = vweird.f32 %v8162_v19  ;;  %v4790_v56 = vand.u32 2147483647, %v8162_v19  ;;  %v4792_v41 = vand.u32 2147483648, %v8162_v19 }
 0x2c9   : > { %v8243_v26 = vpop.eup %6067  ;;  %v8251_v9 = vadd.f32 1.0, %v6066_v48  ;;  %10995 = vst [vmem:[#allocation29_spill] sm:$0xff] %v8274_v58  ;;  %v4139_v43 = vadd.f32 %v4107_v44, %v4039_v38  ;;  %v4175_v48 = vmul.f32 %v7808_v4, %v8154_v6  ;;  %v4799_v16 = vmul.f32 %v8216_v53, %v4798_v2 }
 0x2ca   : > { %v3307_v63 = vmul.f32 %v8243_v26, %v8202_v32  ;;  %vm3312_vm13 = vweird.f32 %v8243_v26  ;;  %1090 = vst.msk [vmem:[#allocation2 + $0xe0] sm:$0xff] %vm1061_vm6, %v1057_v30  ;;  %vm3311_vm7 = vweird.f32 %v8202_v32  ;;  %vm4787_vm9 = vweird.f32 %v8207_v15 }
 0x2cb   : > { %6069 = vrcp.f32 %v8251_v9  ;;  %v8298_v61 = vadd.f32 %v4175_v48, %v4139_v43  ;;  %1283 = vst.msk [vmem:[#allocation2 + $0xe0] sm:$0xff] %vm1254_vm8, %v1215_v40  ;;  %vm3313_vm10 = vmor %vm3311_vm7, %vm3312_vm13  ;;  %v3332_v40 = vand.u32 2147483648, %v8251_v9  ;;  %v3330_v2 = vand.u32 2147483647, %v8251_v9 }
 0x2cc   : > { %v2473_v1 = vpop.permute.xlu1 %2472  ;;  %6071 = vpow2.f32 %v5875_v12  ;;  %v3308_v27 = vsub.f32 1.0, %v3307_v63  ;;  %v4785_v63 = vadd.f32 %v8207_v15, %v4784_v33  ;;  %vm4802_vm7 = vweird.f32 %v8216_v53 }
 0x2cd   : > { %2555 = vst.msk [vmem:[#allocation2 + $0x70] sm:$0xff] %vm10911_vm2, %v2473_v1  ;;  %v2282_v34 = vpop.permute.xlu0 %2281  ;;  %6073 = vpow2.f32 %v5876_v31  ;;  %v3318_v1 = vor.u32 1.1754944e-38, %v3317_v25  ;;  %v4241_v33 = vmul.f32 %v6605_v35, %v8134_v28  ;;  %v4805_v30 = vand.u32 2147483647, %v8164_v55 }
 0x2ce   : > { %2363 = vst.msk [vmem:[#allocation2 + $0x78] sm:$0xff] %vm2347_vm1, %v2282_v34  ;;  %v3309_v57 = vmul.f32 %v8243_v26, %v3308_v27  ;;  %v4800_v27 = vadd.f32 %v8216_v53, %v4799_v16  ;;  %v3333_v19 = vor.u32 1.1754944e-38, %v3332_v40  ;;  %v8363_v40 = vld [vmem:[#allocation3 + $0x4a] sm:$0xff] }
 0x2cf   : > { %2556 = vst.msk [vmem:[#allocation2 + $0x78] sm:$0xff] %vm10911_vm2, %v2475_v29  ;;  %v3315_v29 = vand.u32 2147483647, %v8202_v32  ;;  %vm3331_vm2 = vcmp.eq.f32.partialorder %v3330_v2, 8.507059e+37 }
 0x2d0   : > { %v3310_v11 = vadd.f32 %v8243_v26, %v3309_v57  ;;  %v4807_v57 = vand.u32 2147483648, %v8164_v55 }
 0x2d1   : > { %v6070_v39 = vpop.eup %6069  ;;  %v8312_v31 = vpop.permute.xlu2 %1441  ;;  %vm3316_vm12 = vcmp.eq.f32.partialorder %v3315_v29, 8.507059e+37 }
 0x2d2   : > { %v6072_v12 = vpop.eup %6071  ;;  %v3322_v44 = vmul.f32 %v6070_v39, %v8251_v9  ;;  %v3314_v32 = vsel %vm3313_vm10, %v8243_v26, %v3310_v11  ;;  %vm3327_vm13 = vweird.f32 %v6070_v39  ;;  %vm8329_vm10 = vmor %vm4786_vm5, %vm4787_vm9  ;;  %v4793_v11 = vor.u32 1.1754944e-38, %v4792_v41 }
 0x2d3   : > { %v8314_v34 = vadd.f32 1.0, %v6072_v12  ;;  %v6074_v54 = vpop.eup %6073  ;;  %v3319_v43 = vsel %vm3316_vm12, %v3318_v1, %v3314_v32  ;;  %vm3326_vm12 = vweird.f32 %v8251_v9  ;;  %v4789_v12 = vsel %vm8329_vm10, %v8207_v15, %v4785_v63  ;;  %v8353_v9 = vld [vmem:[#allocation3 + $0x48] sm:$0xff] }
 0x2d4   : > { %v2700_v23 = vpop.permute.xlu1 %2699  ;;  %v3323_v60 = vsub.f32 1.0, %v3322_v44  ;;  %v3646_v26 = vmul.f32 %v3319_v43, %v8141_v24  ;;  %v8338_v24 = vadd.f32 1.0, %v6074_v54  ;;  %vm3328_vm5 = vmor %vm3326_vm12, %vm3327_vm13  ;;  %v4275_v15 = vmul.f32 %v7820_v52, %v4241_v33  ;;  %v3727_v43 = vld [vmem:[#allocation3 + $0x98] sm:$0xff] }
 0x2d5   : > { %2781 = vst.msk [vmem:[#allocation2 + $0x78] sm:$0xff] %vm10910_vm3, %v2700_v23  ;;  %v2698_v38 = vpop.permute.xlu0 %2697  ;;  %6075 = vrcp.f32 %v8314_v34  ;;  %vm8359_vm13 = vcmp.eq.f32.partialorder %v4805_v30, 8.507059e+37  ;;  %v4808_v32 = vor.u32 1.1754944e-38, %v4807_v57  ;;  %v3857_v33 = vld [vmem:[#allocation3 + $0x99] sm:$0xff]  ;;  %v8386_v30 = vld [vmem:[%s10856_s3 + $0x3] ss:$0 sm:$0xff]  ;;  %v4509_v44 = vmul.f32 %v6605_v35, %v8363_v40 }
 0x2d6   : > { %2780 = vst.msk [vmem:[#allocation2 + $0x70] sm:$0xff] %vm10910_vm3, %v2698_v38  ;;  %v3324_v48 = vmul.f32 %v6070_v39, %v3323_v60  ;;  %vm4801_vm3 = vweird.f32 %v8164_v55  ;;  %v4074_v55 = vmul.f32 %v6808_v47, %v8122_v51  ;;  %6077 = vrcp.f32 %v8338_v24 }
 0x2d7   : > { %3683 = vst.msk [vmem:[#allocation3 + $0x61] sm:$0xff] %vm3668_vm0, %v3646_v26  ;;  %vm8347_vm9 = vmor %vm4801_vm3, %vm4802_vm7  ;;  %vm4791_vm3 = vcmp.eq.f32.partialorder %v4790_v56, 8.507059e+37  ;;  %vm11002_vm7 = vcmask 195712   ;;  %v4375_v56 = vmul.f32 %v7838_v37, %v8353_v9  ;;  %v3910_v26 = vadd.f32 %v8278_v20, %v8282_v3 }
 0x2d8   : > { %v3325_v29 = vadd.f32 %v6070_v39, %v3324_v48  ;;  %v4804_v23 = vsel %vm8347_vm9, %v8216_v53, %v4800_v27  ;;  %v8369_v48 = vld [vmem:[#allocation3 + $0x92] sm:$0xff]  ;;  %v4794_v2 = vsel %vm4791_vm3, %v4793_v11, %v4789_v12  ;;  %v4108_v57 = vmul.f32 %v8386_v30, %v4074_v55  ;;  %v8409_v55 = vld [vmem:[%s10856_s3 + $0x2] ss:$0 sm:$0xff] }
 0x2d9   : > { %v8367_v53 = vpop.permute.xlu2 %1857  ;;  %v4809_v25 = vsel %vm8359_vm13, %v4808_v32, %v4804_v23  ;;  %v8396_v20 = vmul.f32 %v7862_v62, %v8256_v21  ;;  %v4307_v3 = vadd.f32 %v4275_v15, %v8298_v61  ;;  %v8399_v12 = vld [vmem:[#allocation3 + $0x50] sm:$0xff]  ;;  %v8416_v61 = vmul.f32 %v8386_v30, %v3727_v43  ;;  %v8453_v32 = vld [vmem:[%s10856_s3 + $0x1] ss:$0 sm:$0xff] }
 0x2da   : > { %v3329_v16 = vsel %vm3328_vm5, %v6070_v39, %v3325_v29  ;;  %v4040_v35 = vadd.f32 %v8291_v17, %v3910_v26  ;;  %v8425_v11 = vmul.f32 %v7808_v4, %v3857_v33  ;;  %v8429_v23 = vmul.f32 %v7820_v52, %v8369_v48  ;;  %v8439_v17 = vld [vmem:[%s10856_s3] ss:$0 sm:$0xff]  ;;  %v8471_v26 = vld [vmem:[%s10856_s3 + $0x5] ss:$0 sm:$0xff] }
 0x2db   : > { %v3334_v63 = vsel %vm3331_vm2, %v3333_v19, %v3329_v16  ;;  %v8390_v29 = vpop.eup %6075  ;;  %v5278_v19 = vsel %vm3668_vm0, %v8270_v45, 0.0  ;;  %11004 = vst [vmem:[#allocation31_spill] sm:$0xff] %v8396_v20  ;;  %vm11005_vm2 = vmmov %vm11002_vm7  ;;  %v8419_v16 = vmul.f32 %v4794_v2, %v8073_v13  ;;  %v8432_v15 = vmul.f32 %v4809_v25, %v8076_v49  ;;  %v3858_v45 = vld [vmem:[#allocation3 + $0xa1] sm:$0xff] }
 0x2dc   : > { %v1440_v1 = vpop.permute.xlu1 %1439  ;;  %v2813_v60 = vld [vmem:[#allocation2 + $0x78] sm:$0xff]  ;;  %v3647_v39 = vmul.f32 %v3334_v63, %v8185_v42  ;;  %v8377_v42 = vmul.f32 %v7808_v4, %v8256_v21  ;;  %v8413_v21 = vmul.f32 %v8409_v55, %v8369_v48  ;;  %11007 = vst [vmem:[#allocation33_spill] sm:$0xff] %v8416_v61  ;;  %v4407_v63 = vadd.f32 %v4375_v56, %v4307_v3  ;;  %v8444_v52 = vpop.eup %6077  ;;  %v8464_v56 = vld [vmem:[%s10856_s3 + $0x4] ss:$0 sm:$0xff] }
 0x2dd   : > { %v1217_v41 = vpop.permute.xlu0 %1216  ;;  %1508 = vst.msk [vmem:[#allocation2 + $0xe0] sm:$0xff] %vm11002_vm7, %v1440_v1  ;;  %v2812_v54 = vld [vmem:[#allocation2 + $0x70] sm:$0xff]  ;;  %v4140_v1 = vadd.f32 %v4108_v57, %v4040_v35  ;;  %v4812_v13 = vmul.f32 %v8390_v29, %v8314_v34  ;;  %v3793_v4 = vmul.f32 %v8439_v17, %v3727_v43  ;;  %v3781_v49 = vmul.f32 %v8439_v17, %v8115_v7  ;;  %v3728_v7 = vld [vmem:[#allocation3 + $0xa0] sm:$0xff] }
 0x2de   : > { %1284 = vst.msk [vmem:[#allocation2 + $0xe8] sm:$0xff] %vm1254_vm8, %v1217_v41  ;;  %v2837_v27 = vpack.c.bf16 %v2813_v60, %v2812_v54  ;;  %v4342_v60 = vmul.f32 %v6808_v47, %v8399_v12  ;;  %v4543_v41 = vmul.f32 %v7871_v46, %v4509_v44  ;;  %v5279_v47 = vsel %vm3668_vm0, %v8419_v16, 0.0 }
 0x2df   : > { %11003 = vst [vmem:[#allocation30_spill] sm:$0xff] %v8377_v42  ;;  %v3879_v2 = vmul.f32 %v8453_v32, %v8154_v6  ;;  %v4276_v25 = vmul.f32 %v8471_v26, %v8181_v0  ;;  %v8477_v6 = vmul.f32 %v7838_v37, %v3727_v43  ;;  %v8480_v3 = vmul.f32 %v7862_v62, %v3857_v33  ;;  %v8490_v37 = vld [vmem:[%s10856_s3 + $0x6] ss:$0 sm:$0xff] }
 0x2e0   : > { %3684 = vst.msk [vmem:[#allocation3 + $0x69] sm:$0xff] %vm3668_vm0, %v3647_v39  ;;  %5831 = vmatmul.msk.bf16.gmra.mxu0 %vm2886_vm4, %v2837_v27  ;;  %v3891_v39 = vmul.f32 %v8453_v32, %v3857_v33  ;;  %v4176_v27 = vmul.f32 %v8464_v56, %v8174_v10  ;;  %v5281_v44 = vsel %vm3668_vm0, %v8432_v15, 0.0  ;;  %v4827_v5 = vmul.f32 %v8444_v52, %v8338_v24 }
 0x2e1   : > { %1509 = vst.msk [vmem:[#allocation2 + $0xe8] sm:$0xff] %vm11005_vm2, %v8312_v31  ;;  %v8422_v31 = vld [vmem:[#allocation3 + $0x49] sm:$0xff]  ;;  %v5280_v43 = vadd.f32 %v5279_v47, %v5278_v19  ;;  %v3760_v33 = vmul.f32 %v6881_v36, %v3728_v7  ;;  %v4352_v19 = vmul.f32 %v6532_v59, %v3728_v7  ;;  %v3955_v47 = vld [vmem:[#allocation3 + $0x9a] sm:$0xff]  ;;  %vm4817_vm10 = vweird.f32 %v8390_v29 }
 0x2e2   : > { %11006 = vst [vmem:[#allocation32_spill] sm:$0xff] %v8413_v21  ;;  %v4443_v38 = vmul.f32 %v7862_v62, %v8422_v31  ;;  %v4376_v62 = vmul.f32 %v8490_v37, %v4342_v60  ;;  %v3892_v60 = vmul.f32 %v8453_v32, %v3858_v45  ;;  %vm4816_vm12 = vweird.f32 %v8314_v34 }
 0x2e3   : > { %11008 = vst [vmem:[#allocation34_spill] sm:$0xff] %v8419_v16  ;;  %v2085_v16 = vpop.permute.xlu2 %2084  ;;  %vm8573_vm5 = vmor %vm4816_vm12, %vm4817_vm10  ;;  %vm4832_vm9 = vweird.f32 %v8444_v52  ;;  %vm4831_vm13 = vweird.f32 %v8338_v24  ;;  %vm11032_vm2 = vcmask 523712   ;;  %vm11039_vm12 = vcmask 589312  }
 0x2e4   : > { %11009 = vst [vmem:[#allocation35_spill] sm:$0xff] %v8425_v11  ;;  %v1667_v54 = vpop.permute.xlu1 %1666  ;;  %v4475_v35 = vadd.f32 %v4443_v38, %v4407_v63  ;;  %v4813_v11 = vsub.f32 1.0, %v4812_v13  ;;  %v4086_v63 = vmul.f32 %v6717_v50, %v3728_v7  ;;  %v8499_v13 = vmul.f32 %v7871_v46, %v8369_v48  ;;  %v8527_v7 = vld [vmem:[%s10856_s3 + $0x7] ss:$0 sm:$0xff]  ;;  %vm8612_vm7 = vmor %vm4831_vm13, %vm4832_vm9 }
 0x2e5   : > { %11010 = vst [vmem:[#allocation36_spill] sm:$0xff] %v8429_v23  ;;  %v1665_v57 = vpop.permute.xlu0 %1664  ;;  %v4208_v23 = vadd.f32 %v4176_v27, %v4140_v1  ;;  %v8501_v38 = vadd.f32 %v3879_v2, %v3781_v49  ;;  %v8503_v27 = vadd.f32 %v3891_v39, %v3793_v4  ;;  %v3794_v39 = vmul.f32 %v8439_v17, %v3760_v33  ;;  %v8541_v33 = vld [vmem:[%s10856_s3 + $0x8] ss:$0 sm:$0xff]  ;;  %vm11041_vm9 = vmmov %vm11039_vm12 }
 0x2e6   : > { %11011 = vst [vmem:[#allocation37_spill] sm:$0xff] %v8432_v15  ;;  %v4575_v1 = vadd.f32 %v4543_v41, %v4475_v35  ;;  %v8512_v41 = vld [vmem:[#allocation3 + $0x51] sm:$0xff]  ;;  %v4814_v48 = vmul.f32 %v8390_v29, %v4813_v11  ;;  %v8522_v2 = vmul.f32 %v8386_v30, %v4086_v63 }
 0x2e7   : > { %11012 = vst [vmem:[#allocation38_spill] sm:$0xff] %v8464_v56  ;;  %v8514_v35 = vld [vmem:[#allocation3 + $0x52] sm:$0xff] }
 0x2e8   : > { %1734 = vst.msk [vmem:[#allocation2 + $0xe8] sm:$0xff] %vm1704_vm11, %v1667_v54  ;;  %v4308_v54 = vadd.f32 %v4276_v25, %v4208_v23  ;;  %v4828_v23 = vsub.f32 1.0, %v4827_v5  ;;  %v8530_v25 = vmul.f32 %v8527_v7, %v3858_v45  ;;  %v8533_v5 = vadd.f32 %v7916_v22, %v4575_v1  ;;  %v1027_v22 = vld [vmem:[%s6380_s22 + $0xf0] sm:$0xff]  ;;  %v11020_v1 = vld [vmem:[#allocation4_spill] sm:$0xff]  ;;  %v11021_v15 = vld [vmem:[#allocation22_spill] sm:$0xff] }
 0x2e9   : > { %11013 = vst [vmem:[#allocation39_spill] sm:$0xff] %v8477_v6  ;;  %v4544_v63 = vmul.f32 %v8541_v33, %v8514_v35  ;;  %v4815_v6 = vadd.f32 %v8390_v29, %v4814_v48 }
 0x2ea   : > { %11014 = vst [vmem:[#allocation40_spill] sm:$0xff] %v8480_v3  ;;  %v3008_v46 = vpop.f32.mrf.mxu2  ;;  %v4408_v4 = vadd.f32 %v4376_v62, %v4308_v54  ;;  %v11022_v3 = vld [vmem:[#allocation26_spill] sm:$0xff]  ;;  %v4829_v42 = vmul.f32 %v8444_v52, %v4828_v23  ;;  %v5877_v61 = vmul.f32 -1.442695, %v8533_v5 }
 0x2eb   : > { %1733 = vst.msk [vmem:[#allocation2 + $0xe0] sm:$0xff] %vm1704_vm11, %v1665_v57  ;;  %v8505_v57 = vadd.f32 %v5281_v44, %v5280_v43  ;;  %v8518_v49 = vadd.f32 %v8021_v14, %v3008_v46  ;;  %v11019_v44 = vld [vmem:[#allocation6_spill] sm:$0xff]  ;;  %v4444_v43 = vmul.f32 %v8527_v7, %v8512_v41  ;;  %v4253_v46 = vmul.f32 %v11020_v1, %v3955_v47 }
 0x2ec   : > { %1926 = vst.msk [vmem:[#allocation2 + $0xe0] sm:$0xff] %vm1897_vm14, %v8367_v53  ;;  %v8509_v53 = vmul.f32 %v8464_v56, %v3858_v45  ;;  %v2083_v11 = vpop.permute.xlu1 %2082  ;;  %v3987_v62 = vmul.f32 %v11019_v44, %v3955_v47 }
 0x2ed   : > { %11015 = vst [vmem:[#allocation41_spill] sm:$0xff] %v8499_v13  ;;  %v5864_v45 = vmul.f32 -1.442695, %v8518_v49  ;;  %v1860_v54 = vpop.permute.xlu0 %1859  ;;  %v1059_v13 = vmul.f32 %v11022_v3, %v1027_v22  ;;  %v4476_v20 = vadd.f32 %v4444_v43, %v4408_v4  ;;  %v8565_v22 = vadd.f32 %v3892_v60, %v3794_v39  ;;  %v3859_v43 = vld [vmem:[#allocation3 + $0xa9] sm:$0xff] }
 0x2ee   : > { %11016 = vst [vmem:[#allocation42_spill] sm:$0xff] %v8509_v53  ;;  %v2501_v53 = vpop.permute.xlu2 %2500  ;;  %v4021_v48 = vmul.f32 %v8409_v55, %v3987_v62  ;;  %v4830_v39 = vadd.f32 %v8444_v52, %v4829_v42  ;;  %v8599_v42 = vld [vmem:[%s10857_s4] ss:$0 sm:$0xff]  ;;  %v4189_v21 = vmul.f32 %v8464_v56, %v3859_v43 }
 0x2ef   : > { %11017 = vst [vmem:[#allocation43_spill] sm:$0xff] %v8522_v2  ;;  %v8553_v2 = vld [vmem:[#allocation3 + $0xa8] sm:$0xff]  ;;  %6079 = vpow2.f32 %v5864_v45  ;;  %v4576_v23 = vadd.f32 %v4544_v63, %v4476_v20  ;;  %v4819_v20 = vsel %vm8573_vm5, %v8390_v29, %v4815_v6  ;;  %v4835_v29 = vand.u32 2147483647, %v8338_v24  ;;  %vm11040_vm5 = vmmov %vm11032_vm2 }
 0x2f0   : > { %11018 = vst [vmem:[#allocation44_spill] sm:$0xff] %v8530_v25  ;;  %v4519_v25 = vmul.f32 %v11021_v15, %v3955_v47  ;;  %v4820_v47 = vand.u32 2147483647, %v8314_v34  ;;  %v4121_v4 = vmul.f32 %v8386_v30, %v8553_v2  ;;  %v3956_v63 = vld [vmem:[#allocation3 + $0xa2] sm:$0xff]  ;;  %6081 = vpow2.f32 %v5877_v61 }
 0x2f1   : > { %2151 = vst.msk [vmem:[#allocation2 + $0xe0] sm:$0xff] %vm2122_vm15, %v2083_v11  ;;  %v8559_v11 = vmul.f32 %v8490_v37, %v4352_v19  ;;  %v11028_v61 = vld [vmem:[#allocation11_spill] sm:$0xff]  ;;  %v11029_v19 = vld [vmem:[#allocation8_spill] sm:$0xff]  ;;  %vm4836_vm10 = vcmp.eq.f32.partialorder %v4835_v29, 8.507059e+37 }
 0x2f2   : > { %1927 = vst.msk [vmem:[#allocation2 + $0xe8] sm:$0xff] %vm1897_vm14, %v1860_v54  ;;  %v4822_v54 = vand.u32 2147483648, %v8314_v34  ;;  %v8583_v34 = vmul.f32 %v8541_v33, %v4519_v25  ;;  %v3010_v60 = vpop.f32.mrf.mxu2  ;;  %vm4821_vm3 = vcmp.eq.f32.partialorder %v4820_v47, 8.507059e+37 }
 0x2f3   : > { %2152 = vst.msk [vmem:[#allocation2 + $0xe8] sm:$0xff] %vm2122_vm15, %v2085_v16  ;;  %v3795_v16 = vmul.f32 %v8439_v17, %v8553_v2  ;;  %v8591_v62 = vadd.f32 %v8021_v14, %v3010_v60  ;;  %v8602_v14 = vadd.f32 %v8599_v42, %v4576_v23  ;;  %v3975_v60 = vmul.f32 %v11029_v19, %v8134_v28 }
 0x2f4   : > { %11023 = vst [vmem:[#allocation6_spill] sm:$0xff] %v8559_v11  ;;  %v4823_v45 = vor.u32 1.1754944e-38, %v4822_v54  ;;  %v2310_v25 = vpop.permute.xlu1 %2309  ;;  %v3748_v54 = vmul.f32 %v11028_v61, %v8122_v51  ;;  %v4022_v51 = vmul.f32 %v8409_v55, %v3956_v63  ;;  %v4834_v28 = vsel %vm8612_vm7, %v8444_v52, %v4830_v39 }
 0x2f5   : > { %1092 = vst.msk [vmem:[#allocation2 + $0xf0] sm:$0xff] %vm1061_vm6, %v1059_v13  ;;  %v8580_v13 = vmul.f32 %v8471_v26, %v4253_v46  ;;  %v4837_v46 = vand.u32 2147483648, %v8338_v24  ;;  %v6080_v3 = vpop.eup %6079  ;;  %v5865_v6 = vmul.f32 -1.442695, %v8591_v62  ;;  %v2308_v47 = vpop.permute.xlu0 %2307  ;;  %v5878_v58 = vmul.f32 -1.442695, %v8602_v14 }
 0x2f6   : > { %11027 = vst [vmem:[#allocation46_spill] sm:$0xff] %v8583_v34  ;;  %v4824_v24 = vsel %vm4821_vm3, %v4823_v45, %v4819_v20  ;;  %v8616_v23 = vadd.f32 1.0, %v6080_v3  ;;  %v2728_v11 = vpop.permute.xlu2 %2727  ;;  %v8628_v20 = vmul.f32 %v8471_v26, %v3956_v63  ;;  %v4053_v45 = vadd.f32 %v4021_v48, %v8503_v27  ;;  %v6082_v52 = vpop.eup %6081 }
 0x2f7   : > { %11026 = vst [vmem:[#allocation45_spill] sm:$0xff] %v8580_v13  ;;  %v1028_v13 = vld [vmem:[%s6380_s22 + $0xf8] sm:$0xff]  ;;  %v4838_v3 = vor.u32 1.1754944e-38, %v4837_v46  ;;  %v4009_v34 = vmul.f32 %v8409_v55, %v3975_v60  ;;  %v8641_v27 = vmul.f32 %v8490_v37, %v8553_v2  ;;  %v8644_v48 = vmul.f32 %v8527_v7, %v3859_v43 }
 0x2f8   : > { %2377 = vst.msk [vmem:[#allocation2 + $0xe8] sm:$0xff] %vm2347_vm1, %v2310_v25  ;;  %v3893_v25 = vmul.f32 %v8453_v32, %v3859_v43  ;;  %6083 = vrcp.f32 %v8616_v23  ;;  %v4153_v46 = vadd.f32 %v4121_v4, %v4053_v45  ;;  %v3880_v4 = vmul.f32 %v8453_v32, %v8174_v10 }
 0x2f9   : > { %2376 = vst.msk [vmem:[#allocation2 + $0xe0] sm:$0xff] %vm2347_vm1, %v2308_v47  ;;  %v8634_v47 = vmul.f32 %v4824_v24, %v8219_v8  ;;  %6085 = vpow2.f32 %v5865_v6  ;;  %v4839_v39 = vsel %vm4836_vm10, %v4838_v3, %v4834_v28  ;;  %v3783_v8 = vmul.f32 %v8439_v17, %v8353_v9  ;;  %v3730_v24 = vld [vmem:[#allocation3 + $0xb0] sm:$0xff] }
 0x2fa   : > { %2569 = vst.msk [vmem:[#allocation2 + $0xe0] sm:$0xff] %vm11032_vm2, %v2501_v53  ;;  %v3782_v53 = vmul.f32 %v8439_v17, %v3748_v54  ;;  %v8650_v29 = vadd.f32 %v3893_v25, %v3795_v16  ;;  %v8653_v6 = vmul.f32 %v8541_v33, %v3956_v63  ;;  %v4109_v2 = vmul.f32 %v8386_v30, %v8353_v9 }
 0x2fb   : > { %11033 = vst [vmem:[#allocation11_spill] sm:$0xff] %v8628_v20  ;;  %v5283_v43 = vsel %vm3668_vm0, %v8634_v47, 0.0  ;;  %v8662_v60 = vmul.f32 %v4839_v39, %v8249_v18  ;;  %v8664_v28 = vadd.f32 1.0, %v6082_v52  ;;  %6087 = vpow2.f32 %v5878_v58 }
 0x2fc   : > { %1093 = vst.msk [vmem:[#allocation2 + $0xf8] sm:$0xff] %vm1061_vm6, %v1028_v13  ;;  %v3881_v13 = vmul.f32 %v8453_v32, %v8422_v31  ;;  %v2726_v54 = vpop.permute.xlu1 %2725  ;;  %v4054_v10 = vadd.f32 %v4022_v51, %v8565_v22  ;;  %v3912_v25 = vadd.f32 %v3880_v4, %v3782_v53  ;;  %v4041_v9 = vadd.f32 %v4009_v34, %v8501_v38 }
 0x2fd   : > { %11034 = vst [vmem:[#allocation8_spill] sm:$0xff] %v8634_v47  ;;  %v2503_v16 = vpop.permute.xlu0 %2502  ;;  %v8671_v3 = vadd.f32 %v4189_v21, %v4153_v46  ;;  %v4010_v58 = vmul.f32 %v8409_v55, %v8181_v0  ;;  %v4177_v52 = vmul.f32 %v8464_v56, %v8422_v31  ;;  %v5284_v38 = vadd.f32 %v5283_v43, %v8505_v57  ;;  %v11042_v0 = vld [vmem:[#allocation13_spill] sm:$0xff] }
 0x2fe   : > { %11035 = vst [vmem:[#allocation47_spill] sm:$0xff] %v8641_v27  ;;  %v8667_v63 = vpop.eup %6083  ;;  %v1444_v18 = vpop.permute.xlu2 %1443  ;;  %v8674_v39 = vadd.f32 %v3881_v13, %v3783_v8  ;;  %v4141_v21 = vadd.f32 %v4109_v2, %v4041_v9  ;;  %v4088_v51 = vmul.f32 %v6881_v36, %v3730_v24  ;;  %v5285_v34 = vsel %vm3668_vm0, %v8662_v60, 0.0  ;;  %v3860_v8 = vld [vmem:[#allocation3 + $0xb1] sm:$0xff] }
 0x2ff   : > { %11036 = vst [vmem:[#allocation48_spill] sm:$0xff] %v8644_v48  ;;  %v6086_v45 = vpop.eup %6085  ;;  %v3517_v22 = vmul.f32 %v8667_v63, %v8616_v23  ;;  %v3762_v46 = vmul.f32 %v11042_v0, %v3730_v24  ;;  %6089 = vrcp.f32 %v8664_v28  ;;  %v11043_v13 = vld [vmem:[#allocation9_spill] sm:$0xff]  ;;  %v3527_v2 = vand.u32 2147483648, %v8616_v23 }
 0x300   : > { %11037 = vst [vmem:[#allocation49_spill] sm:$0xff] %v8653_v6  ;;  %v8685_v53 = vadd.f32 1.0, %v6086_v45  ;;  %vm3521_vm3 = vweird.f32 %v8616_v23  ;;  %vm3522_vm13 = vweird.f32 %v8667_v63  ;;  %v8699_v9 = vadd.f32 %v4010_v58, %v3912_v25 }
 0x301   : > { %11038 = vst [vmem:[#allocation50_spill] sm:$0xff] %v8662_v60  ;;  %v3518_v31 = vsub.f32 1.0, %v3517_v22  ;;  %v6088_v57 = vpop.eup %6087  ;;  %v8701_v45 = vadd.f32 %v4177_v52, %v4141_v21  ;;  %v8703_v22 = vadd.f32 %v5285_v34, %v5284_v38  ;;  %v4122_v60 = vmul.f32 %v8386_v30, %v4088_v51  ;;  %vm8719_vm7 = vmor %vm3521_vm3, %vm3522_vm13 }
 0x302   : > { %2794 = vst.msk [vmem:[#allocation2 + $0xe0] sm:$0xff] %vm11039_vm12, %v2726_v54  ;;  %v3957_v54 = vld [vmem:[#allocation3 + $0xaa] sm:$0xff]  ;;  %6091 = vrcp.f32 %v8685_v53  ;;  %v3796_v6 = vmul.f32 %v8439_v17, %v3762_v46  ;;  %v3894_v48 = vmul.f32 %v8453_v32, %v3860_v8  ;;  %v8713_v52 = vadd.f32 1.0, %v6088_v57 }
 0x303   : > { %2570 = vst.msk [vmem:[#allocation2 + $0xe8] sm:$0xff] %vm11040_vm5, %v2503_v16  ;;  %v3989_v4 = vmul.f32 %v11043_v13, %v3957_v54  ;;  %v3519_v43 = vmul.f32 %v8667_v63, %v3518_v31  ;;  %v3525_v16 = vand.u32 2147483647, %v8616_v23  ;;  %v4354_v31 = vmul.f32 %v6717_v50, %v3730_v24  ;;  %v8733_v23 = vld [vmem:[%s10855_s2] ss:$0 sm:$0xff] }
 0x304   : > { %2795 = vst.msk [vmem:[#allocation2 + $0xe8] sm:$0xff] %vm11041_vm9, %v2728_v11  ;;  %v4255_v11 = vmul.f32 %v11019_v44, %v3957_v54  ;;  %v1221_v47 = vpop.permute.xlu1 %1220  ;;  %v4521_v58 = vmul.f32 %v11020_v1, %v3957_v54  ;;  %v3528_v24 = vor.u32 1.1754944e-38, %v3527_v2  ;;  %v4154_v2 = vadd.f32 %v4122_v60, %v4054_v10  ;;  %v3731_v10 = vld [vmem:[#allocation3 + $0xb8] sm:$0xff] }
 0x305   : > { %11044 = vst [vmem:[#allocation51_spill] sm:$0xff] %v8703_v22  ;;  %v3520_v27 = vadd.f32 %v8667_v63, %v3519_v43  ;;  %v1219_v20 = vpop.permute.xlu0 %1218  ;;  %v4023_v25 = vmul.f32 %v8409_v55, %v3989_v4  ;;  %v8724_v34 = vpop.eup %6089  ;;  %vm3526_vm2 = vcmp.eq.f32.partialorder %v3525_v16, 8.507059e+37  ;;  %6093 = vrcp.f32 %v8713_v52  ;;  %v8819_v50 = vld [vmem:[#allocation3 + $0x5a] sm:$0xff] }
 0x306   : > { %1286 = vst.msk [vmem:[#allocation2 + $0xf8] sm:$0xff] %vm1254_vm8, %v1221_v47  ;;  %v2978_v38 = vpop.f32.mrf.mxu0  ;;  %v1671_v47 = vpop.permute.xlu2 %1670  ;;  %v4289_v54 = vmul.f32 %v8471_v26, %v4255_v11  ;;  %v4076_v11 = vmul.f32 %v11028_v61, %v8399_v12  ;;  %vm3536_vm5 = vweird.f32 %v8685_v53  ;;  %v8828_v22 = vld [vmem:[#allocation3 + $0xba] sm:$0xff]  ;;  %vm4846_vm3 = vweird.f32 %v8664_v28 }
 0x307   : > { %1285 = vst.msk [vmem:[#allocation2 + $0xf0] sm:$0xff] %vm1254_vm8, %v1219_v20  ;;  %v3524_v46 = vsel %vm8719_vm7, %v8667_v63, %v3520_v27  ;;  %v8736_v4 = vadd.f32 %v8733_v23, %v2978_v38  ;;  %vm11048_vm8 = vcmask 195712   ;;  %v4190_v27 = vmul.f32 %v8464_v56, %v3860_v8 }
 0x308   : > { %11047 = vst [vmem:[#allocation52_spill] sm:$0xff] %v8733_v23  ;;  %v8739_v20 = vpop.eup %6091  ;;  %v3529_v57 = vsel %vm3526_vm2, %v3528_v24, %v3524_v46  ;;  %v8745_v63 = vmul.f32 %v8527_v7, %v3860_v8  ;;  %v8750_v38 = vadd.f32 %v3894_v48, %v3796_v6  ;;  %v8761_v8 = vld [vmem:[#allocation3 + $0xb9] sm:$0xff]  ;;  %v8766_v48 = vadd.f32 %v4023_v25, %v8650_v29  ;;  %vm11053_vm12 = vmmov %vm11048_vm8 }
 0x309   : > { %v2826_v15 = vld [vmem:[#allocation2 + $0xe0] sm:$0xff]  ;;  %1510 = vst.msk [vmem:[#allocation2 + $0xf0] sm:$0xff] %vm11048_vm8, %v1444_v18  ;;  %v3660_v16 = vmul.f32 %v3529_v57, %v8518_v49  ;;  %v3532_v21 = vmul.f32 %v8739_v20, %v8685_v53  ;;  %v8753_v18 = vmul.f32 %v8490_v37, %v4354_v31  ;;  %v5852_v60 = vmul.f32 -1.442695, %v8736_v4  ;;  %v8763_v49 = vld [vmem:[#allocation3 + $0xb2] sm:$0xff] }
 0x30a   : > { %11049 = vst [vmem:[#allocation53_spill] sm:$0xff] %v8745_v63  ;;  %v4243_v6 = vmul.f32 %v11029_v19, %v8363_v40  ;;  %v8771_v24 = vadd.f32 %v4190_v27, %v4154_v2  ;;  %v4842_v46 = vmul.f32 %v8724_v34, %v8664_v28  ;;  %vm3537_vm10 = vweird.f32 %v8739_v20 }
 0x30b   : > { %v2827_v51 = vld [vmem:[#allocation2 + $0xe8] sm:$0xff]  ;;  %11050 = vst [vmem:[#allocation54_spill] sm:$0xff] %v8753_v18  ;;  %v3533_v31 = vsub.f32 1.0, %v3532_v21  ;;  %v3542_v25 = vand.u32 2147483648, %v8685_v53  ;;  %6095 = vpow2.f32 %v5852_v60  ;;  %v8788_v2 = vmul.f32 %v8409_v55, %v8763_v49  ;;  %v8803_v63 = vpop.eup %6093  ;;  %vm8815_vm9 = vmor %vm3536_vm5, %vm3537_vm10 }
 0x30c   : > { %v2844_v43 = vpack.c.bf16 %v2827_v51, %v2826_v15  ;;  %v8759_v15 = vmul.f32 %v8541_v33, %v4521_v58  ;;  %3697 = vst.msk [vmem:[#allocation3 + $0xd1] sm:$0xff] %vm3668_vm0, %v3660_v16  ;;  %v4321_v51 = vadd.f32 %v4289_v54, %v8671_v3  ;;  %v4110_v58 = vmul.f32 %v8386_v30, %v4076_v11  ;;  %v1669_v57 = vpop.permute.xlu1 %1668  ;;  %v8790_v11 = vld [vmem:[#allocation3 + $0x60] sm:$0xff] }
 0x30d   : > { %v3534_v29 = vmul.f32 %v8739_v20, %v3533_v31  ;;  %v1446_v16 = vpop.permute.xlu0 %1445  ;;  %1735 = vst.msk [vmem:[#allocation2 + $0xf0] sm:$0xff] %vm1704_vm11, %v1669_v57  ;;  %v3797_v3 = vmul.f32 %v8439_v17, %v3731_v10  ;;  %v3895_v54 = vmul.f32 %v8453_v32, %v8761_v8  ;;  %v3540_v27 = vand.u32 2147483647, %v8685_v53  ;;  %v8798_v31 = vld [vmem:[#allocation3 + $0xc0] sm:$0xff] }
 0x30e   : > { %5838 = vmatmul.msk.bf16.gmra.mxu2 %vm2886_vm4, %v2844_v43  ;;  %11051 = vst [vmem:[#allocation55_spill] sm:$0xff] %v8759_v15  ;;  %v8777_v43 = vld [vmem:[#allocation3 + $0x58] sm:$0xff]  ;;  %v8795_v21 = vmul.f32 %v8386_v30, %v3731_v10  ;;  %v4277_v60 = vmul.f32 %v8471_v26, %v4243_v6  ;;  %v2980_v15 = vpop.f32.mrf.mxu0  ;;  %v8807_v18 = vmul.f32 %v8464_v56, %v8761_v8  ;;  %vm4862_vm7 = vweird.f32 %v8803_v63 }
 0x30f   : > { %11052 = vst [vmem:[#allocation56_spill] sm:$0xff] %v8790_v11  ;;  %v3535_v57 = vadd.f32 %v8739_v20, %v3534_v29  ;;  %v4142_v1 = vadd.f32 %v4110_v58, %v8699_v9  ;;  %v4377_v6 = vmul.f32 %v8490_v37, %v8777_v43  ;;  %v4843_v29 = vsub.f32 1.0, %v4842_v46 }
 0x310   : > { %1511 = vst.msk [vmem:[#allocation2 + $0xf8] sm:$0xff] %vm11053_vm12, %v1446_v16  ;;  %v4389_v16 = vmul.f32 %v8490_v37, %v3731_v10  ;;  %v4344_v59 = vmul.f32 %v11028_v61, %v8790_v11  ;;  %v3543_v10 = vor.u32 1.1754944e-38, %v3542_v25  ;;  %v4178_v58 = vmul.f32 %v8464_v56, %v8512_v41 }
 0x311   : > { %1736 = vst.msk [vmem:[#allocation2 + $0xf8] sm:$0xff] %vm1704_vm11, %v1671_v47  ;;  %v2087_v47 = vpop.permute.xlu2 %2086  ;;  %v3539_v9 = vsel %vm8815_vm9, %v8739_v20, %v3535_v57  ;;  %vm3541_vm11 = vcmp.eq.f32.partialorder %v3540_v27, 8.507059e+37  ;;  %v8833_v46 = vadd.f32 %v8733_v23, %v2980_v15  ;;  %v6096_v13 = vpop.eup %6095  ;;  %v4278_v61 = vmul.f32 %v8471_v26, %v8514_v35 }
 0x312   : > { %11054 = vst [vmem:[#allocation57_spill] sm:$0xff] %v8807_v18  ;;  %v4356_v18 = vmul.f32 %v6881_v36, %v8798_v31  ;;  %v4309_v53 = vadd.f32 %v4277_v60, %v8701_v45  ;;  %v4857_v20 = vmul.f32 %v8803_v63, %v8713_v52  ;;  %v3544_v25 = vsel %vm3541_vm11, %v3543_v10, %v3539_v9  ;;  %v8842_v36 = vld [vmem:[#allocation3 + $0x59] sm:$0xff] }
 0x313   : > { %v4290_v57 = vmul.f32 %v8471_v26, %v8763_v49  ;;  %v4421_v11 = vadd.f32 %v4389_v16, %v4321_v51  ;;  %v4210_v56 = vadd.f32 %v4178_v58, %v4142_v1  ;;  %v4511_v15 = vmul.f32 %v11029_v19, %v8819_v50  ;;  %v8868_v58 = vld [vmem:[#allocation3 + $0x62] sm:$0xff] }
 0x314   : > { %v1864_v27 = vpop.permute.xlu1 %1863  ;;  %v4844_v23 = vmul.f32 %v8724_v34, %v4843_v29  ;;  %v4409_v0 = vadd.f32 %v4377_v6, %v4309_v53  ;;  %v4523_v45 = vmul.f32 %v11019_v44, %v8828_v22  ;;  %v4378_v60 = vmul.f32 %v8490_v37, %v4344_v59 }
 0x315   : > { %v1862_v9 = vpop.permute.xlu0 %1861  ;;  %1929 = vst.msk [vmem:[#allocation2 + $0xf8] sm:$0xff] %vm1897_vm14, %v1864_v27  ;;  %v4390_v51 = vmul.f32 %v8490_v37, %v4356_v18  ;;  %v3661_v1 = vmul.f32 %v3544_v25, %v8591_v62  ;;  %v8853_v16 = vadd.f32 1.0, %v6096_v13  ;;  %v5853_v19 = vmul.f32 -1.442695, %v8833_v46  ;;  %v8865_v13 = vld [vmem:[#allocation3 + $0x61] sm:$0xff] }
 0x316   : > { %1928 = vst.msk [vmem:[#allocation2 + $0xf0] sm:$0xff] %vm1897_vm14, %v1862_v9  ;;  %v4457_v6 = vmul.f32 %v8527_v7, %v8761_v8  ;;  %v4310_v29 = vadd.f32 %v4278_v61, %v4210_v56  ;;  %v4445_v59 = vmul.f32 %v8527_v7, %v8842_v36  ;;  %v4858_v44 = vsub.f32 1.0, %v4857_v20  ;;  %v8873_v61 = vld [vmem:[#allocation3 + $0xc1] sm:$0xff]  ;;  %v11057_v9 = vld [vmem:[#allocation10_spill] sm:$0xff] }
 0x317   : > { %2153 = vst.msk [vmem:[#allocation2 + $0xf0] sm:$0xff] %vm2122_vm15, %v2087_v47  ;;  %v8862_v10 = vadd.f32 %v3895_v54, %v3797_v3  ;;  %v4322_v62 = vadd.f32 %v4290_v57, %v8771_v24  ;;  %v4545_v18 = vmul.f32 %v8541_v33, %v4511_v15  ;;  %6097 = vrcp.f32 %v8853_v16  ;;  %v8875_v3 = vld [vmem:[#allocation3 + $0xc2] sm:$0xff] }
 0x318   : > { %3698 = vst.msk [vmem:[#allocation3 + $0xd9] sm:$0xff] %vm3668_vm0, %v3661_v1  ;;  %v4489_v56 = vadd.f32 %v4457_v6, %v4421_v11  ;;  %vm4847_vm14 = vweird.f32 %v8724_v34  ;;  %v4477_v8 = vadd.f32 %v4445_v59, %v4409_v0  ;;  %v4410_v54 = vadd.f32 %v4378_v60, %v4310_v29 }
 0x319   : > { %v4845_v24 = vadd.f32 %v8724_v34, %v4844_v23  ;;  %v4422_v47 = vadd.f32 %v4390_v51, %v4322_v62  ;;  %v4557_v53 = vmul.f32 %v8541_v33, %v4523_v45  ;;  %6099 = vpow2.f32 %v5853_v19  ;;  %v2314_v20 = vpop.permute.xlu2 %2313  ;;  %vm8898_vm13 = vmor %vm4846_vm3, %vm4847_vm14 }
 0x31a   : > { %v4859_v25 = vmul.f32 %v8803_v63, %v4858_v44  ;;  %v4446_v11 = vmul.f32 %v8527_v7, %v8865_v13  ;;  %v4546_v0 = vmul.f32 %v8541_v33, %v8868_v58  ;;  %v4852_v57 = vand.u32 2147483648, %v8664_v28 }
 0x31b   : > { %v4458_v23 = vmul.f32 %v8527_v7, %v8873_v61  ;;  %v4558_v15 = vmul.f32 %v8541_v33, %v8875_v3  ;;  %v4577_v27 = vadd.f32 %v4545_v18, %v4477_v8  ;;  %v8892_v60 = vadd.f32 %v8788_v2, %v8750_v38 }
 0x31c   : > { %v2312_v45 = vpop.permute.xlu1 %2311  ;;  %v3977_v51 = vmul.f32 %v11057_v9, %v8363_v40  ;;  %v4850_v19 = vand.u32 2147483647, %v8664_v28  ;;  %v4478_v6 = vadd.f32 %v4446_v11, %v4410_v54  ;;  %v4849_v38 = vsel %vm8898_vm13, %v8724_v34, %v4845_v24 }
 0x31d   : > { %v2089_v29 = vpop.permute.xlu0 %2088  ;;  %2378 = vst.msk [vmem:[#allocation2 + $0xf0] sm:$0xff] %vm2347_vm1, %v2312_v45  ;;  %v8904_v59 = vpop.eup %6097  ;;  %v4867_v40 = vand.u32 2147483648, %v8713_v52  ;;  %v4490_v2 = vadd.f32 %v4458_v23, %v4422_v47  ;;  %v4589_v44 = vadd.f32 %v4557_v53, %v4489_v56  ;;  %v4860_v62 = vadd.f32 %v8803_v63, %v4859_v25  ;;  %v11060_v47 = vld [vmem:[#allocation15_spill] sm:$0xff] }
 0x31e   : > { %2154 = vst.msk [vmem:[#allocation2 + $0xf8] sm:$0xff] %vm2122_vm15, %v2089_v29  ;;  %v4578_v28 = vadd.f32 %v4546_v0, %v4478_v6  ;;  %v3337_v18 = vmul.f32 %v8904_v59, %v8853_v16  ;;  %v8918_v34 = vadd.f32 %v8795_v21, %v8766_v48  ;;  %v4853_v54 = vor.u32 1.1754944e-38, %v4852_v57 }
 0x31f   : > { %2379 = vst.msk [vmem:[#allocation2 + $0xf8] sm:$0xff] %vm2347_vm1, %v2314_v20  ;;  %v6100_v8 = vpop.eup %6099  ;;  %v4590_v24 = vadd.f32 %v4558_v15, %v4490_v2  ;;  %v8921_v56 = vadd.f32 %v8599_v42, %v4577_v27  ;;  %v3750_v53 = vmul.f32 %v11060_v47, %v8399_v12  ;;  %v4011_v25 = vmul.f32 %v8409_v55, %v3977_v51  ;;  %v11070_v20 = vld [vmem:[#allocation12_spill] sm:$0xff] }
 0x320   : > { %vm4851_vm15 = vcmp.eq.f32.partialorder %v4850_v19, 8.507059e+37  ;;  %vm4861_vm2 = vweird.f32 %v8713_v52  ;;  %v4865_v48 = vand.u32 2147483647, %v8713_v52  ;;  %v4868_v21 = vor.u32 1.1754944e-38, %v4867_v40 }
 0x321   : > { %v4854_v11 = vsel %vm4851_vm15, %v4853_v54, %v4849_v38  ;;  %vm8927_vm1 = vmor %vm4861_vm2, %vm4862_vm7  ;;  %v8933_v0 = vadd.f32 %v8599_v42, %v4589_v44  ;;  %v8939_v57 = vadd.f32 %v8599_v42, %v4578_v28  ;;  %v3338_v23 = vsub.f32 1.0, %v3337_v18  ;;  %v2730_v51 = vpop.permute.xlu2 %2729 }
 0x322   : > { %v4864_v12 = vsel %vm8927_vm1, %v8803_v63, %v4860_v62  ;;  %v8941_v15 = vadd.f32 1.0, %v6100_v8  ;;  %v5879_v27 = vmul.f32 -1.442695, %v8921_v56  ;;  %vm3341_vm8 = vweird.f32 %v8853_v16 }
 0x323   : > { %11063 = vst [vmem:[#allocation10_spill] sm:$0xff] %v8933_v0  ;;  %v3347_v52 = vand.u32 2147483648, %v8853_v16  ;;  %v8947_v1 = vadd.f32 %v8599_v42, %v4590_v24  ;;  %v3339_v19 = vmul.f32 %v8904_v59, %v3338_v23  ;;  %vm3342_vm10 = vweird.f32 %v8904_v59 }
 0x324   : > { %v2507_v45 = vpop.permute.xlu1 %2506  ;;  %v3345_v63 = vand.u32 2147483647, %v8853_v16  ;;  %6101 = vrcp.f32 %v8941_v15  ;;  %vm11065_vm12 = vcmask 523712   ;;  %v3784_v29 = vmul.f32 %v8439_v17, %v3750_v53  ;;  %vm3343_vm14 = vmor %vm3341_vm8, %vm3342_vm10 }
 0x325   : > { %11064 = vst [vmem:[#allocation15_spill] sm:$0xff] %v8947_v1  ;;  %v2505_v6 = vpop.permute.xlu0 %2504  ;;  %v3882_v38 = vmul.f32 %v8453_v32, %v8512_v41  ;;  %vm4866_vm5 = vcmp.eq.f32.partialorder %v4865_v48, 8.507059e+37  ;;  %vm11066_vm9 = vmmov %vm11065_vm12  ;;  %v5891_v40 = vmul.f32 -1.442695, %v8933_v0  ;;  %v8960_v2 = vmul.f32 %v4854_v11, %v8533_v5 }
 0x326   : > { %2572 = vst.msk [vmem:[#allocation2 + $0xf8] sm:$0xff] %vm11065_vm12, %v2507_v45  ;;  %v4869_v44 = vsel %vm4866_vm5, %v4868_v21, %v4864_v12  ;;  %v5880_v62 = vmul.f32 -1.442695, %v8939_v57  ;;  %v3340_v28 = vadd.f32 %v8904_v59, %v3339_v19  ;;  %vm11068_vm11 = vcmask 589312   ;;  %v11071_v21 = vld [vmem:[#allocation13_spill] sm:$0xff] }
 0x327   : > { %2571 = vst.msk [vmem:[#allocation2 + $0xf0] sm:$0xff] %vm11066_vm9, %v2505_v6  ;;  %v3785_v18 = vmul.f32 %v8439_v17, %v8777_v43  ;;  %v4043_v41 = vadd.f32 %v4011_v25, %v8674_v39  ;;  %6103 = vpow2.f32 %v5879_v27  ;;  %v3348_v5 = vor.u32 1.1754944e-38, %v3347_v52  ;;  %v11072_v12 = vld [vmem:[#allocation9_spill] sm:$0xff]  ;;  %v11075_v6 = vld [vmem:[#allocation38_spill] sm:$0xff]  ;;  %vm11076_vm13 = vmmov %vm11068_vm11 }
 0x328   : > { %11067 = vst [vmem:[#allocation58_spill] sm:$0xff] %v8960_v2  ;;  %v4111_v8 = vmul.f32 %v8386_v30, %v8777_v43  ;;  %v3344_v54 = vsel %vm3343_vm14, %v8904_v59, %v3340_v28  ;;  %vm3346_vm3 = vcmp.eq.f32.partialorder %v3345_v63, 8.507059e+37  ;;  %v5892_v24 = vmul.f32 -1.442695, %v8947_v1  ;;  %v11074_v19 = vld [vmem:[#allocation57_spill] sm:$0xff] }
 0x329   : > { %2796 = vst.msk [vmem:[#allocation2 + $0xf0] sm:$0xff] %vm11068_vm11, %v2730_v51  ;;  %v3883_v53 = vmul.f32 %v8453_v32, %v8842_v36  ;;  %v8979_v39 = vmul.f32 %v4869_v44, %v8602_v14  ;;  %v3349_v25 = vsel %vm3346_vm3, %v3348_v5, %v3344_v54  ;;  %6105 = vpow2.f32 %v5891_v40  ;;  %v11078_v28 = vld [vmem:[#allocation17_spill] sm:$0xff] }
 0x32a   : > { %v8981_v11 = vpop.eup %6101  ;;  %v5287_v16 = vsel %vm3668_vm0, %v8960_v2, 0.0  ;;  %v4012_v43 = vmul.f32 %v8409_v55, %v8514_v35  ;;  %6107 = vpow2.f32 %v5880_v62  ;;  %v3648_v59 = vmul.f32 %v3349_v25, %v8736_v4 }
 0x32b   : > { %11069 = vst [vmem:[#allocation59_spill] sm:$0xff] %v8979_v39  ;;  %v3991_v48 = vmul.f32 %v11070_v20, %v8828_v22  ;;  %v4090_v14 = vmul.f32 %v11071_v21, %v8798_v31  ;;  %v4257_v23 = vmul.f32 %v11072_v12, %v8828_v22  ;;  %v3352_v27 = vmul.f32 %v8981_v11, %v8941_v15 }
 0x32c   : > { %v8998_v52 = vmul.f32 %v8541_v33, %v8763_v49  ;;  %v3914_v35 = vadd.f32 %v3882_v38, %v3784_v29  ;;  %v4143_v45 = vadd.f32 %v4111_v8, %v4043_v41  ;;  %3685 = vst.msk [vmem:[#allocation3 + $0x71] sm:$0xff] %vm3668_vm0, %v3648_v59  ;;  %6109 = vpow2.f32 %v5892_v24  ;;  %v11077_v38 = vld [vmem:[#allocation51_spill] sm:$0xff]  ;;  %v3863_v59 = vld [vmem:[#allocation3 + $0xc9] sm:$0xff] }
 0x32d   : > { %v2732_v4 = vpop.permute.xlu0 %2731  ;;  %v6104_v51 = vpop.eup %6103  ;;  %v4223_v63 = vadd.f32 %v11074_v19, %v8918_v34  ;;  %v4179_v22 = vmul.f32 %v11075_v6, %v8842_v36  ;;  %v5289_v40 = vsel %vm3668_vm0, %v8979_v39, 0.0  ;;  %v3353_v44 = vsub.f32 1.0, %v3352_v27 }
 0x32e   : > { %11073 = vst [vmem:[#allocation12_spill] sm:$0xff] %v8998_v52  ;;  %v9008_v49 = vadd.f32 %v3883_v53, %v3785_v18  ;;  %v9010_v29 = vadd.f32 %v4012_v43, %v3914_v35  ;;  %v5288_v62 = vadd.f32 %v5287_v16, %v11077_v38  ;;  %v3764_v41 = vmul.f32 %v11078_v28, %v8798_v31  ;;  %v3733_v43 = vld [vmem:[#allocation3 + $0xc8] sm:$0xff] }
 0x32f   : > { %2797 = vst.msk [vmem:[#allocation2 + $0xf8] sm:$0xff] %vm11076_vm13, %v2732_v4  ;;  %v6106_v5 = vpop.eup %6105  ;;  %v4025_v34 = vmul.f32 %v8409_v55, %v3991_v48  ;;  %v4124_v36 = vmul.f32 %v8386_v30, %v4090_v14  ;;  %v4291_v8 = vmul.f32 %v8471_v26, %v4257_v23  ;;  %v3354_v54 = vmul.f32 %v8981_v11, %v3353_v44 }
 0x330   : > { %v6108_v24 = vpop.eup %6107  ;;  %v9019_v25 = vadd.f32 %v4179_v22, %v4143_v45  ;;  %v9021_v18 = vadd.f32 %v5289_v40, %v5288_v62  ;;  %v9023_v53 = vadd.f32 1.0, %v6104_v51  ;;  %vm3357_vm7 = vweird.f32 %v8981_v11 }
 0x331   : > { %v3896_v31 = vmul.f32 %v8453_v32, %v8873_v61  ;;  %v4192_v16 = vmul.f32 %v11075_v6, %v8873_v61  ;;  %v3355_v48 = vadd.f32 %v8981_v11, %v3354_v54  ;;  %v3362_v14 = vand.u32 2147483648, %v8941_v15 }
 0x332   : > { %v6110_v23 = vpop.eup %6109  ;;  %v3798_v27 = vmul.f32 %v8439_v17, %v3764_v41  ;;  %vm3356_vm15 = vweird.f32 %v8941_v15  ;;  %v3360_v35 = vand.u32 2147483647, %v8941_v15  ;;  %v9035_v45 = vadd.f32 1.0, %v6106_v5  ;;  %v11081_v5 = vld [vmem:[#allocation56_spill] sm:$0xff] }
 0x333   : > { %v4156_v4 = vadd.f32 %v4124_v36, %v8892_v60  ;;  %v4057_v51 = vadd.f32 %v4025_v34, %v8862_v10  ;;  %v4323_v61 = vadd.f32 %v4291_v8, %v4223_v63  ;;  %v9039_v19 = vadd.f32 1.0, %v6108_v24  ;;  %vm9043_vm2 = vmor %vm3356_vm15, %vm3357_vm7  ;;  %v2828_v10 = vld [vmem:[#allocation2 + $0xf0] sm:$0xff]  ;;  %v11082_v34 = vld [vmem:[#allocation19_spill] sm:$0xff] }
 0x334   : > { %v3799_v40 = vmul.f32 %v8439_v17, %v3733_v43  ;;  %v3897_v44 = vmul.f32 %v8453_v32, %v3863_v59  ;;  %6111 = vrcp.f32 %v9023_v53  ;;  %v3359_v60 = vsel %vm9043_vm2, %v8981_v11, %v3355_v48  ;;  %v11083_v8 = vld [vmem:[#allocation14_spill] sm:$0xff] }
 0x335   : > { %v4125_v63 = vmul.f32 %v8386_v30, %v3733_v43  ;;  %v4391_v38 = vmul.f32 %v8490_v37, %v3733_v43  ;;  %v3363_v62 = vor.u32 1.1754944e-38, %v3362_v14  ;;  %v9055_v41 = vadd.f32 1.0, %v6110_v23 }
 0x336   : > { %v2829_v15 = vld [vmem:[#allocation2 + $0xf8] sm:$0xff]  ;;  %v3752_v36 = vmul.f32 %v11082_v34, %v11081_v5  ;;  %v3979_v54 = vmul.f32 %v11083_v8, %v8819_v50  ;;  %vm3361_vm1 = vcmp.eq.f32.partialorder %v3360_v35, 8.507059e+37  ;;  %6113 = vrcp.f32 %v9035_v45 }
 0x337   : > { %v4078_v11 = vmul.f32 %v11060_v47, %v11081_v5  ;;  %6115 = vrcp.f32 %v9039_v19  ;;  %v3364_v24 = vsel %vm3361_vm1, %v3363_v62, %v3359_v60  ;;  %v2845_v48 = vpack.c.bf16 %v2829_v15, %v2828_v10  ;;  %v9072_v5 = vld [vmem:[#allocation3 + $0xca] sm:$0xff] }
 0x338   : > { %v3928_v43 = vadd.f32 %v3896_v31, %v3798_v27  ;;  %v4026_v14 = vmul.f32 %v8409_v55, %v8875_v3  ;;  %v4292_v23 = vmul.f32 %v8471_v26, %v8875_v3  ;;  %v3649_v22 = vmul.f32 %v3364_v24, %v8833_v46  ;;  %v3851_v62 = vld [vmem:[#allocation3 + $0x69] sm:$0xff] }
 0x339   : > { %v4224_v39 = vadd.f32 %v4192_v16, %v4156_v4  ;;  %v4157_v35 = vadd.f32 %v4125_v63, %v4057_v51  ;;  %v4423_v2 = vadd.f32 %v4391_v38, %v4323_v61  ;;  %v4245_v52 = vmul.f32 %v11057_v9, %v8819_v50  ;;  %5839 = vmatmul.msk.bf16.gmra.mxu2 %vm2886_vm4, %v2845_v48  ;;  %v3721_v63 = vld [vmem:[#allocation3 + $0x68] sm:$0xff] }
 0x33a   : > { %v9075_v60 = vpop.eup %6111  ;;  %v4193_v31 = vmul.f32 %v11075_v6, %v3863_v59  ;;  %v3786_v27 = vmul.f32 %v8439_v17, %v3752_v36  ;;  %3686 = vst.msk [vmem:[#allocation3 + $0x79] sm:$0xff] %vm3668_vm0, %v3649_v22  ;;  %v5062_v46 = vand.u32 2147483648, %v9035_v45  ;;  %6117 = vrcp.f32 %v9055_v41 }
 0x33b   : > { %v9082_v3 = vadd.f32 %v3897_v44, %v3799_v40  ;;  %v4459_v50 = vmul.f32 %v8527_v7, %v3863_v59  ;;  %v4013_v16 = vmul.f32 %v8409_v55, %v3979_v54  ;;  %v4112_v4 = vmul.f32 %v8386_v30, %v4078_v11  ;;  %v9108_v54 = vld [vmem:[#allocation3 + $0x70] sm:$0xff] }
 0x33c   : > { %v9087_v51 = vpop.eup %6113  ;;  %v9089_v61 = vadd.f32 %v4026_v14, %v3928_v43  ;;  %v9091_v10 = vadd.f32 %v4292_v23, %v4224_v39  ;;  %v3884_v15 = vmul.f32 %v8453_v32, %v8865_v13  ;;  %v4525_v40 = vmul.f32 %v11072_v12, %v9072_v5  ;;  %v9110_v11 = vld [vmem:[#allocation3 + $0x6a] sm:$0xff] }
 0x33d   : > { %v9097_v44 = vpop.eup %6115  ;;  %v9099_v59 = vadd.f32 %v4193_v31, %v4157_v35  ;;  %v4491_v55 = vadd.f32 %v4459_v50, %v4423_v2  ;;  %v4279_v30 = vmul.f32 %v8471_v26, %v4245_v52  ;;  %v4872_v38 = vmul.f32 %v9075_v60, %v9023_v53  ;;  %v9118_v43 = vld [vmem:[#allocation3 + $0xd0] sm:$0xff] }
 0x33e   : > { %v9104_v39 = vadd.f32 %v3884_v15, %v3786_v27  ;;  %v4180_v36 = vmul.f32 %v11075_v6, %v8865_v13  ;;  %v9113_v24 = vor.u32 1.1754944e-38, %v5062_v46  ;;  %v4144_v2 = vadd.f32 %v4112_v4, %v9010_v29  ;;  %v9150_v46 = vld [vmem:[%s10856_s3 + $0x3] ss:$0 sm:$0xff] }
 0x33f   : > { %v4045_v52 = vadd.f32 %v4013_v16, %v9008_v49  ;;  %v4379_v48 = vmul.f32 %v8490_v37, %v3721_v63  ;;  %v5052_v14 = vmul.f32 %v9087_v51, %v9035_v45  ;;  %v9125_v6 = vmul.f32 %v8439_v17, %v3721_v63  ;;  %v9141_v17 = vld [vmem:[%s10856_s3 + $0x2] ss:$0 sm:$0xff] }
 0x340   : > { %v9122_v13 = vpop.eup %6117  ;;  %v9128_v23 = vmul.f32 %v8453_v32, %v3851_v62  ;;  %v4887_v29 = vmul.f32 %v9097_v44, %v9039_v19  ;;  %v4559_v49 = vmul.f32 %v8541_v33, %v4525_v40  ;;  %v4873_v22 = vsub.f32 1.0, %v4872_v38 }
 0x341   : > { %v4311_v35 = vadd.f32 %v4279_v30, %v9019_v25  ;;  %v4346_v31 = vmul.f32 %v11060_v47, %v9108_v54  ;;  %v4513_v27 = vmul.f32 %v11057_v9, %v9110_v11  ;;  %v9145_v32 = vmul.f32 %v9141_v17, %v8868_v58  ;;  %v9162_v30 = vld [vmem:[%s10856_s3 + $0x4] ss:$0 sm:$0xff] }
 0x342   : > { %v4113_v25 = vmul.f32 %v9150_v46, %v3721_v63  ;;  %v4280_v47 = vmul.f32 %v8471_v26, %v8868_v58  ;;  %v4358_v9 = vmul.f32 %v11071_v21, %v9118_v43  ;;  %v4212_v16 = vadd.f32 %v4180_v36, %v4144_v2 }
 0x343   : > { %v3013_v50 = vpop.f32.mrf.mxu2  ;;  %v4411_v4 = vadd.f32 %v4379_v48, %v4311_v35  ;;  %v5053_v15 = vsub.f32 1.0, %v5052_v14  ;;  %v5067_v40 = vmul.f32 %v9122_v13, %v9055_v41  ;;  %v9165_v63 = vmul.f32 %v9162_v30, %v3851_v62  ;;  %v11084_v48 = vld [vmem:[#allocation52_spill] sm:$0xff] }
 0x344   : > { %v4447_v26 = vmul.f32 %v8527_v7, %v3851_v62  ;;  %v4888_v58 = vsub.f32 1.0, %v4887_v29  ;;  %v4591_v38 = vadd.f32 %v4559_v49, %v4491_v55  ;;  %v4874_v21 = vmul.f32 %v9075_v60, %v4873_v22 }
 0x345   : > { %v4380_v36 = vmul.f32 %v8490_v37, %v4346_v31  ;;  %v4547_v2 = vmul.f32 %v8541_v33, %v4513_v27  ;;  %v9172_v14 = vadd.f32 %v11084_v48, %v3013_v50  ;;  %v4882_v35 = vand.u32 2147483648, %v9023_v53  ;;  %v9183_v31 = vld [vmem:[#allocation3 + $0x71] sm:$0xff] }
 0x346   : > { %v9175_v12 = vadd.f32 %v4113_v25, %v4045_v52  ;;  %v4312_v1 = vadd.f32 %v4280_v47, %v4212_v16  ;;  %v4392_v0 = vmul.f32 %v8490_v37, %v4358_v9  ;;  %v4479_v8 = vadd.f32 %v4447_v26, %v4411_v4  ;;  %v9185_v27 = vld [vmem:[#allocation3 + $0x72] sm:$0xff] }
 0x347   : > { %v5866_v62 = vmul.f32 -1.442695, %v9172_v14  ;;  %v5054_v55 = vmul.f32 %v9087_v51, %v5053_v15  ;;  %v5068_v29 = vsub.f32 1.0, %v5067_v40  ;;  %vm4876_vm4 = vweird.f32 %v9023_v53  ;;  %v9192_v25 = vld [vmem:[#allocation3 + $0xd1] sm:$0xff] }
 0x348   : > { %v4880_v49 = vand.u32 2147483647, %v9023_v53  ;;  %v4889_v22 = vmul.f32 %v9097_v44, %v4888_v58  ;;  %v9188_v52 = vadd.f32 %v8599_v42, %v4591_v38  ;;  %v4875_v37 = vadd.f32 %v9075_v60, %v4874_v21  ;;  %v9194_v47 = vld [vmem:[#allocation3 + $0xd2] sm:$0xff] }
 0x349   : > { %vm4877_vm8 = vweird.f32 %v9075_v60  ;;  %v4412_v9 = vadd.f32 %v4380_v36, %v4312_v1  ;;  %v4579_v50 = vadd.f32 %v4547_v2, %v4479_v8  ;;  %v4883_v16 = vor.u32 1.1754944e-38, %v4882_v35 }
 0x34a   : > { %11085 = vst [vmem:[#allocation13_spill] sm:$0xff] %v9188_v52  ;;  %v4897_v4 = vand.u32 2147483648, %v9039_v19  ;;  %6119 = vpow2.f32 %v5866_v62  ;;  %v4424_v40 = vadd.f32 %v4392_v0, %v9091_v10  ;;  %vm4892_vm10 = vweird.f32 %v9097_v44  ;;  %vm9208_vm12 = vmor %vm4876_vm4, %vm4877_vm8  ;;  %v9216_v0 = vld [vmem:[%s10856_s3 + $0x7] ss:$0 sm:$0xff] }
 0x34b   : > { %v3015_v15 = vpop.f32.mrf.mxu2  ;;  %v4448_v26 = vmul.f32 %v8527_v7, %v9183_v31  ;;  %v4548_v58 = vmul.f32 %v8541_v33, %v9185_v27  ;;  %v4890_v8 = vadd.f32 %v9097_v44, %v4889_v22  ;;  %v4460_v7 = vmul.f32 %v9216_v0, %v9192_v25 }
 0x34c   : > { %v9204_v38 = vadd.f32 %v11084_v48, %v3015_v15  ;;  %v4560_v10 = vmul.f32 %v8541_v33, %v9194_v47  ;;  %v5893_v21 = vmul.f32 -1.442695, %v9188_v52  ;;  %vm5056_vm5 = vweird.f32 %v9035_v45 }
 0x34d   : > { %v4879_v53 = vsel %vm9208_vm12, %v9075_v60, %v4875_v37  ;;  %v4480_v36 = vadd.f32 %v4448_v26, %v4412_v9  ;;  %v9228_v2 = vadd.f32 %v8599_v42, %v4579_v50  ;;  %vm4891_vm9 = vweird.f32 %v9039_v19 }
 0x34e   : > { %v5867_v35 = vmul.f32 -1.442695, %v9204_v38  ;;  %v4895_v62 = vand.u32 2147483647, %v9039_v19  ;;  %v4492_v22 = vadd.f32 %v4460_v7, %v4424_v40  ;;  %v5069_v33 = vmul.f32 %v9122_v13, %v5068_v29  ;;  %vm9236_vm14 = vmor %vm4891_vm9, %vm4892_vm10 }
 0x34f   : > { %vm4881_vm11 = vcmp.eq.f32.partialorder %v4880_v49, 8.507059e+37  ;;  %v4580_v60 = vadd.f32 %v4548_v58, %v4480_v36  ;;  %vm5057_vm3 = vweird.f32 %v9087_v51  ;;  %v4894_v19 = vsel %vm9236_vm14, %v9097_v44, %v4890_v8 }
 0x350   : > { %6121 = vpow2.f32 %v5867_v35  ;;  %v6120_v37 = vpop.eup %6119  ;;  %v4884_v9 = vsel %vm4881_vm11, %v4883_v16, %v4879_v53  ;;  %v4592_v50 = vadd.f32 %v4560_v10, %v4492_v22  ;;  %v11090_v29 = vand.u32 2147483647, %v9035_v45  ;;  %vm9285_vm2 = vmor %vm5056_vm5, %vm5057_vm3  ;;  %v11100_v35 = vld [vmem:[#allocation20_spill] sm:$0xff] }
 0x351   : > { %6123 = vpow2.f32 %v5893_v21  ;;  %v4898_v40 = vor.u32 1.1754944e-38, %v4897_v4  ;;  %v5881_v26 = vmul.f32 -1.442695, %v9228_v2  ;;  %v9251_v58 = vadd.f32 1.0, %v6120_v37 }
 0x352   : > { %vm9246_vm13 = vcmp.eq.f32.partialorder %v11090_v29, 8.507059e+37  ;;  %v5077_v1 = vand.u32 2147483648, %v9055_v41  ;;  %vm4896_vm7 = vcmp.eq.f32.partialorder %v4895_v62, 8.507059e+37  ;;  %v5055_v16 = vadd.f32 %v9087_v51, %v5054_v55 }
 0x353   : > { %v5070_v44 = vadd.f32 %v9122_v13, %v5069_v33  ;;  %vm5072_vm15 = vweird.f32 %v9122_v13  ;;  %v9258_v8 = vmul.f32 %v4884_v9, %v8921_v56  ;;  %v4899_v7 = vsel %vm4896_vm7, %v4898_v40, %v4894_v19 }
 0x354   : > { %v9261_v10 = vadd.f32 %v8599_v42, %v4580_v60  ;;  %6125 = vrcp.f32 %v9251_v58  ;;  %v9266_v4 = vadd.f32 %v9128_v23, %v9125_v6  ;;  %v9270_v55 = vadd.f32 %v9145_v32, %v9104_v39 }
 0x355   : > { %11093 = vst [vmem:[#allocation9_spill] sm:$0xff] %v9258_v8  ;;  %v4092_v21 = vmul.f32 %v11078_v28, %v9118_v43  ;;  %v9275_v56 = vadd.f32 %v8599_v42, %v4592_v50  ;;  %v9279_v36 = vadd.f32 %v9165_v63, %v9175_v12  ;;  %6127 = vpow2.f32 %v5881_v26 }
 0x356   : > { %v6122_v53 = vpop.eup %6121  ;;  %vm5071_vm1 = vweird.f32 %v9055_v41  ;;  %v5075_v39 = vand.u32 2147483647, %v9055_v41  ;;  %v9292_v23 = vmul.f32 %v4899_v7, %v8939_v57  ;;  %v5059_v12 = vsel %vm9285_vm2, %v9087_v51, %v5055_v16  ;;  %v11101_v51 = vld [vmem:[#allocation16_spill] sm:$0xff] }
 0x357   : > { %11094 = vst [vmem:[#allocation57_spill] sm:$0xff] %v9275_v56  ;;  %v6124_v42 = vpop.eup %6123  ;;  %v9294_v32 = vadd.f32 1.0, %v6122_v53  ;;  %vm9301_vm4 = vmor %vm5071_vm1, %vm5072_vm15  ;;  %v5078_v63 = vor.u32 1.1754944e-38, %v5077_v1  ;;  %v5291_v41 = vsel %vm3668_vm0, %v9258_v8, 0.0  ;;  %v3766_v57 = vmul.f32 %v11100_v35, %v9118_v43  ;;  %v9353_v53 = vld [vmem:[%s10856_s3 + $0x5] ss:$0 sm:$0xff] }
 0x358   : > { %11097 = vst [vmem:[#allocation38_spill] sm:$0xff] %v9292_v23  ;;  %v5882_v62 = vmul.f32 -1.442695, %v9261_v10  ;;  %v5074_v22 = vsel %vm9301_vm4, %v9122_v13, %v5070_v44  ;;  %v3993_v33 = vmul.f32 %v11101_v51, %v9072_v5  ;;  %v4126_v15 = vmul.f32 %v9150_v46, %v4092_v21 }
 0x359   : > { %6129 = vrcp.f32 %v9294_v32  ;;  %v5894_v60 = vmul.f32 -1.442695, %v9275_v56  ;;  %v4259_v9 = vmul.f32 %v11070_v20, %v9072_v5  ;;  %v9320_v43 = vadd.f32 1.0, %v6124_v42  ;;  %v9336_v5 = vld [vmem:[%s10856_s3] ss:$0 sm:$0xff] }
 0x35a   : > { %v6126_v37 = vpop.eup %6125  ;;  %v9325_v19 = vsel %vm9246_vm13, %v9113_v24, %v5059_v12  ;;  %vm5076_vm8 = vcmp.eq.f32.partialorder %v5075_v39, 8.507059e+37  ;;  %v5292_v13 = vadd.f32 %v5291_v41, %v9021_v18  ;;  %v5293_v50 = vsel %vm3668_vm0, %v9292_v23, 0.0  ;;  %v9342_v24 = vld [vmem:[%s10856_s3 + $0x1] ss:$0 sm:$0xff] }
 0x35b   : > { %v3547_v29 = vmul.f32 %v6126_v37, %v9251_v58  ;;  %v9331_v40 = vsel %vm5076_vm8, %v5078_v63, %v5074_v22  ;;  %v6128_v26 = vpop.eup %6127  ;;  %v3800_v49 = vmul.f32 %v9336_v5, %v3766_v57  ;;  %v3898_v18 = vmul.f32 %v9342_v24, %v9192_v25 }
 0x35c   : > { %v4194_v1 = vmul.f32 %v9162_v30, %v9192_v25  ;;  %6131 = vpow2.f32 %v5882_v62  ;;  %v4027_v16 = vmul.f32 %v9141_v17, %v3993_v33  ;;  %v4158_v44 = vadd.f32 %v4126_v15, %v9089_v61 }
 0x35d   : > { %v3548_v7 = vsub.f32 1.0, %v3547_v29  ;;  %v2983_v21 = vpop.f32.mrf.mxu0  ;;  %6133 = vpow2.f32 %v5894_v60  ;;  %v4293_v6 = vmul.f32 %v9353_v53, %v4259_v9  ;;  %v3557_v39 = vand.u32 2147483648, %v9251_v58  ;;  %v3735_v9 = vld [vmem:[#allocation3 + $0xd8] sm:$0xff] }
 0x35e   : > { %v9358_v42 = vadd.f32 %v11084_v48, %v2983_v21  ;;  %6135 = vrcp.f32 %v9320_v43  ;;  %v9361_v12 = vadd.f32 1.0, %v6128_v26  ;;  %vm3552_vm10 = vweird.f32 %v6126_v37  ;;  %v3865_v29 = vld [vmem:[#allocation3 + $0xd9] sm:$0xff] }
 0x35f   : > { %v6130_v25 = vpop.eup %6129  ;;  %v3549_v61 = vmul.f32 %v6126_v37, %v3548_v7  ;;  %v3555_v45 = vand.u32 2147483647, %v9251_v58  ;;  %v9364_v63 = vadd.f32 %v5293_v50, %v5292_v13  ;;  %v9366_v41 = vadd.f32 %v3898_v18, %v3800_v49 }
 0x360   : > { %v3562_v57 = vmul.f32 %v6130_v25, %v9294_v32  ;;  %v5854_v62 = vmul.f32 -1.442695, %v9358_v42  ;;  %v9370_v22 = vadd.f32 %v4194_v1, %v4158_v44  ;;  %v4059_v33 = vadd.f32 %v4027_v16, %v9082_v3 }
 0x361   : > { %v3550_v15 = vadd.f32 %v6126_v37, %v3549_v61  ;;  %vm3551_vm12 = vweird.f32 %v9251_v58  ;;  %v3558_v26 = vor.u32 1.1754944e-38, %v3557_v39  ;;  %v4325_v50 = vadd.f32 %v4293_v6, %v9099_v59 }
 0x362   : > { %v6132_v60 = vpop.eup %6131  ;;  %vm3553_vm5 = vmor %vm3551_vm12, %vm3552_vm10  ;;  %v3563_v13 = vsub.f32 1.0, %v3562_v57  ;;  %6137 = vpow2.f32 %v5854_v62  ;;  %vm3556_vm9 = vcmp.eq.f32.partialorder %v3555_v45, 8.507059e+37  ;;  %v3572_v1 = vand.u32 2147483648, %v9294_v32  ;;  %v9395_v62 = vld [vmem:[%s10856_s3 + $0x6] ss:$0 sm:$0xff] }
 0x363   : > { %v6134_v49 = vpop.eup %6133  ;;  %6139 = vrcp.f32 %v9361_v12  ;;  %v3554_v18 = vsel %vm3553_vm5, %v6126_v37, %v3550_v15  ;;  %vm3567_vm11 = vweird.f32 %v6130_v25  ;;  %v3570_v44 = vand.u32 2147483647, %v9294_v32 }
 0x364   : > { %v9377_v3 = vpop.eup %6135  ;;  %v3559_v16 = vsel %vm3556_vm9, %v3558_v26, %v3554_v18  ;;  %v3564_v58 = vmul.f32 %v6130_v25, %v3563_v13  ;;  %v3801_v7 = vmul.f32 %v9336_v5, %v3735_v9  ;;  %v3899_v21 = vmul.f32 %v9342_v24, %v3865_v29 }
 0x365   : > { %v9382_v39 = vadd.f32 1.0, %v6132_v60  ;;  %v3662_v59 = vmul.f32 %v3559_v16, %v9172_v14  ;;  %v2985_v6 = vpop.f32.mrf.mxu0  ;;  %v4127_v37 = vmul.f32 %v9150_v46, %v3735_v9  ;;  %vm3566_vm14 = vweird.f32 %v9294_v32 }
 0x366   : > { %v3565_v61 = vadd.f32 %v6130_v25, %v3564_v58  ;;  %v9388_v45 = vadd.f32 %v11084_v48, %v2985_v6  ;;  %v4028_v57 = vmul.f32 %v9141_v17, %v9194_v47  ;;  %v4393_v15 = vmul.f32 %v9395_v62, %v3735_v9  ;;  %vm3568_vm3 = vmor %vm3566_vm14, %vm3567_vm11 }
 0x367   : > { %3699 = vst.msk [vmem:[#allocation3 + $0xe1] sm:$0xff] %vm3668_vm0, %v3662_v59  ;;  %v3573_v14 = vor.u32 1.1754944e-38, %v3572_v1  ;;  %v9400_v60 = vadd.f32 1.0, %v6134_v49  ;;  %vm3571_vm13 = vcmp.eq.f32.partialorder %v3570_v44, 8.507059e+37  ;;  %v5082_v13 = vmul.f32 %v9377_v3, %v9320_v43  ;;  %v11102_v59 = vld [vmem:[#allocation23_spill] sm:$0xff] }
 0x368   : > { %v6138_v32 = vpop.eup %6137  ;;  %v3569_v48 = vsel %vm3568_vm3, %v6130_v25, %v3565_v61  ;;  %v5855_v26 = vmul.f32 -1.442695, %v9388_v45  ;;  %v4080_v9 = vmul.f32 %v11082_v34, %v9108_v54  ;;  %6141 = vrcp.f32 %v9382_v39 }
 0x369   : > { %v9405_v18 = vpop.eup %6139  ;;  %v3574_v16 = vsel %vm3571_vm13, %v3573_v14, %v3569_v48  ;;  %v9410_v58 = vadd.f32 1.0, %v6138_v32  ;;  %v4159_v49 = vadd.f32 %v4127_v37, %v4059_v33  ;;  %v4294_v25 = vmul.f32 %v9353_v53, %v9194_v47  ;;  %v11104_v33 = vld [vmem:[#allocation18_spill] sm:$0xff] }
 0x36a   : > { %v3663_v1 = vmul.f32 %v3574_v16, %v9204_v38  ;;  %6143 = vpow2.f32 %v5855_v26  ;;  %v4195_v44 = vmul.f32 %v9162_v30, %v3865_v29  ;;  %v3754_v6 = vmul.f32 %v11102_v59, %v9108_v54  ;;  %v11105_v32 = vld [vmem:[#allocation14_spill] sm:$0xff]  ;;  %v11110_v16 = vld [vmem:[#allocation15_spill] sm:$0xff] }
 0x36b   : > { %6145 = vrcp.f32 %v9410_v58  ;;  %v4425_v61 = vadd.f32 %v4393_v15, %v4325_v50  ;;  %v9419_v23 = vadd.f32 %v3899_v21, %v3801_v7  ;;  %v4461_v14 = vmul.f32 %v9216_v0, %v3865_v29  ;;  %v11108_v21 = vld [vmem:[#allocation10_spill] sm:$0xff] }
 0x36c   : > { %v3981_v37 = vmul.f32 %v11104_v33, %v9110_v11  ;;  %3700 = vst.msk [vmem:[#allocation3 + $0xe9] sm:$0xff] %vm3668_vm0, %v3663_v1  ;;  %v5083_v47 = vsub.f32 1.0, %v5082_v13  ;;  %v4114_v38 = vmul.f32 %v9150_v46, %v4080_v9  ;;  %v4247_v48 = vmul.f32 %v11105_v32, %v9110_v11 }
 0x36d   : > { %11103 = vst [vmem:[#allocation51_spill] sm:$0xff] %v9419_v23  ;;  %v4902_v54 = vmul.f32 %v9405_v18, %v9361_v12  ;;  %6147 = vrcp.f32 %v9400_v60  ;;  %v9432_v50 = vadd.f32 %v4028_v57, %v9366_v41  ;;  %v9434_v29 = vadd.f32 %v4195_v44, %v4159_v49 }
 0x36e   : > { %v9437_v7 = vadd.f32 %v4294_v25, %v9370_v22  ;;  %v9441_v15 = vmul.f32 %v9325_v19, %v11108_v21  ;;  %v9443_v26 = vpop.eup %6141  ;;  %v3788_v11 = vmul.f32 %v9336_v5, %v3754_v6  ;;  %v9446_v13 = vadd.f32 %v4461_v14, %v4425_v61 }
 0x36f   : > { %11106 = vst [vmem:[#allocation17_spill] sm:$0xff] %v9432_v50  ;;  %v5092_v9 = vand.u32 2147483648, %v9320_v43  ;;  %v9451_v41 = vmul.f32 %v9331_v40, %v11110_v16  ;;  %v3886_v22 = vmul.f32 %v9342_v24, %v9183_v31  ;;  %v4015_v49 = vmul.f32 %v9141_v17, %v3981_v37 }
 0x370   : > { %11107 = vst [vmem:[#allocation56_spill] sm:$0xff] %v9434_v29  ;;  %v6144_v57 = vpop.eup %6143  ;;  %v5084_v19 = vmul.f32 %v9377_v3, %v5083_v47  ;;  %vm5086_vm7 = vweird.f32 %v9320_v43  ;;  %v4146_v1 = vadd.f32 %v4114_v38, %v9270_v55  ;;  %v4281_v44 = vmul.f32 %v9353_v53, %v4247_v48 }
 0x371   : > { %11109 = vst [vmem:[#allocation19_spill] sm:$0xff] %v9441_v15  ;;  %v6146_v25 = vpop.eup %6145  ;;  %v4903_v6 = vsub.f32 1.0, %v4902_v54  ;;  %v9460_v61 = vadd.f32 1.0, %v6144_v57  ;;  %v4917_v40 = vmul.f32 %v9443_v26, %v9382_v39  ;;  %v9468_v37 = vsel %vm3668_vm0, %v9441_v15, 0.0 }
 0x372   : > { %11111 = vst [vmem:[#allocation52_spill] sm:$0xff] %v9451_v41  ;;  %v3367_v14 = vmul.f32 %v6146_v25, %v9410_v58  ;;  %v9472_v16 = vadd.f32 %v3886_v22, %v3788_v11  ;;  %v4182_v55 = vmul.f32 %v9162_v30, %v9183_v31  ;;  %v9477_v38 = vor.u32 1.1754944e-38, %v5092_v9  ;;  %v3723_v22 = vld [vmem:[#allocation3 + $0x78] sm:$0xff] }
 0x373   : > { %11112 = vst [vmem:[#allocation20_spill] sm:$0xff] %v9468_v37  ;;  %v9470_v47 = vpop.eup %6147  ;;  %6149 = vrcp.f32 %v9460_v61  ;;  %v9480_v48 = vadd.f32 %v4015_v49, %v9266_v4  ;;  %v9483_v54 = vadd.f32 %v9377_v3, %v5084_v19  ;;  %vm5087_vm15 = vweird.f32 %v9377_v3  ;;  %v9490_v31 = vld [vmem:[#allocation3 + $0x79] sm:$0xff] }
 0x374   : > { %v5107_v57 = vand.u32 2147483648, %v9400_v60  ;;  %v9487_v21 = vadd.f32 %v4182_v55, %v4146_v1  ;;  %v4904_v11 = vmul.f32 %v9405_v18, %v4903_v6  ;;  %v9493_v9 = vadd.f32 %v4281_v44, %v9279_v36  ;;  %vm9504_vm1 = vmor %vm5086_vm7, %vm5087_vm15 }
 0x375   : > { %v3368_v8 = vsub.f32 1.0, %v3367_v14  ;;  %v4918_v4 = vsub.f32 1.0, %v4917_v40  ;;  %v3377_v49 = vand.u32 2147483648, %v9410_v58  ;;  %v5097_v19 = vmul.f32 %v9470_v47, %v9400_v60 }
 0x376   : > { %v5105_v15 = vand.u32 2147483647, %v9400_v60  ;;  %vm3372_vm2 = vweird.f32 %v6146_v25  ;;  %v3375_v1 = vand.u32 2147483647, %v9410_v58  ;;  %v9510_v44 = vsel %vm3668_vm0, %v9451_v41, 0.0 }
 0x377   : > { %v3369_v37 = vmul.f32 %v6146_v25, %v3368_v8  ;;  %11115 = vst [vmem:[#allocation16_spill] sm:$0xff] %v9510_v44  ;;  %v3789_v6 = vmul.f32 %v9336_v5, %v3723_v22  ;;  %v3887_v8 = vmul.f32 %v9342_v24, %v9490_v31  ;;  %v9519_v14 = vor.u32 1.1754944e-38, %v5107_v57 }
 0x378   : > { %v4905_v56 = vadd.f32 %v9405_v18, %v4904_v11  ;;  %vm4907_vm4 = vweird.f32 %v9405_v18  ;;  %vm3371_vm8 = vweird.f32 %v9410_v58  ;;  %v4919_v41 = vmul.f32 %v9443_v26, %v4918_v4 }
 0x379   : > { %v6150_v55 = vpop.eup %6149  ;;  %v3370_v52 = vadd.f32 %v6146_v25, %v3369_v37  ;;  %vm3373_vm10 = vmor %vm3371_vm8, %vm3372_vm2  ;;  %v3378_v44 = vor.u32 1.1754944e-38, %v3377_v49  ;;  %v5098_v50 = vsub.f32 1.0, %v5097_v19  ;;  %vm4906_vm12 = vweird.f32 %v9361_v12 }
 0x37a   : > { %v3382_v29 = vmul.f32 %v6150_v55, %v9460_v61  ;;  %v4912_v57 = vand.u32 2147483648, %v9361_v12  ;;  %vm3376_vm5 = vcmp.eq.f32.partialorder %v3375_v1, 8.507059e+37  ;;  %vm9528_vm9 = vmor %vm4906_vm12, %vm4907_vm4  ;;  %v4910_v37 = vand.u32 2147483647, %v9361_v12 }
 0x37b   : > { %v3374_v40 = vsel %vm3373_vm10, %v6146_v25, %v3370_v52  ;;  %v4016_v58 = vmul.f32 %v9141_v17, %v9185_v27  ;;  %v4909_v19 = vsel %vm9528_vm9, %v9405_v18, %v4905_v56  ;;  %vm4922_vm11 = vweird.f32 %v9443_v26 }
 0x37c   : > { %v3379_v4 = vsel %vm3376_vm5, %v3378_v44, %v3374_v40  ;;  %v3383_v49 = vsub.f32 1.0, %v3382_v29  ;;  %v3392_v25 = vand.u32 2147483648, %v9460_v61  ;;  %vm5101_vm14 = vweird.f32 %v9400_v60 }
 0x37d   : > { %v3650_v52 = vmul.f32 %v3379_v4, %v9358_v42  ;;  %v4920_v1 = vadd.f32 %v9443_v26, %v4919_v41  ;;  %vm3387_vm3 = vweird.f32 %v6150_v55  ;;  %v3390_v23 = vand.u32 2147483647, %v9460_v61  ;;  %v9557_v4 = vld [vmem:[#allocation3 + $0xda] sm:$0xff] }
 0x37e   : > { %v3384_v12 = vmul.f32 %v6150_v55, %v3383_v49  ;;  %v4913_v44 = vor.u32 1.1754944e-38, %v4912_v57  ;;  %vm4921_vm13 = vweird.f32 %v9382_v39  ;;  %v4927_v29 = vand.u32 2147483648, %v9382_v39 }
 0x37f   : > { %3687 = vst.msk [vmem:[#allocation3 + $0x81] sm:$0xff] %vm3668_vm0, %v3650_v52  ;;  %v5099_v56 = vmul.f32 %v9470_v47, %v5098_v50  ;;  %vm4911_vm7 = vcmp.eq.f32.partialorder %v4910_v37, 8.507059e+37  ;;  %vm9548_vm15 = vmor %vm4921_vm13, %vm4922_vm11  ;;  %v4925_v18 = vand.u32 2147483647, %v9382_v39  ;;  %vm3386_vm2 = vweird.f32 %v9460_v61 }
 0x380   : > { %v3385_v41 = vadd.f32 %v6150_v55, %v3384_v12  ;;  %v4914_v40 = vsel %vm4911_vm7, %v4913_v44, %v4909_v19  ;;  %v4115_v57 = vmul.f32 %v9150_v46, %v3723_v22  ;;  %v4282_v11 = vmul.f32 %v9353_v53, %v9185_v27  ;;  %vm3388_vm4 = vmor %vm3386_vm2, %vm3387_vm3 }
 0x381   : > { %v3393_v50 = vor.u32 1.1754944e-38, %v3392_v25  ;;  %v11120_v37 = vand.u32 2147483647, %v9320_v43  ;;  %v4381_v39 = vmul.f32 %v9395_v62, %v3723_v22  ;;  %v4924_v61 = vsel %vm9548_vm15, %v9443_v26, %v4920_v1 }
 0x382   : > { %v3389_v19 = vsel %vm3388_vm4, %v6150_v55, %v3385_v41  ;;  %vm3391_vm10 = vcmp.eq.f32.partialorder %v3390_v23, 8.507059e+37  ;;  %vm9570_vm12 = vcmp.eq.f32.partialorder %v5105_v15, 8.507059e+37  ;;  %v4928_v52 = vor.u32 1.1754944e-38, %v4927_v29  ;;  %v9618_v41 = vld [vmem:[%s10856_s3 + $0x8] ss:$0 sm:$0xff] }
 0x383   : > { %vm9562_vm8 = vcmp.eq.f32.partialorder %v11120_v37, 8.507059e+37  ;;  %v3394_v25 = vsel %vm3391_vm10, %v3393_v50, %v3389_v19  ;;  %v5100_v43 = vadd.f32 %v9470_v47, %v5099_v56  ;;  %vm5102_vm5 = vweird.f32 %v9470_v47 }
 0x384   : > { %v9577_v12 = vmul.f32 %v4914_v40, %v9228_v2  ;;  %vm4926_vm9 = vcmp.eq.f32.partialorder %v4925_v18, 8.507059e+37  ;;  %v4527_v22 = vmul.f32 %v11070_v20, %v9557_v4  ;;  %v3651_v26 = vmul.f32 %v3394_v25, %v9388_v45  ;;  %vm9597_vm11 = vmor %vm5101_vm14, %vm5102_vm5  ;;  %v11133_v45 = vld [vmem:[#allocation4_spill] sm:$0xff] }
 0x385   : > { %v3919_v23 = vadd.f32 %v3887_v8, %v3789_v6  ;;  %v4183_v15 = vmul.f32 %v9162_v30, %v9490_v31  ;;  %v4449_v55 = vmul.f32 %v9216_v0, %v9490_v31  ;;  %v4929_v1 = vsel %vm4926_vm9, %v4928_v52, %v4924_v61 }
 0x386   : > { %11125 = vst [vmem:[#allocation23_spill] sm:$0xff] %v9577_v12  ;;  %v4048_v44 = vadd.f32 %v4016_v58, %v9472_v16  ;;  %v4147_v29 = vadd.f32 %v4115_v57, %v9480_v48  ;;  %v9589_v2 = vadd.f32 %v4282_v11, %v9487_v21  ;;  %v4413_v56 = vadd.f32 %v4381_v39, %v9493_v9  ;;  %v3724_v20 = vld [vmem:[#allocation3 + $0x80] sm:$0xff]  ;;  %v11128_v16 = vld [vmem:[#allocation5_spill] sm:$0xff]  ;;  %v11129_v48 = vld [vmem:[#allocation22_spill] sm:$0xff] }
 0x387   : > { %v3951_v42 = vld [vmem:[#allocation3 + $0x7a] sm:$0xff]  ;;  %3688 = vst.msk [vmem:[#allocation3 + $0x89] sm:$0xff] %vm3668_vm0, %v3651_v26  ;;  %v3756_v31 = vmul.f32 %v11128_v16, %v3724_v20  ;;  %v4082_v21 = vmul.f32 %v11102_v59, %v3724_v20  ;;  %v5104_v9 = vsel %vm9597_vm11, %v9470_v47, %v5100_v43  ;;  %v5295_v8 = vsel %vm3668_vm0, %v9577_v12, 0.0 }
 0x388   : > { %v3983_v6 = vmul.f32 %v11129_v48, %v3951_v42  ;;  %v9610_v58 = vmul.f32 %v4929_v1, %v9261_v10  ;;  %v9612_v60 = vld [vmem:[#allocation3 + $0x81] sm:$0xff]  ;;  %v4249_v18 = vmul.f32 %v11104_v33, %v3951_v42  ;;  %v4561_v40 = vmul.f32 %v9618_v41, %v4527_v22 }
 0x389   : > { %v3790_v57 = vmul.f32 %v9336_v5, %v3756_v31  ;;  %v4116_v47 = vmul.f32 %v9150_v46, %v4082_v21  ;;  %v4348_v11 = vmul.f32 %v11082_v34, %v3724_v20  ;;  %v4515_v10 = vmul.f32 %v11105_v32, %v3951_v42 }
 0x38a   : > { %11130 = vst [vmem:[#allocation18_spill] sm:$0xff] %v9610_v58  ;;  %v4215_v50 = vadd.f32 %v4183_v15, %v4147_v29  ;;  %v4481_v37 = vadd.f32 %v4449_v55, %v4413_v56  ;;  %v4017_v39 = vmul.f32 %v9141_v17, %v3983_v6  ;;  %v11131_v61 = vsel %vm9504_vm1, %v9377_v3, %v9483_v54  ;;  %v11132_v15 = vld [vmem:[#allocation7_spill] sm:$0xff] }
 0x38b   : > { %v9634_v19 = vsel %vm9562_vm8, %v9477_v38, %v11131_v61  ;;  %v9637_v52 = vadd.f32 %v5295_v8, %v9364_v63  ;;  %v3888_v34 = vmul.f32 %v9342_v24, %v9612_v60  ;;  %v4549_v32 = vmul.f32 %v9618_v41, %v4515_v10 }
 0x38c   : > { %v9645_v36 = vsel %vm9570_vm12, %v9519_v14, %v5104_v9  ;;  %v9649_v3 = vsel %vm3668_vm0, %v9610_v58, 0.0  ;;  %v4148_v54 = vadd.f32 %v4116_v47, %v4048_v44  ;;  %v4184_v38 = vmul.f32 %v9162_v30, %v9612_v60 }
 0x38d   : > { %v4593_v63 = vadd.f32 %v4561_v40, %v9446_v13  ;;  %v3920_v49 = vadd.f32 %v3888_v34, %v3790_v57  ;;  %v4283_v25 = vmul.f32 %v9353_v53, %v4249_v18  ;;  %v4382_v43 = vmul.f32 %v9395_v62, %v4348_v11  ;;  %v9662_v13 = vld [vmem:[%s10857_s4] ss:$0 sm:$0xff]  ;;  %v11134_v34 = vld [vmem:[#allocation29_spill] sm:$0xff] }
 0x38e   : > { %v4581_v22 = vadd.f32 %v4549_v32, %v4481_v37  ;;  %v3725_v26 = vld [vmem:[#allocation3 + $0x88] sm:$0xff]  ;;  %v3726_v27 = vld [vmem:[#allocation3 + $0x90] sm:$0xff]  ;;  %v4049_v20 = vadd.f32 %v4017_v39, %v3919_v23  ;;  %v4216_v9 = vadd.f32 %v4184_v38, %v4148_v54 }
 0x38f   : > { %v3855_v14 = vld [vmem:[#allocation3 + $0x89] sm:$0xff]  ;;  %v3758_v55 = vmul.f32 %v11132_v15, %v3726_v27  ;;  %v3791_v1 = vmul.f32 %v9336_v5, %v3725_v26  ;;  %v4084_v21 = vmul.f32 %v11128_v16, %v3726_v27  ;;  %v4117_v23 = vmul.f32 %v9150_v46, %v3725_v26 }
 0x390   : > { %v3889_v44 = vmul.f32 %v9342_v24, %v3855_v14  ;;  %v3952_v29 = vld [vmem:[#allocation3 + $0x82] sm:$0xff]  ;;  %v3953_v56 = vld [vmem:[#allocation3 + $0x8a] sm:$0xff]  ;;  %v9665_v42 = vadd.f32 %v9662_v13, %v4581_v22  ;;  %v4185_v11 = vmul.f32 %v9162_v30, %v3855_v14  ;;  %v4350_v54 = vmul.f32 %v11102_v59, %v3726_v27 }
 0x391   : > { %v3985_v31 = vmul.f32 %v11133_v45, %v3953_v56  ;;  %v4018_v6 = vmul.f32 %v9141_v17, %v3952_v29  ;;  %v3792_v8 = vmul.f32 %v9336_v5, %v3758_v55  ;;  %v3018_v10 = vpop.f32.mrf.mxu2  ;;  %v4118_v37 = vmul.f32 %v9150_v46, %v4084_v21 }
 0x392   : > { %v3921_v18 = vadd.f32 %v3889_v44, %v3791_v1  ;;  %v5883_v40 = vmul.f32 -1.442695, %v9665_v42  ;;  %v4149_v39 = vadd.f32 %v4117_v23, %v4049_v20  ;;  %v4251_v61 = vmul.f32 %v11129_v48, %v3953_v56  ;;  %v3736_v1 = vld [vmem:[#allocation3 + $0xe0] sm:$0xff] }
 0x393   : > { %v4019_v57 = vmul.f32 %v9141_v17, %v3985_v31  ;;  %v4050_v47 = vadd.f32 %v4018_v6, %v3920_v49  ;;  %v4284_v16 = vmul.f32 %v9353_v53, %v3952_v29  ;;  %v3922_v32 = vadd.f32 %v11134_v34, %v3792_v8  ;;  %v11136_v6 = vld [vmem:[#allocation32_spill] sm:$0xff]  ;;  %v11142_v34 = vld [vmem:[#allocation43_spill] sm:$0xff] }
 0x394   : > { %6151 = vpow2.f32 %v5883_v40  ;;  %v9681_v38 = vadd.f32 %v9662_v13, %v4593_v63  ;;  %v4414_v49 = vadd.f32 %v4382_v43, %v9589_v2  ;;  %v4217_v22 = vadd.f32 %v4185_v11, %v4149_v39  ;;  %v3866_v23 = vld [vmem:[#allocation3 + $0xe1] sm:$0xff] }
 0x395   : > { %v4285_v15 = vmul.f32 %v9353_v53, %v4251_v61  ;;  %v4316_v55 = vadd.f32 %v4284_v16, %v4216_v9  ;;  %v4051_v44 = vadd.f32 %v4019_v57, %v3921_v18  ;;  %v4315_v20 = vadd.f32 %v4283_v25, %v4215_v50  ;;  %v11141_v61 = vld [vmem:[#allocation24_spill] sm:$0xff] }
 0x396   : > { %11135 = vst [vmem:[#allocation14_spill] sm:$0xff] %v9681_v38  ;;  %v4383_v48 = vmul.f32 %v9395_v62, %v3725_v26  ;;  %v4384_v45 = vmul.f32 %v9395_v62, %v4350_v54  ;;  %v4450_v31 = vmul.f32 %v9216_v0, %v9612_v60  ;;  %v4150_v59 = vadd.f32 %v4118_v37, %v4050_v47  ;;  %v11137_v60 = vld [vmem:[#allocation33_spill] sm:$0xff]  ;;  %v11138_v47 = vld [vmem:[#allocation31_spill] sm:$0xff] }
 0x397   : > { %v4317_v27 = vadd.f32 %v4285_v15, %v4217_v22  ;;  %v4517_v63 = vmul.f32 %v11104_v33, %v3953_v56  ;;  %v4052_v2 = vadd.f32 %v11136_v6, %v3922_v32  ;;  %v4451_v9 = vmul.f32 %v9216_v0, %v3855_v14  ;;  %v11139_v14 = vld [vmem:[#allocation30_spill] sm:$0xff]  ;;  %v11140_v37 = vld [vmem:[#allocation39_spill] sm:$0xff] }
 0x398   : > { %v4415_v43 = vadd.f32 %v4383_v48, %v4315_v20  ;;  %v4416_v21 = vadd.f32 %v4384_v45, %v4316_v55  ;;  %v4360_v8 = vmul.f32 %v11078_v28, %v3736_v1  ;;  %v4482_v50 = vadd.f32 %v4450_v31, %v4414_v49  ;;  %v11143_v49 = vld [vmem:[#allocation41_spill] sm:$0xff] }
 0x399   : > { %v4550_v25 = vmul.f32 %v9618_v41, %v3952_v29  ;;  %v5895_v26 = vmul.f32 -1.442695, %v9681_v38  ;;  %v4151_v40 = vadd.f32 %v11137_v60, %v4051_v44  ;;  %v4551_v56 = vmul.f32 %v9618_v41, %v4517_v63  ;;  %v3020_v15 = vpop.f32.mrf.mxu2  ;;  %v11146_v63 = vld [vmem:[#allocation40_spill] sm:$0xff] }
 0x39a   : > { %v6152_v18 = vpop.eup %6151  ;;  %v4483_v57 = vadd.f32 %v4451_v9, %v4415_v43  ;;  %v4484_v33 = vadd.f32 %v11138_v47, %v4416_v21  ;;  %v9700_v11 = vadd.f32 %v9649_v3, %v9637_v52  ;;  %v4218_v28 = vadd.f32 %v11139_v14, %v4150_v59  ;;  %v11144_v3 = vld [vmem:[#allocation35_spill] sm:$0xff]  ;;  %v11145_v59 = vld [vmem:[#allocation36_spill] sm:$0xff]  ;;  %v11147_v9 = vld [vmem:[#allocation42_spill] sm:$0xff] }
 0x39b   : > { %v4417_v39 = vadd.f32 %v11140_v37, %v4317_v27  ;;  %v4582_v29 = vadd.f32 %v4550_v25, %v4482_v50  ;;  %v3768_v16 = vmul.f32 %v11141_v61, %v3736_v1  ;;  %v4152_v32 = vadd.f32 %v11142_v34, %v4052_v2  ;;  %v9726_v2 = vld [vmem:[%s10855_s2] ss:$0 sm:$0xff]  ;;  %v3964_v47 = vld [vmem:[#allocation3 + $0xe2] sm:$0xff] }
 0x39c   : > { %v4583_v54 = vadd.f32 %v4551_v56, %v4483_v57  ;;  %v4584_v22 = vadd.f32 %v11143_v49, %v4484_v33  ;;  %v3900_v55 = vmul.f32 %v9342_v24, %v3866_v23  ;;  %v9708_v44 = vadd.f32 1.0, %v6152_v18  ;;  %v11148_v18 = vld [vmem:[#allocation21_spill] sm:$0xff]  ;;  %v3737_v37 = vld [vmem:[#allocation3 + $0xe8] sm:$0xff] }
 0x39d   : > { %v4394_v52 = vmul.f32 %v9395_v62, %v4360_v8  ;;  %6153 = vpow2.f32 %v5895_v26  ;;  %v4219_v20 = vadd.f32 %v11144_v3, %v4151_v40  ;;  %v9713_v48 = vadd.f32 %v9662_v13, %v4582_v29  ;;  %v11149_v33 = vld [vmem:[#allocation45_spill] sm:$0xff]  ;;  %v11150_v29 = vld [vmem:[#allocation6_spill] sm:$0xff] }
 0x39e   : > { %v9716_v45 = vadd.f32 %v9662_v13, %v4583_v54  ;;  %v9719_v31 = vadd.f32 %v9662_v13, %v4584_v22  ;;  %v4318_v27 = vadd.f32 %v11145_v59, %v4218_v28  ;;  %v4485_v6 = vadd.f32 %v11146_v63, %v4417_v39  ;;  %v9748_v39 = vld [vmem:[#allocation3 + $0xe9] sm:$0xff] }
 0x39f   : > { %v9729_v43 = vadd.f32 %v9726_v2, %v3018_v10  ;;  %v9732_v21 = vadd.f32 %v9726_v2, %v3020_v15  ;;  %v4220_v8 = vadd.f32 %v11147_v9, %v4152_v32  ;;  %v5884_v50 = vmul.f32 -1.442695, %v9713_v48  ;;  %v11152_v15 = vld [vmem:[#allocation11_spill] sm:$0xff]  ;;  %v11154_v9 = vld [vmem:[#allocation44_spill] sm:$0xff] }
 0x3a0   : > { %v5885_v25 = vmul.f32 -1.442695, %v9716_v45  ;;  %v5886_v26 = vmul.f32 -1.442695, %v9719_v31  ;;  %v3995_v60 = vmul.f32 %v11148_v18, %v9557_v4  ;;  %v4094_v40 = vmul.f32 %v11100_v35, %v3736_v1  ;;  %v11151_v1 = vld [vmem:[#allocation46_spill] sm:$0xff] }
 0x3a1   : > { %6155 = vrcp.f32 %v9708_v44  ;;  %v5868_v10 = vmul.f32 -1.442695, %v9729_v43  ;;  %v9744_v57 = vmul.f32 %v9162_v30, %v3866_v23  ;;  %v4319_v56 = vadd.f32 %v11149_v33, %v4219_v20 }
 0x3a2   : > { %6157 = vpow2.f32 %v5884_v50  ;;  %v5869_v14 = vmul.f32 -1.442695, %v9732_v21  ;;  %v4418_v34 = vadd.f32 %v11150_v29, %v4318_v27  ;;  %v4585_v32 = vadd.f32 %v11151_v1, %v4485_v6 }
 0x3a3   : > { %v6154_v28 = vpop.eup %6153  ;;  %6159 = vpow2.f32 %v5885_v25  ;;  %v4426_v54 = vadd.f32 %v4394_v52, %v9437_v7  ;;  %v3802_v49 = vmul.f32 %v9336_v5, %v3768_v16  ;;  %v4261_v22 = vmul.f32 %v11101_v51, %v9557_v4  ;;  %v11153_v52 = vld [vmem:[#allocation47_spill] sm:$0xff] }
 0x3a4   : > { %v4320_v3 = vadd.f32 %v11152_v15, %v4220_v8  ;;  %6161 = vpow2.f32 %v5886_v26  ;;  %v4029_v20 = vmul.f32 %v9141_v17, %v3995_v60  ;;  %v4462_v59 = vmul.f32 %v9216_v0, %v3866_v23  ;;  %v11155_v60 = vld [vmem:[#allocation54_spill] sm:$0xff]  ;;  %v11157_v15 = vld [vmem:[#allocation48_spill] sm:$0xff] }
 0x3a5   : > { %6163 = vpow2.f32 %v5868_v10  ;;  %v4562_v27 = vmul.f32 %v9618_v41, %v3964_v47  ;;  %v3803_v63 = vmul.f32 %v9336_v5, %v3737_v37  ;;  %v3901_v7 = vmul.f32 %v9342_v24, %v9748_v39 }
 0x3a6   : > { %v4419_v16 = vadd.f32 %v11153_v52, %v4319_v56  ;;  %6165 = vpow2.f32 %v5869_v14  ;;  %v4128_v4 = vmul.f32 %v9150_v46, %v4094_v40  ;;  %v4486_v8 = vadd.f32 %v11154_v9, %v4418_v34  ;;  %v11159_v52 = vld [vmem:[#allocation49_spill] sm:$0xff] }
 0x3a7   : > { %v9764_v6 = vpop.eup %6155  ;;  %v4494_v50 = vadd.f32 %v4462_v59, %v4426_v54  ;;  %v9769_v25 = vadd.f32 %v9662_v13, %v4585_v32  ;;  %v4030_v26 = vmul.f32 %v9141_v17, %v3964_v47  ;;  %v4295_v5 = vmul.f32 %v9353_v53, %v4261_v22  ;;  %v11156_v54 = vld [vmem:[#allocation51_spill] sm:$0xff] }
 0x3a8   : > { %v6158_v23 = vpop.eup %6157  ;;  %v4420_v24 = vadd.f32 %v11155_v60, %v4320_v3  ;;  %v9774_v10 = vadd.f32 1.0, %v6154_v28  ;;  %v4129_v56 = vmul.f32 %v9150_v46, %v3737_v37  ;;  %v3932_v40 = vadd.f32 %v3900_v55, %v3802_v49  ;;  %v11158_v28 = vld [vmem:[#allocation17_spill] sm:$0xff] }
 0x3a9   : > { %v6160_v33 = vpop.eup %6159  ;;  %v9777_v14 = vadd.f32 1.0, %v6158_v23  ;;  %v4594_v29 = vadd.f32 %v4562_v27, %v4494_v50  ;;  %v9781_v32 = vadd.f32 %v3901_v7, %v3803_v63  ;;  %v4061_v17 = vadd.f32 %v4029_v20, %v11156_v54  ;;  %v11160_v63 = vld [vmem:[#allocation53_spill] sm:$0xff]  ;;  %v11162_v23 = vld [vmem:[#allocation56_spill] sm:$0xff] }
 0x3aa   : > { %v6162_v34 = vpop.eup %6161  ;;  %v9779_v1 = vadd.f32 1.0, %v6160_v33  ;;  %v4487_v22 = vadd.f32 %v11157_v15, %v4419_v16  ;;  %v4160_v3 = vadd.f32 %v4128_v4, %v11158_v28  ;;  %v4586_v46 = vadd.f32 %v11159_v52, %v4486_v8 }
 0x3ab   : > { %v6164_v59 = vpop.eup %6163  ;;  %6167 = vrcp.f32 %v9777_v14  ;;  %v5887_v9 = vmul.f32 -1.442695, %v9769_v25  ;;  %v4932_v49 = vmul.f32 %v9764_v6, %v9708_v44  ;;  %v4395_v27 = vmul.f32 %v9395_v62, %v3737_v37  ;;  %v11163_v37 = vld [vmem:[#allocation55_spill] sm:$0xff] }
 0x3ac   : > { %v6166_v55 = vpop.eup %6165  ;;  %v4488_v7 = vadd.f32 %v11160_v63, %v4420_v24  ;;  %6169 = vrcp.f32 %v9774_v10  ;;  %v4197_v20 = vmul.f32 %v9162_v30, %v9748_v39  ;;  %v4296_v16 = vmul.f32 %v9353_v53, %v3964_v47  ;;  %v11165_v47 = vld [vmem:[#allocation12_spill] sm:$0xff]  ;;  %v11170_v63 = vld [vmem:[#allocation57_spill] sm:$0xff] }
 0x3ad   : > { %6171 = vrcp.f32 %v9779_v1  ;;  %v9799_v4 = vadd.f32 %v9662_v13, %v4594_v29  ;;  %v9801_v8 = vadd.f32 1.0, %v6164_v59  ;;  %v4161_v50 = vadd.f32 %v4129_v56, %v4061_v17 }
 0x3ae   : > { %v4327_v60 = vadd.f32 %v4295_v5, %v11162_v23  ;;  %v4587_v33 = vadd.f32 %v11163_v37, %v4487_v22  ;;  %v9805_v24 = vadd.f32 1.0, %v6162_v34  ;;  %v9807_v54 = vadd.f32 1.0, %v6166_v55  ;;  %v11166_v34 = vld [vmem:[#allocation13_spill] sm:$0xff] }
 0x3af   : > { %11161 = vst [vmem:[#allocation10_spill] sm:$0xff] %v9799_v4  ;;  %v9810_v15 = vadd.f32 %v9662_v13, %v4586_v46  ;;  %6173 = vpow2.f32 %v5887_v9  ;;  %v4933_v30 = vsub.f32 1.0, %v4932_v49  ;;  %v4588_v29 = vadd.f32 %v11165_v47, %v4488_v7 }
 0x3b0   : > { %6175 = vrcp.f32 %v9801_v8  ;;  %v4427_v53 = vadd.f32 %v4395_v27, %v4327_v60  ;;  %v9817_v5 = vadd.f32 %v4030_v26, %v3932_v40  ;;  %v5896_v56 = vmul.f32 -1.442695, %v9799_v4 }
 0x3b1   : > { %11164 = vst [vmem:[#allocation15_spill] sm:$0xff] %v9810_v15  ;;  %v9814_v59 = vpop.eup %6167  ;;  %6177 = vrcp.f32 %v9807_v54  ;;  %v9822_v17 = vmul.f32 %v9634_v19, %v11166_v34  ;;  %v4942_v28 = vand.u32 2147483648, %v9708_v44  ;;  %v4228_v52 = vadd.f32 %v9744_v57, %v4160_v3 }
 0x3b2   : > { %v9824_v22 = vpop.eup %6169  ;;  %v9828_v46 = vadd.f32 %v4197_v20, %v4161_v50  ;;  %v4463_v9 = vmul.f32 %v9216_v0, %v9748_v39  ;;  %v4947_v26 = vmul.f32 %v9814_v59, %v9777_v14  ;;  %6179 = vrcp.f32 %v9805_v24 }
 0x3b3   : > { %11167 = vst [vmem:[#allocation5_spill] sm:$0xff] %v9822_v17  ;;  %v9832_v55 = vpop.eup %6171  ;;  %v9838_v19 = vadd.f32 %v9662_v13, %v4587_v33  ;;  %v5888_v40 = vmul.f32 -1.442695, %v9810_v15  ;;  %v4934_v49 = vmul.f32 %v9764_v6, %v4933_v30  ;;  %v9842_v57 = vadd.f32 %v4296_v16, %v4228_v52  ;;  %v4435_v15 = vld [vmem:[#allocation3 + $0x119] sm:$0xff] }
 0x3b4   : > { %v9844_v3 = vadd.f32 %v4463_v9, %v4427_v53  ;;  %v9847_v0 = vadd.f32 %v9662_v13, %v4588_v29  ;;  %v4940_v27 = vand.u32 2147483647, %v9708_v44  ;;  %6181 = vpow2.f32 %v5896_v56 }
 0x3b5   : > { %11168 = vst [vmem:[#allocation22_spill] sm:$0xff] %v9838_v19  ;;  %v6174_v39 = vpop.eup %6173  ;;  %v9852_v7 = vmul.f32 %v9645_v36, %v11170_v63  ;;  %v9856_v20 = vsel %vm3668_vm0, %v9822_v17, 0.0  ;;  %vm4937_vm1 = vweird.f32 %v9764_v6  ;;  %v9859_v16 = vor.u32 1.1754944e-38, %v4942_v28 }
 0x3b6   : > { %11169 = vst [vmem:[#allocation7_spill] sm:$0xff] %v9847_v0  ;;  %v6176_v50 = vpop.eup %6175  ;;  %v4962_v23 = vmul.f32 %v9832_v55, %v9779_v1  ;;  %v9865_v60 = vmul.f32 %v9824_v22, %v9774_v10  ;;  %vm4936_vm14 = vweird.f32 %v9708_v44  ;;  %v4948_v36 = vsub.f32 1.0, %v4947_v26 }
 0x3b7   : > { %11171 = vst [vmem:[#allocation4_spill] sm:$0xff] %v9852_v7  ;;  %v6178_v37 = vpop.eup %6177  ;;  %v3577_v33 = vmul.f32 %v6176_v50, %v9801_v8  ;;  %6183 = vpow2.f32 %v5888_v40  ;;  %v5889_v30 = vmul.f32 -1.442695, %v9838_v19  ;;  %v4935_v53 = vadd.f32 %v9764_v6, %v4934_v49  ;;  %vm9909_vm9 = vmor %vm4936_vm14, %vm4937_vm1 }
 0x3b8   : > { %11172 = vst [vmem:[#allocation29_spill] sm:$0xff] %v9856_v20  ;;  %v3592_v29 = vmul.f32 %v6178_v37, %v9807_v54  ;;  %v9874_v56 = vmul.f32 -1.442695, %v9847_v0  ;;  %v9876_v34 = vpop.eup %6179  ;;  %vm4951_vm3 = vweird.f32 %v9777_v14  ;;  %v4957_v28 = vand.u32 2147483648, %v9777_v14 }
 0x3b9   : > { %v3578_v52 = vsub.f32 1.0, %v3577_v33  ;;  %v3585_v9 = vand.u32 2147483647, %v9801_v8  ;;  %v9881_v26 = vadd.f32 1.0, %v6174_v39  ;;  %v4963_v40 = vsub.f32 1.0, %v4962_v23 }
 0x3ba   : > { %v3587_v49 = vand.u32 2147483648, %v9801_v8  ;;  %v3593_v63 = vsub.f32 1.0, %v3592_v29  ;;  %v3602_v47 = vand.u32 2147483648, %v9807_v54  ;;  %v6182_v58 = vpop.eup %6181  ;;  %vm9885_vm13 = vcmp.eq.f32.partialorder %v4940_v27, 8.507059e+37 }
 0x3bb   : > { %v4949_v17 = vmul.f32 %v9814_v59, %v4948_v36  ;;  %v3579_v20 = vmul.f32 %v6176_v50, %v3578_v52  ;;  %vm3581_vm7 = vweird.f32 %v9801_v8  ;;  %vm3582_vm15 = vweird.f32 %v6176_v50 }
 0x3bc   : > { %v3594_v33 = vmul.f32 %v6178_v37, %v3593_v63  ;;  %vm3597_vm2 = vweird.f32 %v6178_v37  ;;  %v3600_v39 = vand.u32 2147483647, %v9807_v54  ;;  %v4977_v23 = vmul.f32 %v9876_v34, %v9805_v24  ;;  %vm3583_vm12 = vmor %vm3581_vm7, %vm3582_vm15  ;;  %v3023_v4 = vpop.f32.mrf.mxu2 }
 0x3bd   : > { %v9894_v29 = vpop.eup %6183  ;;  %vm4952_vm4 = vweird.f32 %v9814_v59  ;;  %v3580_v27 = vadd.f32 %v6176_v50, %v3579_v20  ;;  %vm3586_vm8 = vcmp.eq.f32.partialorder %v3585_v9, 8.507059e+37  ;;  %vm3596_vm10 = vweird.f32 %v9807_v54 }
 0x3be   : > { %v4964_v36 = vmul.f32 %v9832_v55, %v4963_v40  ;;  %v3588_v8 = vor.u32 1.1754944e-38, %v3587_v49  ;;  %v3595_v52 = vadd.f32 %v6178_v37, %v3594_v33  ;;  %v3603_v63 = vor.u32 1.1754944e-38, %v3602_v47  ;;  %vm3598_vm5 = vmor %vm3596_vm10, %vm3597_vm2 }
 0x3bf   : > { %v4950_v38 = vadd.f32 %v9814_v59, %v4949_v17  ;;  %v3584_v0 = vsel %vm3583_vm12, %v6176_v50, %v3580_v27  ;;  %v9902_v19 = vadd.f32 %v9726_v2, %v3023_v4  ;;  %6185 = vrcp.f32 %v9881_v26  ;;  %vm9922_vm1 = vmor %vm4951_vm3, %vm4952_vm4 }
 0x3c0   : > { %v3589_v20 = vsel %vm3586_vm8, %v3588_v8, %v3584_v0  ;;  %v3599_v47 = vsel %vm3598_vm5, %v6178_v37, %v3595_v52  ;;  %vm3601_vm11 = vcmp.eq.f32.partialorder %v3600_v39, 8.507059e+37  ;;  %v4978_v17 = vsub.f32 1.0, %v4977_v23 }
 0x3c1   : > { %v4939_v50 = vsel %vm9909_vm9, %v9764_v6, %v4935_v53  ;;  %v3664_v4 = vmul.f32 %v3589_v20, %v9729_v43  ;;  %v3604_v9 = vsel %vm3601_vm11, %v3603_v63, %v3599_v47  ;;  %v5870_v40 = vmul.f32 -1.442695, %v9902_v19 }
 0x3c2   : > { %v4965_v0 = vadd.f32 %v9832_v55, %v4964_v36  ;;  %vm4967_vm14 = vweird.f32 %v9832_v55  ;;  %v3665_v37 = vmul.f32 %v3604_v9, %v9732_v21  ;;  %6187 = vpow2.f32 %v5889_v30  ;;  %v11192_v9 = vld [vmem:[#allocation26_spill] sm:$0xff] }
 0x3c3   : > { %v4954_v43 = vsel %vm9922_vm1, %v9814_v59, %v4950_v38  ;;  %vm4966_vm7 = vweird.f32 %v9779_v1  ;;  %v4972_v6 = vand.u32 2147483648, %v9779_v1  ;;  %3701 = vst.msk [vmem:[#allocation3 + $0xf1] sm:$0xff] %vm3668_vm0, %v3664_v4  ;;  %6189 = vpow2.f32 %v5870_v40 }
 0x3c4   : > { %v4944_v53 = vsel %vm9885_vm13, %v9859_v16, %v4939_v50  ;;  %v4958_v49 = vor.u32 1.1754944e-38, %v4957_v28  ;;  %v4970_v33 = vand.u32 2147483647, %v9779_v1  ;;  %3702 = vst.msk [vmem:[#allocation3 + $0xf9] sm:$0xff] %vm3668_vm0, %v3665_v37  ;;  %v4979_v21 = vmul.f32 %v9876_v34, %v4978_v17  ;;  %vm9947_vm15 = vmor %vm4966_vm7, %vm4967_vm14  ;;  %v3025_v39 = vpop.f32.mrf.mxu2 }
 0x3c5   : > { %v9941_v30 = vpop.eup %6185  ;;  %v11179_v38 = vand.u32 2147483647, %v9777_v14  ;;  %v9951_v12 = vadd.f32 1.0, %v6182_v58  ;;  %v5113_v16 = vsub.f32 1.0, %v9865_v60  ;;  %v9956_v1 = vsel %vm3668_vm0, %v9852_v7, 0.0 }
 0x3c6   : > { %11182 = vst [vmem:[#allocation32_spill] sm:$0xff] %v9956_v1  ;;  %v4969_v14 = vsel %vm9947_vm15, %v9832_v55, %v4965_v0  ;;  %6191 = vpow2.f32 %v9874_v56  ;;  %vm5117_vm13 = vweird.f32 %v9824_v22  ;;  %v5120_v23 = vand.u32 2147483647, %v9774_v10 }
 0x3c7   : > { %vm4956_vm3 = vcmp.eq.f32.partialorder %v11179_v38, 8.507059e+37  ;;  %v9965_v58 = vmul.f32 %v4944_v53, %v9665_v42  ;;  %v4973_v60 = vor.u32 1.1754944e-38, %v4972_v6  ;;  %v9968_v27 = vadd.f32 %v9726_v2, %v3025_v39  ;;  %v10081_v6 = vld [vmem:[%s10856_s3 + $0x7] ss:$0 sm:$0xff] }
 0x3c8   : > { %v4959_v28 = vsel %vm4956_vm3, %v4958_v49, %v4954_v43  ;;  %v5122_v36 = vand.u32 2147483648, %v9774_v10  ;;  %v6188_v8 = vpop.eup %6187  ;;  %vm4971_vm2 = vcmp.eq.f32.partialorder %v4970_v33, 8.507059e+37  ;;  %v4980_v55 = vadd.f32 %v9876_v34, %v4979_v21 }
 0x3c9   : > { %11183 = vst [vmem:[#allocation33_spill] sm:$0xff] %v9965_v58  ;;  %vm4982_vm4 = vweird.f32 %v9876_v34  ;;  %v4992_v56 = vmul.f32 %v9941_v30, %v9881_v26  ;;  %vm5116_vm8 = vweird.f32 %v9774_v10  ;;  %v6190_v52 = vpop.eup %6189  ;;  %v4974_v42 = vsel %vm4971_vm2, %v4973_v60, %v4969_v14 }
 0x3ca   : > { %v9977_v63 = vmul.f32 %v4959_v28, %v9713_v48  ;;  %v5871_v2 = vmul.f32 -1.442695, %v9968_v27  ;;  %v4987_v54 = vand.u32 2147483648, %v9805_v24  ;;  %v9981_v20 = vadd.f32 1.0, %v6190_v52  ;;  %v3738_v53 = vld [vmem:[#allocation3 + $0xf0] sm:$0xff]  ;;  %vm10038_vm11 = vmor %vm5116_vm8, %vm5117_vm13 }
 0x3cb   : > { %vm4981_vm10 = vweird.f32 %v9805_v24  ;;  %v4985_v47 = vand.u32 2147483647, %v9805_v24  ;;  %v5114_v17 = vmul.f32 %v9824_v22, %v5113_v16  ;;  %v5299_v50 = vsel %vm3668_vm0, %v9965_v58, 0.0 }
 0x3cc   : > { %11184 = vst [vmem:[#allocation31_spill] sm:$0xff] %v9977_v63  ;;  %6193 = vpow2.f32 %v5871_v2  ;;  %v9989_v4 = vadd.f32 1.0, %v9894_v29  ;;  %v9991_v48 = vadd.f32 1.0, %v6188_v8  ;;  %vm9995_vm12 = vmor %vm4981_vm10, %vm4982_vm4  ;;  %v6192_v40 = vpop.eup %6191  ;;  %v10000_v24 = vmul.f32 %v4974_v42, %v9716_v45 }
 0x3cd   : > { %6195 = vrcp.f32 %v9981_v20  ;;  %v4984_v44 = vsel %vm9995_vm12, %v9876_v34, %v4980_v55  ;;  %v4993_v29 = vsub.f32 1.0, %v4992_v56  ;;  %v5301_v0 = vsel %vm3668_vm0, %v9977_v63, 0.0 }
 0x3ce   : > { %11187 = vst [vmem:[#allocation30_spill] sm:$0xff] %v10000_v24  ;;  %v4988_v37 = vor.u32 1.1754944e-38, %v4987_v54  ;;  %v5002_v43 = vand.u32 2147483648, %v9881_v26  ;;  %vm10009_vm5 = vcmp.eq.f32.partialorder %v5120_v23, 8.507059e+37  ;;  %v5300_v45 = vadd.f32 %v5299_v50, %v9700_v11  ;;  %v3965_v54 = vld [vmem:[#allocation3 + $0xea] sm:$0xff] }
 0x3cf   : > { %vm4986_vm9 = vcmp.eq.f32.partialorder %v4985_v47, 8.507059e+37  ;;  %v5115_v49 = vadd.f32 %v9824_v22, %v5114_v17  ;;  %v5123_v33 = vor.u32 1.1754944e-38, %v5122_v36  ;;  %v10015_v21 = vadd.f32 1.0, %v6192_v40  ;;  %v10055_v47 = vld [vmem:[#allocation3 + $0xf1] sm:$0xff] }
 0x3d0   : > { %v10017_v34 = vsel %vm4986_vm9, %v4988_v37, %v4984_v44  ;;  %v5017_v59 = vand.u32 2147483648, %v9989_v4  ;;  %v10021_v16 = vadd.f32 %v5301_v0, %v5300_v45  ;;  %v10025_v28 = vsel %vm3668_vm0, %v10000_v24, 0.0  ;;  %v3739_v45 = vld [vmem:[#allocation3 + $0xf8] sm:$0xff] }
 0x3d1   : > { %v4994_v11 = vmul.f32 %v9941_v30, %v4993_v29  ;;  %v5032_v14 = vand.u32 2147483648, %v9991_v48  ;;  %v4362_v23 = vmul.f32 %v11100_v35, %v3738_v53  ;;  %v10030_v60 = vor.u32 1.1754944e-38, %v5002_v43 }
 0x3d2   : > { %v6194_v39 = vpop.eup %6193  ;;  %6197 = vrcp.f32 %v9989_v4  ;;  %v5119_v52 = vsel %vm10038_vm11, %v9824_v22, %v5115_v49  ;;  %v10051_v10 = vor.u32 1.1754944e-38, %v5017_v59  ;;  %v3770_v40 = vmul.f32 %v11192_v9, %v3738_v53 }
 0x3d3   : > { %v6196_v55 = vpop.eup %6195  ;;  %v10042_v56 = vadd.f32 1.0, %v6194_v39  ;;  %6199 = vrcp.f32 %v9991_v48  ;;  %v4396_v2 = vmul.f32 %v9395_v62, %v4362_v23  ;;  %v10058_v17 = vadd.f32 %v9941_v30, %v4994_v11  ;;  %v10064_v62 = vld [vmem:[#allocation3 + $0xf2] sm:$0xff] }
 0x3d4   : > { %v3607_v42 = vmul.f32 %v6196_v55, %v9981_v20  ;;  %6201 = vrcp.f32 %v10015_v21  ;;  %v10060_v50 = vor.u32 1.1754944e-38, %v5032_v14  ;;  %v10069_v0 = vsel %vm10009_vm5, %v5123_v33, %v5119_v52  ;;  %v11194_v11 = vld [vmem:[#allocation25_spill] sm:$0xff] }
 0x3d5   : > { %6203 = vrcp.f32 %v10042_v56  ;;  %11193 = vst [vmem:[#allocation39_spill] sm:$0xff] %v10069_v0  ;;  %v3615_v37 = vand.u32 2147483647, %v9981_v20  ;;  %v3617_v43 = vand.u32 2147483648, %v9981_v20  ;;  %v4428_v49 = vadd.f32 %v4396_v2, %v9842_v57 }
 0x3d6   : > { %v3608_v44 = vsub.f32 1.0, %v3607_v42  ;;  %6205 = vrcp.f32 %v9951_v12  ;;  %v3997_v14 = vmul.f32 %v11194_v11, %v3965_v54  ;;  %vm3612_vm1 = vweird.f32 %v6196_v55 }
 0x3d7   : > { %v4464_v33 = vmul.f32 %v10081_v6, %v10055_v47  ;;  %v4096_v57 = vmul.f32 %v11141_v61, %v3738_v53  ;;  %vm3611_vm14 = vweird.f32 %v9981_v20  ;;  %v4529_v8 = vmul.f32 %v11101_v51, %v3965_v54  ;;  %v10098_v53 = vld [vmem:[#allocation3 + $0xf9] sm:$0xff]  ;;  %v6269_v51 = vld [vmem:[%s10856_s3 + $0x1] ss:$0 sm:$0xff] }
 0x3d8   : > { %v10075_v59 = vpop.eup %6197  ;;  %v3609_v39 = vmul.f32 %v6196_v55, %v3608_v44  ;;  %v4564_v52 = vmul.f32 %v9618_v41, %v10064_v62  ;;  %v6268_v44 = vld [vmem:[%s10856_s3] ss:$0 sm:$0xff]  ;;  %vm3613_vm7 = vmor %vm3611_vm14, %vm3612_vm1  ;;  %vm3616_vm3 = vcmp.eq.f32.partialorder %v3615_v37, 8.507059e+37  ;;  %v3618_v20 = vor.u32 1.1754944e-38, %v3617_v43  ;;  %v10112_v43 = vld [vmem:[%s10856_s3 + $0x2] ss:$0 sm:$0xff] }
 0x3d9   : > { %v10085_v23 = vpop.eup %6199  ;;  %v3804_v29 = vmul.f32 %v6268_v44, %v3770_v40  ;;  %v3805_v22 = vmul.f32 %v6268_v44, %v3739_v45  ;;  %v4496_v35 = vadd.f32 %v4464_v33, %v4428_v49  ;;  %v4563_v38 = vmul.f32 %v9618_v41, %v4529_v8  ;;  %v10118_v8 = vld [vmem:[%s10856_s3 + $0x3] ss:$0 sm:$0xff] }
 0x3da   : > { %v10092_v42 = vpop.eup %6201  ;;  %v3610_v2 = vadd.f32 %v6196_v55, %v3609_v39  ;;  %v3902_v39 = vmul.f32 %v6269_v51, %v10055_v47  ;;  %v4263_v49 = vmul.f32 %v11148_v18, %v3965_v54  ;;  %v4031_v63 = vmul.f32 %v10112_v43, %v3997_v14 }
 0x3db   : > { %v6204_v36 = vpop.eup %6203  ;;  %v4596_v33 = vadd.f32 %v4564_v52, %v4496_v35  ;;  %v4595_v54 = vadd.f32 %v4563_v38, %v9844_v3  ;;  %v4032_v14 = vmul.f32 %v10112_v43, %v10064_v62  ;;  %v4131_v58 = vmul.f32 %v10118_v8, %v3739_v45  ;;  %v10139_v38 = vld [vmem:[%s10856_s3 + $0x5] ss:$0 sm:$0xff] }
 0x3dc   : > { %v3614_v24 = vsel %vm3613_vm7, %v6196_v55, %v3610_v2  ;;  %v3622_v40 = vmul.f32 %v6204_v36, %v10042_v56  ;;  %v10107_v44 = vpop.eup %6205  ;;  %v4130_v55 = vmul.f32 %v10118_v8, %v4096_v57  ;;  %vm3627_vm15 = vweird.f32 %v6204_v36 }
 0x3dd   : > { %v3619_v37 = vsel %vm3616_vm3, %v3618_v20, %v3614_v24  ;;  %v3903_v24 = vmul.f32 %v6269_v51, %v10098_v53  ;;  %v10125_v2 = vadd.f32 %v9662_v13, %v4596_v33  ;;  %v3632_v20 = vand.u32 2147483648, %v10042_v56 }
 0x3de   : > { %v3666_v35 = vmul.f32 %v3619_v37, %v9902_v19  ;;  %v3623_v52 = vsub.f32 1.0, %v3622_v40  ;;  %v10132_v7 = vadd.f32 %v9662_v13, %v4595_v54  ;;  %v3630_v19 = vand.u32 2147483647, %v10042_v56 }
 0x3df   : > { %11195 = vst [vmem:[#allocation24_spill] sm:$0xff] %v10125_v2  ;;  %v4297_v57 = vmul.f32 %v10139_v38, %v4263_v49  ;;  %v4063_v51 = vadd.f32 %v4031_v63, %v9781_v32  ;;  %v4162_v40 = vadd.f32 %v4130_v55, %v9817_v5  ;;  %v5898_v37 = vmul.f32 -1.442695, %v10125_v2  ;;  %v10157_v32 = vld [vmem:[%s10856_s3 + $0x6] ss:$0 sm:$0xff] }
 0x3e0   : > { %11196 = vst [vmem:[#allocation43_spill] sm:$0xff] %v10132_v7  ;;  %v3624_v3 = vmul.f32 %v6204_v36, %v3623_v52  ;;  %v5897_v33 = vmul.f32 -1.442695, %v10132_v7  ;;  %vm3626_vm13 = vweird.f32 %v10042_v56  ;;  %v4397_v5 = vmul.f32 %v10157_v32, %v3739_v45 }
 0x3e1   : > { %3703 = vst.msk [vmem:[#allocation3 + $0x101] sm:$0xff] %vm3668_vm0, %v3666_v35  ;;  %v10150_v35 = vld [vmem:[%s10856_s3 + $0x4] ss:$0 sm:$0xff]  ;;  %vm3628_vm2 = vmor %vm3626_vm13, %vm3627_vm15  ;;  %v3633_v63 = vor.u32 1.1754944e-38, %v3632_v20  ;;  %v4163_v49 = vadd.f32 %v4131_v58, %v4063_v51  ;;  %v4298_v56 = vmul.f32 %v10139_v38, %v10064_v62  ;;  %vm3631_vm4 = vcmp.eq.f32.partialorder %v3630_v19, 8.507059e+37  ;;  %v4434_v51 = vld [vmem:[#allocation3 + $0x111] sm:$0xff] }
 0x3e2   : > { %v3625_v54 = vadd.f32 %v6204_v36, %v3624_v3  ;;  %v4198_v52 = vmul.f32 %v10150_v35, %v10055_v47  ;;  %6207 = vpow2.f32 %v5897_v33  ;;  %v3934_v3 = vadd.f32 %v3902_v39, %v3804_v29  ;;  %v4335_v47 = vld [vmem:[#allocation3 + $0x118] sm:$0xff] }
 0x3e3   : > { %v4329_v1 = vadd.f32 %v4297_v57, %v9828_v46  ;;  %v4199_v7 = vmul.f32 %v10150_v35, %v10098_v53  ;;  %6209 = vpow2.f32 %v5898_v37  ;;  %v3935_v20 = vadd.f32 %v3903_v24, %v3805_v22  ;;  %v4503_v33 = vld [vmem:[#allocation3 + $0x11a] sm:$0xff] }
 0x3e4   : > { %v3629_v55 = vsel %vm3628_vm2, %v6204_v36, %v3625_v54  ;;  %v4230_v0 = vadd.f32 %v4198_v52, %v4162_v40  ;;  %v10168_v36 = vmul.f32 %v10075_v59, %v9989_v4  ;;  %v4064_v29 = vadd.f32 %v4032_v14, %v3934_v3  ;;  %v11197_v40 = vld [vmem:[#allocation27_spill] sm:$0xff] }
 0x3e5   : > { %v3634_v2 = vsel %vm3631_vm4, %v3633_v63, %v3629_v55  ;;  %v4429_v58 = vadd.f32 %v4397_v5, %v4329_v1  ;;  %v4231_v39 = vadd.f32 %v4199_v7, %v4163_v49  ;;  %v10171_v57 = vmul.f32 %v10157_v32, %v4335_v47 }
 0x3e6   : > { %v3667_v45 = vmul.f32 %v3634_v2, %v9968_v27  ;;  %v4330_v19 = vadd.f32 %v4298_v56, %v4230_v0  ;;  %v4465_v24 = vmul.f32 %v10081_v6, %v10098_v53  ;;  %v10181_v7 = vmul.f32 %v10081_v6, %v4434_v51 }
 0x3e7   : > { %v10184_v0 = vmul.f32 %v10081_v6, %v4435_v15  ;;  %vm4997_vm8 = vweird.f32 %v9941_v30  ;;  %v5008_v15 = vsub.f32 1.0, %v10168_v36  ;;  %v10199_v3 = vmul.f32 %v10085_v23, %v9991_v48 }
 0x3e8   : > { %v3967_v62 = vld [vmem:[#allocation3 + $0xfa] sm:$0xff]  ;;  %3704 = vst.msk [vmem:[#allocation3 + $0x109] sm:$0xff] %vm3668_vm0, %v3667_v45  ;;  %v6208_v2 = vpop.eup %6207  ;;  %v4497_v53 = vadd.f32 %v4465_v24, %v4429_v58  ;;  %v10203_v47 = vmul.f32 %v10092_v42, %v10015_v21  ;;  %vm4996_vm10 = vweird.f32 %v9881_v26  ;;  %vm5011_vm5 = vweird.f32 %v9989_v4 }
 0x3e9   : > { %v4066_v46 = vld [vmem:[#allocation3 + $0x100] sm:$0xff]  ;;  %v3999_v27 = vmul.f32 %v11197_v40, %v3967_v62  ;;  %v4265_v22 = vmul.f32 %v11194_v11, %v3967_v62  ;;  %v4531_v37 = vmul.f32 %v11148_v18, %v3967_v62  ;;  %v6210_v49 = vpop.eup %6209  ;;  %v10192_v55 = vadd.f32 1.0, %v6208_v2  ;;  %vm10250_vm9 = vmor %vm4996_vm10, %vm4997_vm8 }
 0x3ea   : > { %v4098_v1 = vmul.f32 %v11192_v9, %v4066_v46  ;;  %v4364_v14 = vmul.f32 %v11141_v61, %v4066_v46  ;;  %v4166_v5 = vld [vmem:[#allocation3 + $0x101] sm:$0xff]  ;;  %v10208_v46 = vadd.f32 1.0, %v6210_v49  ;;  %vm5026_vm11 = vweird.f32 %v9991_v48 }
 0x3eb   : > { %v4033_v54 = vmul.f32 %v10112_v43, %v3999_v27  ;;  %v4299_v63 = vmul.f32 %v10139_v38, %v4265_v22  ;;  %v4565_v56 = vmul.f32 %v9618_v41, %v4531_v37  ;;  %v4535_v43 = vmul.f32 %v11197_v40, %v4503_v33 }
 0x3ec   : > { %v4132_v52 = vmul.f32 %v10118_v8, %v4098_v1  ;;  %v4398_v61 = vmul.f32 %v10157_v32, %v4364_v14  ;;  %v4200_v45 = vmul.f32 %v10150_v35, %v4166_v5  ;;  %v4466_v51 = vmul.f32 %v10081_v6, %v4166_v5 }
 0x3ed   : > { %v4597_v62 = vadd.f32 %v4565_v56, %v4497_v53  ;;  %v4065_v36 = vadd.f32 %v4033_v54, %v3935_v20  ;;  %v10212_v27 = vmul.f32 %v10107_v44, %v9951_v12  ;;  %6211 = vrcp.f32 %v10192_v55 }
 0x3ee   : > { %v4164_v18 = vadd.f32 %v4132_v52, %v4064_v29  ;;  %v4430_v58 = vadd.f32 %v4398_v61, %v4330_v19  ;;  %v4331_v29 = vadd.f32 %v4299_v63, %v4231_v39  ;;  %6213 = vrcp.f32 %v10208_v46 }
 0x3ef   : > { %v4067_v1 = vld [vmem:[#allocation3 + $0x108] sm:$0xff]  ;;  %v10215_v19 = vadd.f32 %v9662_v13, %v4597_v62  ;;  %v4334_v54 = vld [vmem:[#allocation3 + $0x110] sm:$0xff]  ;;  %vm5041_vm1 = vweird.f32 %v10015_v21  ;;  %vm5012_vm14 = vweird.f32 %v10075_v59  ;;  %vm5131_vm3 = vweird.f32 %v9951_v12 }
 0x3f0   : > { %v4167_v22 = vld [vmem:[#allocation3 + $0x109] sm:$0xff]  ;;  %v4232_v24 = vadd.f32 %v4200_v45, %v4164_v18  ;;  %v4498_v14 = vadd.f32 %v4466_v51, %v4430_v58  ;;  %v4133_v33 = vmul.f32 %v10118_v8, %v4067_v1  ;;  %v4399_v52 = vmul.f32 %v10157_v32, %v4067_v1  ;;  %v4502_v8 = vld [vmem:[#allocation3 + $0x112] sm:$0xff]  ;;  %vm10323_vm8 = vmor %vm5011_vm5, %vm5012_vm14 }
 0x3f1   : > { %v4234_v2 = vld [vmem:[#allocation3 + $0x102] sm:$0xff]  ;;  %v4201_v20 = vmul.f32 %v10150_v35, %v4167_v22  ;;  %v4235_v39 = vld [vmem:[#allocation3 + $0x10a] sm:$0xff]  ;;  %v4366_v63 = vmul.f32 %v11192_v9, %v4334_v54  ;;  %v4467_v53 = vmul.f32 %v10081_v6, %v4167_v22  ;;  %v11198_v45 = vand.u32 2147483647, %v9881_v26 }
 0x3f2   : > { %v4300_v37 = vmul.f32 %v10139_v38, %v4234_v2  ;;  %v4267_v5 = vmul.f32 %v11197_v40, %v4235_v39  ;;  %v4533_v49 = vmul.f32 %v11194_v11, %v4235_v39  ;;  %v4165_v61 = vadd.f32 %v4133_v33, %v4065_v36 }
 0x3f3   : > { %v4431_v18 = vadd.f32 %v4399_v52, %v4331_v29  ;;  %v4566_v35 = vmul.f32 %v9618_v41, %v4234_v2  ;;  %vm10229_vm12 = vcmp.eq.f32.partialorder %v11198_v45, 8.507059e+37  ;;  %v4400_v9 = vmul.f32 %v10157_v32, %v4366_v63  ;;  %v10238_v29 = vpop.eup %6211 }
 0x3f4   : > { %v4332_v56 = vadd.f32 %v4300_v37, %v4232_v24  ;;  %v4301_v40 = vmul.f32 %v10139_v38, %v4267_v5  ;;  %v5899_v6 = vmul.f32 -1.442695, %v10215_v19  ;;  %v4233_v11 = vadd.f32 %v4201_v20, %v4165_v61  ;;  %v6275_v37 = vld [vmem:[%s10856_s3 + $0x8] ss:$0 sm:$0xff] }
 0x3f5   : > { %v4499_v51 = vadd.f32 %v4467_v53, %v4431_v18  ;;  %v4567_v62 = vmul.f32 %v9618_v41, %v4533_v49  ;;  %v4598_v36 = vadd.f32 %v4566_v35, %v4498_v14  ;;  %v4568_v22 = vmul.f32 %v9618_v41, %v4502_v8 }
 0x3f6   : > { %v4432_v1 = vadd.f32 %v4400_v9, %v4332_v56  ;;  %6215 = vpow2.f32 %v5899_v6  ;;  %v5023_v38 = vsub.f32 1.0, %v10199_v3  ;;  %v4333_v32 = vadd.f32 %v4301_v40, %v4233_v11  ;;  %v6276_v9 = vld [vmem:[%s10857_s4] ss:$0 sm:$0xff]  ;;  %v11235_v11 = vld [vmem:[#allocation20_spill] sm:$0xff] }
 0x3f7   : > { %v4599_v24 = vadd.f32 %v4567_v62, %v4499_v51  ;;  %v10244_v2 = vadd.f32 %v9662_v13, %v4598_v36  ;;  %v5038_v41 = vsub.f32 1.0, %v10203_v47  ;;  %v4999_v3 = vsel %vm10250_vm9, %v9941_v30, %v10058_v17  ;;  %v10272_v30 = vpop.eup %6213 }
 0x3f8   : > { %v4500_v33 = vadd.f32 %v10181_v7, %v4432_v1  ;;  %v5009_v20 = vmul.f32 %v10075_v59, %v5008_v15  ;;  %v5128_v39 = vsub.f32 1.0, %v10212_v27  ;;  %v4433_v26 = vadd.f32 %v10171_v57, %v4333_v32 }
 0x3f9   : > { %v4569_v47 = vmul.f32 %v6275_v37, %v4535_v43  ;;  %v10268_v7 = vadd.f32 %v9662_v13, %v4599_v24  ;;  %v5900_v54 = vmul.f32 -1.442695, %v10244_v2  ;;  %v11203_v15 = vand.u32 2147483647, %v9989_v4 }
 0x3fa   : > { %v4600_v17 = vadd.f32 %v4568_v22, %v4500_v33  ;;  %v5024_v43 = vmul.f32 %v10085_v23, %v5023_v38  ;;  %v4501_v27 = vadd.f32 %v10184_v0, %v4433_v26  ;;  %v5039_v5 = vmul.f32 %v10092_v42, %v5038_v41 }
 0x3fb   : > { %vm10277_vm7 = vcmp.eq.f32.partialorder %v11203_v15, 8.507059e+37  ;;  %6217 = vpow2.f32 %v5900_v54  ;;  %v5901_v52 = vmul.f32 -1.442695, %v10268_v7  ;;  %v5004_v49 = vsel %vm10229_vm12, %v10030_v60, %v4999_v3 }
 0x3fc   : > { %v6216_v63 = vpop.eup %6215  ;;  %v10287_v53 = vadd.f32 %v9662_v13, %v4600_v17  ;;  %v5010_v61 = vadd.f32 %v10075_v59, %v5009_v20  ;;  %v11206_v56 = vand.u32 2147483647, %v9991_v48  ;;  %v5129_v0 = vmul.f32 %v10107_v44, %v5128_v39 }
 0x3fd   : > { %v4601_v8 = vadd.f32 %v4569_v47, %v4501_v27  ;;  %6219 = vpow2.f32 %v5901_v52  ;;  %v10300_v35 = vadd.f32 1.0, %v6216_v63  ;;  %v11209_v13 = vand.u32 2147483647, %v10015_v21  ;;  %v11221_v27 = vld [vmem:[#allocation15_spill] sm:$0xff] }
 0x3fe   : > { %vm10295_vm15 = vcmp.eq.f32.partialorder %v11206_v56, 8.507059e+37  ;;  %v5142_v60 = vmul.f32 %v10238_v29, %v10192_v55  ;;  %v5902_v58 = vmul.f32 -1.442695, %v10287_v53  ;;  %v5025_v40 = vadd.f32 %v10085_v23, %v5024_v43 }
 0x3ff   : > { %vm10304_vm13 = vcmp.eq.f32.partialorder %v11209_v13, 8.507059e+37  ;;  %vm5027_vm2 = vweird.f32 %v10085_v23  ;;  %vm5042_vm4 = vweird.f32 %v10092_v42  ;;  %v10317_v6 = vadd.f32 %v6276_v9, %v4601_v8  ;;  %v11222_v8 = vld [vmem:[#allocation22_spill] sm:$0xff] }
 0x400   : > { %v5040_v51 = vadd.f32 %v10092_v42, %v5039_v5  ;;  %v5157_v62 = vmul.f32 %v10272_v30, %v10208_v46  ;;  %6221 = vrcp.f32 %v10300_v35  ;;  %v5014_v36 = vsel %vm10323_vm8, %v10075_v59, %v5010_v61  ;;  %vm10339_vm12 = vmor %vm5026_vm11, %vm5027_vm2 }
 0x401   : > { %6223 = vpow2.f32 %v5902_v58  ;;  %v5130_v1 = vadd.f32 %v10107_v44, %v5129_v0  ;;  %vm5132_vm10 = vweird.f32 %v10107_v44  ;;  %v6218_v4 = vpop.eup %6217  ;;  %v5903_v22 = vmul.f32 -1.442695, %v10317_v6  ;;  %vm10355_vm5 = vmor %vm5041_vm1, %vm5042_vm4 }
 0x402   : > { %v11216_v32 = vand.u32 2147483648, %v10015_v21  ;;  %v5137_v14 = vand.u32 2147483648, %v9951_v12  ;;  %v5143_v41 = vsub.f32 1.0, %v5142_v60  ;;  %v10346_v59 = vadd.f32 1.0, %v6218_v4  ;;  %vm10374_vm9 = vmor %vm5131_vm3, %vm5132_vm10  ;;  %v11225_v4 = vld [vmem:[#allocation7_spill] sm:$0xff] }
 0x403   : > { %v5029_v33 = vsel %vm10339_vm12, %v10085_v23, %v5025_v40  ;;  %v5135_v3 = vand.u32 2147483647, %v9951_v12  ;;  %v10362_v20 = vmul.f32 %v10017_v34, %v9719_v31  ;;  %v6220_v39 = vpop.eup %6219  ;;  %6225 = vpow2.f32 %v5903_v22 }
 0x404   : > { %v5048_v24 = vor.u32 1.1754944e-38, %v11216_v32  ;;  %v5019_v23 = vsel %vm10277_vm7, %v10051_v10, %v5014_v36  ;;  %v5044_v21 = vsel %vm10355_vm5, %v10092_v42, %v5040_v51  ;;  %v5158_v31 = vsub.f32 1.0, %v5157_v62  ;;  %v11240_v32 = vld [vmem:[#allocation16_spill] sm:$0xff] }
 0x405   : > { %v10378_v34 = vadd.f32 1.0, %v6220_v39  ;;  %v5134_v37 = vsel %vm10374_vm9, %v10107_v44, %v5130_v1  ;;  %6227 = vrcp.f32 %v10346_v59  ;;  %v10385_v10 = vmul.f32 %v5004_v49, %v9769_v25 }
 0x406   : > { %v10387_v42 = vpop.eup %6221  ;;  %v5034_v12 = vsel %vm10295_vm15, %v10060_v50, %v5029_v33  ;;  %v5138_v47 = vor.u32 1.1754944e-38, %v5137_v14  ;;  %v5144_v54 = vmul.f32 %v10238_v29, %v5143_v41  ;;  %v5304_v17 = vadd.f32 %v10025_v28, %v10021_v16 }
 0x407   : > { %v6224_v15 = vpop.eup %6223  ;;  %v5049_v44 = vsel %vm10304_vm13, %v5048_v24, %v5044_v21  ;;  %vm5136_vm11 = vcmp.eq.f32.partialorder %v5135_v3, 8.507059e+37  ;;  %6229 = vrcp.f32 %v10378_v34  ;;  %v5305_v25 = vsel %vm3668_vm0, %v10362_v20, 0.0 }
 0x408   : > { %v10400_v57 = vadd.f32 1.0, %v6224_v15  ;;  %v5139_v43 = vsel %vm5136_vm11, %v5138_v47, %v5134_v37  ;;  %v5159_v50 = vmul.f32 %v10272_v30, %v5158_v31  ;;  %v10404_v52 = vmul.f32 %v5019_v23, %v11221_v27 }
 0x409   : > { %vm5146_vm1 = vweird.f32 %v10192_v55  ;;  %vm5147_vm14 = vweird.f32 %v10238_v29  ;;  %v5150_v16 = vand.u32 2147483647, %v10192_v55  ;;  %v5307_v28 = vsel %vm3668_vm0, %v10385_v10, 0.0  ;;  %v6226_v5 = vpop.eup %6225 }
 0x40a   : > { %v5145_v63 = vadd.f32 %v10238_v29, %v5144_v54  ;;  %v5172_v49 = vmul.f32 %v10387_v42, %v10300_v35  ;;  %6231 = vrcp.f32 %v10400_v57  ;;  %v5306_v61 = vadd.f32 %v5305_v25, %v5304_v17  ;;  %vm10435_vm3 = vmor %vm5146_vm1, %vm5147_vm14  ;;  %v11228_v54 = vld [vmem:[#allocation14_spill] sm:$0xff]  ;;  %v11229_v17 = vld [vmem:[#allocation39_spill] sm:$0xff] }
 0x40b   : > { %v10415_v56 = vpop.eup %6227  ;;  %v10417_v18 = vadd.f32 1.0, %v6226_v5  ;;  %v5152_v0 = vand.u32 2147483648, %v10192_v55  ;;  %vm5162_vm7 = vweird.f32 %v10272_v30  ;;  %v10422_v13 = vmul.f32 %v5034_v12, %v11222_v8 }
 0x40c   : > { %v5160_v45 = vadd.f32 %v10272_v30, %v5159_v50  ;;  %v5187_v60 = vmul.f32 %v10415_v56, %v10346_v59  ;;  %v5308_v58 = vadd.f32 %v5307_v28, %v5306_v61  ;;  %v5309_v40 = vsel %vm3668_vm0, %v10404_v52, 0.0 }
 0x40d   : > { %v10429_v9 = vpop.eup %6229  ;;  %vm5161_vm15 = vweird.f32 %v10208_v46  ;;  %v5165_v51 = vand.u32 2147483647, %v10208_v46  ;;  %v5167_v62 = vand.u32 2147483648, %v10208_v46  ;;  %6233 = vrcp.f32 %v10417_v18 }
 0x40e   : > { %v5149_v36 = vsel %vm10435_vm3, %v10238_v29, %v5145_v63  ;;  %v5173_v1 = vsub.f32 1.0, %v5172_v49  ;;  %v5202_v55 = vmul.f32 %v10429_v9, %v10378_v34  ;;  %v10449_v22 = vmul.f32 %v5049_v44, %v11225_v4  ;;  %vm10453_vm13 = vmor %vm5161_vm15, %vm5162_vm7  ;;  %v11233_v49 = vld [vmem:[#allocation43_spill] sm:$0xff] }
 0x40f   : > { %v5153_v38 = vor.u32 1.1754944e-38, %v5152_v0  ;;  %v5182_v46 = vand.u32 2147483648, %v10300_v35  ;;  %v5310_v24 = vadd.f32 %v5309_v40, %v5308_v58  ;;  %v5311_v29 = vsel %vm3668_vm0, %v10422_v13, 0.0  ;;  %v11234_v58 = vld [vmem:[#allocation24_spill] sm:$0xff] }
 0x410   : > { %v10460_v14 = vpop.eup %6231  ;;  %vm5151_vm2 = vcmp.eq.f32.partialorder %v5150_v16, 8.507059e+37  ;;  %v5164_v41 = vsel %vm10453_vm13, %v10272_v30, %v5160_v45  ;;  %v5180_v33 = vand.u32 2147483647, %v10300_v35  ;;  %v5188_v48 = vsub.f32 1.0, %v5187_v60  ;;  %v11232_v16 = vld [vmem:[#allocation10_spill] sm:$0xff] }
 0x411   : > { %v5154_v3 = vsel %vm5151_vm2, %v5153_v38, %v5149_v36  ;;  %vm5166_vm4 = vcmp.eq.f32.partialorder %v5165_v51, 8.507059e+37  ;;  %v5168_v39 = vor.u32 1.1754944e-38, %v5167_v62  ;;  %v5217_v23 = vmul.f32 %v10460_v14, %v10400_v57 }
 0x412   : > { %v5174_v21 = vmul.f32 %v10387_v42, %v5173_v1  ;;  %v5203_v26 = vsub.f32 1.0, %v5202_v55  ;;  %v5312_v31 = vadd.f32 %v5311_v29, %v5310_v24  ;;  %v5313_v37 = vsel %vm3668_vm0, %v10449_v22, 0.0 }
 0x413   : > { %v10471_v12 = vpop.eup %6233  ;;  %v5169_v47 = vsel %vm5166_vm4, %v5168_v39, %v5164_v41  ;;  %vm5176_vm8 = vweird.f32 %v10300_v35  ;;  %v5183_v30 = vor.u32 1.1754944e-38, %v5182_v46  ;;  %v10476_v15 = vmul.f32 %v11229_v17, %v11228_v54  ;;  %v5348_v41 = vld [vmem:[%s10858_s5] sm:$0x3] }
 0x414   : > { %vm10478_vm10 = vcmp.eq.f32.partialorder %v5180_v33, 8.507059e+37  ;;  %v5189_v25 = vmul.f32 %v10415_v56, %v5188_v48  ;;  %v5218_v50 = vsub.f32 1.0, %v5217_v23  ;;  %v5232_v27 = vmul.f32 %v10471_v12, %v10417_v18  ;;  %v11245_v48 = vld [vmem:[#allocation29_spill] sm:$0xff] }
 0x415   : > { %v10486_v28 = vmul.f32 %v5139_v43, %v11232_v16  ;;  %v5195_v5 = vand.u32 2147483647, %v10346_v59  ;;  %v5197_v63 = vand.u32 2147483648, %v10346_v59  ;;  %v10491_v61 = vmul.f32 %v5154_v3, %v11233_v49 }
 0x416   : > { %v5314_v0 = vadd.f32 %v5313_v37, %v5312_v31  ;;  %v5175_v8 = vadd.f32 %v10387_v42, %v5174_v21  ;;  %vm5177_vm12 = vweird.f32 %v10387_v42  ;;  %v5204_v45 = vmul.f32 %v10429_v9, %v5203_v26  ;;  %v11248_v37 = vld [vmem:[#allocation32_spill] sm:$0xff] }
 0x417   : > { %v5233_v60 = vsub.f32 1.0, %v5232_v27  ;;  %vm5191_vm5 = vweird.f32 %v10346_v59  ;;  %v5210_v43 = vand.u32 2147483647, %v10378_v34  ;;  %v10499_v40 = vmul.f32 %v5169_v47, %v11234_v58  ;;  %vm10508_vm11 = vmor %vm5176_vm8, %vm5177_vm12 }
 0x418   : > { %v5316_v51 = vadd.f32 %v11235_v11, %v5314_v0  ;;  %v5190_v62 = vadd.f32 %v10415_v56, %v5189_v25  ;;  %vm5192_vm9 = vweird.f32 %v10415_v56  ;;  %v5212_v36 = vand.u32 2147483648, %v10378_v34 }
 0x419   : > { %v5219_v1 = vmul.f32 %v10460_v14, %v5218_v50  ;;  %vm10512_vm1 = vcmp.eq.f32.partialorder %v5195_v5, 8.507059e+37  ;;  %v5198_v38 = vor.u32 1.1754944e-38, %v5197_v63  ;;  %vm5206_vm14 = vweird.f32 %v10378_v34  ;;  %vm10526_vm3 = vmor %vm5191_vm5, %vm5192_vm9 }
 0x41a   : > { %v5318_v46 = vadd.f32 %v11240_v32, %v5316_v51  ;;  %v5179_v24 = vsel %vm10508_vm11, %v10387_v42, %v5175_v8  ;;  %v5205_v29 = vadd.f32 %v10429_v9, %v5204_v45  ;;  %vm5207_vm7 = vweird.f32 %v10429_v9 }
 0x41b   : > { %v5234_v35 = vmul.f32 %v10471_v12, %v5233_v60  ;;  %vm10530_vm15 = vcmp.eq.f32.partialorder %v5210_v43, 8.507059e+37  ;;  %vm5221_vm13 = vweird.f32 %v10400_v57  ;;  %v5225_v42 = vand.u32 2147483647, %v10400_v57  ;;  %vm10546_vm4 = vmor %vm5206_vm14, %vm5207_vm7 }
 0x41c   : > { %v5320_v3 = vadd.f32 %v11245_v48, %v5318_v46  ;;  %v5194_v39 = vsel %vm10526_vm3, %v10415_v56, %v5190_v62  ;;  %v5213_v23 = vor.u32 1.1754944e-38, %v5212_v36  ;;  %v5220_v59 = vadd.f32 %v10460_v14, %v5219_v1 }
 0x41d   : > { %vm5222_vm2 = vweird.f32 %v10460_v14  ;;  %v5184_v21 = vsel %vm10478_vm10, %v5183_v30, %v5179_v24  ;;  %v5227_v31 = vand.u32 2147483648, %v10400_v57  ;;  %vm5236_vm8 = vweird.f32 %v10417_v18 }
 0x41e   : > { %v5322_v56 = vadd.f32 %v11248_v37, %v5320_v3  ;;  %v5209_v47 = vsel %vm10546_vm4, %v10429_v9, %v5205_v29  ;;  %v5235_v54 = vadd.f32 %v10471_v12, %v5234_v35  ;;  %vm5237_vm10 = vweird.f32 %v10471_v12  ;;  %vm10564_vm12 = vmor %vm5221_vm13, %vm5222_vm2  ;;  %v5354_v3 = vld [vmem:[%s10859_s6] sm:$0x3] }
 0x41f   : > { %v5323_v34 = vsel %vm3668_vm0, %v10476_v15, 0.0  ;;  %v5199_v30 = vsel %vm10512_vm1, %v5198_v38, %v5194_v39  ;;  %v5240_v44 = vand.u32 2147483647, %v10417_v18  ;;  %v5242_v9 = vand.u32 2147483648, %v10417_v18  ;;  %vm5238_vm5 = vmor %vm5236_vm8, %vm5237_vm10 }
 0x420   : > { %v5324_v25 = vadd.f32 %v5323_v34, %v5322_v56  ;;  %v5224_v50 = vsel %vm10564_vm12, %v10460_v14, %v5220_v59  ;;  %v10574_v27 = vmul.f32 %v5184_v21, %v10215_v19  ;;  %v5325_v16 = vsel %vm3668_vm0, %v10486_v28, 0.0 }
 0x421   : > { %v5327_v57 = vsel %vm3668_vm0, %v10491_v61, 0.0  ;;  %v5214_v5 = vsel %vm10530_vm15, %v5213_v23, %v5209_v47  ;;  %v5228_v63 = vor.u32 1.1754944e-38, %v5227_v31  ;;  %vm5226_vm9 = vcmp.eq.f32.partialorder %v5225_v42, 8.507059e+37 }
 0x422   : > { %v5326_v49 = vadd.f32 %v5325_v16, %v5324_v25  ;;  %v5239_v14 = vsel %vm5238_vm5, %v10471_v12, %v5235_v54  ;;  %v10586_v19 = vmul.f32 %v5199_v30, %v10244_v2  ;;  %v5329_v0 = vsel %vm3668_vm0, %v10499_v40, 0.0  ;;  %v5376_v16 = vld [vmem:[%s10860_s7] sm:$0x3] }
 0x423   : > { %v5229_v8 = vsel %vm5226_vm9, %v5228_v63, %v5224_v50  ;;  %v5243_v45 = vor.u32 1.1754944e-38, %v5242_v9  ;;  %vm5241_vm11 = vcmp.eq.f32.partialorder %v5240_v44, 8.507059e+37  ;;  %v10591_v43 = vmul.f32 %v5214_v5, %v10268_v7 }
 0x424   : > { %v5328_v60 = vadd.f32 %v5327_v57, %v5326_v49  ;;  %v5331_v18 = vsel %vm3668_vm0, %v10574_v27, 0.0  ;;  %v10596_v12 = vmul.f32 %v5229_v8, %v10287_v53  ;;  %v5333_v2 = vsel %vm3668_vm0, %v10586_v19, 0.0 }
 0x425   : > { %v5244_v58 = vsel %vm5241_vm11, %v5243_v45, %v5239_v14  ;;  %v5335_v36 = vsel %vm3668_vm0, %v10591_v43, 0.0  ;;  %vm5350_vm1 = vcmask 254976   ;;  %v6294_v23 = vmov 0  }
 0x426   : > { %v5330_v11 = vadd.f32 %v5329_v0, %v5328_v60  ;;  %v10601_v62 = vmul.f32 %v5244_v58, %v10317_v6  ;;  %v5337_v1 = vsel %vm3668_vm0, %v10596_v12, 0.0  ;;  %5965 = vset.pattern.permute.xlu2 %v6294_v23  ;;  %5966 = vset.pattern.permute.xlu0 %v6294_v23  ;;  %v5390_v60 = vld [vmem:[%s10861_s8] sm:$0x1]  ;;  %v5938_v58 = vld [vmem:[%s10862_s9 + $0x8] sm:$0xff] }
 0x427   : > { %5534 = vmatpush.bf16.msra.mxu1 %v5938_v58  ;;  %5944 = vmatpush.bf16.msra.mxu3 %v5938_v58 }
 0x428   : > { %v5332_v51 = vadd.f32 %v5331_v18, %v5330_v11  ;;  %v5339_v4 = vsel %vm3668_vm0, %v10601_v62, 0.0 }
 0x42a   : > { %v5334_v7 = vadd.f32 %v5333_v2, %v5332_v51  ;;  %v5937_v2 = vld [vmem:[%s10862_s9] sm:$0xff] }
 0x42b   : > { %5535 = vmatpush.bf16.msra.mxu1 %v5937_v2  ;;  %5945 = vmatpush.bf16.msra.mxu3 %v5937_v2 }
 0x42c   : > { %v5336_v55 = vadd.f32 %v5335_v36, %v5334_v7 }
 0x42e   : > { %v5338_v53 = vadd.f32 %v5337_v1, %v5336_v55 }
 0x430   : > { %v5340_v38 = vadd.f32 %v5339_v4, %v5338_v53 }
 0x432   : > { %v5341_v32 = vrot.slane %v5340_v38, 4 }
 0x434   : > { %v5342_v46 = vadd.f32 %v5341_v32, %v5340_v38 }
 0x436   : > { %v5343_v24 = vrot.slane %v5342_v46, 2 }
 0x438   : > { %v5344_v29 = vadd.f32 %v5343_v24, %v5342_v46 }
 0x43a   : > { %v5345_v35 = vrot.slane %v5344_v29, 1 }
 0x43c   : > { %v5346_v6 = vadd.f32 %v5345_v35, %v5344_v29 }
 0x43e   : > { %v5347_v33 = vmul.f32 0.00390625, %v5346_v6 }
 0x440   : > { %v5349_v42 = vmul.f32 %v5348_v41, %v5347_v33  ;;  %v11251_v41 = vld [vmem:[#allocation28_spill] sm:$0xff] }
 0x442   : > { %v5351_v48 = vsel %vm5350_vm1, %v5349_v42, 0.0  ;;  %v11252_v42 = vld [vmem:[#allocation34_spill] sm:$0xff] }
 0x443   : > { %5352 = vadd.xlane.f32.xlu1 %v5351_v48 }
 0x4b6   : > { %v5353_v39 = vpop.xlane.xlu1 %5352 }
 0x4b7   : > { %v5355_v59 = vadd.f32 %v5354_v3, %v5353_v39  ;;  %v11253_v39 = vld [vmem:[#allocation19_spill] sm:$0xff] }
 0x4b9   : > { %v5904_v21 = vmul.f32 -1.442695, %v5355_v59 }
 0x4bb   : > { %6235 = vpow2.f32 %v5904_v21 }
 0x4c1   : > { %v6236_v26 = vpop.eup %6235 }
 0x4c2   : > { %v5359_v31 = vadd.f32 1.0, %v6236_v26  ;;  %v11254_v26 = vld [vmem:[#allocation37_spill] sm:$0xff] }
 0x4c4   : > { %6237 = vrcp.f32 %v5359_v31  ;;  %v5371_v54 = vand.u32 2147483648, %v5359_v31  ;;  %v5369_v30 = vand.u32 2147483647, %v5359_v31  ;;  %vm5365_vm7 = vweird.f32 %v5359_v31 }
 0x4c6   : > { %v5372_v44 = vor.u32 1.1754944e-38, %v5371_v54  ;;  %vm5370_vm15 = vcmp.eq.f32.partialorder %v5369_v30, 8.507059e+37 }
 0x4ca   : > { %v6238_v37 = vpop.eup %6237 }
 0x4cb   : > { %v5361_v56 = vmul.f32 %v6238_v37, %v5359_v31  ;;  %vm5366_vm14 = vweird.f32 %v6238_v37 }
 0x4cc   : > { %vm5367_vm3 = vmor %vm5365_vm7, %vm5366_vm14 }
 0x4cd   : > { %v5362_v47 = vsub.f32 1.0, %v5361_v56 }
 0x4cf   : > { %v5363_v34 = vmul.f32 %v6238_v37, %v5362_v47  ;;  %v11256_v47 = vld [vmem:[#allocation52_spill] sm:$0xff] }
 0x4d1   : > { %v5364_v17 = vadd.f32 %v6238_v37, %v5363_v34  ;;  %v11257_v34 = vld [vmem:[#allocation5_spill] sm:$0xff] }
 0x4d3   : > { %v5368_v9 = vsel %vm5367_vm3, %v6238_v37, %v5364_v17  ;;  %v11255_v37 = vld [vmem:[#allocation8_spill] sm:$0xff] }
 0x4d4   : > { %v5373_v25 = vsel %vm5370_vm15, %v5372_v44, %v5368_v9  ;;  %v11258_v44 = vld [vmem:[#allocation50_spill] sm:$0xff] }
 0x4d5   : > { %v5375_v50 = vmul.f32 %v5373_v25, %v5355_v59  ;;  %v11259_v25 = vld [vmem:[#allocation58_spill] sm:$0xff] }
 0x4d7   : > { %5379 = vperm.xlu2 %5965, %v5375_v50  }
 0x531   : > { %v5380_v57 = vpop.permute.xlu2 %5379 }
 0x532   : > { %v5382_v5 = vmul.f32 %v5380_v57, %v5376_v16  ;;  %v11260_v16 = vld [vmem:[#allocation4_spill] sm:$0xff] }
 0x534   : > { %v5383_v63 = vsel %vm5350_vm1, %v5382_v5, 0.0 }
 0x535   : > { %v5384_v49 = vrot.slane %v5383_v63, 4 }
 0x537   : > { %v5385_v14 = vadd.f32 %v5384_v49, %v5383_v63 }
 0x539   : > { %v5386_v0 = vrot.slane %v5385_v14, 2 }
 0x53b   : > { %v5387_v8 = vadd.f32 %v5386_v0, %v5385_v14  ;;  %v11261_v14 = vld [vmem:[#allocation59_spill] sm:$0xff] }
 0x53d   : > { %v5388_v45 = vrot.slane %v5387_v8, 1 }
 0x53f   : > { %v5389_v18 = vadd.f32 %v5388_v45, %v5387_v8  ;;  %v11262_v8 = vld [vmem:[#allocation9_spill] sm:$0xff] }
 0x541   : > { %v5391_v11 = vadd.f32 %v5390_v60, %v5389_v18 }
 0x543   : > { %v5905_v51 = vmul.f32 -1.442695, %v5391_v11  ;;  %v11263_v11 = vld [vmem:[#allocation38_spill] sm:$0xff] }
 0x545   : > { %6239 = vpow2.f32 %v5905_v51  ;;  %v11264_v51 = vld [vmem:[#allocation23_spill] sm:$0xff] }
 0x54b   : > { %v6240_v36 = vpop.eup %6239 }
 0x54c   : > { %v5395_v7 = vadd.f32 1.0, %v6240_v36 }
 0x54e   : > { %6241 = vrcp.f32 %v5395_v7  ;;  %v5407_v53 = vand.u32 2147483648, %v5395_v7  ;;  %v5405_v32 = vand.u32 2147483647, %v5395_v7  ;;  %vm5401_vm2 = vweird.f32 %v5395_v7 }
 0x550   : > { %v5408_v24 = vor.u32 1.1754944e-38, %v5407_v53  ;;  %vm5406_vm8 = vcmp.eq.f32.partialorder %v5405_v32, 8.507059e+37  ;;  %v11266_v53 = vld [vmem:[#allocation33_spill] sm:$0xff] }
 0x554   : > { %v6242_v1 = vpop.eup %6241 }
 0x555   : > { %v5397_v55 = vmul.f32 %v6242_v1, %v5395_v7  ;;  %vm5402_vm13 = vweird.f32 %v6242_v1 }
 0x556   : > { %vm5403_vm4 = vmor %vm5401_vm2, %vm5402_vm13 }
 0x557   : > { %v5398_v4 = vsub.f32 1.0, %v5397_v55  ;;  %v11265_v55 = vld [vmem:[#allocation18_spill] sm:$0xff] }
 0x559   : > { %v5399_v38 = vmul.f32 %v6242_v1, %v5398_v4 }
 0x55b   : > { %v5400_v46 = vadd.f32 %v6242_v1, %v5399_v38 }
 0x55d   : > { %v5404_v29 = vsel %vm5403_vm4, %v6242_v1, %v5400_v46 }
 0x55e   : > { %v5409_v35 = vsel %vm5406_vm8, %v5408_v24, %v5404_v29  ;;  %v11267_v24 = vld [vmem:[#allocation31_spill] sm:$0xff] }
 0x55f   : > { %v10629_v6 = vperm.slane %v5409_v35, 0  ;;  %v11268_v35 = vld [vmem:[#allocation30_spill] sm:$0xff] }
 0x561   : > { %v5412_v33 = vmul.f32 %v10629_v6, %v11251_v41  ;;  %v5413_v48 = vmul.f32 %v10629_v6, %v11252_v42  ;;  %v5430_v3 = vmul.f32 %v10629_v6, %v10449_v22  ;;  %v5431_v23 = vmul.f32 %v10629_v6, %v11253_v39 }
 0x562   : > { %v5414_v31 = vmul.f32 %v10629_v6, %v11254_v26  ;;  %v5415_v56 = vmul.f32 %v10629_v6, %v11255_v37  ;;  %v5432_v54 = vmul.f32 %v10629_v6, %v11256_v47  ;;  %v5433_v22 = vmul.f32 %v10629_v6, %v11257_v34  ;;  %v5618_v37 = vld [vmem:[%s6380_s22 + $0x19] sm:$0xff] }
 0x563   : > { %v5444_v59 = vpack.c.bf16 %v5413_v48, %v5412_v33  ;;  %v5453_v21 = vpack.c.bf16 %v5431_v23, %v5430_v3  ;;  %v5416_v9 = vmul.f32 %v10629_v6, %v11258_v44  ;;  %v5417_v50 = vmul.f32 %v10629_v6, %v11259_v25  ;;  %v5619_v44 = vld [vmem:[%s6380_s22 + $0x21] sm:$0xff] }
 0x564   : > { %v5445_v30 = vpack.c.bf16 %v5415_v56, %v5414_v31  ;;  %v5454_v17 = vpack.c.bf16 %v5433_v22, %v5432_v54  ;;  %v5434_v57 = vmul.f32 %v10629_v6, %v11260_v16  ;;  %v5435_v5 = vmul.f32 %v10629_v6, %v10476_v15  ;;  %v5636_v22 = vld [vmem:[%s6380_s22 + $0xa9] sm:$0xff] }
 0x565   : > { %5914 = vmatmul.msk.bf16.vlgmr.msra.gmra.mxu1 %vm3668_vm0, %v5444_v59  ;;  %5923 = vmatmul.msk.bf16.vlgmr.msra.gmra.mxu3 %vm3668_vm0, %v5453_v21  ;;  %v5446_v63 = vpack.c.bf16 %v5417_v50, %v5416_v9  ;;  %v5418_v0 = vmul.f32 %v10629_v6, %v11261_v14  ;;  %v5419_v45 = vmul.f32 %v10629_v6, %v11262_v8  ;;  %v5617_v59 = vld [vmem:[%s6380_s22 + $0x11] sm:$0xff] }
 0x566   : > { %v5455_v49 = vpack.c.bf16 %v5435_v5, %v5434_v57  ;;  %v5436_v60 = vmul.f32 %v10629_v6, %v10486_v28  ;;  %v5437_v18 = vmul.f32 %v10629_v6, %v10491_v61  ;;  %v5420_v2 = vmul.f32 %v10629_v6, %v11263_v11  ;;  %v5637_v57 = vld [vmem:[%s6380_s22 + $0xb1] sm:$0xff] }
 0x567   : > { %v5447_v58 = vpack.c.bf16 %v5419_v45, %v5418_v0  ;;  %v5421_v36 = vmul.f32 %v10629_v6, %v11264_v51  ;;  %v5438_v7 = vmul.f32 %v10629_v6, %v10499_v40  ;;  %v5439_v28 = vmul.f32 %v10629_v6, %v10574_v27 }
 0x568   : > { %v5456_v15 = vpack.c.bf16 %v5437_v18, %v5436_v60  ;;  %v5422_v4 = vmul.f32 %v10629_v6, %v11265_v55  ;;  %v5423_v38 = vmul.f32 %v10629_v6, %v11266_v53  ;;  %v5440_v32 = vmul.f32 %v10629_v6, %v10586_v19  ;;  %v5638_v60 = vld [vmem:[%s6380_s22 + $0xb9] sm:$0xff] }
 0x569   : > { %v5448_v1 = vpack.c.bf16 %v5421_v36, %v5420_v2  ;;  %v5457_v61 = vpack.c.bf16 %v5439_v28, %v5438_v7  ;;  %v5441_v40 = vmul.f32 %v10629_v6, %v10591_v43  ;;  %v5424_v29 = vmul.f32 %v10629_v6, %v11267_v24  ;;  %v5639_v7 = vld [vmem:[%s6380_s22 + $0xc1] sm:$0xff] }
 0x56a   : > { %v5449_v46 = vpack.c.bf16 %v5423_v38, %v5422_v4  ;;  %v5425_v41 = vmul.f32 %v10629_v6, %v11268_v35  ;;  %v5442_v19 = vmul.f32 %v10629_v6, %v10596_v12  ;;  %v5443_v43 = vmul.f32 %v10629_v6, %v10601_v62  ;;  %v10709_v12 = vld [vmem:[%s10863_s10] ss:$0 sm:$0xff] }
 0x56b   : > { %v5458_v27 = vpack.c.bf16 %v5441_v40, %v5440_v32  ;;  %v5426_v48 = vmul.f32 %v10629_v6, %v10362_v20  ;;  %v5427_v3 = vmul.f32 %v10629_v6, %v10385_v10  ;;  %v5428_v62 = vmul.f32 %v10629_v6, %v10404_v52  ;;  %v5640_v32 = vld [vmem:[%s6380_s22 + $0xc9] sm:$0xff] }
 0x56c   : > { %v5450_v33 = vpack.c.bf16 %v5425_v41, %v5424_v29  ;;  %v5459_v42 = vpack.c.bf16 %v5443_v43, %v5442_v19  ;;  %v5429_v23 = vmul.f32 %v10629_v6, %v10422_v13  ;;  %v5635_v13 = vld [vmem:[%s6380_s22 + $0xa1] sm:$0xff]  ;;  %v5641_v19 = vld [vmem:[%s6380_s22 + $0xd1] sm:$0xff] }
 0x56d   : > { %v5451_v39 = vpack.c.bf16 %v5427_v3, %v5426_v48 }
 0x56e   : > { %v5452_v21 = vpack.c.bf16 %v5429_v23, %v5428_v62  ;;  %v5642_v23 = vld [vmem:[%s6380_s22 + $0xd9] sm:$0xff] }
 0x575   : > { %5915 = vmatmul.msk.bf16.gmra.mxu1 %vm3668_vm0, %v5445_v30  ;;  %5924 = vmatmul.msk.bf16.gmra.mxu3 %vm3668_vm0, %v5454_v17 }
 0x585   : > { %5916 = vmatmul.msk.bf16.gmra.mxu1 %vm3668_vm0, %v5446_v63  ;;  %5925 = vmatmul.msk.bf16.gmra.mxu3 %vm3668_vm0, %v5455_v49  ;;  %v5620_v49 = vld [vmem:[%s6380_s22 + $0x29] sm:$0xff] }
 0x595   : > { %5917 = vmatmul.msk.bf16.gmra.mxu1 %vm3668_vm0, %v5447_v58  ;;  %5926 = vmatmul.msk.bf16.gmra.mxu3 %vm3668_vm0, %v5456_v15  ;;  %v5621_v15 = vld [vmem:[%s6380_s22 + $0x31] sm:$0xff] }
 0x5a5   : > { %5918 = vmatmul.msk.bf16.gmra.mxu1 %vm3668_vm0, %v5448_v1  ;;  %5927 = vmatmul.msk.bf16.gmra.mxu3 %vm3668_vm0, %v5457_v61  ;;  %v5622_v61 = vld [vmem:[%s6380_s22 + $0x39] sm:$0xff] }
 0x5b5   : > { %5919 = vmatmul.msk.bf16.gmra.mxu1 %vm3668_vm0, %v5449_v46  ;;  %5928 = vmatmul.msk.bf16.gmra.mxu3 %vm3668_vm0, %v5458_v27  ;;  %v5623_v27 = vld [vmem:[%s6380_s22 + $0x41] sm:$0xff] }
 0x5c5   : > { %5920 = vmatmul.msk.bf16.gmra.mxu1 %vm3668_vm0, %v5450_v33  ;;  %5929 = vmatmul.msk.bf16.gmra.mxu3 %vm3668_vm0, %v5459_v42  ;;  %v5624_v42 = vld [vmem:[%s6380_s22 + $0x49] sm:$0xff] }
 0x5d5   : > { %5921 = vmatmul.msk.bf16.gmra.mxu1 %vm3668_vm0, %v5451_v39 }
 0x5e2   : > { %v5537_v20 = vpop.f32.mrf.mxu1 }
 0x5e3   : > { %v5538_v10 = vadd.f32 %v10709_v12, %v5537_v20 }
 0x5e5   : > { %v5649_v26 = vadd.f32 %v5617_v59, %v5538_v10  ;;  %5922 = vmatmul.msk.bf16.gmra.mxu1 %vm3668_vm0, %v5452_v21  ;;  %v5625_v10 = vld [vmem:[%s6380_s22 + $0x51] sm:$0xff] }
 0x5e7   : > { %5681 = vst.msk [vmem:[%s10721_s25] sm:$0xff] %vm1061_vm6, %v5649_v26 }
 0x5e8   : > { %v5582_v52 = vpop.f32.mrf.mxu3 }
 0x5e9   : > { %v5583_v6 = vadd.f32 %v10709_v12, %v5582_v52 }
 0x5ea   : > { %v5539_v31 = vpop.f32.mrf.mxu1 }
 0x5eb   : > { %v5667_v56 = vadd.f32 %v5635_v13, %v5583_v6  ;;  %v5540_v47 = vadd.f32 %v10709_v12, %v5539_v31  ;;  %v5643_v6 = vld [vmem:[%s6380_s22 + $0xe1] sm:$0xff] }
 0x5ed   : > { %5699 = vst.msk [vmem:[%s10721_s25 + $0x90] sm:$0xff] %vm1061_vm6, %v5667_v56  ;;  %v5650_v54 = vadd.f32 %v5618_v37, %v5540_v47  ;;  %v5626_v56 = vld [vmem:[%s6380_s22 + $0x59] sm:$0xff] }
 0x5ef   : > { %5682 = vst.msk [vmem:[%s10721_s25 + $0x8] sm:$0xff] %vm1061_vm6, %v5650_v54 }
 0x5f0   : > { %v5584_v34 = vpop.f32.mrf.mxu3 }
 0x5f1   : > { %v5585_v30 = vadd.f32 %v10709_v12, %v5584_v34 }
 0x5f2   : > { %v5542_v17 = vpop.f32.mrf.mxu1 }
 0x5f3   : > { %v5668_v9 = vadd.f32 %v5636_v22, %v5585_v30  ;;  %v5543_v25 = vadd.f32 %v10709_v12, %v5542_v17  ;;  %v5644_v30 = vld [vmem:[%s6380_s22 + $0xe9] sm:$0xff] }
 0x5f5   : > { %5700 = vst.msk [vmem:[%s10721_s25 + $0x98] sm:$0xff] %vm1061_vm6, %v5668_v9  ;;  %v5651_v50 = vadd.f32 %v5619_v44, %v5543_v25  ;;  %v5627_v9 = vld [vmem:[%s6380_s22 + $0x61] sm:$0xff] }
 0x5f7   : > { %5683 = vst.msk [vmem:[%s10721_s25 + $0x10] sm:$0xff] %vm1061_vm6, %v5651_v50 }
 0x5f8   : > { %v5587_v16 = vpop.f32.mrf.mxu3 }
 0x5f9   : > { %v5588_v5 = vadd.f32 %v10709_v12, %v5587_v16 }
 0x5fa   : > { %v5544_v63 = vpop.f32.mrf.mxu1 }
 0x5fb   : > { %v5669_v14 = vadd.f32 %v5637_v57, %v5588_v5  ;;  %v5545_v0 = vadd.f32 %v10709_v12, %v5544_v63  ;;  %v5645_v5 = vld [vmem:[%s6380_s22 + $0xf1] sm:$0xff] }
 0x5fd   : > { %5701 = vst.msk [vmem:[%s10721_s25 + $0xa0] sm:$0xff] %vm1061_vm6, %v5669_v14  ;;  %v5652_v8 = vadd.f32 %v5620_v49, %v5545_v0  ;;  %v5628_v14 = vld [vmem:[%s6380_s22 + $0x69] sm:$0xff] }
 0x5ff   : > { %5684 = vst.msk [vmem:[%s10721_s25 + $0x18] sm:$0xff] %vm1061_vm6, %v5652_v8 }
 0x600   : > { %v5589_v45 = vpop.f32.mrf.mxu3 }
 0x601   : > { %v5590_v18 = vadd.f32 %v10709_v12, %v5589_v45 }
 0x602   : > { %v5547_v58 = vpop.f32.mrf.mxu1 }
 0x603   : > { %v5670_v11 = vadd.f32 %v5638_v60, %v5590_v18  ;;  %v5548_v2 = vadd.f32 %v10709_v12, %v5547_v58  ;;  %v5646_v18 = vld [vmem:[%s6380_s22 + $0xf9] sm:$0xff] }
 0x605   : > { %5702 = vst.msk [vmem:[%s10721_s25 + $0xa8] sm:$0xff] %vm1061_vm6, %v5670_v11  ;;  %v5653_v51 = vadd.f32 %v5621_v15, %v5548_v2  ;;  %v5629_v11 = vld [vmem:[%s6380_s22 + $0x71] sm:$0xff] }
 0x607   : > { %5685 = vst.msk [vmem:[%s10721_s25 + $0x20] sm:$0xff] %vm1061_vm6, %v5653_v51 }
 0x608   : > { %v5592_v36 = vpop.f32.mrf.mxu3 }
 0x609   : > { %v5593_v28 = vadd.f32 %v10709_v12, %v5592_v36 }
 0x60a   : > { %v5549_v1 = vpop.f32.mrf.mxu1 }
 0x60b   : > { %v5671_v55 = vadd.f32 %v5639_v7, %v5593_v28  ;;  %v5550_v4 = vadd.f32 %v10709_v12, %v5549_v1  ;;  %v5647_v28 = vld [vmem:[%s6380_s22 + $0x101] sm:$0xff] }
 0x60d   : > { %5703 = vst.msk [vmem:[%s10721_s25 + $0xb0] sm:$0xff] %vm1061_vm6, %v5671_v55  ;;  %v5654_v53 = vadd.f32 %v5622_v61, %v5550_v4  ;;  %v5630_v55 = vld [vmem:[%s6380_s22 + $0x79] sm:$0xff] }
 0x60f   : > { %5686 = vst.msk [vmem:[%s10721_s25 + $0x28] sm:$0xff] %vm1061_vm6, %v5654_v53 }
 0x610   : > { %v5594_v38 = vpop.f32.mrf.mxu3 }
 0x611   : > { %v5595_v40 = vadd.f32 %v10709_v12, %v5594_v38 }
 0x612   : > { %v5552_v46 = vpop.f32.mrf.mxu1 }
 0x613   : > { %v5672_v24 = vadd.f32 %v5640_v32, %v5595_v40  ;;  %v5553_v29 = vadd.f32 %v10709_v12, %v5552_v46  ;;  %v5648_v40 = vld [vmem:[%s6380_s22 + $0x109] sm:$0xff] }
 0x615   : > { %5704 = vst.msk [vmem:[%s10721_s25 + $0xb8] sm:$0xff] %vm1061_vm6, %v5672_v24  ;;  %v5655_v35 = vadd.f32 %v5623_v27, %v5553_v29  ;;  %v5631_v24 = vld [vmem:[%s6380_s22 + $0x81] sm:$0xff] }
 0x617   : > { %5687 = vst.msk [vmem:[%s10721_s25 + $0x30] sm:$0xff] %vm1061_vm6, %v5655_v35 }
 0x618   : > { %v5597_v41 = vpop.f32.mrf.mxu3 }
 0x619   : > { %v5598_v43 = vadd.f32 %v10709_v12, %v5597_v41 }
 0x61a   : > { %v5554_v33 = vpop.f32.mrf.mxu1 }
 0x61b   : > { %v5673_v48 = vadd.f32 %v5641_v19, %v5598_v43  ;;  %v5555_v3 = vadd.f32 %v10709_v12, %v5554_v33  ;;  %v5632_v43 = vld [vmem:[%s6380_s22 + $0x89] sm:$0xff] }
 0x61d   : > { %5705 = vst.msk [vmem:[%s10721_s25 + $0xc0] sm:$0xff] %vm1061_vm6, %v5673_v48  ;;  %v5656_v39 = vadd.f32 %v5624_v42, %v5555_v3  ;;  %v5633_v3 = vld [vmem:[%s6380_s22 + $0x91] sm:$0xff] }
 0x61f   : > { %5688 = vst.msk [vmem:[%s10721_s25 + $0x38] sm:$0xff] %vm1061_vm6, %v5656_v39 }
 0x620   : > { %v5599_v62 = vpop.f32.mrf.mxu3 }
 0x621   : > { %v5600_v20 = vadd.f32 %v10709_v12, %v5599_v62 }
 0x622   : > { %v5557_v59 = vpop.f32.mrf.mxu1 }
 0x623   : > { %v5674_v21 = vadd.f32 %v5642_v23, %v5600_v20  ;;  %v5558_v26 = vadd.f32 %v10709_v12, %v5557_v59  ;;  %v5634_v20 = vld [vmem:[%s6380_s22 + $0x99] sm:$0xff] }
 0x625   : > { %5706 = vst.msk [vmem:[%s10721_s25 + $0xc8] sm:$0xff] %vm1061_vm6, %v5674_v21  ;;  %v5657_v52 = vadd.f32 %v5625_v10, %v5558_v26 }
 0x627   : > { %5689 = vst.msk [vmem:[%s10721_s25 + $0x40] sm:$0xff] %vm1061_vm6, %v5657_v52 }
 0x628   : > { %v5602_v13 = vpop.f32.mrf.mxu3 }
 0x629   : > { %v5603_v31 = vadd.f32 %v10709_v12, %v5602_v13 }
 0x62a   : > { %v5559_v37 = vpop.f32.mrf.mxu1 }
 0x62b   : > { %v5675_v47 = vadd.f32 %v5643_v6, %v5603_v31  ;;  %v5560_v54 = vadd.f32 %v10709_v12, %v5559_v37 }
 0x62d   : > { %5707 = vst.msk [vmem:[%s10721_s25 + $0xd0] sm:$0xff] %vm1061_vm6, %v5675_v47  ;;  %v5658_v34 = vadd.f32 %v5626_v56, %v5560_v54 }
 0x62f   : > { %5690 = vst.msk [vmem:[%s10721_s25 + $0x48] sm:$0xff] %vm1061_vm6, %v5658_v34 }
 0x630   : > { %v5604_v22 = vpop.f32.mrf.mxu3 }
 0x631   : > { %v5605_v17 = vadd.f32 %v10709_v12, %v5604_v22 }
 0x632   : > { %v5562_v44 = vpop.f32.mrf.mxu1 }
 0x633   : > { %v5676_v25 = vadd.f32 %v5644_v30, %v5605_v17  ;;  %v5563_v50 = vadd.f32 %v10709_v12, %v5562_v44 }
 0x635   : > { %5708 = vst.msk [vmem:[%s10721_s25 + $0xd8] sm:$0xff] %vm1061_vm6, %v5676_v25  ;;  %v5659_v16 = vadd.f32 %v5627_v9, %v5563_v50 }
 0x637   : > { %5691 = vst.msk [vmem:[%s10721_s25 + $0x50] sm:$0xff] %vm1061_vm6, %v5659_v16 }
 0x638   : > { %v5607_v57 = vpop.f32.mrf.mxu3 }
 0x639   : > { %v5608_v63 = vadd.f32 %v10709_v12, %v5607_v57 }
 0x63a   : > { %v5564_v49 = vpop.f32.mrf.mxu1 }
 0x63b   : > { %v5677_v0 = vadd.f32 %v5645_v5, %v5608_v63  ;;  %v5565_v8 = vadd.f32 %v10709_v12, %v5564_v49 }
 0x63d   : > { %5709 = vst.msk [vmem:[%s10721_s25 + $0xe0] sm:$0xff] %vm1061_vm6, %v5677_v0  ;;  %v5660_v45 = vadd.f32 %v5628_v14, %v5565_v8 }
 0x63f   : > { %5692 = vst.msk [vmem:[%s10721_s25 + $0x58] sm:$0xff] %vm1061_vm6, %v5660_v45 }
 0x640   : > { %v5609_v60 = vpop.f32.mrf.mxu3 }
 0x641   : > { %v5610_v58 = vadd.f32 %v10709_v12, %v5609_v60 }
 0x642   : > { %v5567_v15 = vpop.f32.mrf.mxu1 }
 0x643   : > { %v5678_v2 = vadd.f32 %v5646_v18, %v5610_v58  ;;  %v5568_v51 = vadd.f32 %v10709_v12, %v5567_v15 }
 0x645   : > { %5710 = vst.msk [vmem:[%s10721_s25 + $0xe8] sm:$0xff] %vm1061_vm6, %v5678_v2  ;;  %v5661_v36 = vadd.f32 %v5629_v11, %v5568_v51 }
 0x647   : > { %5693 = vst.msk [vmem:[%s10721_s25 + $0x60] sm:$0xff] %vm1061_vm6, %v5661_v36 }
 0x648   : > { %v5612_v7 = vpop.f32.mrf.mxu3 }
 0x649   : > { %v5613_v1 = vadd.f32 %v10709_v12, %v5612_v7 }
 0x64a   : > { %v5569_v61 = vpop.f32.mrf.mxu1 }
 0x64b   : > { %v5679_v4 = vadd.f32 %v5647_v28, %v5613_v1  ;;  %v5570_v53 = vadd.f32 %v10709_v12, %v5569_v61 }
 0x64d   : > { %5711 = vst.msk [vmem:[%s10721_s25 + $0xf0] sm:$0xff] %vm1061_vm6, %v5679_v4  ;;  %v5662_v38 = vadd.f32 %v5630_v55, %v5570_v53 }
 0x64f   : > { %5694 = vst.msk [vmem:[%s10721_s25 + $0x68] sm:$0xff] %vm1061_vm6, %v5662_v38 }
 0x650   : > { %v5614_v32 = vpop.f32.mrf.mxu3 }
 0x651   : > { %v5615_v46 = vadd.f32 %v10709_v12, %v5614_v32 }
 0x652   : > { %v5572_v27 = vpop.f32.mrf.mxu1 }
 0x653   : > { %v5680_v29 = vadd.f32 %v5648_v40, %v5615_v46  ;;  %v5573_v35 = vadd.f32 %v10709_v12, %v5572_v27 }
 0x655   : > { %5712 = vst.msk [vmem:[%s10721_s25 + $0xf8] sm:$0xff] %vm1061_vm6, %v5680_v29  ;;  %v5663_v41 = vadd.f32 %v5631_v24, %v5573_v35 }
 0x657   : > { %5695 = vst.msk [vmem:[%s10721_s25 + $0x70] sm:$0xff] %vm1061_vm6, %v5663_v41 }
 0x65a   : > { %v5574_v19 = vpop.f32.mrf.mxu1 }
 0x65b   : > { %v5575_v33 = vadd.f32 %v10709_v12, %v5574_v19 }
 0x65d   : > { %v5664_v42 = vadd.f32 %v5632_v43, %v5575_v33 }
 0x65f   : > { %5696 = vst.msk [vmem:[%s10721_s25 + $0x78] sm:$0xff] %vm1061_vm6, %v5664_v42 }
 0x662   : > { %v5577_v48 = vpop.f32.mrf.mxu1 }
 0x663   : > { %v5578_v39 = vadd.f32 %v10709_v12, %v5577_v48 }
 0x665   : > { %v5665_v62 = vadd.f32 %v5633_v3, %v5578_v39 }
 0x667   : > { %5697 = vst.msk [vmem:[%s10721_s25 + $0x80] sm:$0xff] %vm1061_vm6, %v5665_v62 }
 0x66a   : > { %v5579_v23 = vpop.f32.mrf.mxu1 }
 0x66b   : > { %v5580_v59 = vadd.f32 %v10709_v12, %v5579_v23 }
 0x66d   : > { %v5666_v10 = vadd.f32 %v5634_v20, %v5580_v59 }
 0x66f   : > { %5698 = vst.msk [vmem:[%s10721_s25 + $0x88] sm:$0xff] %vm1061_vm6, %v5666_v10 }
 0x670 PF: > { %s21_s17 = sadd.s32 1, %s6283_s17  }
 0x671   : > { %p18_p4 = scmp.ge.s32.totalorder %s21_s17, 4  }
 0x673   :  { %20 = sbr.rel (!%p18_p4) target bundleno = 1 (0x1), region = 94 }

</bundles_post_ra>
